<compile_context>
chip_gen: v7x
topology: tpu7x:2x2x1
jax: 0.10.0
libtpu: 0.0.40
codegen_flags: <defaults>
</compile_context>

<pallas_src>
import functools

import jax
import jax.numpy as jnp
from jax.experimental import pallas as pl
from jax.experimental.pallas import tpu as pltpu

BN_EPS = 1e-5
VMEM_LIMIT = 32 * 1024 * 1024

# (in_channels, out_channels, stride) for each MobileNetConvBlock
BLOCKS = [(32, 64, 1), (64, 128, 2), (128, 128, 1),
          (128, 256, 2), (256, 256, 1), (256, 512, 2)]


def _round_up(v, m):
    return ((v + m - 1) // m) * m


# ---------------------------- Pallas kernels ----------------------------

def _matmul_bias_relu_kernel(x_ref, w_ref, b_ref, o_ref):
    # y = relu(x @ w + b); BN scale folded into w (bf16 MXU, f32 accumulate).
    acc = jnp.dot(x_ref[...], w_ref[...], preferred_element_type=jnp.float32)
    o_ref[...] = jnp.maximum(acc + b_ref[...], 0.0).astype(o_ref.dtype)


def matmul_bias_relu(x_bf16, w_bf16, bias_f32, *, tm=256):
    M, K = x_bf16.shape
    nout = w_bf16.shape[1]
    mp = _round_up(M, tm)                      # pad M instead of tm=M fallback
    if mp != M:
        x_bf16 = jnp.pad(x_bf16, ((0, mp - M), (0, 0)))
    out = pl.pallas_call(
        _matmul_bias_relu_kernel,
        out_shape=jax.ShapeDtypeStruct((mp, nout), jnp.bfloat16),
        grid=(mp // tm,),
        in_specs=[pl.BlockSpec((tm, K), lambda i: (i, 0)),
                  pl.BlockSpec((K, nout), lambda i: (0, 0)),
                  pl.BlockSpec((1, nout), lambda i: (0, 0))],
        out_specs=pl.BlockSpec((tm, nout), lambda i: (i, 0)),
        compiler_params=pltpu.CompilerParams(
            dimension_semantics=("parallel",),
            vmem_limit_bytes=VMEM_LIMIT),
    )(x_bf16, w_bf16, bias_f32)
    return out[:M] if mp != M else out


def _dw_taps_relu(planes_ref, dww_ref, dwb_ref, *, stride, hs, ho, wo_t):
    """9-tap depthwise MAC (+BN bias +ReLU) built from in-VMEM slices."""
    xf = planes_ref[0].astype(jnp.float32)        # (P*Hs, Ws, C) upcast once
    dww = dww_ref[...]                            # (9, C) f32, BN scale folded
    acc = None
    for kh in range(3):
        for kw in range(3):
            if stride == 1:
                r0, c0 = kh, kw
            else:  # stride 2: taps come from the parity plane p = 2*(kh%2)+(kw%2)
                p = 2 * (kh % 2) + (kw % 2)
                r0, c0 = p * hs + kh // 2, kw // 2
            tap = xf[r0:r0 + ho, c0:c0 + wo_t, :]
            term = tap * dww[3 * kh + kw]
            acc = term if acc is None else acc + term
    h = jnp.maximum(acc + dwb_ref[...], 0.0)      # (Ho, Wo_t, C) f32
    # Wo_t is a multiple of 8 -> this reshape is layout-trivial.
    return h.reshape(ho * wo_t, h.shape[-1])


def _dw_sep_kernel(planes_ref, dww_ref, dwb_ref, pww_ref, pwb_ref, o_ref,
                   *, stride, hs, ho, wo_t):
    h = _dw_taps_relu(planes_ref, dww_ref, dwb_ref,
                      stride=stride, hs=hs, ho=ho, wo_t=wo_t)
    # Pointwise 1x1 conv on the MXU (bf16 operands, f32 acc) + BN bias + ReLU.
    y = jnp.dot(h.astype(jnp.bfloat16), pww_ref[...],
                preferred_element_type=jnp.float32)
    o_ref[0] = jnp.maximum(y + pwb_ref[...], 0.0).astype(o_ref.dtype)


def dw_sep_block(planes, dww, dwb, pww, pwb, *, stride, hs, ho, wo_t):
    n, phs, ws, c = planes.shape
    cout = pww.shape[1]
    kern = functools.partial(_dw_sep_kernel, stride=stride, hs=hs, ho=ho,
                             wo_t=wo_t)
    return pl.pallas_call(
        kern,
        out_shape=jax.ShapeDtypeStruct((n, ho * wo_t, cout), jnp.bfloat16),
        grid=(n,),
        in_specs=[pl.BlockSpec((1, phs, ws, c), lambda i: (i, 0, 0, 0)),
                  pl.BlockSpec((9, c), lambda i: (0, 0)),
                  pl.BlockSpec((1, c), lambda i: (0, 0)),
                  pl.BlockSpec((c, cout), lambda i: (0, 0)),
                  pl.BlockSpec((1, cout), lambda i: (0, 0))],
        out_specs=pl.BlockSpec((1, ho * wo_t, cout), lambda i: (i, 0, 0)),
        compiler_params=pltpu.CompilerParams(
            dimension_semantics=("parallel",),
            vmem_limit_bytes=VMEM_LIMIT),
    )(planes, dww, dwb, pww, pwb)


def _head_kernel(planes_ref, dww_ref, dwb_ref, pww_ref, pwb_ref,
                 fcw_ref, fcb_ref, o_ref, *, stride, hs, ho, wo, wo_t):
    # Last block (dw + pw) fused with AdaptiveAvgPool2d(1) + Flatten + Linear.
    h = _dw_taps_relu(planes_ref, dww_ref, dwb_ref,
                      stride=stride, hs=hs, ho=ho, wo_t=wo_t)
    y = jnp.dot(h.astype(jnp.bfloat16), pww_ref[...],
                preferred_element_type=jnp.float32)
    y = jnp.maximum(y + pwb_ref[...], 0.0)                    # (Ho*Wo_t, 512)
    # Global average pool as an in-kernel masked sum (only the Wo valid
    # columns of each spatial row count; the Wo_t padding columns are garbage).
    col = jax.lax.broadcasted_iota(jnp.int32, (ho * wo_t, 1), 0) % wo_t
    y = jnp.where(col < wo, y, 0.0)
    pooled = jnp.sum(y, axis=0, keepdims=True) * (1.0 / (ho * wo))
    logits = jnp.dot(pooled.astype(jnp.bfloat16), fcw_ref[...],
                     preferred_element_type=jnp.float32) + fcb_ref[...]
    o_ref[0] = logits


def head_block(planes, dww, dwb, pww, pwb, fcw, fcb,
               *, stride, hs, ho, wo, wo_t):
    n, phs, ws, c = planes.shape
    cmid = pww.shape[1]
    nout = fcw.shape[1]
    kern = functools.partial(_head_kernel, stride=stride, hs=hs, ho=ho,
                             wo=wo, wo_t=wo_t)
    return pl.pallas_call(
        kern,
        out_shape=jax.ShapeDtypeStruct((n, 1, nout), jnp.float32),
        grid=(n,),
        in_specs=[pl.BlockSpec((1, phs, ws, c), lambda i: (i, 0, 0, 0)),
                  pl.BlockSpec((9, c), lambda i: (0, 0)),
                  pl.BlockSpec((1, c), lambda i: (0, 0)),
                  pl.BlockSpec((c, cmid), lambda i: (0, 0)),
                  pl.BlockSpec((1, cmid), lambda i: (0, 0)),
                  pl.BlockSpec((cmid, nout), lambda i: (0, 0)),
                  pl.BlockSpec((1, nout), lambda i: (0, 0))],
        out_specs=pl.BlockSpec((1, 1, nout), lambda i: (i, 0, 0)),
        compiler_params=pltpu.CompilerParams(
            dimension_semantics=("parallel",),
            vmem_limit_bytes=VMEM_LIMIT),
    )(planes, dww, dwb, pww, pwb, fcw, fcb)


# ------------------------------ JAX glue ------------------------------

def _fold_bn(bn):
    scale = bn["gamma"] / jnp.sqrt(bn["var"] + BN_EPS)
    bias = bn["beta"] - bn["mean"] * scale
    return scale, bias


def _extract_taps(x_nhwc, stride):
    """3x3 / pad=1 conv taps for the tiny 3-channel stem input (im2col)."""
    N, H, W, C = x_nhwc.shape
    Ho = (H + 2 - 3) // stride + 1
    Wo = (W + 2 - 3) // stride + 1
    xp = jnp.pad(x_nhwc, ((0, 0), (1, 1), (1, 1), (0, 0)))
    taps = []
    for kh in range(3):
        for kw in range(3):
            taps.append(xp[:, kh:kh + (Ho - 1) * stride + 1:stride,
                           kw:kw + (Wo - 1) * stride + 1:stride, :])
    return taps, Ho, Wo


def build_planes(x_bf16, stride):
    """Zero-padded (and parity-split for stride 2) activation for one block.

    Returns planes (N, P*Hs, Ws, C) where every one of the 9 depthwise taps is
    a unit-stride static slice, plus the block geometry (hs, ho, wo, wo_t).
    The output width is computed at wo_t = round_up(wo, 8) so the in-kernel
    flatten is layout-trivial; the extra columns read zero padding and are
    discarded outside.
    """
    n, h, w, c = x_bf16.shape
    ho, wo = h // stride, w // stride
    wo_t = _round_up(wo, 8)
    if stride == 1:
        wp = wo_t + 2
        xp = jnp.pad(x_bf16, ((0, 0), (1, 1), (1, wp - w - 1), (0, 0)))
        hs, ws = h + 2, wp
        planes = xp
    else:
        wp = 2 * wo_t + 2
        xp = jnp.pad(x_bf16, ((0, 0), (1, 1), (1, wp - w - 1), (0, 0)))
        hp = h + 2
        hs, ws = hp // 2, wp // 2
        planes = xp.reshape(n, hs, 2, ws, 2, c).transpose(0, 2, 4, 1, 3, 5)
        planes = planes.reshape(n, 4 * hs, ws, c)
    return planes, hs, ho, wo, wo_t


def init_params(key, num_classes):
    params = {}

    def take(shape, scale=0.1):
        nonlocal key
        key, sub = jax.random.split(key)
        return scale * jax.random.normal(sub, shape, jnp.float32)

    def bn(c):
        nonlocal key
        key, k1, k2, k3, k4 = jax.random.split(key, 5)
        return {"gamma": 1.0 + 0.1 * jax.random.normal(k1, (c,), jnp.float32),
                "beta": 0.1 * jax.random.normal(k2, (c,), jnp.float32),
                "mean": 0.1 * jax.random.normal(k3, (c,), jnp.float32),
                "var": 1.0 + 0.5 * jax.random.uniform(k4, (c,), jnp.float32)}

    params["conv1_w"] = take((3, 3, 3, 32))          # (kh, kw, Cin, Cout)
    params["bn1"] = bn(32)
    for i, (cin, cout, _s) in enumerate(BLOCKS):
        params[f"dw{i}_w"] = take((3, 3, cin))       # (kh, kw, C) depthwise
        params[f"bn_dw{i}"] = bn(cin)
        params[f"pw{i}_w"] = take((cin, cout))       # (Cin, Cout) pointwise
        params[f"bn_pw{i}"] = bn(cout)
    params["fc_w"] = take((512, num_classes))
    params["fc_b"] = take((num_classes,))
    return params


def mobilenet_forward(x_nchw, params, num_classes):
    x = jnp.transpose(x_nchw, (0, 2, 3, 1)).astype(jnp.float32)  # NCHW -> NHWC
    n = x.shape[0]

    # --- Stem: Conv2d(3, 32, 3, s=2, p=1) + BN + ReLU as an im2col matmul ---
    taps, ho, wo = _extract_taps(x, stride=2)
    cols = jnp.stack(taps, axis=3).reshape(n * ho * wo, 27)
    cols = jnp.pad(cols, ((0, 0), (0, 5))).astype(jnp.bfloat16)  # K: 27 -> 32
    s, b = _fold_bn(params["bn1"])
    wst = params["conv1_w"].reshape(27, 32) * s[None, :]
    wst = jnp.pad(wst, ((0, 5), (0, 0))).astype(jnp.bfloat16)    # (32, 32)
    y = matmul_bias_relu(cols, wst, b[None, :])                  # (M, 32) bf16
    x = y.reshape(n, ho, wo, 32)        # true 32 channels (bandwidth-first)

    nc_pad = _round_up(num_classes, 128)
    logits = None
    for i, (cin, cout, stride) in enumerate(BLOCKS):
        planes, hs, ho, wo, wo_t = build_planes(x, stride)

        s1, b1 = _fold_bn(params[f"bn_dw{i}"])
        dww = (params[f"dw{i}_w"] * s1[None, None, :]).reshape(9, cin)
        dwb = b1[None, :]
        s2, b2 = _fold_bn(params[f"bn_pw{i}"])
        pww = (params[f"pw{i}_w"] * s2[None, :]).astype(jnp.bfloat16)
        pwb = b2[None, :]

        if i < len(BLOCKS) - 1:
            y = dw_sep_block(planes, dww, dwb, pww, pwb,
                             stride=stride, hs=hs, ho=ho, wo_t=wo_t)
            x = y.reshape(n, ho, wo_t, cout)[:, :, :wo, :]       # drop pad cols
        else:
            fcw = jnp.pad(params["fc_w"],
                          ((0, 0), (0, nc_pad - num_classes))).astype(jnp.bfloat16)
            fcb = jnp.pad(params["fc_b"], (0, nc_pad - num_classes))[None, :]
            logits = head_block(planes, dww, dwb, pww, pwb, fcw, fcb,
                                stride=stride, hs=hs, ho=ho, wo=wo, wo_t=wo_t)

    return logits[:, 0, :num_classes]


if __name__ == "__main__":
    num_classes = 1000
    key = jax.random.PRNGKey(0)
    key, kx, kp = jax.random.split(key, 3)
    # Small input consistent with the module (torch example was 5x3x32x32).
    x = jax.random.normal(kx, (2, 3, 32, 32), jnp.float32)        # NCHW
    params = init_params(kp, num_classes)

    fwd = jax.jit(functools.partial(mobilenet_forward, num_classes=num_classes))
    out = fwd(x, params)
    jax.block_until_ready(out)
    assert out.shape == (2, num_classes), out.shape
    print("KERNEL_OK")
</pallas_src>

<mosaic_0001>
module attributes {stable_mosaic.version = 11 : i64} {
  func.func @_matmul_bias_relu_kernel(%arg0: i32, %arg1: memref<256x32xbf16, #tpu.memory_space<vmem>>, %arg2: memref<32x32xbf16, #tpu.memory_space<vmem>>, %arg3: memref<1x32xf32, #tpu.memory_space<vmem>>, %arg4: memref<256x32xbf16, #tpu.memory_space<vmem>>) attributes {dimension_semantics = [#tpu.dimension_semantics<parallel>], iteration_bounds = array<i64: 2>, scalar_prefetch = 0 : i64, scratch_operands = 0 : i64, tpu.core_type = #tpu.core_type<tc>, window_params = [{transform_indices = @transform_0, window_bounds = array<i64: 256, 32>}, {pipeline_mode = #tpu.pipeline_mode<synchronous>, transform_indices = @transform_1, window_bounds = array<i64: 32, 32>}, {pipeline_mode = #tpu.pipeline_mode<synchronous>, transform_indices = @transform_2, window_bounds = array<i64: 1, 32>}, {transform_indices = @transform_3, window_bounds = array<i64: 256, 32>}]} {
    %c0 = arith.constant 0 : index
    %c0_0 = arith.constant 0 : index
    %0 = vector.load %arg1[%c0, %c0_0] : memref<256x32xbf16, #tpu.memory_space<vmem>>, vector<256x32xbf16>
    %c0_1 = arith.constant 0 : index
    %c0_2 = arith.constant 0 : index
    %1 = vector.load %arg2[%c0_1, %c0_2] : memref<32x32xbf16, #tpu.memory_space<vmem>>, vector<32x32xbf16>
    %cst = arith.constant dense<0.000000e+00> : vector<256x32xf32>
    %2 = tpu.matmul %0, %1, %cst {dimension_numbers = #tpu.dot_dimension_numbers<[1], [0], [0], [1], [0, 0, 1, 1], [], []>} : vector<256x32xbf16>, vector<32x32xbf16>, vector<256x32xf32> -> vector<256x32xf32>
    %c0_3 = arith.constant 0 : index
    %c0_4 = arith.constant 0 : index
    %3 = vector.load %arg3[%c0_3, %c0_4] : memref<1x32xf32, #tpu.memory_space<vmem>>, vector<1x32xf32>
    %4 = vector.broadcast %3 : vector<1x32xf32> to vector<256x32xf32>
    %5 = arith.addf %2, %4 : vector<256x32xf32>
    %cst_5 = arith.constant 0.000000e+00 : f32
    %6 = vector.broadcast %cst_5 : f32 to vector<256x32xf32>
    %7 = arith.maximumf %5, %6 : vector<256x32xf32>
    %8 = arith.truncf %7 : vector<256x32xf32> to vector<256x32xbf16>
    %c0_6 = arith.constant 0 : index
    %c0_7 = arith.constant 0 : index
    %9 = vector.load %arg4[%c0_6, %c0_7] : memref<256x32xbf16, #tpu.memory_space<vmem>>, vector<256x32xbf16>
    tpu.vector_store %arg4[%c0_6, %c0_7], %8 {strides = array<i32>} : memref<256x32xbf16, #tpu.memory_space<vmem>>, vector<256x32xbf16>,
    return
  }
  func.func @transform_0(%arg0: i32) -> (i32, i32) {
    %c0_i32 = arith.constant 0 : i32
    %c0_i32_0 = arith.constant 0 : i32
    return %arg0, %c0_i32 : i32, i32
  }
  func.func @transform_1(%arg0: i32) -> (i32, i32) {
    %c0_i32 = arith.constant 0 : i32
    %c0_i32_0 = arith.constant 0 : i32
    %c0_i32_1 = arith.constant 0 : i32
    return %c0_i32, %c0_i32_0 : i32, i32
  }
  func.func @transform_2(%arg0: i32) -> (i32, i32) {
    %c0_i32 = arith.constant 0 : i32
    %c0_i32_0 = arith.constant 0 : i32
    %c0_i32_1 = arith.constant 0 : i32
    return %c0_i32, %c0_i32_0 : i32, i32
  }
  func.func @transform_3(%arg0: i32) -> (i32, i32) {
    %c0_i32 = arith.constant 0 : i32
    %c0_i32_0 = arith.constant 0 : i32
    return %arg0, %c0_i32 : i32, i32
  }
}

module attributes {stable_mosaic.version = 11 : i64} {
  func.func @_dw_sep_kernel(%arg0: i32, %arg1: memref<1x18x18x32xbf16, #tpu.memory_space<vmem>>, %arg2: memref<9x32xf32, #tpu.memory_space<vmem>>, %arg3: memref<1x32xf32, #tpu.memory_space<vmem>>, %arg4: memref<32x64xbf16, #tpu.memory_space<vmem>>, %arg5: memref<1x64xf32, #tpu.memory_space<vmem>>, %arg6: memref<1x256x64xbf16, #tpu.memory_space<vmem>>) attributes {dimension_semantics = [#tpu.dimension_semantics<parallel>], iteration_bounds = array<i64: 2>, scalar_prefetch = 0 : i64, scratch_operands = 0 : i64, tpu.core_type = #tpu.core_type<tc>, window_params = [{transform_indices = @transform_0, window_bounds = array<i64: 1, 18, 18, 32>}, {pipeline_mode = #tpu.pipeline_mode<synchronous>, transform_indices = @transform_1, window_bounds = array<i64: 9, 32>}, {pipeline_mode = #tpu.pipeline_mode<synchronous>, transform_indices = @transform_2, window_bounds = array<i64: 1, 32>}, {pipeline_mode = #tpu.pipeline_mode<synchronous>, transform_indices = @transform_3, window_bounds = array<i64: 32, 64>}, {pipeline_mode = #tpu.pipeline_mode<synchronous>, transform_indices = @transform_4, window_bounds = array<i64: 1, 64>}, {transform_indices = @transform_5, window_bounds = array<i64: 1, 256, 64>}]} {
    %c0 = arith.constant 0 : index
    %c0_0 = arith.constant 0 : index
    %c0_1 = arith.constant 0 : index
    %c0_2 = arith.constant 0 : index
    %0 = vector.load %arg1[%c0, %c0_0, %c0_1, %c0_2] : memref<1x18x18x32xbf16, #tpu.memory_space<vmem>>, vector<1x18x18x32xbf16>
    %1 = vector.shape_cast %0 : vector<1x18x18x32xbf16> to vector<18x18x32xbf16>
    %2 = arith.extf %1 : vector<18x18x32xbf16> to vector<18x18x32xf32>
    %c0_3 = arith.constant 0 : index
    %c0_4 = arith.constant 0 : index
    %3 = vector.load %arg2[%c0_3, %c0_4] : memref<9x32xf32, #tpu.memory_space<vmem>>, vector<9x32xf32>
    %4 = vector.extract_strided_slice %2 {offsets = [0, 0, 0], sizes = [16, 16, 32], strides = [1, 1, 1]} : vector<18x18x32xf32> to vector<16x16x32xf32>
    %5 = vector.extract_strided_slice %3 {offsets = [0, 0], sizes = [1, 32], strides = [1, 1]} : vector<9x32xf32> to vector<1x32xf32>
    %6 = vector.shape_cast %5 : vector<1x32xf32> to vector<32xf32>
    %7 = vector.shape_cast %6 : vector<32xf32> to vector<1x1x32xf32>
    %8 = vector.broadcast %7 : vector<1x1x32xf32> to vector<16x16x32xf32>
    %9 = arith.mulf %4, %8 : vector<16x16x32xf32>
    %10 = vector.extract_strided_slice %2 {offsets = [0, 1, 0], sizes = [16, 16, 32], strides = [1, 1, 1]} : vector<18x18x32xf32> to vector<16x16x32xf32>
    %11 = vector.extract_strided_slice %3 {offsets = [1, 0], sizes = [1, 32], strides = [1, 1]} : vector<9x32xf32> to vector<1x32xf32>
    %12 = vector.shape_cast %11 : vector<1x32xf32> to vector<32xf32>
    %13 = vector.shape_cast %12 : vector<32xf32> to vector<1x1x32xf32>
    %14 = vector.broadcast %13 : vector<1x1x32xf32> to vector<16x16x32xf32>
    %15 = arith.mulf %10, %14 : vector<16x16x32xf32>
    %16 = arith.addf %9, %15 : vector<16x16x32xf32>
    %17 = vector.extract_strided_slice %2 {offsets = [0, 2, 0], sizes = [16, 16, 32], strides = [1, 1, 1]} : vector<18x18x32xf32> to vector<16x16x32xf32>
    %18 = vector.extract_strided_slice %3 {offsets = [2, 0], sizes = [1, 32], strides = [1, 1]} : vector<9x32xf32> to vector<1x32xf32>
    %19 = vector.shape_cast %18 : vector<1x32xf32> to vector<32xf32>
    %20 = vector.shape_cast %19 : vector<32xf32> to vector<1x1x32xf32>
    %21 = vector.broadcast %20 : vector<1x1x32xf32> to vector<16x16x32xf32>
    %22 = arith.mulf %17, %21 : vector<16x16x32xf32>
    %23 = arith.addf %16, %22 : vector<16x16x32xf32>
    %24 = vector.extract_strided_slice %2 {offsets = [1, 0, 0], sizes = [16, 16, 32], strides = [1, 1, 1]} : vector<18x18x32xf32> to vector<16x16x32xf32>
    %25 = vector.extract_strided_slice %3 {offsets = [3, 0], sizes = [1, 32], strides = [1, 1]} : vector<9x32xf32> to vector<1x32xf32>
    %26 = vector.shape_cast %25 : vector<1x32xf32> to vector<32xf32>
    %27 = vector.shape_cast %26 : vector<32xf32> to vector<1x1x32xf32>
    %28 = vector.broadcast %27 : vector<1x1x32xf32> to vector<16x16x32xf32>
    %29 = arith.mulf %24, %28 : vector<16x16x32xf32>
    %30 = arith.addf %23, %29 : vector<16x16x32xf32>
    %31 = vector.extract_strided_slice %2 {offsets = [1, 1, 0], sizes = [16, 16, 32], strides = [1, 1, 1]} : vector<18x18x32xf32> to vector<16x16x32xf32>
    %32 = vector.extract_strided_slice %3 {offsets = [4, 0], sizes = [1, 32], strides = [1, 1]} : vector<9x32xf32> to vector<1x32xf32>
    %33 = vector.shape_cast %32 : vector<1x32xf32> to vector<32xf32>
    %34 = vector.shape_cast %33 : vector<32xf32> to vector<1x1x32xf32>
    %35 = vector.broadcast %34 : vector<1x1x32xf32> to vector<16x16x32xf32>
    %36 = arith.mulf %31, %35 : vector<16x16x32xf32>
    %37 = arith.addf %30, %36 : vector<16x16x32xf32>
    %38 = vector.extract_strided_slice %2 {offsets = [1, 2, 0], sizes = [16, 16, 32], strides = [1, 1, 1]} : vector<18x18x32xf32> to vector<16x16x32xf32>
    %39 = vector.extract_strided_slice %3 {offsets = [5, 0], sizes = [1, 32], strides = [1, 1]} : vector<9x32xf32> to vector<1x32xf32>
    %40 = vector.shape_cast %39 : vector<1x32xf32> to vector<32xf32>
    %41 = vector.shape_cast %40 : vector<32xf32> to vector<1x1x32xf32>
    %42 = vector.broadcast %41 : vector<1x1x32xf32> to vector<16x16x32xf32>
    %43 = arith.mulf %38, %42 : vector<16x16x32xf32>
    %44 = arith.addf %37, %43 : vector<16x16x32xf32>
    %45 = vector.extract_strided_slice %2 {offsets = [2, 0, 0], sizes = [16, 16, 32], strides = [1, 1, 1]} : vector<18x18x32xf32> to vector<16x16x32xf32>
    %46 = vector.extract_strided_slice %3 {offsets = [6, 0], sizes = [1, 32], strides = [1, 1]} : vector<9x32xf32> to vector<1x32xf32>
    %47 = vector.shape_cast %46 : vector<1x32xf32> to vector<32xf32>
    %48 = vector.shape_cast %47 : vector<32xf32> to vector<1x1x32xf32>
    %49 = vector.broadcast %48 : vector<1x1x32xf32> to vector<16x16x32xf32>
    %50 = arith.mulf %45, %49 : vector<16x16x32xf32>
    %51 = arith.addf %44, %50 : vector<16x16x32xf32>
    %52 = vector.extract_strided_slice %2 {offsets = [2, 1, 0], sizes = [16, 16, 32], strides = [1, 1, 1]} : vector<18x18x32xf32> to vector<16x16x32xf32>
    %53 = vector.extract_strided_slice %3 {offsets = [7, 0], sizes = [1, 32], strides = [1, 1]} : vector<9x32xf32> to vector<1x32xf32>
    %54 = vector.shape_cast %53 : vector<1x32xf32> to vector<32xf32>
    %55 = vector.shape_cast %54 : vector<32xf32> to vector<1x1x32xf32>
    %56 = vector.broadcast %55 : vector<1x1x32xf32> to vector<16x16x32xf32>
    %57 = arith.mulf %52, %56 : vector<16x16x32xf32>
    %58 = arith.addf %51, %57 : vector<16x16x32xf32>
    %59 = vector.extract_strided_slice %2 {offsets = [2, 2, 0], sizes = [16, 16, 32], strides = [1, 1, 1]} : vector<18x18x32xf32> to vector<16x16x32xf32>
    %60 = vector.extract_strided_slice %3 {offsets = [8, 0], sizes = [1, 32], strides = [1, 1]} : vector<9x32xf32> to vector<1x32xf32>
    %61 = vector.shape_cast %60 : vector<1x32xf32> to vector<32xf32>
    %62 = vector.shape_cast %61 : vector<32xf32> to vector<1x1x32xf32>
    %63 = vector.broadcast %62 : vector<1x1x32xf32> to vector<16x16x32xf32>
    %64 = arith.mulf %59, %63 : vector<16x16x32xf32>
    %65 = arith.addf %58, %64 : vector<16x16x32xf32>
    %c0_5 = arith.constant 0 : index
    %c0_6 = arith.constant 0 : index
    %66 = vector.load %arg3[%c0_5, %c0_6] : memref<1x32xf32, #tpu.memory_space<vmem>>, vector<1x32xf32>
    %67 = vector.shape_cast %66 : vector<1x32xf32> to vector<1x1x32xf32>
    %68 = vector.broadcast %67 : vector<1x1x32xf32> to vector<16x16x32xf32>
    %69 = arith.addf %65, %68 : vector<16x16x32xf32>
    %cst = arith.constant 0.000000e+00 : f32
    %70 = vector.broadcast %cst : f32 to vector<16x16x32xf32>
    %71 = arith.maximumf %69, %70 : vector<16x16x32xf32>
    %72 = vector.shape_cast %71 : vector<16x16x32xf32> to vector<256x32xf32>
    %73 = arith.truncf %72 : vector<256x32xf32> to vector<256x32xbf16>
    %c0_7 = arith.constant 0 : index
    %c0_8 = arith.constant 0 : index
    %74 = vector.load %arg4[%c0_7, %c0_8] : memref<32x64xbf16, #tpu.memory_space<vmem>>, vector<32x64xbf16>
    %cst_9 = arith.constant dense<0.000000e+00> : vector<256x64xf32>
    %75 = tpu.matmul %73, %74, %cst_9 {dimension_numbers = #tpu.dot_dimension_numbers<[1], [0], [0], [1], [0, 0, 1, 1], [], []>} : vector<256x32xbf16>, vector<32x64xbf16>, vector<256x64xf32> -> vector<256x64xf32>
    %c0_10 = arith.constant 0 : index
    %c0_11 = arith.constant 0 : index
    %76 = vector.load %arg5[%c0_10, %c0_11] : memref<1x64xf32, #tpu.memory_space<vmem>>, vector<1x64xf32>
    %77 = vector.broadcast %76 : vector<1x64xf32> to vector<256x64xf32>
    %78 = arith.addf %75, %77 : vector<256x64xf32>
    %cst_12 = arith.constant 0.000000e+00 : f32
    %79 = vector.broadcast %cst_12 : f32 to vector<256x64xf32>
    %80 = arith.maximumf %78, %79 : vector<256x64xf32>
    %81 = arith.truncf %80 : vector<256x64xf32> to vector<256x64xbf16>
    %c0_13 = arith.constant 0 : index
    %c0_14 = arith.constant 0 : index
    %c0_15 = arith.constant 0 : index
    %82 = vector.load %arg6[%c0_13, %c0_14, %c0_15] : memref<1x256x64xbf16, #tpu.memory_space<vmem>>, vector<1x256x64xbf16>
    %83 = vector.shape_cast %82 : vector<1x256x64xbf16> to vector<256x64xbf16>
    %84 = vector.shape_cast %81 : vector<256x64xbf16> to vector<1x256x64xbf16>
    tpu.vector_store %arg6[%c0_13, %c0_14, %c0_15], %84 {strides = array<i32>} : memref<1x256x64xbf16, #tpu.memory_space<vmem>>, vector<1x256x64xbf16>,
    return
  }
  func.func @transform_0(%arg0: i32) -> (i32, i32, i32, i32) {
    %c0_i32 = arith.constant 0 : i32
    %c0_i32_0 = arith.constant 0 : i32
    %c0_i32_1 = arith.constant 0 : i32
    %c0_i32_2 = arith.constant 0 : i32
    return %arg0, %c0_i32, %c0_i32_0, %c0_i32_1 : i32, i32, i32, i32
  }
  func.func @transform_1(%arg0: i32) -> (i32, i32) {
    %c0_i32 = arith.constant 0 : i32
    %c0_i32_0 = arith.constant 0 : i32
    %c0_i32_1 = arith.constant 0 : i32
    return %c0_i32, %c0_i32_0 : i32, i32
  }
  func.func @transform_2(%arg0: i32) -> (i32, i32) {
    %c0_i32 = arith.constant 0 : i32
    %c0_i32_0 = arith.constant 0 : i32
    %c0_i32_1 = arith.constant 0 : i32
    return %c0_i32, %c0_i32_0 : i32, i32
  }
  func.func @transform_3(%arg0: i32) -> (i32, i32) {
    %c0_i32 = arith.constant 0 : i32
    %c0_i32_0 = arith.constant 0 : i32
    %c0_i32_1 = arith.constant 0 : i32
    return %c0_i32, %c0_i32_0 : i32, i32
  }
  func.func @transform_4(%arg0: i32) -> (i32, i32) {
    %c0_i32 = arith.constant 0 : i32
    %c0_i32_0 = arith.constant 0 : i32
    %c0_i32_1 = arith.constant 0 : i32
    return %c0_i32, %c0_i32_0 : i32, i32
  }
  func.func @transform_5(%arg0: i32) -> (i32, i32, i32) {
    %c0_i32 = arith.constant 0 : i32
    %c0_i32_0 = arith.constant 0 : i32
    %c0_i32_1 = arith.constant 0 : i32
    return %arg0, %c0_i32, %c0_i32_0 : i32, i32, i32
  }
}

module attributes {stable_mosaic.version = 11 : i64} {
  func.func @_dw_sep_kernel(%arg0: i32, %arg1: memref<1x36x9x64xbf16, #tpu.memory_space<vmem>>, %arg2: memref<9x64xf32, #tpu.memory_space<vmem>>, %arg3: memref<1x64xf32, #tpu.memory_space<vmem>>, %arg4: memref<64x128xbf16, #tpu.memory_space<vmem>>, %arg5: memref<1x128xf32, #tpu.memory_space<vmem>>, %arg6: memref<1x64x128xbf16, #tpu.memory_space<vmem>>) attributes {dimension_semantics = [#tpu.dimension_semantics<parallel>], iteration_bounds = array<i64: 2>, scalar_prefetch = 0 : i64, scratch_operands = 0 : i64, tpu.core_type = #tpu.core_type<tc>, window_params = [{transform_indices = @transform_0, window_bounds = array<i64: 1, 36, 9, 64>}, {pipeline_mode = #tpu.pipeline_mode<synchronous>, transform_indices = @transform_1, window_bounds = array<i64: 9, 64>}, {pipeline_mode = #tpu.pipeline_mode<synchronous>, transform_indices = @transform_2, window_bounds = array<i64: 1, 64>}, {pipeline_mode = #tpu.pipeline_mode<synchronous>, transform_indices = @transform_3, window_bounds = array<i64: 64, 128>}, {pipeline_mode = #tpu.pipeline_mode<synchronous>, transform_indices = @transform_4, window_bounds = array<i64: 1, 128>}, {transform_indices = @transform_5, window_bounds = array<i64: 1, 64, 128>}]} {
    %c0 = arith.constant 0 : index
    %c0_0 = arith.constant 0 : index
    %c0_1 = arith.constant 0 : index
    %c0_2 = arith.constant 0 : index
    %0 = vector.load %arg1[%c0, %c0_0, %c0_1, %c0_2] : memref<1x36x9x64xbf16, #tpu.memory_space<vmem>>, vector<1x36x9x64xbf16>
    %1 = vector.shape_cast %0 : vector<1x36x9x64xbf16> to vector<36x9x64xbf16>
    %2 = arith.extf %1 : vector<36x9x64xbf16> to vector<36x9x64xf32>
    %c0_3 = arith.constant 0 : index
    %c0_4 = arith.constant 0 : index
    %3 = vector.load %arg2[%c0_3, %c0_4] : memref<9x64xf32, #tpu.memory_space<vmem>>, vector<9x64xf32>
    %4 = vector.extract_strided_slice %2 {offsets = [0, 0, 0], sizes = [8, 8, 64], strides = [1, 1, 1]} : vector<36x9x64xf32> to vector<8x8x64xf32>
    %5 = vector.extract_strided_slice %3 {offsets = [0, 0], sizes = [1, 64], strides = [1, 1]} : vector<9x64xf32> to vector<1x64xf32>
    %6 = vector.shape_cast %5 : vector<1x64xf32> to vector<64xf32>
    %7 = vector.shape_cast %6 : vector<64xf32> to vector<1x1x64xf32>
    %8 = vector.broadcast %7 : vector<1x1x64xf32> to vector<8x8x64xf32>
    %9 = arith.mulf %4, %8 : vector<8x8x64xf32>
    %10 = vector.extract_strided_slice %2 {offsets = [9, 0, 0], sizes = [8, 8, 64], strides = [1, 1, 1]} : vector<36x9x64xf32> to vector<8x8x64xf32>
    %11 = vector.extract_strided_slice %3 {offsets = [1, 0], sizes = [1, 64], strides = [1, 1]} : vector<9x64xf32> to vector<1x64xf32>
    %12 = vector.shape_cast %11 : vector<1x64xf32> to vector<64xf32>
    %13 = vector.shape_cast %12 : vector<64xf32> to vector<1x1x64xf32>
    %14 = vector.broadcast %13 : vector<1x1x64xf32> to vector<8x8x64xf32>
    %15 = arith.mulf %10, %14 : vector<8x8x64xf32>
    %16 = arith.addf %9, %15 : vector<8x8x64xf32>
    %17 = vector.extract_strided_slice %2 {offsets = [0, 1, 0], sizes = [8, 8, 64], strides = [1, 1, 1]} : vector<36x9x64xf32> to vector<8x8x64xf32>
    %18 = vector.extract_strided_slice %3 {offsets = [2, 0], sizes = [1, 64], strides = [1, 1]} : vector<9x64xf32> to vector<1x64xf32>
    %19 = vector.shape_cast %18 : vector<1x64xf32> to vector<64xf32>
    %20 = vector.shape_cast %19 : vector<64xf32> to vector<1x1x64xf32>
    %21 = vector.broadcast %20 : vector<1x1x64xf32> to vector<8x8x64xf32>
    %22 = arith.mulf %17, %21 : vector<8x8x64xf32>
    %23 = arith.addf %16, %22 : vector<8x8x64xf32>
    %24 = vector.extract_strided_slice %2 {offsets = [18, 0, 0], sizes = [8, 8, 64], strides = [1, 1, 1]} : vector<36x9x64xf32> to vector<8x8x64xf32>
    %25 = vector.extract_strided_slice %3 {offsets = [3, 0], sizes = [1, 64], strides = [1, 1]} : vector<9x64xf32> to vector<1x64xf32>
    %26 = vector.shape_cast %25 : vector<1x64xf32> to vector<64xf32>
    %27 = vector.shape_cast %26 : vector<64xf32> to vector<1x1x64xf32>
    %28 = vector.broadcast %27 : vector<1x1x64xf32> to vector<8x8x64xf32>
    %29 = arith.mulf %24, %28 : vector<8x8x64xf32>
    %30 = arith.addf %23, %29 : vector<8x8x64xf32>
    %31 = vector.extract_strided_slice %2 {offsets = [27, 0, 0], sizes = [8, 8, 64], strides = [1, 1, 1]} : vector<36x9x64xf32> to vector<8x8x64xf32>
    %32 = vector.extract_strided_slice %3 {offsets = [4, 0], sizes = [1, 64], strides = [1, 1]} : vector<9x64xf32> to vector<1x64xf32>
    %33 = vector.shape_cast %32 : vector<1x64xf32> to vector<64xf32>
    %34 = vector.shape_cast %33 : vector<64xf32> to vector<1x1x64xf32>
    %35 = vector.broadcast %34 : vector<1x1x64xf32> to vector<8x8x64xf32>
    %36 = arith.mulf %31, %35 : vector<8x8x64xf32>
    %37 = arith.addf %30, %36 : vector<8x8x64xf32>
    %38 = vector.extract_strided_slice %2 {offsets = [18, 1, 0], sizes = [8, 8, 64], strides = [1, 1, 1]} : vector<36x9x64xf32> to vector<8x8x64xf32>
    %39 = vector.extract_strided_slice %3 {offsets = [5, 0], sizes = [1, 64], strides = [1, 1]} : vector<9x64xf32> to vector<1x64xf32>
    %40 = vector.shape_cast %39 : vector<1x64xf32> to vector<64xf32>
    %41 = vector.shape_cast %40 : vector<64xf32> to vector<1x1x64xf32>
    %42 = vector.broadcast %41 : vector<1x1x64xf32> to vector<8x8x64xf32>
    %43 = arith.mulf %38, %42 : vector<8x8x64xf32>
    %44 = arith.addf %37, %43 : vector<8x8x64xf32>
    %45 = vector.extract_strided_slice %2 {offsets = [1, 0, 0], sizes = [8, 8, 64], strides = [1, 1, 1]} : vector<36x9x64xf32> to vector<8x8x64xf32>
    %46 = vector.extract_strided_slice %3 {offsets = [6, 0], sizes = [1, 64], strides = [1, 1]} : vector<9x64xf32> to vector<1x64xf32>
    %47 = vector.shape_cast %46 : vector<1x64xf32> to vector<64xf32>
    %48 = vector.shape_cast %47 : vector<64xf32> to vector<1x1x64xf32>
    %49 = vector.broadcast %48 : vector<1x1x64xf32> to vector<8x8x64xf32>
    %50 = arith.mulf %45, %49 : vector<8x8x64xf32>
    %51 = arith.addf %44, %50 : vector<8x8x64xf32>
    %52 = vector.extract_strided_slice %2 {offsets = [10, 0, 0], sizes = [8, 8, 64], strides = [1, 1, 1]} : vector<36x9x64xf32> to vector<8x8x64xf32>
    %53 = vector.extract_strided_slice %3 {offsets = [7, 0], sizes = [1, 64], strides = [1, 1]} : vector<9x64xf32> to vector<1x64xf32>
    %54 = vector.shape_cast %53 : vector<1x64xf32> to vector<64xf32>
    %55 = vector.shape_cast %54 : vector<64xf32> to vector<1x1x64xf32>
    %56 = vector.broadcast %55 : vector<1x1x64xf32> to vector<8x8x64xf32>
    %57 = arith.mulf %52, %56 : vector<8x8x64xf32>
    %58 = arith.addf %51, %57 : vector<8x8x64xf32>
    %59 = vector.extract_strided_slice %2 {offsets = [1, 1, 0], sizes = [8, 8, 64], strides = [1, 1, 1]} : vector<36x9x64xf32> to vector<8x8x64xf32>
    %60 = vector.extract_strided_slice %3 {offsets = [8, 0], sizes = [1, 64], strides = [1, 1]} : vector<9x64xf32> to vector<1x64xf32>
    %61 = vector.shape_cast %60 : vector<1x64xf32> to vector<64xf32>
    %62 = vector.shape_cast %61 : vector<64xf32> to vector<1x1x64xf32>
    %63 = vector.broadcast %62 : vector<1x1x64xf32> to vector<8x8x64xf32>
    %64 = arith.mulf %59, %63 : vector<8x8x64xf32>
    %65 = arith.addf %58, %64 : vector<8x8x64xf32>
    %c0_5 = arith.constant 0 : index
    %c0_6 = arith.constant 0 : index
    %66 = vector.load %arg3[%c0_5, %c0_6] : memref<1x64xf32, #tpu.memory_space<vmem>>, vector<1x64xf32>
    %67 = vector.shape_cast %66 : vector<1x64xf32> to vector<1x1x64xf32>
    %68 = vector.broadcast %67 : vector<1x1x64xf32> to vector<8x8x64xf32>
    %69 = arith.addf %65, %68 : vector<8x8x64xf32>
    %cst = arith.constant 0.000000e+00 : f32
    %70 = vector.broadcast %cst : f32 to vector<8x8x64xf32>
    %71 = arith.maximumf %69, %70 : vector<8x8x64xf32>
    %72 = vector.shape_cast %71 : vector<8x8x64xf32> to vector<64x64xf32>
    %73 = arith.truncf %72 : vector<64x64xf32> to vector<64x64xbf16>
    %c0_7 = arith.constant 0 : index
    %c0_8 = arith.constant 0 : index
    %74 = vector.load %arg4[%c0_7, %c0_8] : memref<64x128xbf16, #tpu.memory_space<vmem>>, vector<64x128xbf16>
    %cst_9 = arith.constant dense<0.000000e+00> : vector<64x128xf32>
    %75 = tpu.matmul %73, %74, %cst_9 {dimension_numbers = #tpu.dot_dimension_numbers<[1], [0], [0], [1], [0, 0, 1, 1], [], []>} : vector<64x64xbf16>, vector<64x128xbf16>, vector<64x128xf32> -> vector<64x128xf32>
    %c0_10 = arith.constant 0 : index
    %c0_11 = arith.constant 0 : index
    %76 = vector.load %arg5[%c0_10, %c0_11] : memref<1x128xf32, #tpu.memory_space<vmem>>, vector<1x128xf32>
    %77 = vector.broadcast %76 : vector<1x128xf32> to vector<64x128xf32>
    %78 = arith.addf %75, %77 : vector<64x128xf32>
    %cst_12 = arith.constant 0.000000e+00 : f32
    %79 = vector.broadcast %cst_12 : f32 to vector<64x128xf32>
    %80 = arith.maximumf %78, %79 : vector<64x128xf32>
    %81 = arith.truncf %80 : vector<64x128xf32> to vector<64x128xbf16>
    %c0_13 = arith.constant 0 : index
    %c0_14 = arith.constant 0 : index
    %c0_15 = arith.constant 0 : index
    %82 = vector.load %arg6[%c0_13, %c0_14, %c0_15] : memref<1x64x128xbf16, #tpu.memory_space<vmem>>, vector<1x64x128xbf16>
    %83 = vector.shape_cast %82 : vector<1x64x128xbf16> to vector<64x128xbf16>
    %84 = vector.shape_cast %81 : vector<64x128xbf16> to vector<1x64x128xbf16>
    tpu.vector_store %arg6[%c0_13, %c0_14, %c0_15], %84 {strides = array<i32>} : memref<1x64x128xbf16, #tpu.memory_space<vmem>>, vector<1x64x128xbf16>,
    return
  }
  func.func @transform_0(%arg0: i32) -> (i32, i32, i32, i32) {
    %c0_i32 = arith.constant 0 : i32
    %c0_i32_0 = arith.constant 0 : i32
    %c0_i32_1 = arith.constant 0 : i32
    %c0_i32_2 = arith.constant 0 : i32
    return %arg0, %c0_i32, %c0_i32_0, %c0_i32_1 : i32, i32, i32, i32
  }
  func.func @transform_1(%arg0: i32) -> (i32, i32) {
    %c0_i32 = arith.constant 0 : i32
    %c0_i32_0 = arith.constant 0 : i32
    %c0_i32_1 = arith.constant 0 : i32
    return %c0_i32, %c0_i32_0 : i32, i32
  }
  func.func @transform_2(%arg0: i32) -> (i32, i32) {
    %c0_i32 = arith.constant 0 : i32
    %c0_i32_0 = arith.constant 0 : i32
    %c0_i32_1 = arith.constant 0 : i32
    return %c0_i32, %c0_i32_0 : i32, i32
  }
  func.func @transform_3(%arg0: i32) -> (i32, i32) {
    %c0_i32 = arith.constant 0 : i32
    %c0_i32_0 = arith.constant 0 : i32
    %c0_i32_1 = arith.constant 0 : i32
    return %c0_i32, %c0_i32_0 : i32, i32
  }
  func.func @transform_4(%arg0: i32) -> (i32, i32) {
    %c0_i32 = arith.constant 0 : i32
    %c0_i32_0 = arith.constant 0 : i32
    %c0_i32_1 = arith.constant 0 : i32
    return %c0_i32, %c0_i32_0 : i32, i32
  }
  func.func @transform_5(%arg0: i32) -> (i32, i32, i32) {
    %c0_i32 = arith.constant 0 : i32
    %c0_i32_0 = arith.constant 0 : i32
    %c0_i32_1 = arith.constant 0 : i32
    return %arg0, %c0_i32, %c0_i32_0 : i32, i32, i32
  }
}

module attributes {stable_mosaic.version = 11 : i64} {
  func.func @_dw_sep_kernel(%arg0: i32, %arg1: memref<1x10x10x128xbf16, #tpu.memory_space<vmem>>, %arg2: memref<9x128xf32, #tpu.memory_space<vmem>>, %arg3: memref<1x128xf32, #tpu.memory_space<vmem>>, %arg4: memref<128x128xbf16, #tpu.memory_space<vmem>>, %arg5: memref<1x128xf32, #tpu.memory_space<vmem>>, %arg6: memref<1x64x128xbf16, #tpu.memory_space<vmem>>) attributes {dimension_semantics = [#tpu.dimension_semantics<parallel>], iteration_bounds = array<i64: 2>, scalar_prefetch = 0 : i64, scratch_operands = 0 : i64, tpu.core_type = #tpu.core_type<tc>, window_params = [{transform_indices = @transform_0, window_bounds = array<i64: 1, 10, 10, 128>}, {pipeline_mode = #tpu.pipeline_mode<synchronous>, transform_indices = @transform_1, window_bounds = array<i64: 9, 128>}, {pipeline_mode = #tpu.pipeline_mode<synchronous>, transform_indices = @transform_2, window_bounds = array<i64: 1, 128>}, {pipeline_mode = #tpu.pipeline_mode<synchronous>, transform_indices = @transform_3, window_bounds = array<i64: 128, 128>}, {pipeline_mode = #tpu.pipeline_mode<synchronous>, transform_indices = @transform_4, window_bounds = array<i64: 1, 128>}, {transform_indices = @transform_5, window_bounds = array<i64: 1, 64, 128>}]} {
    %c0 = arith.constant 0 : index
    %c0_0 = arith.constant 0 : index
    %c0_1 = arith.constant 0 : index
    %c0_2 = arith.constant 0 : index
    %0 = vector.load %arg1[%c0, %c0_0, %c0_1, %c0_2] : memref<1x10x10x128xbf16, #tpu.memory_space<vmem>>, vector<1x10x10x128xbf16>
    %1 = vector.shape_cast %0 : vector<1x10x10x128xbf16> to vector<10x10x128xbf16>
    %2 = arith.extf %1 : vector<10x10x128xbf16> to vector<10x10x128xf32>
    %c0_3 = arith.constant 0 : index
    %c0_4 = arith.constant 0 : index
    %3 = vector.load %arg2[%c0_3, %c0_4] : memref<9x128xf32, #tpu.memory_space<vmem>>, vector<9x128xf32>
    %4 = vector.extract_strided_slice %2 {offsets = [0, 0, 0], sizes = [8, 8, 128], strides = [1, 1, 1]} : vector<10x10x128xf32> to vector<8x8x128xf32>
    %5 = vector.extract_strided_slice %3 {offsets = [0, 0], sizes = [1, 128], strides = [1, 1]} : vector<9x128xf32> to vector<1x128xf32>
    %6 = vector.shape_cast %5 : vector<1x128xf32> to vector<128xf32>
    %7 = vector.shape_cast %6 : vector<128xf32> to vector<1x1x128xf32>
    %8 = vector.broadcast %7 : vector<1x1x128xf32> to vector<8x8x128xf32>
    %9 = arith.mulf %4, %8 : vector<8x8x128xf32>
    %10 = vector.extract_strided_slice %2 {offsets = [0, 1, 0], sizes = [8, 8, 128], strides = [1, 1, 1]} : vector<10x10x128xf32> to vector<8x8x128xf32>
    %11 = vector.extract_strided_slice %3 {offsets = [1, 0], sizes = [1, 128], strides = [1, 1]} : vector<9x128xf32> to vector<1x128xf32>
    %12 = vector.shape_cast %11 : vector<1x128xf32> to vector<128xf32>
    %13 = vector.shape_cast %12 : vector<128xf32> to vector<1x1x128xf32>
    %14 = vector.broadcast %13 : vector<1x1x128xf32> to vector<8x8x128xf32>
    %15 = arith.mulf %10, %14 : vector<8x8x128xf32>
    %16 = arith.addf %9, %15 : vector<8x8x128xf32>
    %17 = vector.extract_strided_slice %2 {offsets = [0, 2, 0], sizes = [8, 8, 128], strides = [1, 1, 1]} : vector<10x10x128xf32> to vector<8x8x128xf32>
    %18 = vector.extract_strided_slice %3 {offsets = [2, 0], sizes = [1, 128], strides = [1, 1]} : vector<9x128xf32> to vector<1x128xf32>
    %19 = vector.shape_cast %18 : vector<1x128xf32> to vector<128xf32>
    %20 = vector.shape_cast %19 : vector<128xf32> to vector<1x1x128xf32>
    %21 = vector.broadcast %20 : vector<1x1x128xf32> to vector<8x8x128xf32>
    %22 = arith.mulf %17, %21 : vector<8x8x128xf32>
    %23 = arith.addf %16, %22 : vector<8x8x128xf32>
    %24 = vector.extract_strided_slice %2 {offsets = [1, 0, 0], sizes = [8, 8, 128], strides = [1, 1, 1]} : vector<10x10x128xf32> to vector<8x8x128xf32>
    %25 = vector.extract_strided_slice %3 {offsets = [3, 0], sizes = [1, 128], strides = [1, 1]} : vector<9x128xf32> to vector<1x128xf32>
    %26 = vector.shape_cast %25 : vector<1x128xf32> to vector<128xf32>
    %27 = vector.shape_cast %26 : vector<128xf32> to vector<1x1x128xf32>
    %28 = vector.broadcast %27 : vector<1x1x128xf32> to vector<8x8x128xf32>
    %29 = arith.mulf %24, %28 : vector<8x8x128xf32>
    %30 = arith.addf %23, %29 : vector<8x8x128xf32>
    %31 = vector.extract_strided_slice %2 {offsets = [1, 1, 0], sizes = [8, 8, 128], strides = [1, 1, 1]} : vector<10x10x128xf32> to vector<8x8x128xf32>
    %32 = vector.extract_strided_slice %3 {offsets = [4, 0], sizes = [1, 128], strides = [1, 1]} : vector<9x128xf32> to vector<1x128xf32>
    %33 = vector.shape_cast %32 : vector<1x128xf32> to vector<128xf32>
    %34 = vector.shape_cast %33 : vector<128xf32> to vector<1x1x128xf32>
    %35 = vector.broadcast %34 : vector<1x1x128xf32> to vector<8x8x128xf32>
    %36 = arith.mulf %31, %35 : vector<8x8x128xf32>
    %37 = arith.addf %30, %36 : vector<8x8x128xf32>
    %38 = vector.extract_strided_slice %2 {offsets = [1, 2, 0], sizes = [8, 8, 128], strides = [1, 1, 1]} : vector<10x10x128xf32> to vector<8x8x128xf32>
    %39 = vector.extract_strided_slice %3 {offsets = [5, 0], sizes = [1, 128], strides = [1, 1]} : vector<9x128xf32> to vector<1x128xf32>
    %40 = vector.shape_cast %39 : vector<1x128xf32> to vector<128xf32>
    %41 = vector.shape_cast %40 : vector<128xf32> to vector<1x1x128xf32>
    %42 = vector.broadcast %41 : vector<1x1x128xf32> to vector<8x8x128xf32>
    %43 = arith.mulf %38, %42 : vector<8x8x128xf32>
    %44 = arith.addf %37, %43 : vector<8x8x128xf32>
    %45 = vector.extract_strided_slice %2 {offsets = [2, 0, 0], sizes = [8, 8, 128], strides = [1, 1, 1]} : vector<10x10x128xf32> to vector<8x8x128xf32>
    %46 = vector.extract_strided_slice %3 {offsets = [6, 0], sizes = [1, 128], strides = [1, 1]} : vector<9x128xf32> to vector<1x128xf32>
    %47 = vector.shape_cast %46 : vector<1x128xf32> to vector<128xf32>
    %48 = vector.shape_cast %47 : vector<128xf32> to vector<1x1x128xf32>
    %49 = vector.broadcast %48 : vector<1x1x128xf32> to vector<8x8x128xf32>
    %50 = arith.mulf %45, %49 : vector<8x8x128xf32>
    %51 = arith.addf %44, %50 : vector<8x8x128xf32>
    %52 = vector.extract_strided_slice %2 {offsets = [2, 1, 0], sizes = [8, 8, 128], strides = [1, 1, 1]} : vector<10x10x128xf32> to vector<8x8x128xf32>
    %53 = vector.extract_strided_slice %3 {offsets = [7, 0], sizes = [1, 128], strides = [1, 1]} : vector<9x128xf32> to vector<1x128xf32>
    %54 = vector.shape_cast %53 : vector<1x128xf32> to vector<128xf32>
    %55 = vector.shape_cast %54 : vector<128xf32> to vector<1x1x128xf32>
    %56 = vector.broadcast %55 : vector<1x1x128xf32> to vector<8x8x128xf32>
    %57 = arith.mulf %52, %56 : vector<8x8x128xf32>
    %58 = arith.addf %51, %57 : vector<8x8x128xf32>
    %59 = vector.extract_strided_slice %2 {offsets = [2, 2, 0], sizes = [8, 8, 128], strides = [1, 1, 1]} : vector<10x10x128xf32> to vector<8x8x128xf32>
    %60 = vector.extract_strided_slice %3 {offsets = [8, 0], sizes = [1, 128], strides = [1, 1]} : vector<9x128xf32> to vector<1x128xf32>
    %61 = vector.shape_cast %60 : vector<1x128xf32> to vector<128xf32>
    %62 = vector.shape_cast %61 : vector<128xf32> to vector<1x1x128xf32>
    %63 = vector.broadcast %62 : vector<1x1x128xf32> to vector<8x8x128xf32>
    %64 = arith.mulf %59, %63 : vector<8x8x128xf32>
    %65 = arith.addf %58, %64 : vector<8x8x128xf32>
    %c0_5 = arith.constant 0 : index
    %c0_6 = arith.constant 0 : index
    %66 = vector.load %arg3[%c0_5, %c0_6] : memref<1x128xf32, #tpu.memory_space<vmem>>, vector<1x128xf32>
    %67 = vector.shape_cast %66 : vector<1x128xf32> to vector<1x1x128xf32>
    %68 = vector.broadcast %67 : vector<1x1x128xf32> to vector<8x8x128xf32>
    %69 = arith.addf %65, %68 : vector<8x8x128xf32>
    %cst = arith.constant 0.000000e+00 : f32
    %70 = vector.broadcast %cst : f32 to vector<8x8x128xf32>
    %71 = arith.maximumf %69, %70 : vector<8x8x128xf32>
    %72 = vector.shape_cast %71 : vector<8x8x128xf32> to vector<64x128xf32>
    %73 = arith.truncf %72 : vector<64x128xf32> to vector<64x128xbf16>
    %c0_7 = arith.constant 0 : index
    %c0_8 = arith.constant 0 : index
    %74 = vector.load %arg4[%c0_7, %c0_8] : memref<128x128xbf16, #tpu.memory_space<vmem>>, vector<128x128xbf16>
    %cst_9 = arith.constant dense<0.000000e+00> : vector<64x128xf32>
    %75 = tpu.matmul %73, %74, %cst_9 {dimension_numbers = #tpu.dot_dimension_numbers<[1], [0], [0], [1], [0, 0, 1, 1], [], []>} : vector<64x128xbf16>, vector<128x128xbf16>, vector<64x128xf32> -> vector<64x128xf32>
    %c0_10 = arith.constant 0 : index
    %c0_11 = arith.constant 0 : index
    %76 = vector.load %arg5[%c0_10, %c0_11] : memref<1x128xf32, #tpu.memory_space<vmem>>, vector<1x128xf32>
    %77 = vector.broadcast %76 : vector<1x128xf32> to vector<64x128xf32>
    %78 = arith.addf %75, %77 : vector<64x128xf32>
    %cst_12 = arith.constant 0.000000e+00 : f32
    %79 = vector.broadcast %cst_12 : f32 to vector<64x128xf32>
    %80 = arith.maximumf %78, %79 : vector<64x128xf32>
    %81 = arith.truncf %80 : vector<64x128xf32> to vector<64x128xbf16>
    %c0_13 = arith.constant 0 : index
    %c0_14 = arith.constant 0 : index
    %c0_15 = arith.constant 0 : index
    %82 = vector.load %arg6[%c0_13, %c0_14, %c0_15] : memref<1x64x128xbf16, #tpu.memory_space<vmem>>, vector<1x64x128xbf16>
    %83 = vector.shape_cast %82 : vector<1x64x128xbf16> to vector<64x128xbf16>
    %84 = vector.shape_cast %81 : vector<64x128xbf16> to vector<1x64x128xbf16>
    tpu.vector_store %arg6[%c0_13, %c0_14, %c0_15], %84 {strides = array<i32>} : memref<1x64x128xbf16, #tpu.memory_space<vmem>>, vector<1x64x128xbf16>,
    return
  }
  func.func @transform_0(%arg0: i32) -> (i32, i32, i32, i32) {
    %c0_i32 = arith.constant 0 : i32
    %c0_i32_0 = arith.constant 0 : i32
    %c0_i32_1 = arith.constant 0 : i32
    %c0_i32_2 = arith.constant 0 : i32
    return %arg0, %c0_i32, %c0_i32_0, %c0_i32_1 : i32, i32, i32, i32
  }
  func.func @transform_1(%arg0: i32) -> (i32, i32) {
    %c0_i32 = arith.constant 0 : i32
    %c0_i32_0 = arith.constant 0 : i32
    %c0_i32_1 = arith.constant 0 : i32
    return %c0_i32, %c0_i32_0 : i32, i32
  }
  func.func @transform_2(%arg0: i32) -> (i32, i32) {
    %c0_i32 = arith.constant 0 : i32
    %c0_i32_0 = arith.constant 0 : i32
    %c0_i32_1 = arith.constant 0 : i32
    return %c0_i32, %c0_i32_0 : i32, i32
  }
  func.func @transform_3(%arg0: i32) -> (i32, i32) {
    %c0_i32 = arith.constant 0 : i32
    %c0_i32_0 = arith.constant 0 : i32
    %c0_i32_1 = arith.constant 0 : i32
    return %c0_i32, %c0_i32_0 : i32, i32
  }
  func.func @transform_4(%arg0: i32) -> (i32, i32) {
    %c0_i32 = arith.constant 0 : i32
    %c0_i32_0 = arith.constant 0 : i32
    %c0_i32_1 = arith.constant 0 : i32
    return %c0_i32, %c0_i32_0 : i32, i32
  }
  func.func @transform_5(%arg0: i32) -> (i32, i32, i32) {
    %c0_i32 = arith.constant 0 : i32
    %c0_i32_0 = arith.constant 0 : i32
    %c0_i32_1 = arith.constant 0 : i32
    return %arg0, %c0_i32, %c0_i32_0 : i32, i32, i32
  }
}

module attributes {stable_mosaic.version = 11 : i64} {
  func.func @_dw_sep_kernel(%arg0: i32, %arg1: memref<1x20x9x128xbf16, #tpu.memory_space<vmem>>, %arg2: memref<9x128xf32, #tpu.memory_space<vmem>>, %arg3: memref<1x128xf32, #tpu.memory_space<vmem>>, %arg4: memref<128x256xbf16, #tpu.memory_space<vmem>>, %arg5: memref<1x256xf32, #tpu.memory_space<vmem>>, %arg6: memref<1x32x256xbf16, #tpu.memory_space<vmem>>) attributes {dimension_semantics = [#tpu.dimension_semantics<parallel>], iteration_bounds = array<i64: 2>, scalar_prefetch = 0 : i64, scratch_operands = 0 : i64, tpu.core_type = #tpu.core_type<tc>, window_params = [{transform_indices = @transform_0, window_bounds = array<i64: 1, 20, 9, 128>}, {pipeline_mode = #tpu.pipeline_mode<synchronous>, transform_indices = @transform_1, window_bounds = array<i64: 9, 128>}, {pipeline_mode = #tpu.pipeline_mode<synchronous>, transform_indices = @transform_2, window_bounds = array<i64: 1, 128>}, {pipeline_mode = #tpu.pipeline_mode<synchronous>, transform_indices = @transform_3, window_bounds = array<i64: 128, 256>}, {pipeline_mode = #tpu.pipeline_mode<synchronous>, transform_indices = @transform_4, window_bounds = array<i64: 1, 256>}, {transform_indices = @transform_5, window_bounds = array<i64: 1, 32, 256>}]} {
    %c0 = arith.constant 0 : index
    %c0_0 = arith.constant 0 : index
    %c0_1 = arith.constant 0 : index
    %c0_2 = arith.constant 0 : index
    %0 = vector.load %arg1[%c0, %c0_0, %c0_1, %c0_2] : memref<1x20x9x128xbf16, #tpu.memory_space<vmem>>, vector<1x20x9x128xbf16>
    %1 = vector.shape_cast %0 : vector<1x20x9x128xbf16> to vector<20x9x128xbf16>
    %2 = arith.extf %1 : vector<20x9x128xbf16> to vector<20x9x128xf32>
    %c0_3 = arith.constant 0 : index
    %c0_4 = arith.constant 0 : index
    %3 = vector.load %arg2[%c0_3, %c0_4] : memref<9x128xf32, #tpu.memory_space<vmem>>, vector<9x128xf32>
    %4 = vector.extract_strided_slice %2 {offsets = [0, 0, 0], sizes = [4, 8, 128], strides = [1, 1, 1]} : vector<20x9x128xf32> to vector<4x8x128xf32>
    %5 = vector.extract_strided_slice %3 {offsets = [0, 0], sizes = [1, 128], strides = [1, 1]} : vector<9x128xf32> to vector<1x128xf32>
    %6 = vector.shape_cast %5 : vector<1x128xf32> to vector<128xf32>
    %7 = vector.shape_cast %6 : vector<128xf32> to vector<1x1x128xf32>
    %8 = vector.broadcast %7 : vector<1x1x128xf32> to vector<4x8x128xf32>
    %9 = arith.mulf %4, %8 : vector<4x8x128xf32>
    %10 = vector.extract_strided_slice %2 {offsets = [5, 0, 0], sizes = [4, 8, 128], strides = [1, 1, 1]} : vector<20x9x128xf32> to vector<4x8x128xf32>
    %11 = vector.extract_strided_slice %3 {offsets = [1, 0], sizes = [1, 128], strides = [1, 1]} : vector<9x128xf32> to vector<1x128xf32>
    %12 = vector.shape_cast %11 : vector<1x128xf32> to vector<128xf32>
    %13 = vector.shape_cast %12 : vector<128xf32> to vector<1x1x128xf32>
    %14 = vector.broadcast %13 : vector<1x1x128xf32> to vector<4x8x128xf32>
    %15 = arith.mulf %10, %14 : vector<4x8x128xf32>
    %16 = arith.addf %9, %15 : vector<4x8x128xf32>
    %17 = vector.extract_strided_slice %2 {offsets = [0, 1, 0], sizes = [4, 8, 128], strides = [1, 1, 1]} : vector<20x9x128xf32> to vector<4x8x128xf32>
    %18 = vector.extract_strided_slice %3 {offsets = [2, 0], sizes = [1, 128], strides = [1, 1]} : vector<9x128xf32> to vector<1x128xf32>
    %19 = vector.shape_cast %18 : vector<1x128xf32> to vector<128xf32>
    %20 = vector.shape_cast %19 : vector<128xf32> to vector<1x1x128xf32>
    %21 = vector.broadcast %20 : vector<1x1x128xf32> to vector<4x8x128xf32>
    %22 = arith.mulf %17, %21 : vector<4x8x128xf32>
    %23 = arith.addf %16, %22 : vector<4x8x128xf32>
    %24 = vector.extract_strided_slice %2 {offsets = [10, 0, 0], sizes = [4, 8, 128], strides = [1, 1, 1]} : vector<20x9x128xf32> to vector<4x8x128xf32>
    %25 = vector.extract_strided_slice %3 {offsets = [3, 0], sizes = [1, 128], strides = [1, 1]} : vector<9x128xf32> to vector<1x128xf32>
    %26 = vector.shape_cast %25 : vector<1x128xf32> to vector<128xf32>
    %27 = vector.shape_cast %26 : vector<128xf32> to vector<1x1x128xf32>
    %28 = vector.broadcast %27 : vector<1x1x128xf32> to vector<4x8x128xf32>
    %29 = arith.mulf %24, %28 : vector<4x8x128xf32>
    %30 = arith.addf %23, %29 : vector<4x8x128xf32>
    %31 = vector.extract_strided_slice %2 {offsets = [15, 0, 0], sizes = [4, 8, 128], strides = [1, 1, 1]} : vector<20x9x128xf32> to vector<4x8x128xf32>
    %32 = vector.extract_strided_slice %3 {offsets = [4, 0], sizes = [1, 128], strides = [1, 1]} : vector<9x128xf32> to vector<1x128xf32>
    %33 = vector.shape_cast %32 : vector<1x128xf32> to vector<128xf32>
    %34 = vector.shape_cast %33 : vector<128xf32> to vector<1x1x128xf32>
    %35 = vector.broadcast %34 : vector<1x1x128xf32> to vector<4x8x128xf32>
    %36 = arith.mulf %31, %35 : vector<4x8x128xf32>
    %37 = arith.addf %30, %36 : vector<4x8x128xf32>
    %38 = vector.extract_strided_slice %2 {offsets = [10, 1, 0], sizes = [4, 8, 128], strides = [1, 1, 1]} : vector<20x9x128xf32> to vector<4x8x128xf32>
    %39 = vector.extract_strided_slice %3 {offsets = [5, 0], sizes = [1, 128], strides = [1, 1]} : vector<9x128xf32> to vector<1x128xf32>
    %40 = vector.shape_cast %39 : vector<1x128xf32> to vector<128xf32>
    %41 = vector.shape_cast %40 : vector<128xf32> to vector<1x1x128xf32>
    %42 = vector.broadcast %41 : vector<1x1x128xf32> to vector<4x8x128xf32>
    %43 = arith.mulf %38, %42 : vector<4x8x128xf32>
    %44 = arith.addf %37, %43 : vector<4x8x128xf32>
    %45 = vector.extract_strided_slice %2 {offsets = [1, 0, 0], sizes = [4, 8, 128], strides = [1, 1, 1]} : vector<20x9x128xf32> to vector<4x8x128xf32>
    %46 = vector.extract_strided_slice %3 {offsets = [6, 0], sizes = [1, 128], strides = [1, 1]} : vector<9x128xf32> to vector<1x128xf32>
    %47 = vector.shape_cast %46 : vector<1x128xf32> to vector<128xf32>
    %48 = vector.shape_cast %47 : vector<128xf32> to vector<1x1x128xf32>
    %49 = vector.broadcast %48 : vector<1x1x128xf32> to vector<4x8x128xf32>
    %50 = arith.mulf %45, %49 : vector<4x8x128xf32>
    %51 = arith.addf %44, %50 : vector<4x8x128xf32>
    %52 = vector.extract_strided_slice %2 {offsets = [6, 0, 0], sizes = [4, 8, 128], strides = [1, 1, 1]} : vector<20x9x128xf32> to vector<4x8x128xf32>
    %53 = vector.extract_strided_slice %3 {offsets = [7, 0], sizes = [1, 128], strides = [1, 1]} : vector<9x128xf32> to vector<1x128xf32>
    %54 = vector.shape_cast %53 : vector<1x128xf32> to vector<128xf32>
    %55 = vector.shape_cast %54 : vector<128xf32> to vector<1x1x128xf32>
    %56 = vector.broadcast %55 : vector<1x1x128xf32> to vector<4x8x128xf32>
    %57 = arith.mulf %52, %56 : vector<4x8x128xf32>
    %58 = arith.addf %51, %57 : vector<4x8x128xf32>
    %59 = vector.extract_strided_slice %2 {offsets = [1, 1, 0], sizes = [4, 8, 128], strides = [1, 1, 1]} : vector<20x9x128xf32> to vector<4x8x128xf32>
    %60 = vector.extract_strided_slice %3 {offsets = [8, 0], sizes = [1, 128], strides = [1, 1]} : vector<9x128xf32> to vector<1x128xf32>
    %61 = vector.shape_cast %60 : vector<1x128xf32> to vector<128xf32>
    %62 = vector.shape_cast %61 : vector<128xf32> to vector<1x1x128xf32>
    %63 = vector.broadcast %62 : vector<1x1x128xf32> to vector<4x8x128xf32>
    %64 = arith.mulf %59, %63 : vector<4x8x128xf32>
    %65 = arith.addf %58, %64 : vector<4x8x128xf32>
    %c0_5 = arith.constant 0 : index
    %c0_6 = arith.constant 0 : index
    %66 = vector.load %arg3[%c0_5, %c0_6] : memref<1x128xf32, #tpu.memory_space<vmem>>, vector<1x128xf32>
    %67 = vector.shape_cast %66 : vector<1x128xf32> to vector<1x1x128xf32>
    %68 = vector.broadcast %67 : vector<1x1x128xf32> to vector<4x8x128xf32>
    %69 = arith.addf %65, %68 : vector<4x8x128xf32>
    %cst = arith.constant 0.000000e+00 : f32
    %70 = vector.broadcast %cst : f32 to vector<4x8x128xf32>
    %71 = arith.maximumf %69, %70 : vector<4x8x128xf32>
    %72 = vector.shape_cast %71 : vector<4x8x128xf32> to vector<32x128xf32>
    %73 = arith.truncf %72 : vector<32x128xf32> to vector<32x128xbf16>
    %c0_7 = arith.constant 0 : index
    %c0_8 = arith.constant 0 : index
    %74 = vector.load %arg4[%c0_7, %c0_8] : memref<128x256xbf16, #tpu.memory_space<vmem>>, vector<128x256xbf16>
    %cst_9 = arith.constant dense<0.000000e+00> : vector<32x256xf32>
    %75 = tpu.matmul %73, %74, %cst_9 {dimension_numbers = #tpu.dot_dimension_numbers<[1], [0], [0], [1], [0, 0, 1, 1], [], []>} : vector<32x128xbf16>, vector<128x256xbf16>, vector<32x256xf32> -> vector<32x256xf32>
    %c0_10 = arith.constant 0 : index
    %c0_11 = arith.constant 0 : index
    %76 = vector.load %arg5[%c0_10, %c0_11] : memref<1x256xf32, #tpu.memory_space<vmem>>, vector<1x256xf32>
    %77 = vector.broadcast %76 : vector<1x256xf32> to vector<32x256xf32>
    %78 = arith.addf %75, %77 : vector<32x256xf32>
    %cst_12 = arith.constant 0.000000e+00 : f32
    %79 = vector.broadcast %cst_12 : f32 to vector<32x256xf32>
    %80 = arith.maximumf %78, %79 : vector<32x256xf32>
    %81 = arith.truncf %80 : vector<32x256xf32> to vector<32x256xbf16>
    %c0_13 = arith.constant 0 : index
    %c0_14 = arith.constant 0 : index
    %c0_15 = arith.constant 0 : index
    %82 = vector.load %arg6[%c0_13, %c0_14, %c0_15] : memref<1x32x256xbf16, #tpu.memory_space<vmem>>, vector<1x32x256xbf16>
    %83 = vector.shape_cast %82 : vector<1x32x256xbf16> to vector<32x256xbf16>
    %84 = vector.shape_cast %81 : vector<32x256xbf16> to vector<1x32x256xbf16>
    tpu.vector_store %arg6[%c0_13, %c0_14, %c0_15], %84 {strides = array<i32>} : memref<1x32x256xbf16, #tpu.memory_space<vmem>>, vector<1x32x256xbf16>,
    return
  }
  func.func @transform_0(%arg0: i32) -> (i32, i32, i32, i32) {
    %c0_i32 = arith.constant 0 : i32
    %c0_i32_0 = arith.constant 0 : i32
    %c0_i32_1 = arith.constant 0 : i32
    %c0_i32_2 = arith.constant 0 : i32
    return %arg0, %c0_i32, %c0_i32_0, %c0_i32_1 : i32, i32, i32, i32
  }
  func.func @transform_1(%arg0: i32) -> (i32, i32) {
    %c0_i32 = arith.constant 0 : i32
    %c0_i32_0 = arith.constant 0 : i32
    %c0_i32_1 = arith.constant 0 : i32
    return %c0_i32, %c0_i32_0 : i32, i32
  }
  func.func @transform_2(%arg0: i32) -> (i32, i32) {
    %c0_i32 = arith.constant 0 : i32
    %c0_i32_0 = arith.constant 0 : i32
    %c0_i32_1 = arith.constant 0 : i32
    return %c0_i32, %c0_i32_0 : i32, i32
  }
  func.func @transform_3(%arg0: i32) -> (i32, i32) {
    %c0_i32 = arith.constant 0 : i32
    %c0_i32_0 = arith.constant 0 : i32
    %c0_i32_1 = arith.constant 0 : i32
    return %c0_i32, %c0_i32_0 : i32, i32
  }
  func.func @transform_4(%arg0: i32) -> (i32, i32) {
    %c0_i32 = arith.constant 0 : i32
    %c0_i32_0 = arith.constant 0 : i32
    %c0_i32_1 = arith.constant 0 : i32
    return %c0_i32, %c0_i32_0 : i32, i32
  }
  func.func @transform_5(%arg0: i32) -> (i32, i32, i32) {
    %c0_i32 = arith.constant 0 : i32
    %c0_i32_0 = arith.constant 0 : i32
    %c0_i32_1 = arith.constant 0 : i32
    return %arg0, %c0_i32, %c0_i32_0 : i32, i32, i32
  }
}

module attributes {stable_mosaic.version = 11 : i64} {
  func.func @_dw_sep_kernel(%arg0: i32, %arg1: memref<1x6x10x256xbf16, #tpu.memory_space<vmem>>, %arg2: memref<9x256xf32, #tpu.memory_space<vmem>>, %arg3: memref<1x256xf32, #tpu.memory_space<vmem>>, %arg4: memref<256x256xbf16, #tpu.memory_space<vmem>>, %arg5: memref<1x256xf32, #tpu.memory_space<vmem>>, %arg6: memref<1x32x256xbf16, #tpu.memory_space<vmem>>) attributes {dimension_semantics = [#tpu.dimension_semantics<parallel>], iteration_bounds = array<i64: 2>, scalar_prefetch = 0 : i64, scratch_operands = 0 : i64, tpu.core_type = #tpu.core_type<tc>, window_params = [{transform_indices = @transform_0, window_bounds = array<i64: 1, 6, 10, 256>}, {pipeline_mode = #tpu.pipeline_mode<synchronous>, transform_indices = @transform_1, window_bounds = array<i64: 9, 256>}, {pipeline_mode = #tpu.pipeline_mode<synchronous>, transform_indices = @transform_2, window_bounds = array<i64: 1, 256>}, {pipeline_mode = #tpu.pipeline_mode<synchronous>, transform_indices = @transform_3, window_bounds = array<i64: 256, 256>}, {pipeline_mode = #tpu.pipeline_mode<synchronous>, transform_indices = @transform_4, window_bounds = array<i64: 1, 256>}, {transform_indices = @transform_5, window_bounds = array<i64: 1, 32, 256>}]} {
    %c0 = arith.constant 0 : index
    %c0_0 = arith.constant 0 : index
    %c0_1 = arith.constant 0 : index
    %c0_2 = arith.constant 0 : index
    %0 = vector.load %arg1[%c0, %c0_0, %c0_1, %c0_2] : memref<1x6x10x256xbf16, #tpu.memory_space<vmem>>, vector<1x6x10x256xbf16>
    %1 = vector.shape_cast %0 : vector<1x6x10x256xbf16> to vector<6x10x256xbf16>
    %2 = arith.extf %1 : vector<6x10x256xbf16> to vector<6x10x256xf32>
    %c0_3 = arith.constant 0 : index
    %c0_4 = arith.constant 0 : index
    %3 = vector.load %arg2[%c0_3, %c0_4] : memref<9x256xf32, #tpu.memory_space<vmem>>, vector<9x256xf32>
    %4 = vector.extract_strided_slice %2 {offsets = [0, 0, 0], sizes = [4, 8, 256], strides = [1, 1, 1]} : vector<6x10x256xf32> to vector<4x8x256xf32>
    %5 = vector.extract_strided_slice %3 {offsets = [0, 0], sizes = [1, 256], strides = [1, 1]} : vector<9x256xf32> to vector<1x256xf32>
    %6 = vector.shape_cast %5 : vector<1x256xf32> to vector<256xf32>
    %7 = vector.shape_cast %6 : vector<256xf32> to vector<1x1x256xf32>
    %8 = vector.broadcast %7 : vector<1x1x256xf32> to vector<4x8x256xf32>
    %9 = arith.mulf %4, %8 : vector<4x8x256xf32>
    %10 = vector.extract_strided_slice %2 {offsets = [0, 1, 0], sizes = [4, 8, 256], strides = [1, 1, 1]} : vector<6x10x256xf32> to vector<4x8x256xf32>
    %11 = vector.extract_strided_slice %3 {offsets = [1, 0], sizes = [1, 256], strides = [1, 1]} : vector<9x256xf32> to vector<1x256xf32>
    %12 = vector.shape_cast %11 : vector<1x256xf32> to vector<256xf32>
    %13 = vector.shape_cast %12 : vector<256xf32> to vector<1x1x256xf32>
    %14 = vector.broadcast %13 : vector<1x1x256xf32> to vector<4x8x256xf32>
    %15 = arith.mulf %10, %14 : vector<4x8x256xf32>
    %16 = arith.addf %9, %15 : vector<4x8x256xf32>
    %17 = vector.extract_strided_slice %2 {offsets = [0, 2, 0], sizes = [4, 8, 256], strides = [1, 1, 1]} : vector<6x10x256xf32> to vector<4x8x256xf32>
    %18 = vector.extract_strided_slice %3 {offsets = [2, 0], sizes = [1, 256], strides = [1, 1]} : vector<9x256xf32> to vector<1x256xf32>
    %19 = vector.shape_cast %18 : vector<1x256xf32> to vector<256xf32>
    %20 = vector.shape_cast %19 : vector<256xf32> to vector<1x1x256xf32>
    %21 = vector.broadcast %20 : vector<1x1x256xf32> to vector<4x8x256xf32>
    %22 = arith.mulf %17, %21 : vector<4x8x256xf32>
    %23 = arith.addf %16, %22 : vector<4x8x256xf32>
    %24 = vector.extract_strided_slice %2 {offsets = [1, 0, 0], sizes = [4, 8, 256], strides = [1, 1, 1]} : vector<6x10x256xf32> to vector<4x8x256xf32>
    %25 = vector.extract_strided_slice %3 {offsets = [3, 0], sizes = [1, 256], strides = [1, 1]} : vector<9x256xf32> to vector<1x256xf32>
    %26 = vector.shape_cast %25 : vector<1x256xf32> to vector<256xf32>
    %27 = vector.shape_cast %26 : vector<256xf32> to vector<1x1x256xf32>
    %28 = vector.broadcast %27 : vector<1x1x256xf32> to vector<4x8x256xf32>
    %29 = arith.mulf %24, %28 : vector<4x8x256xf32>
    %30 = arith.addf %23, %29 : vector<4x8x256xf32>
    %31 = vector.extract_strided_slice %2 {offsets = [1, 1, 0], sizes = [4, 8, 256], strides = [1, 1, 1]} : vector<6x10x256xf32> to vector<4x8x256xf32>
    %32 = vector.extract_strided_slice %3 {offsets = [4, 0], sizes = [1, 256], strides = [1, 1]} : vector<9x256xf32> to vector<1x256xf32>
    %33 = vector.shape_cast %32 : vector<1x256xf32> to vector<256xf32>
    %34 = vector.shape_cast %33 : vector<256xf32> to vector<1x1x256xf32>
    %35 = vector.broadcast %34 : vector<1x1x256xf32> to vector<4x8x256xf32>
    %36 = arith.mulf %31, %35 : vector<4x8x256xf32>
    %37 = arith.addf %30, %36 : vector<4x8x256xf32>
    %38 = vector.extract_strided_slice %2 {offsets = [1, 2, 0], sizes = [4, 8, 256], strides = [1, 1, 1]} : vector<6x10x256xf32> to vector<4x8x256xf32>
    %39 = vector.extract_strided_slice %3 {offsets = [5, 0], sizes = [1, 256], strides = [1, 1]} : vector<9x256xf32> to vector<1x256xf32>
    %40 = vector.shape_cast %39 : vector<1x256xf32> to vector<256xf32>
    %41 = vector.shape_cast %40 : vector<256xf32> to vector<1x1x256xf32>
    %42 = vector.broadcast %41 : vector<1x1x256xf32> to vector<4x8x256xf32>
    %43 = arith.mulf %38, %42 : vector<4x8x256xf32>
    %44 = arith.addf %37, %43 : vector<4x8x256xf32>
    %45 = vector.extract_strided_slice %2 {offsets = [2, 0, 0], sizes = [4, 8, 256], strides = [1, 1, 1]} : vector<6x10x256xf32> to vector<4x8x256xf32>
    %46 = vector.extract_strided_slice %3 {offsets = [6, 0], sizes = [1, 256], strides = [1, 1]} : vector<9x256xf32> to vector<1x256xf32>
    %47 = vector.shape_cast %46 : vector<1x256xf32> to vector<256xf32>
    %48 = vector.shape_cast %47 : vector<256xf32> to vector<1x1x256xf32>
    %49 = vector.broadcast %48 : vector<1x1x256xf32> to vector<4x8x256xf32>
    %50 = arith.mulf %45, %49 : vector<4x8x256xf32>
    %51 = arith.addf %44, %50 : vector<4x8x256xf32>
    %52 = vector.extract_strided_slice %2 {offsets = [2, 1, 0], sizes = [4, 8, 256], strides = [1, 1, 1]} : vector<6x10x256xf32> to vector<4x8x256xf32>
    %53 = vector.extract_strided_slice %3 {offsets = [7, 0], sizes = [1, 256], strides = [1, 1]} : vector<9x256xf32> to vector<1x256xf32>
    %54 = vector.shape_cast %53 : vector<1x256xf32> to vector<256xf32>
    %55 = vector.shape_cast %54 : vector<256xf32> to vector<1x1x256xf32>
    %56 = vector.broadcast %55 : vector<1x1x256xf32> to vector<4x8x256xf32>
    %57 = arith.mulf %52, %56 : vector<4x8x256xf32>
    %58 = arith.addf %51, %57 : vector<4x8x256xf32>
    %59 = vector.extract_strided_slice %2 {offsets = [2, 2, 0], sizes = [4, 8, 256], strides = [1, 1, 1]} : vector<6x10x256xf32> to vector<4x8x256xf32>
    %60 = vector.extract_strided_slice %3 {offsets = [8, 0], sizes = [1, 256], strides = [1, 1]} : vector<9x256xf32> to vector<1x256xf32>
    %61 = vector.shape_cast %60 : vector<1x256xf32> to vector<256xf32>
    %62 = vector.shape_cast %61 : vector<256xf32> to vector<1x1x256xf32>
    %63 = vector.broadcast %62 : vector<1x1x256xf32> to vector<4x8x256xf32>
    %64 = arith.mulf %59, %63 : vector<4x8x256xf32>
    %65 = arith.addf %58, %64 : vector<4x8x256xf32>
    %c0_5 = arith.constant 0 : index
    %c0_6 = arith.constant 0 : index
    %66 = vector.load %arg3[%c0_5, %c0_6] : memref<1x256xf32, #tpu.memory_space<vmem>>, vector<1x256xf32>
    %67 = vector.shape_cast %66 : vector<1x256xf32> to vector<1x1x256xf32>
    %68 = vector.broadcast %67 : vector<1x1x256xf32> to vector<4x8x256xf32>
    %69 = arith.addf %65, %68 : vector<4x8x256xf32>
    %cst = arith.constant 0.000000e+00 : f32
    %70 = vector.broadcast %cst : f32 to vector<4x8x256xf32>
    %71 = arith.maximumf %69, %70 : vector<4x8x256xf32>
    %72 = vector.shape_cast %71 : vector<4x8x256xf32> to vector<32x256xf32>
    %73 = arith.truncf %72 : vector<32x256xf32> to vector<32x256xbf16>
    %c0_7 = arith.constant 0 : index
    %c0_8 = arith.constant 0 : index
    %74 = vector.load %arg4[%c0_7, %c0_8] : memref<256x256xbf16, #tpu.memory_space<vmem>>, vector<256x256xbf16>
    %cst_9 = arith.constant dense<0.000000e+00> : vector<32x256xf32>
    %75 = tpu.matmul %73, %74, %cst_9 {dimension_numbers = #tpu.dot_dimension_numbers<[1], [0], [0], [1], [0, 0, 1, 1], [], []>} : vector<32x256xbf16>, vector<256x256xbf16>, vector<32x256xf32> -> vector<32x256xf32>
    %c0_10 = arith.constant 0 : index
    %c0_11 = arith.constant 0 : index
    %76 = vector.load %arg5[%c0_10, %c0_11] : memref<1x256xf32, #tpu.memory_space<vmem>>, vector<1x256xf32>
    %77 = vector.broadcast %76 : vector<1x256xf32> to vector<32x256xf32>
    %78 = arith.addf %75, %77 : vector<32x256xf32>
    %cst_12 = arith.constant 0.000000e+00 : f32
    %79 = vector.broadcast %cst_12 : f32 to vector<32x256xf32>
    %80 = arith.maximumf %78, %79 : vector<32x256xf32>
    %81 = arith.truncf %80 : vector<32x256xf32> to vector<32x256xbf16>
    %c0_13 = arith.constant 0 : index
    %c0_14 = arith.constant 0 : index
    %c0_15 = arith.constant 0 : index
    %82 = vector.load %arg6[%c0_13, %c0_14, %c0_15] : memref<1x32x256xbf16, #tpu.memory_space<vmem>>, vector<1x32x256xbf16>
    %83 = vector.shape_cast %82 : vector<1x32x256xbf16> to vector<32x256xbf16>
    %84 = vector.shape_cast %81 : vector<32x256xbf16> to vector<1x32x256xbf16>
    tpu.vector_store %arg6[%c0_13, %c0_14, %c0_15], %84 {strides = array<i32>} : memref<1x32x256xbf16, #tpu.memory_space<vmem>>, vector<1x32x256xbf16>,
    return
  }
  func.func @transform_0(%arg0: i32) -> (i32, i32, i32, i32) {
    %c0_i32 = arith.constant 0 : i32
    %c0_i32_0 = arith.constant 0 : i32
    %c0_i32_1 = arith.constant 0 : i32
    %c0_i32_2 = arith.constant 0 : i32
    return %arg0, %c0_i32, %c0_i32_0, %c0_i32_1 : i32, i32, i32, i32
  }
  func.func @transform_1(%arg0: i32) -> (i32, i32) {
    %c0_i32 = arith.constant 0 : i32
    %c0_i32_0 = arith.constant 0 : i32
    %c0_i32_1 = arith.constant 0 : i32
    return %c0_i32, %c0_i32_0 : i32, i32
  }
  func.func @transform_2(%arg0: i32) -> (i32, i32) {
    %c0_i32 = arith.constant 0 : i32
    %c0_i32_0 = arith.constant 0 : i32
    %c0_i32_1 = arith.constant 0 : i32
    return %c0_i32, %c0_i32_0 : i32, i32
  }
  func.func @transform_3(%arg0: i32) -> (i32, i32) {
    %c0_i32 = arith.constant 0 : i32
    %c0_i32_0 = arith.constant 0 : i32
    %c0_i32_1 = arith.constant 0 : i32
    return %c0_i32, %c0_i32_0 : i32, i32
  }
  func.func @transform_4(%arg0: i32) -> (i32, i32) {
    %c0_i32 = arith.constant 0 : i32
    %c0_i32_0 = arith.constant 0 : i32
    %c0_i32_1 = arith.constant 0 : i32
    return %c0_i32, %c0_i32_0 : i32, i32
  }
  func.func @transform_5(%arg0: i32) -> (i32, i32, i32) {
    %c0_i32 = arith.constant 0 : i32
    %c0_i32_0 = arith.constant 0 : i32
    %c0_i32_1 = arith.constant 0 : i32
    return %arg0, %c0_i32, %c0_i32_0 : i32, i32, i32
  }
}

module attributes {stable_mosaic.version = 11 : i64} {
  func.func @_head_kernel(%arg0: i32, %arg1: memref<1x12x9x256xbf16, #tpu.memory_space<vmem>>, %arg2: memref<9x256xf32, #tpu.memory_space<vmem>>, %arg3: memref<1x256xf32, #tpu.memory_space<vmem>>, %arg4: memref<256x512xbf16, #tpu.memory_space<vmem>>, %arg5: memref<1x512xf32, #tpu.memory_space<vmem>>, %arg6: memref<512x1024xbf16, #tpu.memory_space<vmem>>, %arg7: memref<1x1024xf32, #tpu.memory_space<vmem>>, %arg8: memref<1x1x1024xf32, #tpu.memory_space<vmem>>) attributes {dimension_semantics = [#tpu.dimension_semantics<parallel>], iteration_bounds = array<i64: 2>, scalar_prefetch = 0 : i64, scratch_operands = 0 : i64, tpu.core_type = #tpu.core_type<tc>, window_params = [{transform_indices = @transform_0, window_bounds = array<i64: 1, 12, 9, 256>}, {pipeline_mode = #tpu.pipeline_mode<synchronous>, transform_indices = @transform_1, window_bounds = array<i64: 9, 256>}, {pipeline_mode = #tpu.pipeline_mode<synchronous>, transform_indices = @transform_2, window_bounds = array<i64: 1, 256>}, {pipeline_mode = #tpu.pipeline_mode<synchronous>, transform_indices = @transform_3, window_bounds = array<i64: 256, 512>}, {pipeline_mode = #tpu.pipeline_mode<synchronous>, transform_indices = @transform_4, window_bounds = array<i64: 1, 512>}, {pipeline_mode = #tpu.pipeline_mode<synchronous>, transform_indices = @transform_5, window_bounds = array<i64: 512, 1024>}, {pipeline_mode = #tpu.pipeline_mode<synchronous>, transform_indices = @transform_6, window_bounds = array<i64: 1, 1024>}, {transform_indices = @transform_7, window_bounds = array<i64: 1, 1, 1024>}]} {
    %c0 = arith.constant 0 : index
    %c0_0 = arith.constant 0 : index
    %c0_1 = arith.constant 0 : index
    %c0_2 = arith.constant 0 : index
    %0 = vector.load %arg1[%c0, %c0_0, %c0_1, %c0_2] : memref<1x12x9x256xbf16, #tpu.memory_space<vmem>>, vector<1x12x9x256xbf16>
    %1 = vector.shape_cast %0 : vector<1x12x9x256xbf16> to vector<12x9x256xbf16>
    %2 = arith.extf %1 : vector<12x9x256xbf16> to vector<12x9x256xf32>
    %c0_3 = arith.constant 0 : index
    %c0_4 = arith.constant 0 : index
    %3 = vector.load %arg2[%c0_3, %c0_4] : memref<9x256xf32, #tpu.memory_space<vmem>>, vector<9x256xf32>
    %4 = vector.extract_strided_slice %2 {offsets = [0, 0, 0], sizes = [2, 8, 256], strides = [1, 1, 1]} : vector<12x9x256xf32> to vector<2x8x256xf32>
    %5 = vector.extract_strided_slice %3 {offsets = [0, 0], sizes = [1, 256], strides = [1, 1]} : vector<9x256xf32> to vector<1x256xf32>
    %6 = vector.shape_cast %5 : vector<1x256xf32> to vector<256xf32>
    %7 = vector.shape_cast %6 : vector<256xf32> to vector<1x1x256xf32>
    %8 = vector.broadcast %7 : vector<1x1x256xf32> to vector<2x8x256xf32>
    %9 = arith.mulf %4, %8 : vector<2x8x256xf32>
    %10 = vector.extract_strided_slice %2 {offsets = [3, 0, 0], sizes = [2, 8, 256], strides = [1, 1, 1]} : vector<12x9x256xf32> to vector<2x8x256xf32>
    %11 = vector.extract_strided_slice %3 {offsets = [1, 0], sizes = [1, 256], strides = [1, 1]} : vector<9x256xf32> to vector<1x256xf32>
    %12 = vector.shape_cast %11 : vector<1x256xf32> to vector<256xf32>
    %13 = vector.shape_cast %12 : vector<256xf32> to vector<1x1x256xf32>
    %14 = vector.broadcast %13 : vector<1x1x256xf32> to vector<2x8x256xf32>
    %15 = arith.mulf %10, %14 : vector<2x8x256xf32>
    %16 = arith.addf %9, %15 : vector<2x8x256xf32>
    %17 = vector.extract_strided_slice %2 {offsets = [0, 1, 0], sizes = [2, 8, 256], strides = [1, 1, 1]} : vector<12x9x256xf32> to vector<2x8x256xf32>
    %18 = vector.extract_strided_slice %3 {offsets = [2, 0], sizes = [1, 256], strides = [1, 1]} : vector<9x256xf32> to vector<1x256xf32>
    %19 = vector.shape_cast %18 : vector<1x256xf32> to vector<256xf32>
    %20 = vector.shape_cast %19 : vector<256xf32> to vector<1x1x256xf32>
    %21 = vector.broadcast %20 : vector<1x1x256xf32> to vector<2x8x256xf32>
    %22 = arith.mulf %17, %21 : vector<2x8x256xf32>
    %23 = arith.addf %16, %22 : vector<2x8x256xf32>
    %24 = vector.extract_strided_slice %2 {offsets = [6, 0, 0], sizes = [2, 8, 256], strides = [1, 1, 1]} : vector<12x9x256xf32> to vector<2x8x256xf32>
    %25 = vector.extract_strided_slice %3 {offsets = [3, 0], sizes = [1, 256], strides = [1, 1]} : vector<9x256xf32> to vector<1x256xf32>
    %26 = vector.shape_cast %25 : vector<1x256xf32> to vector<256xf32>
    %27 = vector.shape_cast %26 : vector<256xf32> to vector<1x1x256xf32>
    %28 = vector.broadcast %27 : vector<1x1x256xf32> to vector<2x8x256xf32>
    %29 = arith.mulf %24, %28 : vector<2x8x256xf32>
    %30 = arith.addf %23, %29 : vector<2x8x256xf32>
    %31 = vector.extract_strided_slice %2 {offsets = [9, 0, 0], sizes = [2, 8, 256], strides = [1, 1, 1]} : vector<12x9x256xf32> to vector<2x8x256xf32>
    %32 = vector.extract_strided_slice %3 {offsets = [4, 0], sizes = [1, 256], strides = [1, 1]} : vector<9x256xf32> to vector<1x256xf32>
    %33 = vector.shape_cast %32 : vector<1x256xf32> to vector<256xf32>
    %34 = vector.shape_cast %33 : vector<256xf32> to vector<1x1x256xf32>
    %35 = vector.broadcast %34 : vector<1x1x256xf32> to vector<2x8x256xf32>
    %36 = arith.mulf %31, %35 : vector<2x8x256xf32>
    %37 = arith.addf %30, %36 : vector<2x8x256xf32>
    %38 = vector.extract_strided_slice %2 {offsets = [6, 1, 0], sizes = [2, 8, 256], strides = [1, 1, 1]} : vector<12x9x256xf32> to vector<2x8x256xf32>
    %39 = vector.extract_strided_slice %3 {offsets = [5, 0], sizes = [1, 256], strides = [1, 1]} : vector<9x256xf32> to vector<1x256xf32>
    %40 = vector.shape_cast %39 : vector<1x256xf32> to vector<256xf32>
    %41 = vector.shape_cast %40 : vector<256xf32> to vector<1x1x256xf32>
    %42 = vector.broadcast %41 : vector<1x1x256xf32> to vector<2x8x256xf32>
    %43 = arith.mulf %38, %42 : vector<2x8x256xf32>
    %44 = arith.addf %37, %43 : vector<2x8x256xf32>
    %45 = vector.extract_strided_slice %2 {offsets = [1, 0, 0], sizes = [2, 8, 256], strides = [1, 1, 1]} : vector<12x9x256xf32> to vector<2x8x256xf32>
    %46 = vector.extract_strided_slice %3 {offsets = [6, 0], sizes = [1, 256], strides = [1, 1]} : vector<9x256xf32> to vector<1x256xf32>
    %47 = vector.shape_cast %46 : vector<1x256xf32> to vector<256xf32>
    %48 = vector.shape_cast %47 : vector<256xf32> to vector<1x1x256xf32>
    %49 = vector.broadcast %48 : vector<1x1x256xf32> to vector<2x8x256xf32>
    %50 = arith.mulf %45, %49 : vector<2x8x256xf32>
    %51 = arith.addf %44, %50 : vector<2x8x256xf32>
    %52 = vector.extract_strided_slice %2 {offsets = [4, 0, 0], sizes = [2, 8, 256], strides = [1, 1, 1]} : vector<12x9x256xf32> to vector<2x8x256xf32>
    %53 = vector.extract_strided_slice %3 {offsets = [7, 0], sizes = [1, 256], strides = [1, 1]} : vector<9x256xf32> to vector<1x256xf32>
    %54 = vector.shape_cast %53 : vector<1x256xf32> to vector<256xf32>
    %55 = vector.shape_cast %54 : vector<256xf32> to vector<1x1x256xf32>
    %56 = vector.broadcast %55 : vector<1x1x256xf32> to vector<2x8x256xf32>
    %57 = arith.mulf %52, %56 : vector<2x8x256xf32>
    %58 = arith.addf %51, %57 : vector<2x8x256xf32>
    %59 = vector.extract_strided_slice %2 {offsets = [1, 1, 0], sizes = [2, 8, 256], strides = [1, 1, 1]} : vector<12x9x256xf32> to vector<2x8x256xf32>
    %60 = vector.extract_strided_slice %3 {offsets = [8, 0], sizes = [1, 256], strides = [1, 1]} : vector<9x256xf32> to vector<1x256xf32>
    %61 = vector.shape_cast %60 : vector<1x256xf32> to vector<256xf32>
    %62 = vector.shape_cast %61 : vector<256xf32> to vector<1x1x256xf32>
    %63 = vector.broadcast %62 : vector<1x1x256xf32> to vector<2x8x256xf32>
    %64 = arith.mulf %59, %63 : vector<2x8x256xf32>
    %65 = arith.addf %58, %64 : vector<2x8x256xf32>
    %c0_5 = arith.constant 0 : index
    %c0_6 = arith.constant 0 : index
    %66 = vector.load %arg3[%c0_5, %c0_6] : memref<1x256xf32, #tpu.memory_space<vmem>>, vector<1x256xf32>
    %67 = vector.shape_cast %66 : vector<1x256xf32> to vector<1x1x256xf32>
    %68 = vector.broadcast %67 : vector<1x1x256xf32> to vector<2x8x256xf32>
    %69 = arith.addf %65, %68 : vector<2x8x256xf32>
    %cst = arith.constant 0.000000e+00 : f32
    %70 = vector.broadcast %cst : f32 to vector<2x8x256xf32>
    %71 = arith.maximumf %69, %70 : vector<2x8x256xf32>
    %72 = vector.shape_cast %71 : vector<2x8x256xf32> to vector<16x256xf32>
    %73 = arith.truncf %72 : vector<16x256xf32> to vector<16x256xbf16>
    %c0_7 = arith.constant 0 : index
    %c0_8 = arith.constant 0 : index
    %74 = vector.load %arg4[%c0_7, %c0_8] : memref<256x512xbf16, #tpu.memory_space<vmem>>, vector<256x512xbf16>
    %cst_9 = arith.constant dense<0.000000e+00> : vector<16x512xf32>
    %75 = tpu.matmul %73, %74, %cst_9 {dimension_numbers = #tpu.dot_dimension_numbers<[1], [0], [0], [1], [0, 0, 1, 1], [], []>} : vector<16x256xbf16>, vector<256x512xbf16>, vector<16x512xf32> -> vector<16x512xf32>
    %c0_10 = arith.constant 0 : index
    %c0_11 = arith.constant 0 : index
    %76 = vector.load %arg5[%c0_10, %c0_11] : memref<1x512xf32, #tpu.memory_space<vmem>>, vector<1x512xf32>
    %77 = vector.broadcast %76 : vector<1x512xf32> to vector<16x512xf32>
    %78 = arith.addf %75, %77 : vector<16x512xf32>
    %cst_12 = arith.constant 0.000000e+00 : f32
    %79 = vector.broadcast %cst_12 : f32 to vector<16x512xf32>
    %80 = arith.maximumf %78, %79 : vector<16x512xf32>
    %81 = tpu.iota {dimensions = array<i32: 0>} : vector<16x1xi32>
    %c8_i32 = arith.constant 8 : i32
    %c0_i32 = arith.constant 0 : i32
    %82 = arith.cmpi eq, %c8_i32, %c0_i32 : i32
    %c1_i32 = arith.constant 1 : i32
    %83 = arith.select %82, %c1_i32, %c8_i32 : i32
    %84 = vector.broadcast %83 : i32 to vector<16x1xi32>
    %85 = arith.remsi %81, %84 : vector<16x1xi32>
    %c0_i32_13 = arith.constant 0 : i32
    %86 = vector.broadcast %c0_i32_13 : i32 to vector<16x1xi32>
    %87 = arith.cmpi ne, %85, %86 : vector<16x1xi32>
    %c0_i32_14 = arith.constant 0 : i32
    %88 = vector.broadcast %c0_i32_14 : i32 to vector<16x1xi32>
    %89 = arith.cmpi slt, %85, %88 : vector<16x1xi32>
    %c0_i32_15 = arith.constant 0 : i32
    %90 = arith.cmpi slt, %83, %c0_i32_15 : i32
    %91 = vector.broadcast %90 : i1 to vector<16x1xi1>
    %92 = vector.broadcast %91 : vector<16x1xi1> to vector<16x1xi1>
    %93 = arith.xori %89, %92 : vector<16x1xi1>
    %94 = arith.andi %93, %87 : vector<16x1xi1>
    %95 = vector.broadcast %83 : i32 to vector<16x1xi32>
    %96 = arith.addi %85, %95 : vector<16x1xi32>
    %97 = arith.select %94, %96, %85 : vector<16x1xi1>, vector<16x1xi32>
    %c2_i32 = arith.constant 2 : i32
    %98 = vector.broadcast %c2_i32 : i32 to vector<16x1xi32>
    %99 = arith.cmpi slt, %97, %98 : vector<16x1xi32>
    %cst_16 = arith.constant 0.000000e+00 : f32
    %100 = vector.shape_cast %99 : vector<16x1xi1> to vector<16x1xi1>
    %101 = vector.broadcast %100 : vector<16x1xi1> to vector<16x512xi1>
    %102 = vector.broadcast %cst_16 : f32 to vector<16x512xf32>
    %103 = arith.select %101, %80, %102 : vector<16x512xi1>, vector<16x512xf32>
    %cst_17 = arith.constant dense<0.000000e+00> : vector<512xf32>
    %104 = vector.multi_reduction <add>, %103, %cst_17 [0] : vector<16x512xf32> to vector<512xf32>
    %105 = vector.shape_cast %104 : vector<512xf32> to vector<1x512xf32>
    %cst_18 = arith.constant 2.500000e-01 : f32
    %106 = vector.broadcast %cst_18 : f32 to vector<1x512xf32>
    %107 = arith.mulf %105, %106 : vector<1x512xf32>
    %108 = arith.truncf %107 : vector<1x512xf32> to vector<1x512xbf16>
    %c0_19 = arith.constant 0 : index
    %c0_20 = arith.constant 0 : index
    %109 = vector.load %arg6[%c0_19, %c0_20] : memref<512x1024xbf16, #tpu.memory_space<vmem>>, vector<512x1024xbf16>
    %cst_21 = arith.constant dense<0.000000e+00> : vector<1x1024xf32>
    %110 = tpu.matmul %108, %109, %cst_21 {dimension_numbers = #tpu.dot_dimension_numbers<[1], [0], [0], [1], [0, 0, 1, 1], [], []>} : vector<1x512xbf16>, vector<512x1024xbf16>, vector<1x1024xf32> -> vector<1x1024xf32>
    %c0_22 = arith.constant 0 : index
    %c0_23 = arith.constant 0 : index
    %111 = vector.load %arg7[%c0_22, %c0_23] : memref<1x1024xf32, #tpu.memory_space<vmem>>, vector<1x1024xf32>
    %112 = arith.addf %110, %111 : vector<1x1024xf32>
    %c0_24 = arith.constant 0 : index
    %c0_25 = arith.constant 0 : index
    %c0_26 = arith.constant 0 : index
    %113 = vector.load %arg8[%c0_24, %c0_25, %c0_26] : memref<1x1x1024xf32, #tpu.memory_space<vmem>>, vector<1x1x1024xf32>
    %114 = vector.shape_cast %113 : vector<1x1x1024xf32> to vector<1x1024xf32>
    %115 = vector.shape_cast %112 : vector<1x1024xf32> to vector<1x1x1024xf32>
    tpu.vector_store %arg8[%c0_24, %c0_25, %c0_26], %115 {strides = array<i32>} : memref<1x1x1024xf32, #tpu.memory_space<vmem>>, vector<1x1x1024xf32>,
    return
  }
  func.func @transform_0(%arg0: i32) -> (i32, i32, i32, i32) {
    %c0_i32 = arith.constant 0 : i32
    %c0_i32_0 = arith.constant 0 : i32
    %c0_i32_1 = arith.constant 0 : i32
    %c0_i32_2 = arith.constant 0 : i32
    return %arg0, %c0_i32, %c0_i32_0, %c0_i32_1 : i32, i32, i32, i32
  }
  func.func @transform_1(%arg0: i32) -> (i32, i32) {
    %c0_i32 = arith.constant 0 : i32
    %c0_i32_0 = arith.constant 0 : i32
    %c0_i32_1 = arith.constant 0 : i32
    return %c0_i32, %c0_i32_0 : i32, i32
  }
  func.func @transform_2(%arg0: i32) -> (i32, i32) {
    %c0_i32 = arith.constant 0 : i32
    %c0_i32_0 = arith.constant 0 : i32
    %c0_i32_1 = arith.constant 0 : i32
    return %c0_i32, %c0_i32_0 : i32, i32
  }
  func.func @transform_3(%arg0: i32) -> (i32, i32) {
    %c0_i32 = arith.constant 0 : i32
    %c0_i32_0 = arith.constant 0 : i32
    %c0_i32_1 = arith.constant 0 : i32
    return %c0_i32, %c0_i32_0 : i32, i32
  }
  func.func @transform_4(%arg0: i32) -> (i32, i32) {
    %c0_i32 = arith.constant 0 : i32
    %c0_i32_0 = arith.constant 0 : i32
    %c0_i32_1 = arith.constant 0 : i32
    return %c0_i32, %c0_i32_0 : i32, i32
  }
  func.func @transform_5(%arg0: i32) -> (i32, i32) {
    %c0_i32 = arith.constant 0 : i32
    %c0_i32_0 = arith.constant 0 : i32
    %c0_i32_1 = arith.constant 0 : i32
    return %c0_i32, %c0_i32_0 : i32, i32
  }
  func.func @transform_6(%arg0: i32) -> (i32, i32) {
    %c0_i32 = arith.constant 0 : i32
    %c0_i32_0 = arith.constant 0 : i32
    %c0_i32_1 = arith.constant 0 : i32
    return %c0_i32, %c0_i32_0 : i32, i32
  }
  func.func @transform_7(%arg0: i32) -> (i32, i32, i32) {
    %c0_i32 = arith.constant 0 : i32
    %c0_i32_0 = arith.constant 0 : i32
    %c0_i32_1 = arith.constant 0 : i32
    return %arg0, %c0_i32, %c0_i32_0 : i32, i32, i32
  }
}

</mosaic_0001>

<bundles_post_ra>
// kernel: mobilenet_forward.7
= control target key start
LH: loop header
LB: loop body
LE: loop exit
PB: predicated region body
PF: predicated region fallthrough
CT: control target
= control target key end

     0   :  { %s991_s12 = smov 0   ;;  %s1158_s0 = inlined_call_operand.vmem [shape: bf16[512,32], index: 0, kind: input, shape index: {}]   ;;  %s1159_s1 = inlined_call_operand.vmem [shape: bf16[32,32], index: 1, kind: input, shape index: {}]   ;;  %s1160_s2 = inlined_call_operand.vmem [shape: f32[1,32], index: 2, kind: input, shape index: {}]   ;;  %s1161_s3 = inlined_call_operand.vmem [shape: bf16[512,32], index: 3, kind: output, shape index: {}]  }
   0x1 LB: > { %s769_s13 = sadd.s32 4294967295, %s969_s12   ;;  %p773_p0 = scmp.ge.s32.totalorder %s969_s12, 1  ;;  %s969_s12 = sphi %s991_s12, %s13_s12  }
   0x2   : > { %p138_p1 = scmp.lt.s32.totalorder %s969_s12, 3 }
   0x4   : > { %p139_p2 = pnand %p773_p0, %p138_p1 }
   0x5   : > { %v945_v0 = vld [vmem:[%s1159_s1] sm:$0xff] (!%p139_p2)   ;;  %s774_s16 = sshll.u32 (!%p139_p2), %s769_s13, 5  ;;  %v946_v1 = vld [vmem:[%s1159_s1 + $0x8] sm:$0xff] (!%p139_p2)   ;;  %vm310_vm0 = vcmask (!%p139_p2), 261120   ;;  %vm680_vm1 = vcmask (!%p139_p2), 257024  }
   0x6   : > { %142 = sbr.rel (%p139_p2) target bundleno = 265 (0x109), region = 32  ;;  %p163_p3 = scmp.lt.s32.totalorder (!%p139_p2), %s774_s16, 63  ;;  %897 = vmatprep.subr.bf16.mxu0 (!%p139_p2), %v945_v0  ;;  %933 = vmatprep.subr.bf16.mxu1 (!%p139_p2), %v945_v0  ;;  %v1050_v18 = vld [vmem:[%s1160_s2] ss:$0 sm:$0xff] (!%p139_p2) }
   0x7   : > { %898 = vmatpush3.bf16.msra.mxu0 (!%p139_p2), %v945_v0  ;;  %935 = vmatpush3.bf16.msra.mxu1 (!%p139_p2), %v945_v0 }
   0x8   : > { %899 = vmatprep.subr.bf16.mxu0 (!%p139_p2), %v946_v1  ;;  %934 = vmatprep.subr.bf16.mxu1 (!%p139_p2), %v946_v1 }
   0xb   : > { %900 = vmatpush3.bf16.msra.mxu0 (!%p139_p2), %v946_v1  ;;  %936 = vmatpush3.bf16.msra.mxu1 (!%p139_p2), %v946_v1 }
   0xd   : > { %s1163_s16 = smov (!%p163_p3, %s774_s16), 63 }
   0xe   : > { %s775_s19 = sshll.u32 %s1163_s16, 2 }
   0xf   : > { %s1013_s22 = scalar_lea.vmem %s1158_s0, %s775_s19  ;;  %s1062_s27 = scalar_lea.vmem %s1161_s3, %s775_s19 }
  0x10   : > { %v947_v2 = vld [vmem:[%s1013_s22] sm:$0xff]   ;;  %v949_v4 = vld [vmem:[%s1013_s22 + $0x8] sm:$0xff]   ;;  %v951_v6 = vld [vmem:[%s1013_s22 + $0x10] sm:$0xff]  }
  0x11   : > { %v948_v3 = vld [vmem:[%s1013_s22 + $0x40] sm:$0xff]   ;;  %901 = vmatprep.mubr.msk.bf16.mxu0 %vm310_vm0, %v947_v2  ;;  %v950_v5 = vld [vmem:[%s1013_s22 + $0x48] sm:$0xff]   ;;  %v952_v7 = vld [vmem:[%s1013_s22 + $0x50] sm:$0xff]  }
  0x12   : > { %917 = vmatprep.mubr.msk.bf16.mxu1 %vm310_vm0, %v948_v3  ;;  %902 = vmatmul.mubr.msk.bf16.vlgmr.msra.gmra.mrb[0].mxu0 %vm310_vm0, %v949_v4  ;;  %v953_v8 = vld [vmem:[%s1013_s22 + $0x18] sm:$0xff]   ;;  %v955_v10 = vld [vmem:[%s1013_s22 + $0x20] sm:$0xff]   ;;  %v957_v12 = vld [vmem:[%s1013_s22 + $0x28] sm:$0xff]  }
  0x13   : > { %918 = vmatmul.mubr.msk.bf16.vlgmr.msra.gmra.mrb[0].mxu1 %vm310_vm0, %v950_v5  ;;  %905 = vmatprep.mubr.msk.bf16.mxu0 %vm310_vm0, %v951_v6  ;;  %v954_v9 = vld [vmem:[%s1013_s22 + $0x58] sm:$0xff]   ;;  %v956_v11 = vld [vmem:[%s1013_s22 + $0x60] sm:$0xff]   ;;  %v958_v13 = vld [vmem:[%s1013_s22 + $0x68] sm:$0xff]  }
  0x14   : > { %921 = vmatprep.mubr.msk.bf16.mxu1 %vm310_vm0, %v952_v7  ;;  %v959_v14 = vld [vmem:[%s1013_s22 + $0x30] sm:$0xff]   ;;  %v961_v16 = vld [vmem:[%s1013_s22 + $0x38] sm:$0xff]  }
  0x15   : > { %v960_v15 = vld [vmem:[%s1013_s22 + $0x70] sm:$0xff]   ;;  %v962_v17 = vld [vmem:[%s1013_s22 + $0x78] sm:$0xff]  }
  0x1a   : > { %906 = vmatmul.mubr.msk.bf16.gmra.mrb[4].mxu0 %vm310_vm0, %v953_v8 }
  0x1b   : > { %922 = vmatmul.mubr.msk.bf16.gmra.mrb[4].mxu1 %vm310_vm0, %v954_v9  ;;  %909 = vmatprep.mubr.msk.bf16.mxu0 %vm310_vm0, %v955_v10 }
  0x1c   : > { %925 = vmatprep.mubr.msk.bf16.mxu1 %vm310_vm0, %v956_v11 }
  0x22   : > { %910 = vmatmul.mubr.msk.bf16.gmra.mrb[8].mxu0 %vm310_vm0, %v957_v12 }
  0x23   : > { %926 = vmatmul.mubr.msk.bf16.gmra.mrb[8].mxu1 %vm310_vm0, %v958_v13  ;;  %913 = vmatprep.mubr.msk.bf16.mxu0 %vm310_vm0, %v959_v14 }
  0x24   : > { %929 = vmatprep.mubr.msk.bf16.mxu1 %vm310_vm0, %v960_v15 }
  0x2a   : > { %914 = vmatmul.mubr.msk.bf16.gmra.mrb[12].mxu0 %vm310_vm0, %v961_v16 }
  0x2b   : > { %930 = vmatmul.mubr.msk.bf16.gmra.mrb[12].mxu1 %vm310_vm0, %v962_v17 }
  0xe5   : > { %v903_v19 = vpop.f32.mrb[0].mxu0 }
  0xe6   : > { %v402_v20 = vadd.f32 %v903_v19, %v1050_v18  ;;  %v919_v21 = vpop.f32.mrb[0].mxu1  ;;  %v393_v22 = vpop.f32.mrb[1].mxu0 }
  0xe7   : > { %v466_v23 = vadd.f32 %v919_v21, %v1050_v18  ;;  %v394_v24 = vadd.f32 %v1050_v18, %v393_v22  ;;  %v457_v25 = vpop.f32.mrb[1].mxu1  ;;  %v904_v26 = vpop.f32.mrb[2].mxu0 }
  0xe8   : > { %v522_v27 = vmax.f32 %v402_v20, 0.0  ;;  %v458_v28 = vadd.f32 %v1050_v18, %v457_v25  ;;  %v405_v29 = vadd.f32 %v904_v26, %v1050_v18  ;;  %v920_v30 = vpop.f32.mrb[2].mxu1  ;;  %v396_v31 = vpop.f32.mrb[3].mxu0 }
  0xe9   : > { %v538_v32 = vmax.f32 %v466_v23, 0.0  ;;  %v520_v33 = vmax.f32 %v394_v24, 0.0  ;;  %v469_v34 = vadd.f32 %v920_v30, %v1050_v18  ;;  %v397_v35 = vadd.f32 %v1050_v18, %v396_v31  ;;  %v460_v36 = vpop.f32.mrb[3].mxu1 }
  0xea   : > { %v849_v37 = vpack.c.bf16 %v522_v27, %v522_v27  ;;  %v536_v38 = vmax.f32 %v458_v28, 0.0  ;;  %v523_v39 = vmax.f32 %v405_v29, 0.0  ;;  %v461_v40 = vadd.f32 %v1050_v18, %v460_v36 }
  0xeb   : > { %v865_v41 = vpack.c.bf16 %v538_v32, %v538_v32  ;;  %v847_v42 = vpack.c.bf16 %v520_v33, %v520_v33  ;;  %v539_v43 = vmax.f32 %v469_v34, 0.0  ;;  %v521_v44 = vmax.f32 %v397_v35, 0.0 }
  0xec   : > { %683 = vst.msk [vmem:[%s1062_s27 + $0x8] sm:$0xf] %vm680_vm1, %v849_v37  ;;  %v863_v45 = vpack.c.bf16 %v536_v38, %v536_v38  ;;  %v850_v46 = vpack.c.bf16 %v523_v39, %v523_v39  ;;  %v537_v47 = vmax.f32 %v461_v40, 0.0 }
  0xed   : > { %699 = vst.msk [vmem:[%s1062_s27 + $0x48] sm:$0xf] %vm680_vm1, %v865_v41  ;;  %681 = vst.msk [vmem:[%s1062_s27] sm:$0xf] %vm680_vm1, %v847_v42  ;;  %v866_v48 = vpack.c.bf16 %v539_v43, %v539_v43  ;;  %v848_v49 = vpack.c.bf16 %v521_v44, %v521_v44  ;;  %v907_v50 = vpop.f32.mrb[4].mxu0 }
  0xee   : > { %697 = vst.msk [vmem:[%s1062_s27 + $0x40] sm:$0xf] %vm680_vm1, %v863_v45  ;;  %684 = vst.msk [vmem:[%s1062_s27 + $0xc] sm:$0xf] %vm680_vm1, %v850_v46  ;;  %v864_v51 = vpack.c.bf16 %v537_v47, %v537_v47  ;;  %v418_v52 = vadd.f32 %v907_v50, %v1050_v18  ;;  %v923_v53 = vpop.f32.mrb[4].mxu1  ;;  %v409_v54 = vpop.f32.mrb[5].mxu0 }
  0xef   : > { %700 = vst.msk [vmem:[%s1062_s27 + $0x4c] sm:$0xf] %vm680_vm1, %v866_v48  ;;  %682 = vst.msk [vmem:[%s1062_s27 + $0x4] sm:$0xf] %vm680_vm1, %v848_v49  ;;  %v482_v55 = vadd.f32 %v923_v53, %v1050_v18  ;;  %v410_v56 = vadd.f32 %v1050_v18, %v409_v54  ;;  %v473_v57 = vpop.f32.mrb[5].mxu1  ;;  %v908_v58 = vpop.f32.mrb[6].mxu0 }
  0xf0   : > { %698 = vst.msk [vmem:[%s1062_s27 + $0x44] sm:$0xf] %vm680_vm1, %v864_v51  ;;  %v526_v59 = vmax.f32 %v418_v52, 0.0  ;;  %v474_v60 = vadd.f32 %v1050_v18, %v473_v57  ;;  %v421_v61 = vadd.f32 %v908_v58, %v1050_v18  ;;  %v924_v62 = vpop.f32.mrb[6].mxu1  ;;  %v412_v63 = vpop.f32.mrb[7].mxu0 }
  0xf1   : > { %v542_v0 = vmax.f32 %v482_v55, 0.0  ;;  %v524_v1 = vmax.f32 %v410_v56, 0.0  ;;  %v485_v2 = vadd.f32 %v924_v62, %v1050_v18  ;;  %v413_v3 = vadd.f32 %v1050_v18, %v412_v63  ;;  %v476_v4 = vpop.f32.mrb[7].mxu1 }
  0xf2   : > { %v853_v5 = vpack.c.bf16 %v526_v59, %v526_v59  ;;  %v540_v6 = vmax.f32 %v474_v60, 0.0  ;;  %v527_v7 = vmax.f32 %v421_v61, 0.0  ;;  %v477_v8 = vadd.f32 %v1050_v18, %v476_v4 }
  0xf3   : > { %v869_v9 = vpack.c.bf16 %v542_v0, %v542_v0  ;;  %v851_v10 = vpack.c.bf16 %v524_v1, %v524_v1  ;;  %v543_v11 = vmax.f32 %v485_v2, 0.0  ;;  %v525_v12 = vmax.f32 %v413_v3, 0.0 }
  0xf4   : > { %687 = vst.msk [vmem:[%s1062_s27 + $0x18] sm:$0xf] %vm680_vm1, %v853_v5  ;;  %v867_v13 = vpack.c.bf16 %v540_v6, %v540_v6  ;;  %v854_v14 = vpack.c.bf16 %v527_v7, %v527_v7  ;;  %v541_v15 = vmax.f32 %v477_v8, 0.0 }
  0xf5   : > { %703 = vst.msk [vmem:[%s1062_s27 + $0x58] sm:$0xf] %vm680_vm1, %v869_v9  ;;  %685 = vst.msk [vmem:[%s1062_s27 + $0x10] sm:$0xf] %vm680_vm1, %v851_v10  ;;  %v870_v16 = vpack.c.bf16 %v543_v11, %v543_v11  ;;  %v852_v17 = vpack.c.bf16 %v525_v12, %v525_v12  ;;  %v911_v19 = vpop.f32.mrb[8].mxu0 }
  0xf6   : > { %701 = vst.msk [vmem:[%s1062_s27 + $0x50] sm:$0xf] %vm680_vm1, %v867_v13  ;;  %688 = vst.msk [vmem:[%s1062_s27 + $0x1c] sm:$0xf] %vm680_vm1, %v854_v14  ;;  %v868_v20 = vpack.c.bf16 %v541_v15, %v541_v15  ;;  %v434_v21 = vadd.f32 %v911_v19, %v1050_v18  ;;  %v927_v22 = vpop.f32.mrb[8].mxu1  ;;  %v425_v23 = vpop.f32.mrb[9].mxu0 }
  0xf7   : > { %704 = vst.msk [vmem:[%s1062_s27 + $0x5c] sm:$0xf] %vm680_vm1, %v870_v16  ;;  %686 = vst.msk [vmem:[%s1062_s27 + $0x14] sm:$0xf] %vm680_vm1, %v852_v17  ;;  %v498_v24 = vadd.f32 %v927_v22, %v1050_v18  ;;  %v426_v25 = vadd.f32 %v1050_v18, %v425_v23  ;;  %v489_v26 = vpop.f32.mrb[9].mxu1  ;;  %v912_v27 = vpop.f32.mrb[10].mxu0 }
  0xf8   : > { %702 = vst.msk [vmem:[%s1062_s27 + $0x54] sm:$0xf] %vm680_vm1, %v868_v20  ;;  %v530_v28 = vmax.f32 %v434_v21, 0.0  ;;  %v490_v29 = vadd.f32 %v1050_v18, %v489_v26  ;;  %v437_v30 = vadd.f32 %v912_v27, %v1050_v18  ;;  %v928_v31 = vpop.f32.mrb[10].mxu1  ;;  %v428_v32 = vpop.f32.mrb[11].mxu0 }
  0xf9   : > { %v546_v33 = vmax.f32 %v498_v24, 0.0  ;;  %v528_v34 = vmax.f32 %v426_v25, 0.0  ;;  %v501_v35 = vadd.f32 %v928_v31, %v1050_v18  ;;  %v429_v36 = vadd.f32 %v1050_v18, %v428_v32  ;;  %v492_v37 = vpop.f32.mrb[11].mxu1 }
  0xfa   : > { %v857_v38 = vpack.c.bf16 %v530_v28, %v530_v28  ;;  %v544_v39 = vmax.f32 %v490_v29, 0.0  ;;  %v531_v40 = vmax.f32 %v437_v30, 0.0  ;;  %v493_v41 = vadd.f32 %v1050_v18, %v492_v37 }
  0xfb   : > { %v873_v42 = vpack.c.bf16 %v546_v33, %v546_v33  ;;  %v855_v43 = vpack.c.bf16 %v528_v34, %v528_v34  ;;  %v547_v44 = vmax.f32 %v501_v35, 0.0  ;;  %v529_v45 = vmax.f32 %v429_v36, 0.0 }
  0xfc   : > { %691 = vst.msk [vmem:[%s1062_s27 + $0x28] sm:$0xf] %vm680_vm1, %v857_v38  ;;  %v871_v46 = vpack.c.bf16 %v544_v39, %v544_v39  ;;  %v858_v47 = vpack.c.bf16 %v531_v40, %v531_v40  ;;  %v545_v48 = vmax.f32 %v493_v41, 0.0 }
  0xfd   : > { %707 = vst.msk [vmem:[%s1062_s27 + $0x68] sm:$0xf] %vm680_vm1, %v873_v42  ;;  %689 = vst.msk [vmem:[%s1062_s27 + $0x20] sm:$0xf] %vm680_vm1, %v855_v43  ;;  %v874_v49 = vpack.c.bf16 %v547_v44, %v547_v44  ;;  %v856_v50 = vpack.c.bf16 %v529_v45, %v529_v45  ;;  %v915_v51 = vpop.f32.mrb[12].mxu0 }
  0xfe   : > { %705 = vst.msk [vmem:[%s1062_s27 + $0x60] sm:$0xf] %vm680_vm1, %v871_v46  ;;  %692 = vst.msk [vmem:[%s1062_s27 + $0x2c] sm:$0xf] %vm680_vm1, %v858_v47  ;;  %v872_v52 = vpack.c.bf16 %v545_v48, %v545_v48  ;;  %v450_v53 = vadd.f32 %v915_v51, %v1050_v18  ;;  %v931_v54 = vpop.f32.mrb[12].mxu1  ;;  %v441_v55 = vpop.f32.mrb[13].mxu0 }
  0xff   : > { %708 = vst.msk [vmem:[%s1062_s27 + $0x6c] sm:$0xf] %vm680_vm1, %v874_v49  ;;  %690 = vst.msk [vmem:[%s1062_s27 + $0x24] sm:$0xf] %vm680_vm1, %v856_v50  ;;  %v514_v56 = vadd.f32 %v931_v54, %v1050_v18  ;;  %v442_v57 = vadd.f32 %v1050_v18, %v441_v55  ;;  %v505_v58 = vpop.f32.mrb[13].mxu1  ;;  %v916_v59 = vpop.f32.mrb[14].mxu0 }
 0x100   : > { %706 = vst.msk [vmem:[%s1062_s27 + $0x64] sm:$0xf] %vm680_vm1, %v872_v52  ;;  %v534_v60 = vmax.f32 %v450_v53, 0.0  ;;  %v506_v61 = vadd.f32 %v1050_v18, %v505_v58  ;;  %v453_v62 = vadd.f32 %v916_v59, %v1050_v18  ;;  %v932_v63 = vpop.f32.mrb[14].mxu1  ;;  %v444_v0 = vpop.f32.mrb[15].mxu0 }
 0x101   : > { %v550_v1 = vmax.f32 %v514_v56, 0.0  ;;  %v532_v2 = vmax.f32 %v442_v57, 0.0  ;;  %v517_v3 = vadd.f32 %v932_v63, %v1050_v18  ;;  %v445_v4 = vadd.f32 %v1050_v18, %v444_v0  ;;  %v508_v5 = vpop.f32.mrb[15].mxu1 }
 0x102   : > { %v861_v6 = vpack.c.bf16 %v534_v60, %v534_v60  ;;  %v548_v7 = vmax.f32 %v506_v61, 0.0  ;;  %v535_v8 = vmax.f32 %v453_v62, 0.0  ;;  %v509_v9 = vadd.f32 %v1050_v18, %v508_v5 }
 0x103   : > { %v877_v10 = vpack.c.bf16 %v550_v1, %v550_v1  ;;  %v859_v11 = vpack.c.bf16 %v532_v2, %v532_v2  ;;  %v551_v12 = vmax.f32 %v517_v3, 0.0  ;;  %v533_v13 = vmax.f32 %v445_v4, 0.0 }
 0x104   : > { %695 = vst.msk [vmem:[%s1062_s27 + $0x38] sm:$0xf] %vm680_vm1, %v861_v6  ;;  %v875_v14 = vpack.c.bf16 %v548_v7, %v548_v7  ;;  %v862_v15 = vpack.c.bf16 %v535_v8, %v535_v8  ;;  %v549_v16 = vmax.f32 %v509_v9, 0.0 }
 0x105   : > { %711 = vst.msk [vmem:[%s1062_s27 + $0x78] sm:$0xf] %vm680_vm1, %v877_v10  ;;  %693 = vst.msk [vmem:[%s1062_s27 + $0x30] sm:$0xf] %vm680_vm1, %v859_v11  ;;  %v878_v17 = vpack.c.bf16 %v551_v12, %v551_v12  ;;  %v860_v19 = vpack.c.bf16 %v533_v13, %v533_v13 }
 0x106   : > { %709 = vst.msk [vmem:[%s1062_s27 + $0x70] sm:$0xf] %vm680_vm1, %v875_v14  ;;  %696 = vst.msk [vmem:[%s1062_s27 + $0x3c] sm:$0xf] %vm680_vm1, %v862_v15  ;;  %v876_v18 = vpack.c.bf16 %v549_v16, %v549_v16 }
 0x107   : > { %712 = vst.msk [vmem:[%s1062_s27 + $0x7c] sm:$0xf] %vm680_vm1, %v878_v17  ;;  %694 = vst.msk [vmem:[%s1062_s27 + $0x34] sm:$0xf] %vm680_vm1, %v860_v19 }
 0x108   : > { %710 = vst.msk [vmem:[%s1062_s27 + $0x74] sm:$0xf] %vm680_vm1, %v876_v18 }
 0x109 PF: > { %s13_s12 = sadd.s32 1, %s969_s12  }
 0x10a   : > { %p10_p4 = scmp.ge.s32.totalorder %s13_s12, 4  }
 0x10c   :  { %12 = sbr.rel (!%p10_p4) target bundleno = 1 (0x1), region = 62 }

// kernel: mobilenet_forward.8
= control target key start
LH: loop header
LB: loop body
LE: loop exit
PB: predicated region body
PF: predicated region fallthrough
CT: control target
= control target key end

     0   :  { %s2793_s18 = smov 0   ;;  %s4150_s0 = inlined_call_operand.vmem [shape: bf16[2,18,18,32], index: 0, kind: input, shape index: {}]   ;;  %s4151_s1 = inlined_call_operand.vmem [shape: f32[9,32], index: 1, kind: input, shape index: {}]   ;;  %s4152_s2 = inlined_call_operand.vmem [shape: f32[1,32], index: 2, kind: input, shape index: {}]   ;;  %s4153_s3 = inlined_call_operand.vmem [shape: bf16[32,64], index: 3, kind: input, shape index: {}]   ;;  %s4154_s4 = inlined_call_operand.vmem [shape: f32[1,64], index: 4, kind: input, shape index: {}]   ;;  %s4155_s5 = inlined_call_operand.vmem [shape: bf16[2,256,64], index: 5, kind: output, shape index: {}]  }
   0x1 LB: > { %s2542_s19 = sadd.s32 4294967295, %s2761_s18   ;;  %p2546_p0 = scmp.ge.s32.totalorder %s2761_s18, 1  ;;  %s2761_s18 = sphi %s2793_s18, %s15_s18  }
   0x2   : > { %p187_p1 = scmp.lt.s32.totalorder %s2761_s18, 3 }
   0x4   : > { %p188_p2 = pnand %p2546_p0, %p187_p1 }
   0x5   : > { %v2749_v0 = vld [vmem:[%s4153_s3] sm:$0xff] (!%p188_p2)   ;;  %p215_p3 = scmp.lt.s32.totalorder (!%p188_p2), %s2542_s19, 1  ;;  %v336_v1 = vlaneseq (!%p188_p2)  ;;  %v2750_v2 = vld [vmem:[%s4153_s3 + $0x8] sm:$0xff] (!%p188_p2)   ;;  %vm472_vm0 = vcmask (!%p188_p2), 1046528   ;;  %vm717_vm1 = vcmask (!%p188_p2), 1045504   ;;  %vm2084_vm2 = vcmask (!%p188_p2), 261120  }
   0x6   : > { %191 = sbr.rel (%p188_p2) target bundleno = 562 (0x232), region = 40  ;;  %2700 = vmatprep.subr.bf16.mxu0 (!%p188_p2), %v2749_v0  ;;  %2736 = vmatprep.subr.bf16.mxu1 (!%p188_p2), %v2749_v0  ;;  %v2814_v4 = vld [vmem:[%s4151_s1] sm:$0xff] (!%p188_p2)  ;;  %vm2454_vm3 = vcmask (!%p188_p2), 519168  }
   0x7   : > { %v2809_v3 = vshrl.u32 (!%p188_p2), %v336_v1, 7  ;;  %2701 = vmatpush3.bf16.msra.mxu0 (!%p188_p2), %v2749_v0  ;;  %2738 = vmatpush3.bf16.msra.mxu1 (!%p188_p2), %v2749_v0 }
   0x8   : > { %2702 = vmatprep.subr.bf16.mxu0 (!%p188_p2), %v2750_v2  ;;  %2737 = vmatprep.subr.bf16.mxu1 (!%p188_p2), %v2750_v2 }
   0x9   : > { %v338_v5 = vsub.s32 (!%p188_p2), 0, %v2809_v3  ;;  %v374_v6 = vsub.s32 (!%p188_p2), 1, %v2809_v3  ;;  %v619_v7 = vsub.s32 (!%p188_p2), 2, %v2809_v3  ;;  %v864_v8 = vsub.s32 (!%p188_p2), 3, %v2809_v3 }
   0xa   : > { %v932_v9 = vsub.s32 (!%p188_p2), 4, %v2809_v3  ;;  %v1176_v10 = vsub.s32 (!%p188_p2), 5, %v2809_v3  ;;  %v1420_v11 = vsub.s32 (!%p188_p2), 6, %v2809_v3  ;;  %v1488_v22 = vsub.s32 (!%p188_p2), 7, %v2809_v3 }
   0xb   : > { %v2830_v12 = vrot.slane (!%p188_p2), %v2814_v4, %v338_v5  ;;  %v2833_v13 = vrot.slane (!%p188_p2), %v2814_v4, %v374_v6  ;;  %v2836_v14 = vrot.slane (!%p188_p2), %v2814_v4, %v619_v7  ;;  %v2839_v15 = vrot.slane (!%p188_p2), %v2814_v4, %v864_v8  ;;  %2703 = vmatpush3.bf16.msra.mxu0 (!%p188_p2), %v2750_v2 }
   0xc   : > { %2739 = vmatpush3.bf16.msra.mxu1 (!%p188_p2), %v2750_v2  ;;  %v2845_v19 = vrot.slane (!%p188_p2), %v2814_v4, %v932_v9  ;;  %v2848_v20 = vrot.slane (!%p188_p2), %v2814_v4, %v1176_v10  ;;  %v2851_v21 = vrot.slane (!%p188_p2), %v2814_v4, %v1420_v11  ;;  %v2900_v2 = vld [vmem:[%s4151_s1 + $0x8] ss:$0 sm:$0xff] (!%p188_p2) }
   0xd   : > { %s4157_s19 = smov (!%p215_p3, %s2542_s19), 1 }
   0xe   : > { %s2740_s26 = smul.u32 216, %s4157_s19  ;;  %s2605_s21 = sshll.u32 %s4157_s19, 7 }
   0xf   : > { %s4046_s23 = scalar_lea.vmem %s4155_s5, %s2605_s21 }
  0x10   : > { %s2827_s29 = scalar_lea.vmem %s4150_s0, %s2740_s26 }
  0x11   : > { %v2639_v16 = vld [vmem:[%s2827_s29] sm:$0xff]   ;;  %v228_v17 = vld [vmem:[%s2827_s29 + $0x8] sm:$0x1]  ;;  %v229_v18 = vld [vmem:[%s2827_s29 + $0xc] sm:$0xff]  }
  0x12   : > { %v2640_v23 = vunpack.c.l.bf16 %v2639_v16  ;;  %v2641_v24 = vunpack.c.h.bf16 %v2639_v16  ;;  %v231_v25 = vld [vmem:[%s2827_s29 + $0x14] sm:$0x1]  ;;  %v2674_v26 = vld [vmem:[%s2827_s29 + $0x18] sm:$0xff]   ;;  %v234_v27 = vld [vmem:[%s2827_s29 + $0x20] sm:$0x1]  ;;  %v282_v28 = vunpack.c.l.bf16 %v228_v17  ;;  %v2857_v29 = vunpack.c.l.bf16 %v229_v18 }
  0x13   : > { %v2859_v30 = vunpack.c.l.bf16 %v2674_v26  ;;  %v2861_v31 = vunpack.c.h.bf16 %v2674_v26  ;;  %v2863_v32 = vunpack.c.h.bf16 %v229_v18  ;;  %v2865_v33 = vunpack.c.l.bf16 %v231_v25 }
  0x14   : > { %v2867_v34 = vunpack.c.l.bf16 %v234_v27  ;;  %v340_v35 = vmul.f32 %v2640_v23, %v2830_v12  ;;  %v341_v36 = vmul.f32 %v2641_v24, %v2830_v12  ;;  %v376_v37 = vmul.f32 %v2640_v23, %v2833_v13 }
  0x15   : > { %v377_v38 = vmul.f32 %v2641_v24, %v2833_v13  ;;  %v378_v39 = vmul.f32 %v2833_v13, %v282_v28  ;;  %v621_v40 = vmul.f32 %v2640_v23, %v2836_v14  ;;  %v622_v41 = vmul.f32 %v2641_v24, %v2836_v14 }
  0x16   : > { %v473_v42 = vrot.slane %v376_v37, 1  ;;  %v623_v43 = vmul.f32 %v2836_v14, %v282_v28  ;;  %v866_v44 = vmul.f32 %v2839_v15, %v2857_v29  ;;  %v867_v45 = vmul.f32 %v2839_v15, %v2863_v32 }
  0x17   : > { %v474_v46 = vrot.slane %v377_v38, 1  ;;  %v476_v47 = vrot.slane %v378_v39, 1  ;;  %v718_v48 = vrot.slane %v621_v40, 2  ;;  %v719_v49 = vrot.slane %v622_v41, 2 }
  0x18   : > { %v721_v50 = vrot.slane %v623_v43, 2  ;;  %v934_v51 = vmul.f32 %v2845_v19, %v2857_v29  ;;  %v935_v52 = vmul.f32 %v2845_v19, %v2863_v32  ;;  %v936_v53 = vmul.f32 %v2845_v19, %v2865_v33 }
  0x19   : > { %v475_v54 = vsel %vm472_vm0, %v473_v42, %v474_v46  ;;  %v477_v55 = vsel %vm472_vm0, %v474_v46, %v476_v47  ;;  %v720_v56 = vsel %vm717_vm1, %v718_v48, %v719_v49  ;;  %v1178_v57 = vmul.f32 %v2848_v20, %v2857_v29 }
  0x1a   : > { %v585_v58 = vadd.f32 %v475_v54, %v340_v35  ;;  %v586_v59 = vadd.f32 %v477_v55, %v341_v36  ;;  %v722_v60 = vsel %vm717_vm1, %v719_v49, %v721_v50  ;;  %v1030_v61 = vrot.slane %v934_v51, 1  ;;  %v252_v50 = vld [vmem:[%s2827_s29 + $0x68] sm:$0x1]  ;;  %v253_v51 = vld [vmem:[%s2827_s29 + $0x6c] sm:$0xff]  }
  0x1b   : > { %v1031_v62 = vrot.slane %v935_v52, 1  ;;  %v1033_v63 = vrot.slane %v936_v53, 1  ;;  %v1179_v0 = vmul.f32 %v2848_v20, %v2863_v32  ;;  %v1180_v1 = vmul.f32 %v2848_v20, %v2865_v33 }
  0x1c   : > { %v830_v3 = vadd.f32 %v720_v56, %v585_v58  ;;  %v831_v5 = vadd.f32 %v722_v60, %v586_v59  ;;  %v1274_v6 = vrot.slane %v1178_v57, 2  ;;  %v1422_v7 = vmul.f32 %v2859_v30, %v2851_v21  ;;  %v255_v56 = vld [vmem:[%s2827_s29 + $0x74] sm:$0x1]  ;;  %v258_v57 = vld [vmem:[%s2827_s29 + $0x80] sm:$0x1] }
  0x1d   : > { %v1032_v8 = vsel %vm472_vm0, %v1030_v61, %v1031_v62  ;;  %v1034_v9 = vsel %vm472_vm0, %v1031_v62, %v1033_v63  ;;  %v1275_v10 = vrot.slane %v1179_v0, 2  ;;  %v1277_v11 = vrot.slane %v1180_v1, 2 }
  0x1e   : > { %v898_v16 = vadd.f32 %v866_v44, %v830_v3  ;;  %v899_v17 = vadd.f32 %v867_v45, %v831_v5  ;;  %v1423_v18 = vmul.f32 %v2861_v31, %v2851_v21  ;;  %v2909_v23 = vrot.slane %v2814_v4, %v1488_v22  ;;  %v2677_v22 = vld [vmem:[%s2827_s29 + $0x60] sm:$0xff]   ;;  %v2678_v45 = vld [vmem:[%s2827_s29 + $0x78] sm:$0xff]  }
  0x1f   : > { %v1276_v24 = vsel %vm717_vm1, %v1274_v6, %v1275_v10  ;;  %v1278_v25 = vsel %vm717_vm1, %v1275_v10, %v1277_v11  ;;  %v1734_v26 = vmul.f32 %v2859_v30, %v2900_v2  ;;  %v1735_v27 = vmul.f32 %v2861_v31, %v2900_v2  ;;  %v2950_v3 = vld [vmem:[%s4152_s2] ss:$0 sm:$0xff] }
  0x20   : > { %v1142_v28 = vadd.f32 %v1032_v8, %v898_v16  ;;  %v1143_v35 = vadd.f32 %v1034_v9, %v899_v17  ;;  %v1490_v36 = vmul.f32 %v2859_v30, %v2909_v23  ;;  %v1491_v4 = vmul.f32 %v2861_v31, %v2909_v23 }
  0x21   : > { %v1492_v37 = vmul.f32 %v2909_v23, %v2867_v34  ;;  %v1736_v38 = vmul.f32 %v2900_v2, %v2867_v34  ;;  %v1830_v39 = vrot.slane %v1734_v26, 2  ;;  %v1831_v40 = vrot.slane %v1735_v27, 2 }
  0x22   : > { %v1386_v41 = vadd.f32 %v1276_v24, %v1142_v28  ;;  %v1387_v42 = vadd.f32 %v1278_v25, %v1143_v35  ;;  %v1586_v43 = vrot.slane %v1490_v36, 1  ;;  %v1587_v44 = vrot.slane %v1491_v4, 1 }
  0x23   : > { %v1589_v46 = vrot.slane %v1492_v37, 1  ;;  %v1832_v47 = vsel %vm717_vm1, %v1830_v39, %v1831_v40  ;;  %v1833_v48 = vrot.slane %v1736_v38, 2  ;;  %v2928_v49 = vunpack.c.l.bf16 %v2677_v22 }
  0x24   : > { %v1454_v52 = vadd.f32 %v1422_v7, %v1386_v41  ;;  %v1455_v53 = vadd.f32 %v1423_v18, %v1387_v42  ;;  %v1588_v54 = vsel %vm472_vm0, %v1586_v43, %v1587_v44  ;;  %v2933_v55 = vunpack.c.h.bf16 %v2677_v22 }
  0x25   : > { %v1590_v58 = vsel %vm472_vm0, %v1587_v44, %v1589_v46  ;;  %v1834_v59 = vsel %vm717_vm1, %v1831_v40, %v1833_v48  ;;  %v2939_v60 = vunpack.c.l.bf16 %v2678_v45  ;;  %v2941_v61 = vunpack.c.h.bf16 %v2678_v45 }
  0x26   : > { %v1698_v62 = vadd.f32 %v1588_v54, %v1454_v52  ;;  %v1699_v63 = vadd.f32 %v1590_v58, %v1455_v53  ;;  %v2943_v0 = vunpack.c.l.bf16 %v252_v50  ;;  %v2945_v1 = vunpack.c.l.bf16 %v253_v51 }
  0x27   : > { %v2952_v5 = vunpack.c.h.bf16 %v253_v51  ;;  %v2954_v6 = vunpack.c.l.bf16 %v255_v56  ;;  %v2956_v7 = vunpack.c.l.bf16 %v258_v57  ;;  %v356_v8 = vmul.f32 %v2928_v49, %v2830_v12 }
  0x28   : > { %v1942_v9 = vadd.f32 %v1832_v47, %v1698_v62  ;;  %v1943_v10 = vadd.f32 %v1834_v59, %v1699_v63  ;;  %v357_v11 = vmul.f32 %v2933_v55, %v2830_v12  ;;  %v400_v16 = vmul.f32 %v2928_v49, %v2833_v13 }
  0x29   : > { %v401_v17 = vmul.f32 %v2933_v55, %v2833_v13  ;;  %v402_v18 = vmul.f32 %v2833_v13, %v2943_v0  ;;  %v645_v24 = vmul.f32 %v2928_v49, %v2836_v14  ;;  %v646_v25 = vmul.f32 %v2933_v55, %v2836_v14 }
  0x2a   : > { %v1981_v26 = vadd.f32 %v2950_v3, %v1942_v9  ;;  %v1982_v27 = vadd.f32 %v2950_v3, %v1943_v10  ;;  %v513_v28 = vrot.slane %v400_v16, 1  ;;  %v647_v35 = vmul.f32 %v2836_v14, %v2943_v0 }
  0x2b   : > { %v514_v36 = vrot.slane %v401_v17, 1  ;;  %v516_v4 = vrot.slane %v402_v18, 1  ;;  %v758_v22 = vrot.slane %v645_v24, 2  ;;  %v759_v37 = vrot.slane %v646_v25, 2 }
  0x2c   : > { %v2013_v38 = vmax.f32 %v1981_v26, 0.0  ;;  %v2014_v39 = vmax.f32 %v1982_v27, 0.0  ;;  %v761_v40 = vrot.slane %v647_v35, 2  ;;  %v882_v41 = vmul.f32 %v2839_v15, %v2945_v1 }
  0x2d   : > { %v515_v42 = vsel %vm472_vm0, %v513_v28, %v514_v36  ;;  %v517_v43 = vsel %vm472_vm0, %v514_v36, %v516_v4  ;;  %v760_v44 = vsel %vm717_vm1, %v758_v22, %v759_v37  ;;  %v883_v45 = vmul.f32 %v2839_v15, %v2952_v5 }
  0x2e   : > { %v2045_v46 = vpack.c.bf16 %v2014_v39, %v2013_v38  ;;  %v601_v47 = vadd.f32 %v515_v42, %v356_v8  ;;  %v602_v48 = vadd.f32 %v517_v43, %v357_v11  ;;  %v762_v50 = vsel %vm717_vm1, %v759_v37, %v761_v40  ;;  %v235_v43 = vld [vmem:[%s2827_s29 + $0x24] sm:$0xff]  }
  0x2f   : > { %v958_v51 = vmul.f32 %v2845_v19, %v2945_v1  ;;  %v959_v52 = vmul.f32 %v2845_v19, %v2952_v5  ;;  %v960_v53 = vmul.f32 %v2845_v19, %v2954_v6  ;;  %v1202_v54 = vmul.f32 %v2848_v20, %v2945_v1 }
  0x30   : > { %2704 = vmatprep.mubr.msk.bf16.mxu0 %vm2084_vm2, %v2045_v46  ;;  %v846_v56 = vadd.f32 %v760_v44, %v601_v47  ;;  %v847_v57 = vadd.f32 %v762_v50, %v602_v48  ;;  %v1203_v58 = vmul.f32 %v2848_v20, %v2952_v5  ;;  %v1204_v59 = vmul.f32 %v2848_v20, %v2954_v6 }
  0x31   : > { %v1070_v62 = vrot.slane %v958_v51, 1  ;;  %v1071_v63 = vrot.slane %v959_v52, 1  ;;  %v1073_v8 = vrot.slane %v960_v53, 1  ;;  %v1314_v9 = vrot.slane %v1202_v54, 2  ;;  %v237_v53 = vld [vmem:[%s2827_s29 + $0x2c] sm:$0x1] }
  0x32   : > { %v914_v10 = vadd.f32 %v882_v41, %v846_v56  ;;  %v915_v11 = vadd.f32 %v883_v45, %v847_v57  ;;  %v1315_v16 = vrot.slane %v1203_v58, 2  ;;  %v1317_v17 = vrot.slane %v1204_v59, 2 }
  0x33   : > { %v1072_v18 = vsel %vm472_vm0, %v1070_v62, %v1071_v63  ;;  %v1074_v24 = vsel %vm472_vm0, %v1071_v63, %v1073_v8  ;;  %v1438_v25 = vmul.f32 %v2939_v60, %v2851_v21  ;;  %v1439_v26 = vmul.f32 %v2941_v61, %v2851_v21 }
  0x34   : > { %v1158_v27 = vadd.f32 %v1072_v18, %v914_v10  ;;  %v1159_v28 = vadd.f32 %v1074_v24, %v915_v11  ;;  %v1316_v35 = vsel %vm717_vm1, %v1314_v9, %v1315_v16  ;;  %v1318_v36 = vsel %vm717_vm1, %v1315_v16, %v1317_v17 }
  0x35   : > { %v1514_v4 = vmul.f32 %v2939_v60, %v2909_v23  ;;  %v1515_v22 = vmul.f32 %v2941_v61, %v2909_v23  ;;  %v1516_v37 = vmul.f32 %v2909_v23, %v2956_v7  ;;  %v1758_v38 = vmul.f32 %v2939_v60, %v2900_v2 }
  0x36   : > { %v1402_v39 = vadd.f32 %v1316_v35, %v1158_v27  ;;  %v1403_v40 = vadd.f32 %v1318_v36, %v1159_v28  ;;  %v1759_v41 = vmul.f32 %v2941_v61, %v2900_v2  ;;  %v1760_v42 = vmul.f32 %v2900_v2, %v2956_v7 }
  0x37   : > { %v1626_v44 = vrot.slane %v1514_v4, 1  ;;  %v1627_v45 = vrot.slane %v1515_v22, 1  ;;  %v1629_v46 = vrot.slane %v1516_v37, 1  ;;  %v1870_v47 = vrot.slane %v1758_v38, 2 }
  0x38   : > { %v1470_v48 = vadd.f32 %v1438_v25, %v1402_v39  ;;  %v1471_v50 = vadd.f32 %v1439_v26, %v1403_v40  ;;  %v1871_v51 = vrot.slane %v1759_v41, 2  ;;  %v1873_v52 = vrot.slane %v1760_v42, 2 }
  0x39   : > { %v1628_v54 = vsel %vm472_vm0, %v1626_v44, %v1627_v45  ;;  %v1630_v56 = vsel %vm472_vm0, %v1627_v45, %v1629_v46  ;;  %v3021_v57 = vunpack.c.l.bf16 %v235_v43  ;;  %v3023_v58 = vunpack.c.h.bf16 %v235_v43 }
  0x3a   : > { %v1714_v59 = vadd.f32 %v1628_v54, %v1470_v48  ;;  %v1715_v62 = vadd.f32 %v1630_v56, %v1471_v50  ;;  %v1872_v63 = vsel %vm717_vm1, %v1870_v47, %v1871_v51  ;;  %v1874_v8 = vsel %vm717_vm1, %v1871_v51, %v1873_v52 }
  0x3b   : > { %v3027_v9 = vunpack.c.l.bf16 %v237_v53  ;;  %v342_v10 = vmul.f32 %v2830_v12, %v2857_v29  ;;  %v343_v11 = vmul.f32 %v2830_v12, %v2863_v32  ;;  %v379_v16 = vmul.f32 %v2833_v13, %v2857_v29 }
  0x3c   : > { %v1958_v17 = vadd.f32 %v1872_v63, %v1714_v59  ;;  %v1959_v18 = vadd.f32 %v1874_v8, %v1715_v62  ;;  %v380_v24 = vmul.f32 %v2833_v13, %v2863_v32  ;;  %v381_v25 = vmul.f32 %v2833_v13, %v2865_v33 }
  0x3d   : > { %v478_v26 = vrot.slane %v379_v16, 1  ;;  %v624_v27 = vmul.f32 %v2836_v14, %v2857_v29  ;;  %v625_v28 = vmul.f32 %v2836_v14, %v2863_v32  ;;  %v626_v35 = vmul.f32 %v2836_v14, %v2865_v33 }
  0x3e   : > { %v1997_v36 = vadd.f32 %v2950_v3, %v1958_v17  ;;  %v1998_v4 = vadd.f32 %v2950_v3, %v1959_v18  ;;  %v479_v22 = vrot.slane %v380_v24, 1  ;;  %v481_v37 = vrot.slane %v381_v25, 1 }
  0x3f   : > { %v723_v38 = vrot.slane %v624_v27, 2  ;;  %v724_v39 = vrot.slane %v625_v28, 2  ;;  %v726_v40 = vrot.slane %v626_v35, 2  ;;  %v868_v41 = vmul.f32 %v2859_v30, %v2839_v15 }
  0x40   : > { %v2029_v42 = vmax.f32 %v1997_v36, 0.0  ;;  %v2030_v29 = vmax.f32 %v1998_v4, 0.0  ;;  %v480_v43 = vsel %vm472_vm0, %v478_v26, %v479_v22  ;;  %v482_v32 = vsel %vm472_vm0, %v479_v22, %v481_v37 }
  0x41   : > { %v587_v44 = vadd.f32 %v480_v43, %v342_v10  ;;  %v588_v33 = vadd.f32 %v482_v32, %v343_v11  ;;  %v725_v45 = vsel %vm717_vm1, %v723_v38, %v724_v39  ;;  %v727_v46 = vsel %vm717_vm1, %v724_v39, %v726_v40  ;;  %v259_v39 = vld [vmem:[%s2827_s29 + $0x84] sm:$0xff]  }
  0x42   : > { %v2053_v47 = vpack.c.bf16 %v2030_v29, %v2029_v42  ;;  %v869_v48 = vmul.f32 %v2861_v31, %v2839_v15  ;;  %v937_v50 = vmul.f32 %v2859_v30, %v2845_v19  ;;  %v938_v51 = vmul.f32 %v2861_v31, %v2845_v19 }
  0x43   : > { %v832_v52 = vadd.f32 %v725_v45, %v587_v44  ;;  %v833_v53 = vadd.f32 %v727_v46, %v588_v33  ;;  %v939_v54 = vmul.f32 %v2845_v19, %v2867_v34  ;;  %v1181_v56 = vmul.f32 %v2859_v30, %v2848_v20  ;;  %v261_v45 = vld [vmem:[%s2827_s29 + $0x8c] sm:$0x1] }
  0x44   : > { %2720 = vmatprep.mubr.msk.bf16.mxu1 %vm2084_vm2, %v2053_v47  ;;  %v1035_v59 = vrot.slane %v937_v50, 1  ;;  %v1036_v62 = vrot.slane %v938_v51, 1  ;;  %v1182_v63 = vmul.f32 %v2861_v31, %v2848_v20  ;;  %v1183_v8 = vmul.f32 %v2848_v20, %v2867_v34 }
  0x45   : > { %v900_v10 = vadd.f32 %v868_v41, %v832_v52  ;;  %v901_v11 = vadd.f32 %v869_v48, %v833_v53  ;;  %v1038_v16 = vrot.slane %v939_v54, 1  ;;  %v1279_v17 = vrot.slane %v1181_v56, 2 }
  0x46   : > { %v1037_v18 = vsel %vm472_vm0, %v1035_v59, %v1036_v62  ;;  %v1280_v24 = vrot.slane %v1182_v63, 2  ;;  %v1282_v25 = vrot.slane %v1183_v8, 2  ;;  %v1424_v26 = vmul.f32 %v2851_v21, %v3021_v57 }
  0x47   : > { %v1039_v27 = vsel %vm472_vm0, %v1036_v62, %v1038_v16  ;;  %v1144_v28 = vadd.f32 %v1037_v18, %v900_v10  ;;  %v1425_v35 = vmul.f32 %v2851_v21, %v3023_v58  ;;  %v1493_v36 = vmul.f32 %v2909_v23, %v3021_v57 }
  0x48   : > { %v1145_v4 = vadd.f32 %v1039_v27, %v901_v11  ;;  %v1281_v22 = vsel %vm717_vm1, %v1279_v17, %v1280_v24  ;;  %v1283_v37 = vsel %vm717_vm1, %v1280_v24, %v1282_v25  ;;  %v1494_v38 = vmul.f32 %v2909_v23, %v3023_v58 }
  0x49   : > { %v1388_v40 = vadd.f32 %v1281_v22, %v1144_v28  ;;  %v1495_v41 = vmul.f32 %v2909_v23, %v3027_v9  ;;  %v1591_v42 = vrot.slane %v1493_v36, 1  ;;  %v1737_v29 = vmul.f32 %v2900_v2, %v3021_v57 }
  0x4a   : > { %v1389_v43 = vadd.f32 %v1283_v37, %v1145_v4  ;;  %v1592_v32 = vrot.slane %v1494_v38, 1  ;;  %v1738_v44 = vmul.f32 %v2900_v2, %v3023_v58  ;;  %v1739_v33 = vmul.f32 %v2900_v2, %v3027_v9 }
  0x4b   : > { %v1456_v46 = vadd.f32 %v1424_v26, %v1388_v40  ;;  %v1594_v47 = vrot.slane %v1495_v41, 1  ;;  %v1835_v48 = vrot.slane %v1737_v29, 2  ;;  %v3090_v50 = vunpack.c.l.bf16 %v259_v39 }
  0x4c   : > { %v1457_v51 = vadd.f32 %v1425_v35, %v1389_v43  ;;  %v1593_v52 = vsel %vm472_vm0, %v1591_v42, %v1592_v32  ;;  %v1836_v53 = vrot.slane %v1738_v44, 2  ;;  %v1838_v54 = vrot.slane %v1739_v33, 2 }
  0x4d   : > { %v1595_v56 = vsel %vm472_vm0, %v1592_v32, %v1594_v47  ;;  %v1700_v59 = vadd.f32 %v1593_v52, %v1456_v46  ;;  %v3094_v62 = vunpack.c.h.bf16 %v259_v39  ;;  %v3096_v63 = vunpack.c.l.bf16 %v261_v45 }
  0x4e   : > { %v1701_v8 = vadd.f32 %v1595_v56, %v1457_v51  ;;  %v1837_v10 = vsel %vm717_vm1, %v1835_v48, %v1836_v53  ;;  %v1839_v11 = vsel %vm717_vm1, %v1836_v53, %v1838_v54  ;;  %v358_v16 = vmul.f32 %v2830_v12, %v2945_v1 }
  0x4f   : > { %v1944_v17 = vadd.f32 %v1837_v10, %v1700_v59  ;;  %v359_v18 = vmul.f32 %v2830_v12, %v2952_v5  ;;  %v403_v24 = vmul.f32 %v2833_v13, %v2945_v1  ;;  %v404_v25 = vmul.f32 %v2833_v13, %v2952_v5 }
  0x50   : > { %v1945_v26 = vadd.f32 %v1839_v11, %v1701_v8  ;;  %v405_v27 = vmul.f32 %v2833_v13, %v2954_v6  ;;  %v648_v28 = vmul.f32 %v2836_v14, %v2945_v1  ;;  %v649_v35 = vmul.f32 %v2836_v14, %v2952_v5 }
  0x51   : > { %v1983_v36 = vadd.f32 %v2950_v3, %v1944_v17  ;;  %v518_v4 = vrot.slane %v403_v24, 1  ;;  %v519_v22 = vrot.slane %v404_v25, 1  ;;  %v650_v37 = vmul.f32 %v2836_v14, %v2954_v6 }
  0x52   : > { %v1984_v38 = vadd.f32 %v2950_v3, %v1945_v26  ;;  %v521_v39 = vrot.slane %v405_v27, 1  ;;  %v763_v40 = vrot.slane %v648_v28, 2  ;;  %v764_v41 = vrot.slane %v649_v35, 2 }
  0x53   : > { %v2015_v42 = vmax.f32 %v1983_v36, 0.0  ;;  %v520_v29 = vsel %vm472_vm0, %v518_v4, %v519_v22  ;;  %v766_v43 = vrot.slane %v650_v37, 2  ;;  %v884_v32 = vmul.f32 %v2939_v60, %v2839_v15 }
  0x54   : > { %v2016_v44 = vmax.f32 %v1984_v38, 0.0  ;;  %v522_v33 = vsel %vm472_vm0, %v519_v22, %v521_v39  ;;  %v603_v45 = vadd.f32 %v520_v29, %v358_v16  ;;  %v765_v46 = vsel %vm717_vm1, %v763_v40, %v764_v41 }
  0x55   : > { %v604_v47 = vadd.f32 %v522_v33, %v359_v18  ;;  %v767_v48 = vsel %vm717_vm1, %v764_v41, %v766_v43  ;;  %v885_v51 = vmul.f32 %v2941_v61, %v2839_v15  ;;  %v961_v52 = vmul.f32 %v2939_v60, %v2845_v19 }
  0x56   : > { %v2046_v53 = vpack.c.bf16 %v2016_v44, %v2015_v42  ;;  %v848_v54 = vadd.f32 %v765_v46, %v603_v45  ;;  %v962_v56 = vmul.f32 %v2941_v61, %v2845_v19  ;;  %v963_v59 = vmul.f32 %v2845_v19, %v2956_v7  ;;  %v2675_v44 = vld [vmem:[%s2827_s29 + $0x30] sm:$0xff]  }
  0x57   : > { %v849_v8 = vadd.f32 %v767_v48, %v604_v47  ;;  %v1075_v10 = vrot.slane %v961_v52, 1  ;;  %v1205_v11 = vmul.f32 %v2939_v60, %v2848_v20  ;;  %v1206_v16 = vmul.f32 %v2941_v61, %v2848_v20 }
  0x58   : > { %2705 = vmatmul.mubr.msk.bf16.vlgmr.msra.gmra.mrb[0].mxu0 %vm2084_vm2, %v2046_v53  ;;  %v916_v17 = vadd.f32 %v884_v32, %v848_v54  ;;  %v1076_v18 = vrot.slane %v962_v56, 1  ;;  %v1078_v24 = vrot.slane %v963_v59, 1  ;;  %v1207_v25 = vmul.f32 %v2848_v20, %v2956_v7  ;;  %v240_v54 = vld [vmem:[%s2827_s29 + $0x38] sm:$0x1] }
  0x59   : > { %v917_v26 = vadd.f32 %v885_v51, %v849_v8  ;;  %v1319_v27 = vrot.slane %v1205_v11, 2  ;;  %v1320_v28 = vrot.slane %v1206_v16, 2  ;;  %v1440_v35 = vmul.f32 %v2851_v21, %v3090_v50 }
  0x5a   : > { %v1077_v36 = vsel %vm472_vm0, %v1075_v10, %v1076_v18  ;;  %v1079_v4 = vsel %vm472_vm0, %v1076_v18, %v1078_v24  ;;  %v1322_v22 = vrot.slane %v1207_v25, 2  ;;  %v1441_v37 = vmul.f32 %v2851_v21, %v3094_v62 }
  0x5b   : > { %v1160_v38 = vadd.f32 %v1077_v36, %v916_v17  ;;  %v1161_v39 = vadd.f32 %v1079_v4, %v917_v26  ;;  %v1321_v40 = vsel %vm717_vm1, %v1319_v27, %v1320_v28  ;;  %v1517_v41 = vmul.f32 %v2909_v23, %v3090_v50 }
  0x5c   : > { %v1323_v42 = vsel %vm717_vm1, %v1320_v28, %v1322_v22  ;;  %v1518_v29 = vmul.f32 %v2909_v23, %v3094_v62  ;;  %v1519_v43 = vmul.f32 %v2909_v23, %v3096_v63  ;;  %v1761_v32 = vmul.f32 %v2900_v2, %v3090_v50 }
  0x5d   : > { %v1404_v33 = vadd.f32 %v1321_v40, %v1160_v38  ;;  %v1405_v45 = vadd.f32 %v1323_v42, %v1161_v39  ;;  %v1631_v46 = vrot.slane %v1517_v41, 1  ;;  %v1762_v47 = vmul.f32 %v2900_v2, %v3094_v62 }
  0x5e   : > { %v1632_v48 = vrot.slane %v1518_v29, 1  ;;  %v1634_v51 = vrot.slane %v1519_v43, 1  ;;  %v1763_v52 = vmul.f32 %v2900_v2, %v3096_v63  ;;  %v1875_v53 = vrot.slane %v1761_v32, 2 }
  0x5f   : > { %v1472_v56 = vadd.f32 %v1440_v35, %v1404_v33  ;;  %v1473_v59 = vadd.f32 %v1441_v37, %v1405_v45  ;;  %v1876_v8 = vrot.slane %v1762_v47, 2  ;;  %v3161_v10 = vunpack.c.l.bf16 %v2675_v44 }
  0x60   : > { %v1633_v11 = vsel %vm472_vm0, %v1631_v46, %v1632_v48  ;;  %v1635_v16 = vsel %vm472_vm0, %v1632_v48, %v1634_v51  ;;  %v1878_v17 = vrot.slane %v1763_v52, 2  ;;  %v3165_v18 = vunpack.c.h.bf16 %v2675_v44 }
  0x61   : > { %v1716_v24 = vadd.f32 %v1633_v11, %v1472_v56  ;;  %v1717_v25 = vadd.f32 %v1635_v16, %v1473_v59  ;;  %v1877_v26 = vsel %vm717_vm1, %v1875_v53, %v1876_v8  ;;  %v3168_v27 = vunpack.c.l.bf16 %v240_v54 }
  0x62   : > { %v1879_v28 = vsel %vm717_vm1, %v1876_v8, %v1878_v17  ;;  %v344_v35 = vmul.f32 %v2859_v30, %v2830_v12  ;;  %v345_v36 = vmul.f32 %v2861_v31, %v2830_v12  ;;  %v382_v4 = vmul.f32 %v2859_v30, %v2833_v13 }
  0x63   : > { %v1960_v22 = vadd.f32 %v1877_v26, %v1716_v24  ;;  %v1961_v37 = vadd.f32 %v1879_v28, %v1717_v25  ;;  %v383_v38 = vmul.f32 %v2861_v31, %v2833_v13  ;;  %v384_v39 = vmul.f32 %v2833_v13, %v2867_v34 }
  0x64   : > { %v483_v40 = vrot.slane %v382_v4, 1  ;;  %v627_v41 = vmul.f32 %v2859_v30, %v2836_v14  ;;  %v628_v42 = vmul.f32 %v2861_v31, %v2836_v14  ;;  %v629_v29 = vmul.f32 %v2836_v14, %v2867_v34 }
  0x65   : > { %v1999_v43 = vadd.f32 %v2950_v3, %v1960_v22  ;;  %v2000_v32 = vadd.f32 %v2950_v3, %v1961_v37  ;;  %v484_v44 = vrot.slane %v383_v38, 1  ;;  %v486_v33 = vrot.slane %v384_v39, 1 }
  0x66   : > { %v728_v45 = vrot.slane %v627_v41, 2  ;;  %v729_v46 = vrot.slane %v628_v42, 2  ;;  %v731_v47 = vrot.slane %v629_v29, 2  ;;  %v870_v48 = vmul.f32 %v2839_v15, %v3021_v57 }
  0x67   : > { %v2031_v51 = vmax.f32 %v1999_v43, 0.0  ;;  %v2032_v30 = vmax.f32 %v2000_v32, 0.0  ;;  %v485_v52 = vsel %vm472_vm0, %v483_v40, %v484_v44  ;;  %v487_v31 = vsel %vm472_vm0, %v484_v44, %v486_v33 }
  0x68   : > { %v589_v53 = vadd.f32 %v485_v52, %v344_v35  ;;  %v590_v34 = vadd.f32 %v487_v31, %v345_v36  ;;  %v730_v54 = vsel %vm717_vm1, %v728_v45, %v729_v46  ;;  %v732_v56 = vsel %vm717_vm1, %v729_v46, %v731_v47 }
  0x69   : > { %v2054_v59 = vpack.c.bf16 %v2032_v30, %v2031_v51  ;;  %v871_v8 = vmul.f32 %v2839_v15, %v3023_v58  ;;  %v940_v11 = vmul.f32 %v2845_v19, %v3021_v57  ;;  %v941_v16 = vmul.f32 %v2845_v19, %v3023_v58  ;;  %v2679_v51 = vld [vmem:[%s2827_s29 + $0x90] sm:$0xff]  }
  0x6a   : > { %v834_v17 = vadd.f32 %v730_v54, %v589_v53  ;;  %v835_v24 = vadd.f32 %v732_v56, %v590_v34  ;;  %v942_v25 = vmul.f32 %v2845_v19, %v3027_v9  ;;  %v1184_v26 = vmul.f32 %v2848_v20, %v3021_v57 }
  0x6b   : > { %2721 = vmatmul.mubr.msk.bf16.vlgmr.msra.gmra.mrb[0].mxu1 %vm2084_vm2, %v2054_v59  ;;  %v1040_v28 = vrot.slane %v940_v11, 1  ;;  %v1041_v35 = vrot.slane %v941_v16, 1  ;;  %v1185_v36 = vmul.f32 %v2848_v20, %v3023_v58  ;;  %v1186_v4 = vmul.f32 %v2848_v20, %v3027_v9 }
  0x6c   : > { %v902_v22 = vadd.f32 %v870_v48, %v834_v17  ;;  %v903_v37 = vadd.f32 %v871_v8, %v835_v24  ;;  %v1043_v38 = vrot.slane %v942_v25, 1  ;;  %v1284_v39 = vrot.slane %v1184_v26, 2  ;;  %v264_v8 = vld [vmem:[%s2827_s29 + $0x98] sm:$0x1] }
  0x6d   : > { %v1042_v40 = vsel %vm472_vm0, %v1040_v28, %v1041_v35  ;;  %v1285_v41 = vrot.slane %v1185_v36, 2  ;;  %v1287_v42 = vrot.slane %v1186_v4, 2  ;;  %v1426_v29 = vmul.f32 %v3161_v10, %v2851_v21 }
  0x6e   : > { %v1044_v43 = vsel %vm472_vm0, %v1041_v35, %v1043_v38  ;;  %v1146_v32 = vadd.f32 %v1042_v40, %v902_v22  ;;  %v1427_v44 = vmul.f32 %v3165_v18, %v2851_v21  ;;  %v1496_v33 = vmul.f32 %v3161_v10, %v2909_v23 }
  0x6f   : > { %v1147_v45 = vadd.f32 %v1044_v43, %v903_v37  ;;  %v1286_v46 = vsel %vm717_vm1, %v1284_v39, %v1285_v41  ;;  %v1288_v47 = vsel %vm717_vm1, %v1285_v41, %v1287_v42  ;;  %v1497_v48 = vmul.f32 %v3165_v18, %v2909_v23 }
  0x70   : > { %v1390_v30 = vadd.f32 %v1286_v46, %v1146_v32  ;;  %v1498_v52 = vmul.f32 %v2909_v23, %v3168_v27  ;;  %v1596_v31 = vrot.slane %v1496_v33, 1  ;;  %v1740_v53 = vmul.f32 %v3161_v10, %v2900_v2 }
  0x71   : > { %v1391_v34 = vadd.f32 %v1288_v47, %v1147_v45  ;;  %v1597_v54 = vrot.slane %v1497_v48, 1  ;;  %v1741_v56 = vmul.f32 %v3165_v18, %v2900_v2  ;;  %v1742_v59 = vmul.f32 %v2900_v2, %v3168_v27 }
  0x72   : > { %v1458_v11 = vadd.f32 %v1426_v29, %v1390_v30  ;;  %v1599_v16 = vrot.slane %v1498_v52, 1  ;;  %v1840_v17 = vrot.slane %v1740_v53, 2  ;;  %v3232_v24 = vunpack.c.l.bf16 %v2679_v51 }
  0x73   : > { %v1459_v25 = vadd.f32 %v1427_v44, %v1391_v34  ;;  %v1598_v26 = vsel %vm472_vm0, %v1596_v31, %v1597_v54  ;;  %v1841_v28 = vrot.slane %v1741_v56, 2  ;;  %v1843_v35 = vrot.slane %v1742_v59, 2 }
  0x74   : > { %v1600_v36 = vsel %vm472_vm0, %v1597_v54, %v1599_v16  ;;  %v1702_v4 = vadd.f32 %v1598_v26, %v1458_v11  ;;  %v3236_v22 = vunpack.c.h.bf16 %v2679_v51  ;;  %v3238_v37 = vunpack.c.l.bf16 %v264_v8 }
  0x75   : > { %v1703_v38 = vadd.f32 %v1600_v36, %v1459_v25  ;;  %v1842_v39 = vsel %vm717_vm1, %v1840_v17, %v1841_v28  ;;  %v1844_v40 = vsel %vm717_vm1, %v1841_v28, %v1843_v35  ;;  %v360_v41 = vmul.f32 %v2939_v60, %v2830_v12 }
  0x76   : > { %v1946_v42 = vadd.f32 %v1842_v39, %v1702_v4  ;;  %v361_v29 = vmul.f32 %v2941_v61, %v2830_v12  ;;  %v406_v43 = vmul.f32 %v2939_v60, %v2833_v13  ;;  %v407_v32 = vmul.f32 %v2941_v61, %v2833_v13 }
  0x77   : > { %v1947_v44 = vadd.f32 %v1844_v40, %v1703_v38  ;;  %v408_v33 = vmul.f32 %v2833_v13, %v2956_v7  ;;  %v651_v45 = vmul.f32 %v2939_v60, %v2836_v14  ;;  %v652_v46 = vmul.f32 %v2941_v61, %v2836_v14 }
  0x78   : > { %v1985_v47 = vadd.f32 %v2950_v3, %v1946_v42  ;;  %v523_v48 = vrot.slane %v406_v43, 1  ;;  %v524_v51 = vrot.slane %v407_v32, 1  ;;  %v653_v30 = vmul.f32 %v2836_v14, %v2956_v7 }
  0x79   : > { %v1986_v52 = vadd.f32 %v2950_v3, %v1947_v44  ;;  %v526_v31 = vrot.slane %v408_v33, 1  ;;  %v768_v53 = vrot.slane %v651_v45, 2  ;;  %v769_v34 = vrot.slane %v652_v46, 2 }
  0x7a   : > { %v2017_v54 = vmax.f32 %v1985_v47, 0.0  ;;  %v525_v56 = vsel %vm472_vm0, %v523_v48, %v524_v51  ;;  %v771_v59 = vrot.slane %v653_v30, 2  ;;  %v886_v60 = vmul.f32 %v2839_v15, %v3090_v50 }
  0x7b   : > { %v2018_v61 = vmax.f32 %v1986_v52, 0.0  ;;  %v527_v8 = vsel %vm472_vm0, %v524_v51, %v526_v31  ;;  %v605_v11 = vadd.f32 %v525_v56, %v360_v41  ;;  %v770_v16 = vsel %vm717_vm1, %v768_v53, %v769_v34 }
  0x7c   : > { %v606_v17 = vadd.f32 %v527_v8, %v361_v29  ;;  %v772_v7 = vsel %vm717_vm1, %v769_v34, %v771_v59  ;;  %v887_v25 = vmul.f32 %v2839_v15, %v3094_v62  ;;  %v964_v26 = vmul.f32 %v2845_v19, %v3090_v50 }
  0x7d   : > { %v2047_v28 = vpack.c.bf16 %v2018_v61, %v2017_v54  ;;  %v850_v35 = vadd.f32 %v770_v16, %v605_v11  ;;  %v965_v36 = vmul.f32 %v2845_v19, %v3094_v62  ;;  %v966_v4 = vmul.f32 %v2845_v19, %v3096_v63  ;;  %v241_v61 = vld [vmem:[%s2827_s29 + $0x3c] sm:$0xff]  }
  0x7e   : > { %v851_v38 = vadd.f32 %v772_v7, %v606_v17  ;;  %v1080_v39 = vrot.slane %v964_v26, 1  ;;  %v1208_v40 = vmul.f32 %v2848_v20, %v3090_v50  ;;  %v1209_v41 = vmul.f32 %v2848_v20, %v3094_v62 }
  0x7f   : > { %2708 = vmatprep.mubr.msk.bf16.mxu0 %vm2084_vm2, %v2047_v28  ;;  %v918_v42 = vadd.f32 %v886_v60, %v850_v35  ;;  %v1081_v29 = vrot.slane %v965_v36, 1  ;;  %v1083_v43 = vrot.slane %v966_v4, 1  ;;  %v1210_v32 = vmul.f32 %v2848_v20, %v3096_v63  ;;  %v243_v35 = vld [vmem:[%s2827_s29 + $0x44] sm:$0x1] }
  0x80   : > { %v919_v44 = vadd.f32 %v887_v25, %v851_v38  ;;  %v1324_v33 = vrot.slane %v1208_v40, 2  ;;  %v1325_v45 = vrot.slane %v1209_v41, 2  ;;  %v1442_v46 = vmul.f32 %v3232_v24, %v2851_v21 }
  0x81   : > { %v1082_v47 = vsel %vm472_vm0, %v1080_v39, %v1081_v29  ;;  %v1084_v48 = vsel %vm472_vm0, %v1081_v29, %v1083_v43  ;;  %v1327_v51 = vrot.slane %v1210_v32, 2  ;;  %v1443_v30 = vmul.f32 %v3236_v22, %v2851_v21 }
  0x82   : > { %v1162_v52 = vadd.f32 %v1082_v47, %v918_v42  ;;  %v1163_v31 = vadd.f32 %v1084_v48, %v919_v44  ;;  %v1326_v53 = vsel %vm717_vm1, %v1324_v33, %v1325_v45  ;;  %v1520_v34 = vmul.f32 %v3232_v24, %v2909_v23 }
  0x83   : > { %v1328_v54 = vsel %vm717_vm1, %v1325_v45, %v1327_v51  ;;  %v1521_v56 = vmul.f32 %v3236_v22, %v2909_v23  ;;  %v1522_v59 = vmul.f32 %v2909_v23, %v3238_v37  ;;  %v1764_v60 = vmul.f32 %v3232_v24, %v2900_v2 }
  0x84   : > { %v1406_v8 = vadd.f32 %v1326_v53, %v1162_v52  ;;  %v1407_v11 = vadd.f32 %v1328_v54, %v1163_v31  ;;  %v1636_v16 = vrot.slane %v1520_v34, 1  ;;  %v1765_v17 = vmul.f32 %v3236_v22, %v2900_v2 }
  0x85   : > { %v1637_v7 = vrot.slane %v1521_v56, 1  ;;  %v1639_v25 = vrot.slane %v1522_v59, 1  ;;  %v1766_v26 = vmul.f32 %v2900_v2, %v3238_v37  ;;  %v1880_v28 = vrot.slane %v1764_v60, 2 }
  0x86   : > { %v1474_v36 = vadd.f32 %v1442_v46, %v1406_v8  ;;  %v1475_v4 = vadd.f32 %v1443_v30, %v1407_v11  ;;  %v1881_v38 = vrot.slane %v1765_v17, 2  ;;  %v3303_v39 = vunpack.c.l.bf16 %v241_v61 }
  0x87   : > { %v1638_v40 = vsel %vm472_vm0, %v1636_v16, %v1637_v7  ;;  %v1640_v41 = vsel %vm472_vm0, %v1637_v7, %v1639_v25  ;;  %v1883_v42 = vrot.slane %v1766_v26, 2  ;;  %v3307_v29 = vunpack.c.h.bf16 %v241_v61 }
  0x88   : > { %v1718_v43 = vadd.f32 %v1638_v40, %v1474_v36  ;;  %v1719_v32 = vadd.f32 %v1640_v41, %v1475_v4  ;;  %v1882_v44 = vsel %vm717_vm1, %v1880_v28, %v1881_v38  ;;  %v3310_v33 = vunpack.c.l.bf16 %v243_v35 }
  0x89   : > { %v1884_v2 = vsel %vm717_vm1, %v1881_v38, %v1883_v42  ;;  %v346_v45 = vmul.f32 %v2830_v12, %v3021_v57  ;;  %v347_v46 = vmul.f32 %v2830_v12, %v3023_v58  ;;  %v385_v47 = vmul.f32 %v2833_v13, %v3021_v57 }
  0x8a   : > { %v1962_v48 = vadd.f32 %v1882_v44, %v1718_v43  ;;  %v1963_v51 = vadd.f32 %v1884_v2, %v1719_v32  ;;  %v386_v30 = vmul.f32 %v2833_v13, %v3023_v58  ;;  %v387_v52 = vmul.f32 %v2833_v13, %v3027_v9 }
  0x8b   : > { %v488_v31 = vrot.slane %v385_v47, 1  ;;  %v630_v53 = vmul.f32 %v2836_v14, %v3021_v57  ;;  %v631_v34 = vmul.f32 %v2836_v14, %v3023_v58  ;;  %v632_v54 = vmul.f32 %v2836_v14, %v3027_v9 }
  0x8c   : > { %v2001_v56 = vadd.f32 %v2950_v3, %v1962_v48  ;;  %v2002_v59 = vadd.f32 %v2950_v3, %v1963_v51  ;;  %v489_v60 = vrot.slane %v386_v30, 1  ;;  %v491_v61 = vrot.slane %v387_v52, 1 }
  0x8d   : > { %v733_v8 = vrot.slane %v630_v53, 2  ;;  %v734_v11 = vrot.slane %v631_v34, 2  ;;  %v736_v16 = vrot.slane %v632_v54, 2  ;;  %v872_v17 = vmul.f32 %v3161_v10, %v2839_v15 }
  0x8e   : > { %v2033_v7 = vmax.f32 %v2001_v56, 0.0  ;;  %v2034_v57 = vmax.f32 %v2002_v59, 0.0  ;;  %v490_v25 = vsel %vm472_vm0, %v488_v31, %v489_v60  ;;  %v492_v58 = vsel %vm472_vm0, %v489_v60, %v491_v61 }
  0x8f   : > { %v591_v26 = vadd.f32 %v490_v25, %v346_v45  ;;  %v592_v9 = vadd.f32 %v492_v58, %v347_v46  ;;  %v735_v28 = vsel %vm717_vm1, %v733_v8, %v734_v11  ;;  %v737_v35 = vsel %vm717_vm1, %v734_v11, %v736_v16  ;;  %v3370_v58 = vld [vmem:[%s4151_s1 + $0x8] ss:$0 sm:$0xff] }
  0x90   : > { %v2055_v36 = vpack.c.bf16 %v2034_v57, %v2033_v7  ;;  %v873_v4 = vmul.f32 %v3165_v18, %v2839_v15  ;;  %v943_v38 = vmul.f32 %v3161_v10, %v2845_v19  ;;  %v944_v40 = vmul.f32 %v3165_v18, %v2845_v19 }
  0x91   : > { %v836_v41 = vadd.f32 %v735_v28, %v591_v26  ;;  %v837_v42 = vadd.f32 %v737_v35, %v592_v9  ;;  %v945_v43 = vmul.f32 %v2845_v19, %v3168_v27  ;;  %v1187_v32 = vmul.f32 %v3161_v10, %v2848_v20 }
  0x92   : > { %2724 = vmatprep.mubr.msk.bf16.mxu1 %vm2084_vm2, %v2055_v36  ;;  %v1045_v44 = vrot.slane %v943_v38, 1  ;;  %v1046_v2 = vrot.slane %v944_v40, 1  ;;  %v1188_v45 = vmul.f32 %v3165_v18, %v2848_v20  ;;  %v1189_v46 = vmul.f32 %v2848_v20, %v3168_v27 }
  0x93   : > { %v904_v47 = vadd.f32 %v872_v17, %v836_v41  ;;  %v905_v48 = vadd.f32 %v873_v4, %v837_v42  ;;  %v1048_v51 = vrot.slane %v945_v43, 1  ;;  %v1289_v30 = vrot.slane %v1187_v32, 2  ;;  %v265_v17 = vld [vmem:[%s2827_s29 + $0x9c] sm:$0xff]   ;;  %v267_v4 = vld [vmem:[%s2827_s29 + $0xa4] sm:$0x1] }
  0x94   : > { %v1047_v52 = vsel %vm472_vm0, %v1045_v44, %v1046_v2  ;;  %v1290_v31 = vrot.slane %v1188_v45, 2  ;;  %v1292_v53 = vrot.slane %v1189_v46, 2  ;;  %v1428_v34 = vmul.f32 %v2851_v21, %v3303_v39 }
  0x95   : > { %v1049_v54 = vsel %vm472_vm0, %v1046_v2, %v1048_v51  ;;  %v1148_v56 = vadd.f32 %v1047_v52, %v904_v47  ;;  %v1429_v59 = vmul.f32 %v2851_v21, %v3307_v29  ;;  %v1499_v60 = vmul.f32 %v2909_v23, %v3303_v39 }
  0x96   : > { %v1149_v61 = vadd.f32 %v1049_v54, %v905_v48  ;;  %v1291_v8 = vsel %vm717_vm1, %v1289_v30, %v1290_v31  ;;  %v1293_v11 = vsel %vm717_vm1, %v1290_v31, %v1292_v53  ;;  %v1500_v16 = vmul.f32 %v2909_v23, %v3307_v29 }
  0x97   : > { %v1392_v7 = vadd.f32 %v1291_v8, %v1148_v56  ;;  %v1501_v57 = vmul.f32 %v2909_v23, %v3310_v33  ;;  %v1601_v25 = vrot.slane %v1499_v60, 1  ;;  %v1743_v26 = vmul.f32 %v3370_v58, %v3303_v39 }
  0x98   : > { %v1393_v9 = vadd.f32 %v1293_v11, %v1149_v61  ;;  %v1602_v28 = vrot.slane %v1500_v16, 1  ;;  %v1744_v35 = vmul.f32 %v3370_v58, %v3307_v29  ;;  %v1745_v36 = vmul.f32 %v3370_v58, %v3310_v33 }
  0x99   : > { %v1460_v38 = vadd.f32 %v1428_v34, %v1392_v7  ;;  %v1604_v40 = vrot.slane %v1501_v57, 1  ;;  %v1845_v41 = vrot.slane %v1743_v26, 2  ;;  %v3379_v42 = vunpack.c.l.bf16 %v265_v17 }
  0x9a   : > { %v1461_v43 = vadd.f32 %v1429_v59, %v1393_v9  ;;  %v1603_v32 = vsel %vm472_vm0, %v1601_v25, %v1602_v28  ;;  %v1846_v44 = vrot.slane %v1744_v35, 2  ;;  %v1848_v2 = vrot.slane %v1745_v36, 2 }
  0x9b   : > { %v1605_v45 = vsel %vm472_vm0, %v1602_v28, %v1604_v40  ;;  %v1704_v46 = vadd.f32 %v1603_v32, %v1460_v38  ;;  %v3383_v47 = vunpack.c.h.bf16 %v265_v17  ;;  %v3385_v48 = vunpack.c.l.bf16 %v267_v4 }
  0x9c   : > { %v1705_v51 = vadd.f32 %v1605_v45, %v1461_v43  ;;  %v1847_v30 = vsel %vm717_vm1, %v1845_v41, %v1846_v44  ;;  %v1849_v52 = vsel %vm717_vm1, %v1846_v44, %v1848_v2  ;;  %v362_v31 = vmul.f32 %v2830_v12, %v3090_v50 }
  0x9d   : > { %v1948_v53 = vadd.f32 %v1847_v30, %v1704_v46  ;;  %v363_v34 = vmul.f32 %v2830_v12, %v3094_v62  ;;  %v409_v54 = vmul.f32 %v2833_v13, %v3090_v50  ;;  %v410_v56 = vmul.f32 %v2833_v13, %v3094_v62 }
  0x9e   : > { %v1949_v59 = vadd.f32 %v1849_v52, %v1705_v51  ;;  %v411_v60 = vmul.f32 %v2833_v13, %v3096_v63  ;;  %v654_v61 = vmul.f32 %v2836_v14, %v3090_v50  ;;  %v655_v8 = vmul.f32 %v2836_v14, %v3094_v62 }
  0x9f   : > { %v1987_v11 = vadd.f32 %v2950_v3, %v1948_v53  ;;  %v528_v16 = vrot.slane %v409_v54, 1  ;;  %v529_v17 = vrot.slane %v410_v56, 1  ;;  %v656_v7 = vmul.f32 %v2836_v14, %v3096_v63 }
  0xa0   : > { %v1988_v57 = vadd.f32 %v2950_v3, %v1949_v59  ;;  %v531_v25 = vrot.slane %v411_v60, 1  ;;  %v773_v26 = vrot.slane %v654_v61, 2  ;;  %v774_v9 = vrot.slane %v655_v8, 2 }
  0xa1   : > { %v2019_v28 = vmax.f32 %v1987_v11, 0.0  ;;  %v530_v35 = vsel %vm472_vm0, %v528_v16, %v529_v17  ;;  %v776_v36 = vrot.slane %v656_v7, 2  ;;  %v888_v50 = vmul.f32 %v3232_v24, %v2839_v15 }
  0xa2   : > { %v2020_v62 = vmax.f32 %v1988_v57, 0.0  ;;  %v532_v4 = vsel %vm472_vm0, %v529_v17, %v531_v25  ;;  %v607_v38 = vadd.f32 %v530_v35, %v362_v31  ;;  %v775_v40 = vsel %vm717_vm1, %v773_v26, %v774_v9 }
  0xa3   : > { %v608_v41 = vadd.f32 %v532_v4, %v363_v34  ;;  %v777_v63 = vsel %vm717_vm1, %v774_v9, %v776_v36  ;;  %v889_v3 = vmul.f32 %v3236_v22, %v2839_v15  ;;  %v967_v43 = vmul.f32 %v3232_v24, %v2845_v19 }
  0xa4   : > { %v2048_v32 = vpack.c.bf16 %v2020_v62, %v2019_v28  ;;  %v852_v44 = vadd.f32 %v775_v40, %v607_v38  ;;  %v968_v2 = vmul.f32 %v3236_v22, %v2845_v19  ;;  %v969_v45 = vmul.f32 %v2845_v19, %v3238_v37 }
  0xa5   : > { %v853_v46 = vadd.f32 %v777_v63, %v608_v41  ;;  %v1085_v51 = vrot.slane %v967_v43, 1  ;;  %v1211_v30 = vmul.f32 %v3232_v24, %v2848_v20  ;;  %v1212_v52 = vmul.f32 %v3236_v22, %v2848_v20 }
  0xa6   : > { %2709 = vmatmul.mubr.msk.bf16.gmra.mrb[4].mxu0 %vm2084_vm2, %v2048_v32  ;;  %v920_v31 = vadd.f32 %v888_v50, %v852_v44  ;;  %v1086_v53 = vrot.slane %v968_v2, 1  ;;  %v1088_v34 = vrot.slane %v969_v45, 1  ;;  %v1213_v54 = vmul.f32 %v2848_v20, %v3238_v37  ;;  %v2676_v50 = vld [vmem:[%s2827_s29 + $0x48] sm:$0xff]   ;;  %v246_v32 = vld [vmem:[%s2827_s29 + $0x50] sm:$0x1] }
  0xa7   : > { %v921_v56 = vadd.f32 %v889_v3, %v853_v46  ;;  %v1329_v59 = vrot.slane %v1211_v30, 2  ;;  %v1330_v60 = vrot.slane %v1212_v52, 2  ;;  %v1444_v61 = vmul.f32 %v2851_v21, %v3379_v42 }
  0xa8   : > { %v1087_v8 = vsel %vm472_vm0, %v1085_v51, %v1086_v53  ;;  %v1089_v11 = vsel %vm472_vm0, %v1086_v53, %v1088_v34  ;;  %v1332_v16 = vrot.slane %v1213_v54, 2  ;;  %v1445_v17 = vmul.f32 %v2851_v21, %v3383_v47 }
  0xa9   : > { %v1164_v7 = vadd.f32 %v1087_v8, %v920_v31  ;;  %v1165_v57 = vadd.f32 %v1089_v11, %v921_v56  ;;  %v1331_v25 = vsel %vm717_vm1, %v1329_v59, %v1330_v60  ;;  %v1523_v26 = vmul.f32 %v2909_v23, %v3379_v42 }
  0xaa   : > { %v1333_v9 = vsel %vm717_vm1, %v1330_v60, %v1332_v16  ;;  %v1524_v28 = vmul.f32 %v2909_v23, %v3383_v47  ;;  %v1525_v35 = vmul.f32 %v2909_v23, %v3385_v48  ;;  %v1767_v36 = vmul.f32 %v3370_v58, %v3379_v42 }
  0xab   : > { %v1408_v62 = vadd.f32 %v1331_v25, %v1164_v7  ;;  %v1409_v4 = vadd.f32 %v1333_v9, %v1165_v57  ;;  %v1641_v38 = vrot.slane %v1523_v26, 1  ;;  %v1768_v40 = vmul.f32 %v3370_v58, %v3383_v47 }
  0xac   : > { %v1642_v41 = vrot.slane %v1524_v28, 1  ;;  %v1644_v63 = vrot.slane %v1525_v35, 1  ;;  %v1769_v3 = vmul.f32 %v3370_v58, %v3385_v48  ;;  %v1885_v43 = vrot.slane %v1767_v36, 2  ;;  %v3479_v28 = vld [vmem:[%s4152_s2] ss:$0 sm:$0xff] }
  0xad   : > { %v1476_v44 = vadd.f32 %v1444_v61, %v1408_v62  ;;  %v1477_v2 = vadd.f32 %v1445_v17, %v1409_v4  ;;  %v1886_v45 = vrot.slane %v1768_v40, 2  ;;  %v3450_v46 = vunpack.c.l.bf16 %v2676_v50 }
  0xae   : > { %v1643_v51 = vsel %vm472_vm0, %v1641_v38, %v1642_v41  ;;  %v1645_v30 = vsel %vm472_vm0, %v1642_v41, %v1644_v63  ;;  %v1888_v52 = vrot.slane %v1769_v3, 2  ;;  %v3454_v31 = vunpack.c.h.bf16 %v2676_v50 }
  0xaf   : > { %v1720_v53 = vadd.f32 %v1643_v51, %v1476_v44  ;;  %v1721_v34 = vadd.f32 %v1645_v30, %v1477_v2  ;;  %v1887_v54 = vsel %vm717_vm1, %v1885_v43, %v1886_v45  ;;  %v3457_v56 = vunpack.c.l.bf16 %v246_v32 }
  0xb0   : > { %v1889_v59 = vsel %vm717_vm1, %v1886_v45, %v1888_v52  ;;  %v348_v60 = vmul.f32 %v3161_v10, %v2830_v12  ;;  %v349_v61 = vmul.f32 %v3165_v18, %v2830_v12  ;;  %v388_v8 = vmul.f32 %v3161_v10, %v2833_v13 }
  0xb1   : > { %v1964_v11 = vadd.f32 %v1887_v54, %v1720_v53  ;;  %v1965_v16 = vadd.f32 %v1889_v59, %v1721_v34  ;;  %v389_v17 = vmul.f32 %v3165_v18, %v2833_v13  ;;  %v390_v7 = vmul.f32 %v2833_v13, %v3168_v27 }
  0xb2   : > { %v493_v57 = vrot.slane %v388_v8, 1  ;;  %v633_v25 = vmul.f32 %v3161_v10, %v2836_v14  ;;  %v634_v26 = vmul.f32 %v3165_v18, %v2836_v14  ;;  %v635_v9 = vmul.f32 %v2836_v14, %v3168_v27 }
  0xb3   : > { %v2003_v35 = vadd.f32 %v3479_v28, %v1964_v11  ;;  %v2004_v36 = vadd.f32 %v3479_v28, %v1965_v16  ;;  %v494_v50 = vrot.slane %v389_v17, 1  ;;  %v496_v62 = vrot.slane %v390_v7, 1 }
  0xb4   : > { %v738_v4 = vrot.slane %v633_v25, 2  ;;  %v739_v38 = vrot.slane %v634_v26, 2  ;;  %v741_v10 = vrot.slane %v635_v9, 2  ;;  %v874_v18 = vmul.f32 %v2839_v15, %v3303_v39 }
  0xb5   : > { %v2035_v40 = vmax.f32 %v2003_v35, 0.0  ;;  %v2036_v41 = vmax.f32 %v2004_v36, 0.0  ;;  %v495_v27 = vsel %vm472_vm0, %v493_v57, %v494_v50  ;;  %v497_v63 = vsel %vm472_vm0, %v494_v50, %v496_v62 }
  0xb6   : > { %v593_v3 = vadd.f32 %v495_v27, %v348_v60  ;;  %v594_v43 = vadd.f32 %v497_v63, %v349_v61  ;;  %v740_v32 = vsel %vm717_vm1, %v738_v4, %v739_v38  ;;  %v742_v44 = vsel %vm717_vm1, %v739_v38, %v741_v10 }
  0xb7   : > { %v2056_v2 = vpack.c.bf16 %v2036_v41, %v2035_v40  ;;  %v875_v45 = vmul.f32 %v2839_v15, %v3307_v29  ;;  %v946_v51 = vmul.f32 %v2845_v19, %v3303_v39  ;;  %v947_v30 = vmul.f32 %v2845_v19, %v3307_v29  ;;  %v2680_v40 = vld [vmem:[%s2827_s29 + $0xa8] sm:$0xff]  }
  0xb8   : > { %v838_v52 = vadd.f32 %v740_v32, %v593_v3  ;;  %v839_v53 = vadd.f32 %v742_v44, %v594_v43  ;;  %v948_v34 = vmul.f32 %v2845_v19, %v3310_v33  ;;  %v1190_v54 = vmul.f32 %v2848_v20, %v3303_v39 }
  0xb9   : > { %2725 = vmatmul.mubr.msk.bf16.gmra.mrb[4].mxu1 %vm2084_vm2, %v2056_v2  ;;  %v1050_v59 = vrot.slane %v946_v51, 1  ;;  %v1051_v60 = vrot.slane %v947_v30, 1  ;;  %v1191_v61 = vmul.f32 %v2848_v20, %v3307_v29  ;;  %v1192_v8 = vmul.f32 %v2848_v20, %v3310_v33 }
  0xba   : > { %v906_v11 = vadd.f32 %v874_v18, %v838_v52  ;;  %v907_v16 = vadd.f32 %v875_v45, %v839_v53  ;;  %v1053_v17 = vrot.slane %v948_v34, 1  ;;  %v1294_v7 = vrot.slane %v1190_v54, 2  ;;  %v270_v45 = vld [vmem:[%s2827_s29 + $0xb0] sm:$0x1] }
  0xbb   : > { %v1052_v57 = vsel %vm472_vm0, %v1050_v59, %v1051_v60  ;;  %v1295_v25 = vrot.slane %v1191_v61, 2  ;;  %v1297_v26 = vrot.slane %v1192_v8, 2  ;;  %v1430_v9 = vmul.f32 %v3450_v46, %v2851_v21 }
  0xbc   : > { %v1054_v35 = vsel %vm472_vm0, %v1051_v60, %v1053_v17  ;;  %v1150_v36 = vadd.f32 %v1052_v57, %v906_v11  ;;  %v1431_v50 = vmul.f32 %v3454_v31, %v2851_v21  ;;  %v1502_v62 = vmul.f32 %v3450_v46, %v2909_v23 }
  0xbd   : > { %v1151_v4 = vadd.f32 %v1054_v35, %v907_v16  ;;  %v1296_v38 = vsel %vm717_vm1, %v1294_v7, %v1295_v25  ;;  %v1298_v10 = vsel %vm717_vm1, %v1295_v25, %v1297_v26  ;;  %v1503_v18 = vmul.f32 %v3454_v31, %v2909_v23 }
  0xbe   : > { %v1394_v41 = vadd.f32 %v1296_v38, %v1150_v36  ;;  %v1504_v27 = vmul.f32 %v2909_v23, %v3457_v56  ;;  %v1606_v63 = vrot.slane %v1502_v62, 1  ;;  %v1746_v3 = vmul.f32 %v3370_v58, %v3450_v46 }
  0xbf   : > { %v1395_v43 = vadd.f32 %v1298_v10, %v1151_v4  ;;  %v1607_v32 = vrot.slane %v1503_v18, 1  ;;  %v1747_v44 = vmul.f32 %v3370_v58, %v3454_v31  ;;  %v1748_v2 = vmul.f32 %v3370_v58, %v3457_v56 }
  0xc0   : > { %v1462_v51 = vadd.f32 %v1430_v9, %v1394_v41  ;;  %v1609_v30 = vrot.slane %v1504_v27, 1  ;;  %v1850_v52 = vrot.slane %v1746_v3, 2  ;;  %v3526_v53 = vunpack.c.l.bf16 %v2680_v40 }
  0xc1   : > { %v1463_v34 = vadd.f32 %v1431_v50, %v1395_v43  ;;  %v1608_v54 = vsel %vm472_vm0, %v1606_v63, %v1607_v32  ;;  %v1851_v59 = vrot.slane %v1747_v44, 2  ;;  %v1853_v60 = vrot.slane %v1748_v2, 2 }
  0xc2   : > { %v1610_v61 = vsel %vm472_vm0, %v1607_v32, %v1609_v30  ;;  %v1706_v8 = vadd.f32 %v1608_v54, %v1462_v51  ;;  %v3530_v11 = vunpack.c.h.bf16 %v2680_v40  ;;  %v3532_v16 = vunpack.c.l.bf16 %v270_v45 }
  0xc3   : > { %v1707_v17 = vadd.f32 %v1610_v61, %v1463_v34  ;;  %v1852_v7 = vsel %vm717_vm1, %v1850_v52, %v1851_v59  ;;  %v1854_v57 = vsel %vm717_vm1, %v1851_v59, %v1853_v60  ;;  %v364_v25 = vmul.f32 %v3232_v24, %v2830_v12 }
  0xc4   : > { %v1950_v26 = vadd.f32 %v1852_v7, %v1706_v8  ;;  %v365_v9 = vmul.f32 %v3236_v22, %v2830_v12  ;;  %v412_v35 = vmul.f32 %v3232_v24, %v2833_v13  ;;  %v413_v36 = vmul.f32 %v3236_v22, %v2833_v13 }
  0xc5   : > { %v1951_v50 = vadd.f32 %v1854_v57, %v1707_v17  ;;  %v414_v62 = vmul.f32 %v2833_v13, %v3238_v37  ;;  %v657_v4 = vmul.f32 %v3232_v24, %v2836_v14  ;;  %v658_v38 = vmul.f32 %v3236_v22, %v2836_v14 }
  0xc6   : > { %v1989_v10 = vadd.f32 %v3479_v28, %v1950_v26  ;;  %v533_v18 = vrot.slane %v412_v35, 1  ;;  %v534_v40 = vrot.slane %v413_v36, 1  ;;  %v659_v41 = vmul.f32 %v2836_v14, %v3238_v37 }
  0xc7   : > { %v1990_v27 = vadd.f32 %v3479_v28, %v1951_v50  ;;  %v536_v63 = vrot.slane %v414_v62, 1  ;;  %v778_v3 = vrot.slane %v657_v4, 2  ;;  %v779_v43 = vrot.slane %v658_v38, 2 }
  0xc8   : > { %v2021_v32 = vmax.f32 %v1989_v10, 0.0  ;;  %v535_v44 = vsel %vm472_vm0, %v533_v18, %v534_v40  ;;  %v781_v2 = vrot.slane %v659_v41, 2  ;;  %v890_v24 = vmul.f32 %v2839_v15, %v3379_v42 }
  0xc9   : > { %v2022_v22 = vmax.f32 %v1990_v27, 0.0  ;;  %v537_v45 = vsel %vm472_vm0, %v534_v40, %v536_v63  ;;  %v609_v51 = vadd.f32 %v535_v44, %v364_v25  ;;  %v780_v30 = vsel %vm717_vm1, %v778_v3, %v779_v43 }
  0xca   : > { %v610_v52 = vadd.f32 %v537_v45, %v365_v9  ;;  %v782_v37 = vsel %vm717_vm1, %v779_v43, %v781_v2  ;;  %v891_v34 = vmul.f32 %v2839_v15, %v3383_v47  ;;  %v970_v54 = vmul.f32 %v2845_v19, %v3379_v42 }
  0xcb   : > { %v2049_v59 = vpack.c.bf16 %v2022_v22, %v2021_v32  ;;  %v854_v60 = vadd.f32 %v780_v30, %v609_v51  ;;  %v971_v61 = vmul.f32 %v2845_v19, %v3383_v47  ;;  %v972_v8 = vmul.f32 %v2845_v19, %v3385_v48  ;;  %v247_v22 = vld [vmem:[%s2827_s29 + $0x54] sm:$0xff]  }
  0xcc   : > { %v855_v17 = vadd.f32 %v782_v37, %v610_v52  ;;  %v1090_v7 = vrot.slane %v970_v54, 1  ;;  %v1214_v57 = vmul.f32 %v2848_v20, %v3379_v42  ;;  %v1215_v25 = vmul.f32 %v2848_v20, %v3383_v47 }
  0xcd   : > { %2712 = vmatprep.mubr.msk.bf16.mxu0 %vm2084_vm2, %v2049_v59  ;;  %v922_v26 = vadd.f32 %v890_v24, %v854_v60  ;;  %v1091_v9 = vrot.slane %v971_v61, 1  ;;  %v1093_v35 = vrot.slane %v972_v8, 1  ;;  %v1216_v36 = vmul.f32 %v2848_v20, %v3385_v48  ;;  %v249_v60 = vld [vmem:[%s2827_s29 + $0x5c] sm:$0x1] }
  0xce   : > { %v923_v50 = vadd.f32 %v891_v34, %v855_v17  ;;  %v1334_v62 = vrot.slane %v1214_v57, 2  ;;  %v1335_v4 = vrot.slane %v1215_v25, 2  ;;  %v1446_v38 = vmul.f32 %v3526_v53, %v2851_v21 }
  0xcf   : > { %v1092_v10 = vsel %vm472_vm0, %v1090_v7, %v1091_v9  ;;  %v1094_v18 = vsel %vm472_vm0, %v1091_v9, %v1093_v35  ;;  %v1337_v40 = vrot.slane %v1216_v36, 2  ;;  %v1447_v41 = vmul.f32 %v3530_v11, %v2851_v21 }
  0xd0   : > { %v1166_v27 = vadd.f32 %v1092_v10, %v922_v26  ;;  %v1167_v63 = vadd.f32 %v1094_v18, %v923_v50  ;;  %v1336_v3 = vsel %vm717_vm1, %v1334_v62, %v1335_v4  ;;  %v1526_v43 = vmul.f32 %v3526_v53, %v2909_v23 }
  0xd1   : > { %v1338_v32 = vsel %vm717_vm1, %v1335_v4, %v1337_v40  ;;  %v1527_v44 = vmul.f32 %v3530_v11, %v2909_v23  ;;  %v1528_v2 = vmul.f32 %v2909_v23, %v3532_v16  ;;  %v1770_v24 = vmul.f32 %v3370_v58, %v3526_v53 }
  0xd2   : > { %v1410_v45 = vadd.f32 %v1336_v3, %v1166_v27  ;;  %v1411_v51 = vadd.f32 %v1338_v32, %v1167_v63  ;;  %v1646_v30 = vrot.slane %v1526_v43, 1  ;;  %v1771_v52 = vmul.f32 %v3370_v58, %v3530_v11 }
  0xd3   : > { %v1647_v37 = vrot.slane %v1527_v44, 1  ;;  %v1649_v34 = vrot.slane %v1528_v2, 1  ;;  %v1772_v54 = vmul.f32 %v3370_v58, %v3532_v16  ;;  %v1890_v59 = vrot.slane %v1770_v24, 2 }
  0xd4   : > { %v1478_v61 = vadd.f32 %v1446_v38, %v1410_v45  ;;  %v1479_v8 = vadd.f32 %v1447_v41, %v1411_v51  ;;  %v1891_v17 = vrot.slane %v1771_v52, 2  ;;  %v3597_v7 = vunpack.c.l.bf16 %v247_v22 }
  0xd5   : > { %v1648_v57 = vsel %vm472_vm0, %v1646_v30, %v1647_v37  ;;  %v1650_v25 = vsel %vm472_vm0, %v1647_v37, %v1649_v34  ;;  %v1893_v26 = vrot.slane %v1772_v54, 2  ;;  %v3601_v9 = vunpack.c.h.bf16 %v247_v22 }
  0xd6   : > { %v1722_v35 = vadd.f32 %v1648_v57, %v1478_v61  ;;  %v1723_v36 = vadd.f32 %v1650_v25, %v1479_v8  ;;  %v1892_v50 = vsel %vm717_vm1, %v1890_v59, %v1891_v17  ;;  %v3604_v62 = vunpack.c.l.bf16 %v249_v60 }
  0xd7   : > { %v1894_v4 = vsel %vm717_vm1, %v1891_v17, %v1893_v26  ;;  %v350_v38 = vmul.f32 %v2830_v12, %v3303_v39  ;;  %v351_v10 = vmul.f32 %v2830_v12, %v3307_v29  ;;  %v391_v18 = vmul.f32 %v2833_v13, %v3303_v39 }
  0xd8   : > { %v1966_v40 = vadd.f32 %v1892_v50, %v1722_v35  ;;  %v1967_v41 = vadd.f32 %v1894_v4, %v1723_v36  ;;  %v392_v27 = vmul.f32 %v2833_v13, %v3307_v29  ;;  %v393_v63 = vmul.f32 %v2833_v13, %v3310_v33 }
  0xd9   : > { %v498_v3 = vrot.slane %v391_v18, 1  ;;  %v636_v43 = vmul.f32 %v2836_v14, %v3303_v39  ;;  %v637_v32 = vmul.f32 %v2836_v14, %v3307_v29  ;;  %v638_v44 = vmul.f32 %v2836_v14, %v3310_v33 }
  0xda   : > { %v2005_v2 = vadd.f32 %v3479_v28, %v1966_v40  ;;  %v2006_v24 = vadd.f32 %v3479_v28, %v1967_v41  ;;  %v499_v22 = vrot.slane %v392_v27, 1  ;;  %v501_v45 = vrot.slane %v393_v63, 1 }
  0xdb   : > { %v743_v51 = vrot.slane %v636_v43, 2  ;;  %v744_v30 = vrot.slane %v637_v32, 2  ;;  %v746_v52 = vrot.slane %v638_v44, 2  ;;  %v876_v37 = vmul.f32 %v3450_v46, %v2839_v15 }
  0xdc   : > { %v2037_v34 = vmax.f32 %v2005_v2, 0.0  ;;  %v2038_v39 = vmax.f32 %v2006_v24, 0.0  ;;  %v500_v54 = vsel %vm472_vm0, %v498_v3, %v499_v22  ;;  %v502_v29 = vsel %vm472_vm0, %v499_v22, %v501_v45 }
  0xdd   : > { %v595_v59 = vadd.f32 %v500_v54, %v350_v38  ;;  %v596_v33 = vadd.f32 %v502_v29, %v351_v10  ;;  %v745_v60 = vsel %vm717_vm1, %v743_v51, %v744_v30  ;;  %v747_v61 = vsel %vm717_vm1, %v744_v30, %v746_v52 }
  0xde   : > { %v2057_v8 = vpack.c.bf16 %v2038_v39, %v2037_v34  ;;  %v877_v17 = vmul.f32 %v3454_v31, %v2839_v15  ;;  %v949_v57 = vmul.f32 %v3450_v46, %v2845_v19  ;;  %v950_v25 = vmul.f32 %v3454_v31, %v2845_v19  ;;  %v271_v34 = vld [vmem:[%s2827_s29 + $0xb4] sm:$0xff]  }
  0xdf   : > { %v840_v26 = vadd.f32 %v745_v60, %v595_v59  ;;  %v841_v35 = vadd.f32 %v747_v61, %v596_v33  ;;  %v951_v36 = vmul.f32 %v2845_v19, %v3457_v56  ;;  %v1193_v50 = vmul.f32 %v3450_v46, %v2848_v20 }
  0xe0   : > { %2728 = vmatprep.mubr.msk.bf16.mxu1 %vm2084_vm2, %v2057_v8  ;;  %v1055_v4 = vrot.slane %v949_v57, 1  ;;  %v1056_v38 = vrot.slane %v950_v25, 1  ;;  %v1194_v10 = vmul.f32 %v3454_v31, %v2848_v20  ;;  %v1195_v18 = vmul.f32 %v2848_v20, %v3457_v56 }
  0xe1   : > { %v908_v40 = vadd.f32 %v876_v37, %v840_v26  ;;  %v909_v41 = vadd.f32 %v877_v17, %v841_v35  ;;  %v1058_v27 = vrot.slane %v951_v36, 1  ;;  %v1299_v63 = vrot.slane %v1193_v50, 2  ;;  %v273_v17 = vld [vmem:[%s2827_s29 + $0xbc] sm:$0x1] }
  0xe2   : > { %v1057_v3 = vsel %vm472_vm0, %v1055_v4, %v1056_v38  ;;  %v1300_v43 = vrot.slane %v1194_v10, 2  ;;  %v1302_v32 = vrot.slane %v1195_v18, 2  ;;  %v1432_v44 = vmul.f32 %v2851_v21, %v3597_v7 }
  0xe3   : > { %v1059_v2 = vsel %vm472_vm0, %v1056_v38, %v1058_v27  ;;  %v1152_v24 = vadd.f32 %v1057_v3, %v908_v40  ;;  %v1433_v22 = vmul.f32 %v2851_v21, %v3601_v9  ;;  %v1505_v45 = vmul.f32 %v2909_v23, %v3597_v7 }
  0xe4   : > { %v1153_v51 = vadd.f32 %v1059_v2, %v909_v41  ;;  %v1301_v30 = vsel %vm717_vm1, %v1299_v63, %v1300_v43  ;;  %v1303_v52 = vsel %vm717_vm1, %v1300_v43, %v1302_v32  ;;  %v1506_v37 = vmul.f32 %v2909_v23, %v3601_v9 }
  0xe5   : > { %v1396_v39 = vadd.f32 %v1301_v30, %v1152_v24  ;;  %v1507_v54 = vmul.f32 %v2909_v23, %v3604_v62  ;;  %v1611_v29 = vrot.slane %v1505_v45, 1  ;;  %v1749_v59 = vmul.f32 %v3370_v58, %v3597_v7 }
  0xe6   : > { %v1397_v33 = vadd.f32 %v1303_v52, %v1153_v51  ;;  %v1612_v60 = vrot.slane %v1506_v37, 1  ;;  %v1750_v61 = vmul.f32 %v3370_v58, %v3601_v9  ;;  %v1751_v8 = vmul.f32 %v3370_v58, %v3604_v62 }
  0xe7   : > { %v1464_v57 = vadd.f32 %v1432_v44, %v1396_v39  ;;  %v1614_v25 = vrot.slane %v1507_v54, 1  ;;  %v1855_v26 = vrot.slane %v1749_v59, 2  ;;  %v3668_v35 = vunpack.c.l.bf16 %v271_v34 }
  0xe8   : > { %v1465_v36 = vadd.f32 %v1433_v22, %v1397_v33  ;;  %v1613_v50 = vsel %vm472_vm0, %v1611_v29, %v1612_v60  ;;  %v1856_v4 = vrot.slane %v1750_v61, 2  ;;  %v1858_v38 = vrot.slane %v1751_v8, 2 }
  0xe9   : > { %v1615_v10 = vsel %vm472_vm0, %v1612_v60, %v1614_v25  ;;  %v1708_v18 = vadd.f32 %v1613_v50, %v1464_v57  ;;  %v3672_v40 = vunpack.c.h.bf16 %v271_v34  ;;  %v3674_v41 = vunpack.c.l.bf16 %v273_v17 }
  0xea   : > { %v1709_v27 = vadd.f32 %v1615_v10, %v1465_v36  ;;  %v1857_v63 = vsel %vm717_vm1, %v1855_v26, %v1856_v4  ;;  %v1859_v3 = vsel %vm717_vm1, %v1856_v4, %v1858_v38  ;;  %v366_v43 = vmul.f32 %v2830_v12, %v3379_v42 }
  0xeb   : > { %v1952_v32 = vadd.f32 %v1857_v63, %v1708_v18  ;;  %v367_v44 = vmul.f32 %v2830_v12, %v3383_v47  ;;  %v415_v2 = vmul.f32 %v2833_v13, %v3379_v42  ;;  %v416_v24 = vmul.f32 %v2833_v13, %v3383_v47 }
  0xec   : > { %v1953_v22 = vadd.f32 %v1859_v3, %v1709_v27  ;;  %v417_v45 = vmul.f32 %v2833_v13, %v3385_v48  ;;  %v660_v51 = vmul.f32 %v2836_v14, %v3379_v42  ;;  %v661_v30 = vmul.f32 %v2836_v14, %v3383_v47 }
  0xed   : > { %v1991_v52 = vadd.f32 %v3479_v28, %v1952_v32  ;;  %v538_v37 = vrot.slane %v415_v2, 1  ;;  %v539_v34 = vrot.slane %v416_v24, 1  ;;  %v662_v39 = vmul.f32 %v2836_v14, %v3385_v48 }
  0xee   : > { %v1992_v54 = vadd.f32 %v3479_v28, %v1953_v22  ;;  %v541_v29 = vrot.slane %v417_v45, 1  ;;  %v783_v59 = vrot.slane %v660_v51, 2  ;;  %v784_v33 = vrot.slane %v661_v30, 2 }
  0xef   : > { %v2023_v60 = vmax.f32 %v1991_v52, 0.0  ;;  %v540_v61 = vsel %vm472_vm0, %v538_v37, %v539_v34  ;;  %v786_v8 = vrot.slane %v662_v39, 2  ;;  %v892_v42 = vmul.f32 %v3526_v53, %v2839_v15 }
  0xf0   : > { %v2024_v47 = vmax.f32 %v1992_v54, 0.0  ;;  %v542_v17 = vsel %vm472_vm0, %v539_v34, %v541_v29  ;;  %v611_v57 = vadd.f32 %v540_v61, %v366_v43  ;;  %v785_v25 = vsel %vm717_vm1, %v783_v59, %v784_v33 }
  0xf1   : > { %v612_v26 = vadd.f32 %v542_v17, %v367_v44  ;;  %v787_v48 = vsel %vm717_vm1, %v784_v33, %v786_v8  ;;  %v893_v36 = vmul.f32 %v3530_v11, %v2839_v15  ;;  %v973_v50 = vmul.f32 %v3526_v53, %v2845_v19 }
  0xf2   : > { %v2050_v4 = vpack.c.bf16 %v2024_v47, %v2023_v60  ;;  %v856_v38 = vadd.f32 %v785_v25, %v611_v57  ;;  %v974_v10 = vmul.f32 %v3530_v11, %v2845_v19  ;;  %v975_v18 = vmul.f32 %v2845_v19, %v3532_v16 }
  0xf3   : > { %v857_v27 = vadd.f32 %v787_v48, %v612_v26  ;;  %v1095_v63 = vrot.slane %v973_v50, 1  ;;  %v1217_v3 = vmul.f32 %v3526_v53, %v2848_v20  ;;  %v1218_v43 = vmul.f32 %v3530_v11, %v2848_v20 }
  0xf4   : > { %2713 = vmatmul.mubr.msk.bf16.gmra.mrb[8].mxu0 %vm2084_vm2, %v2050_v4  ;;  %v924_v32 = vadd.f32 %v892_v42, %v856_v38  ;;  %v1096_v44 = vrot.slane %v974_v10, 1  ;;  %v1098_v2 = vrot.slane %v975_v18, 1  ;;  %v1219_v24 = vmul.f32 %v2848_v20, %v3532_v16 }
  0xf5   : > { %v925_v22 = vadd.f32 %v893_v36, %v857_v27  ;;  %v1339_v45 = vrot.slane %v1217_v3, 2  ;;  %v1340_v51 = vrot.slane %v1218_v43, 2  ;;  %v1448_v30 = vmul.f32 %v2851_v21, %v3668_v35 }
  0xf6   : > { %v1097_v52 = vsel %vm472_vm0, %v1095_v63, %v1096_v44  ;;  %v1099_v37 = vsel %vm472_vm0, %v1096_v44, %v1098_v2  ;;  %v1342_v34 = vrot.slane %v1219_v24, 2  ;;  %v1449_v39 = vmul.f32 %v2851_v21, %v3672_v40 }
  0xf7   : > { %v1168_v54 = vadd.f32 %v1097_v52, %v924_v32  ;;  %v1169_v29 = vadd.f32 %v1099_v37, %v925_v22  ;;  %v1341_v59 = vsel %vm717_vm1, %v1339_v45, %v1340_v51  ;;  %v1529_v33 = vmul.f32 %v2909_v23, %v3668_v35 }
  0xf8   : > { %v1343_v60 = vsel %vm717_vm1, %v1340_v51, %v1342_v34  ;;  %v1530_v61 = vmul.f32 %v2909_v23, %v3672_v40  ;;  %v1531_v8 = vmul.f32 %v2909_v23, %v3674_v41  ;;  %v1773_v42 = vmul.f32 %v3370_v58, %v3668_v35 }
  0xf9   : > { %v1412_v47 = vadd.f32 %v1341_v59, %v1168_v54  ;;  %v1413_v17 = vadd.f32 %v1343_v60, %v1169_v29  ;;  %v1651_v57 = vrot.slane %v1529_v33, 1  ;;  %v1774_v25 = vmul.f32 %v3370_v58, %v3672_v40 }
  0xfa   : > { %v1652_v26 = vrot.slane %v1530_v61, 1  ;;  %v1654_v48 = vrot.slane %v1531_v8, 1  ;;  %v1775_v36 = vmul.f32 %v3370_v58, %v3674_v41  ;;  %v1895_v50 = vrot.slane %v1773_v42, 2 }
  0xfb   : > { %v1480_v4 = vadd.f32 %v1448_v30, %v1412_v47  ;;  %v1481_v38 = vadd.f32 %v1449_v39, %v1413_v17  ;;  %v1896_v10 = vrot.slane %v1774_v25, 2  ;;  %v352_v18 = vmul.f32 %v3450_v46, %v2830_v12 }
  0xfc   : > { %v1653_v27 = vsel %vm472_vm0, %v1651_v57, %v1652_v26  ;;  %v1655_v63 = vsel %vm472_vm0, %v1652_v26, %v1654_v48  ;;  %v1898_v3 = vrot.slane %v1775_v36, 2  ;;  %v353_v43 = vmul.f32 %v3454_v31, %v2830_v12 }
  0xfd   : > { %v1724_v32 = vadd.f32 %v1653_v27, %v1480_v4  ;;  %v1725_v44 = vadd.f32 %v1655_v63, %v1481_v38  ;;  %v1897_v2 = vsel %vm717_vm1, %v1895_v50, %v1896_v10  ;;  %v394_v24 = vmul.f32 %v3450_v46, %v2833_v13 }
  0xfe   : > { %v1899_v22 = vsel %vm717_vm1, %v1896_v10, %v1898_v3  ;;  %v395_v45 = vmul.f32 %v3454_v31, %v2833_v13  ;;  %v396_v51 = vmul.f32 %v2833_v13, %v3457_v56  ;;  %v639_v30 = vmul.f32 %v3450_v46, %v2836_v14 }
  0xff   : > { %v1968_v52 = vadd.f32 %v1897_v2, %v1724_v32  ;;  %v1969_v37 = vadd.f32 %v1899_v22, %v1725_v44  ;;  %v503_v34 = vrot.slane %v394_v24, 1  ;;  %v640_v39 = vmul.f32 %v3454_v31, %v2836_v14 }
 0x100   : > { %v504_v54 = vrot.slane %v395_v45, 1  ;;  %v506_v29 = vrot.slane %v396_v51, 1  ;;  %v641_v59 = vmul.f32 %v2836_v14, %v3457_v56  ;;  %v748_v33 = vrot.slane %v639_v30, 2 }
 0x101   : > { %v2007_v60 = vadd.f32 %v3479_v28, %v1968_v52  ;;  %v2008_v61 = vadd.f32 %v3479_v28, %v1969_v37  ;;  %v749_v8 = vrot.slane %v640_v39, 2  ;;  %v878_v46 = vmul.f32 %v2839_v15, %v3597_v7 }
 0x102   : > { %v505_v42 = vsel %vm472_vm0, %v503_v34, %v504_v54  ;;  %v507_v47 = vsel %vm472_vm0, %v504_v54, %v506_v29  ;;  %v751_v17 = vrot.slane %v641_v59, 2  ;;  %v879_v31 = vmul.f32 %v2839_v15, %v3601_v9 }
 0x103   : > { %v2039_v57 = vmax.f32 %v2007_v60, 0.0  ;;  %v2040_v25 = vmax.f32 %v2008_v61, 0.0  ;;  %v597_v56 = vadd.f32 %v505_v42, %v352_v18  ;;  %v598_v26 = vadd.f32 %v507_v47, %v353_v43  ;;  %v2681_v47 = vld [vmem:[%s2827_s29 + $0xc0] sm:$0xff]  }
 0x104   : > { %v750_v48 = vsel %vm717_vm1, %v748_v33, %v749_v8  ;;  %v752_v36 = vsel %vm717_vm1, %v749_v8, %v751_v17  ;;  %v952_v50 = vmul.f32 %v2845_v19, %v3597_v7  ;;  %v953_v4 = vmul.f32 %v2845_v19, %v3601_v9 }
 0x105   : > { %v2058_v38 = vpack.c.bf16 %v2040_v25, %v2039_v57  ;;  %v842_v10 = vadd.f32 %v750_v48, %v597_v56  ;;  %v843_v27 = vadd.f32 %v752_v36, %v598_v26  ;;  %v954_v63 = vmul.f32 %v2845_v19, %v3604_v62 }
 0x106   : > { %v1060_v3 = vrot.slane %v952_v50, 1  ;;  %v1061_v32 = vrot.slane %v953_v4, 1  ;;  %v1196_v18 = vmul.f32 %v2848_v20, %v3597_v7  ;;  %v1197_v43 = vmul.f32 %v2848_v20, %v3601_v9  ;;  %v276_v50 = vld [vmem:[%s2827_s29 + $0xc8] sm:$0x1] }
 0x107   : > { %2729 = vmatmul.mubr.msk.bf16.gmra.mrb[8].mxu1 %vm2084_vm2, %v2058_v38  ;;  %v910_v44 = vadd.f32 %v878_v46, %v842_v10  ;;  %v911_v2 = vadd.f32 %v879_v31, %v843_v27  ;;  %v1063_v24 = vrot.slane %v954_v63, 1  ;;  %v1198_v22 = vmul.f32 %v2848_v20, %v3604_v62 }
 0x108   : > { %v1062_v45 = vsel %vm472_vm0, %v1060_v3, %v1061_v32  ;;  %v1304_v51 = vrot.slane %v1196_v18, 2  ;;  %v1305_v30 = vrot.slane %v1197_v43, 2  ;;  %v1434_v52 = vmul.f32 %v2928_v49, %v2851_v21 }
 0x109   : > { %v1064_v37 = vsel %vm472_vm0, %v1061_v32, %v1063_v24  ;;  %v1154_v34 = vadd.f32 %v1062_v45, %v910_v44  ;;  %v1307_v39 = vrot.slane %v1198_v22, 2  ;;  %v1435_v54 = vmul.f32 %v2933_v55, %v2851_v21 }
 0x10a   : > { %v1155_v29 = vadd.f32 %v1064_v37, %v911_v2  ;;  %v1306_v59 = vsel %vm717_vm1, %v1304_v51, %v1305_v30  ;;  %v1508_v33 = vmul.f32 %v2928_v49, %v2909_v23  ;;  %v1509_v60 = vmul.f32 %v2933_v55, %v2909_v23 }
 0x10b   : > { %v1308_v61 = vsel %vm717_vm1, %v1305_v30, %v1307_v39  ;;  %v1398_v8 = vadd.f32 %v1306_v59, %v1154_v34  ;;  %v1510_v46 = vmul.f32 %v2909_v23, %v2943_v0  ;;  %v1752_v42 = vmul.f32 %v3370_v58, %v2928_v49 }
 0x10c   : > { %v1399_v17 = vadd.f32 %v1308_v61, %v1155_v29  ;;  %v1616_v31 = vrot.slane %v1508_v33, 1  ;;  %v1617_v57 = vrot.slane %v1509_v60, 1  ;;  %v1753_v25 = vmul.f32 %v3370_v58, %v2933_v55 }
 0x10d   : > { %v1466_v56 = vadd.f32 %v1434_v52, %v1398_v8  ;;  %v1619_v26 = vrot.slane %v1510_v46, 1  ;;  %v1754_v48 = vmul.f32 %v3370_v58, %v2943_v0  ;;  %v1860_v36 = vrot.slane %v1752_v42, 2 }
 0x10e   : > { %v1467_v4 = vadd.f32 %v1435_v54, %v1399_v17  ;;  %v1618_v38 = vsel %vm472_vm0, %v1616_v31, %v1617_v57  ;;  %v1861_v10 = vrot.slane %v1753_v25, 2  ;;  %v3803_v27 = vunpack.c.l.bf16 %v2681_v47 }
 0x10f   : > { %v1620_v63 = vsel %vm472_vm0, %v1617_v57, %v1619_v26  ;;  %v1710_v3 = vadd.f32 %v1618_v38, %v1466_v56  ;;  %v1863_v32 = vrot.slane %v1754_v48, 2  ;;  %v3806_v18 = vunpack.c.h.bf16 %v2681_v47 }
 0x110   : > { %v1711_v43 = vadd.f32 %v1620_v63, %v1467_v4  ;;  %v1862_v44 = vsel %vm717_vm1, %v1860_v36, %v1861_v10  ;;  %v3809_v2 = vunpack.c.l.bf16 %v276_v50  ;;  %v368_v58 = vmul.f32 %v3526_v53, %v2830_v12 }
 0x111   : > { %v1864_v24 = vsel %vm717_vm1, %v1861_v10, %v1863_v32  ;;  %v1954_v22 = vadd.f32 %v1862_v44, %v1710_v3  ;;  %v369_v45 = vmul.f32 %v3530_v11, %v2830_v12  ;;  %v418_v51 = vmul.f32 %v3526_v53, %v2833_v13 }
 0x112   : > { %v1955_v30 = vadd.f32 %v1864_v24, %v1711_v43  ;;  %v419_v52 = vmul.f32 %v3530_v11, %v2833_v13  ;;  %v420_v37 = vmul.f32 %v2833_v13, %v3532_v16  ;;  %v663_v34 = vmul.f32 %v3526_v53, %v2836_v14 }
 0x113   : > { %v1993_v39 = vadd.f32 %v3479_v28, %v1954_v22  ;;  %v543_v54 = vrot.slane %v418_v51, 1  ;;  %v664_v29 = vmul.f32 %v3530_v11, %v2836_v14  ;;  %v665_v59 = vmul.f32 %v2836_v14, %v3532_v16 }
 0x114   : > { %v1994_v33 = vadd.f32 %v3479_v28, %v1955_v30  ;;  %v544_v60 = vrot.slane %v419_v52, 1  ;;  %v546_v61 = vrot.slane %v420_v37, 1  ;;  %v788_v8 = vrot.slane %v663_v34, 2 }
 0x115   : > { %v2025_v46 = vmax.f32 %v1993_v39, 0.0  ;;  %v789_v42 = vrot.slane %v664_v29, 2  ;;  %v791_v47 = vrot.slane %v665_v59, 2  ;;  %v894_v53 = vmul.f32 %v2839_v15, %v3668_v35 }
 0x116   : > { %v2026_v17 = vmax.f32 %v1994_v33, 0.0  ;;  %v545_v31 = vsel %vm472_vm0, %v543_v54, %v544_v60  ;;  %v547_v57 = vsel %vm472_vm0, %v544_v60, %v546_v61  ;;  %v895_v11 = vmul.f32 %v2839_v15, %v3672_v40 }
 0x117   : > { %v613_v16 = vadd.f32 %v545_v31, %v368_v58  ;;  %v614_v25 = vadd.f32 %v547_v57, %v369_v45  ;;  %v790_v56 = vsel %vm717_vm1, %v788_v8, %v789_v42  ;;  %v792_v26 = vsel %vm717_vm1, %v789_v42, %v791_v47  ;;  %v3868_v47 = vld [vmem:[%s4151_s1 + $0x8] ss:$0 sm:$0xff] }
 0x118   : > { %v2051_v48 = vpack.c.bf16 %v2026_v17, %v2025_v46  ;;  %v976_v36 = vmul.f32 %v2845_v19, %v3668_v35  ;;  %v977_v50 = vmul.f32 %v2845_v19, %v3672_v40  ;;  %v978_v4 = vmul.f32 %v2845_v19, %v3674_v41 }
 0x119   : > { %v858_v38 = vadd.f32 %v790_v56, %v613_v16  ;;  %v859_v10 = vadd.f32 %v792_v26, %v614_v25  ;;  %v1220_v63 = vmul.f32 %v2848_v20, %v3668_v35  ;;  %v1221_v3 = vmul.f32 %v2848_v20, %v3672_v40 }
 0x11a   : > { %2716 = vmatprep.mubr.msk.bf16.mxu0 %vm2084_vm2, %v2051_v48  ;;  %v1100_v32 = vrot.slane %v976_v36, 1  ;;  %v1101_v43 = vrot.slane %v977_v50, 1  ;;  %v1103_v44 = vrot.slane %v978_v4, 1  ;;  %v1222_v58 = vmul.f32 %v2848_v20, %v3674_v41 }
 0x11b   : > { %v926_v24 = vadd.f32 %v894_v53, %v858_v38  ;;  %v927_v22 = vadd.f32 %v895_v11, %v859_v10  ;;  %v1344_v45 = vrot.slane %v1220_v63, 2  ;;  %v1345_v51 = vrot.slane %v1221_v3, 2 }
 0x11c   : > { %v1102_v30 = vsel %vm472_vm0, %v1100_v32, %v1101_v43  ;;  %v1104_v52 = vsel %vm472_vm0, %v1101_v43, %v1103_v44  ;;  %v1347_v37 = vrot.slane %v1222_v58, 2  ;;  %v1450_v34 = vmul.f32 %v3803_v27, %v2851_v21 }
 0x11d   : > { %v1170_v39 = vadd.f32 %v1102_v30, %v926_v24  ;;  %v1171_v54 = vadd.f32 %v1104_v52, %v927_v22  ;;  %v1346_v29 = vsel %vm717_vm1, %v1344_v45, %v1345_v51  ;;  %v1451_v59 = vmul.f32 %v3806_v18, %v2851_v21 }
 0x11e   : > { %v1348_v33 = vsel %vm717_vm1, %v1345_v51, %v1347_v37  ;;  %v1532_v60 = vmul.f32 %v3803_v27, %v2909_v23  ;;  %v1533_v61 = vmul.f32 %v3806_v18, %v2909_v23  ;;  %v1534_v8 = vmul.f32 %v2909_v23, %v3809_v2 }
 0x11f   : > { %v1414_v46 = vadd.f32 %v1346_v29, %v1170_v39  ;;  %v1415_v42 = vadd.f32 %v1348_v33, %v1171_v54  ;;  %v1776_v53 = vmul.f32 %v3868_v47, %v3803_v27  ;;  %v1777_v17 = vmul.f32 %v3868_v47, %v3806_v18 }
 0x120   : > { %v1656_v31 = vrot.slane %v1532_v60, 1  ;;  %v1657_v57 = vrot.slane %v1533_v61, 1  ;;  %v1659_v11 = vrot.slane %v1534_v8, 1  ;;  %v1778_v16 = vmul.f32 %v3868_v47, %v3809_v2 }
 0x121   : > { %v1482_v25 = vadd.f32 %v1450_v34, %v1414_v46  ;;  %v1483_v56 = vadd.f32 %v1451_v59, %v1415_v42  ;;  %v1900_v26 = vrot.slane %v1776_v53, 2  ;;  %v1901_v48 = vrot.slane %v1777_v17, 2 }
 0x122   : > { %v1658_v36 = vsel %vm472_vm0, %v1656_v31, %v1657_v57  ;;  %v1660_v50 = vsel %vm472_vm0, %v1657_v57, %v1659_v11  ;;  %v1903_v4 = vrot.slane %v1778_v16, 2  ;;  %v354_v38 = vmul.f32 %v2830_v12, %v3597_v7 }
 0x123   : > { %v1726_v10 = vadd.f32 %v1658_v36, %v1482_v25  ;;  %v1727_v63 = vadd.f32 %v1660_v50, %v1483_v56  ;;  %v1902_v3 = vsel %vm717_vm1, %v1900_v26, %v1901_v48  ;;  %v355_v32 = vmul.f32 %v2830_v12, %v3601_v9 }
 0x124   : > { %v1904_v43 = vsel %vm717_vm1, %v1901_v48, %v1903_v4  ;;  %v397_v44 = vmul.f32 %v2833_v13, %v3597_v7  ;;  %v398_v58 = vmul.f32 %v2833_v13, %v3601_v9  ;;  %v399_v24 = vmul.f32 %v2833_v13, %v3604_v62 }
 0x125   : > { %v1970_v22 = vadd.f32 %v1902_v3, %v1726_v10  ;;  %v1971_v45 = vadd.f32 %v1904_v43, %v1727_v63  ;;  %v642_v51 = vmul.f32 %v2836_v14, %v3597_v7  ;;  %v643_v30 = vmul.f32 %v2836_v14, %v3601_v9 }
 0x126   : > { %v508_v52 = vrot.slane %v397_v44, 1  ;;  %v509_v37 = vrot.slane %v398_v58, 1  ;;  %v511_v34 = vrot.slane %v399_v24, 1  ;;  %v644_v39 = vmul.f32 %v2836_v14, %v3604_v62 }
 0x127   : > { %v2009_v54 = vadd.f32 %v3479_v28, %v1970_v22  ;;  %v2010_v29 = vadd.f32 %v3479_v28, %v1971_v45  ;;  %v753_v59 = vrot.slane %v642_v51, 2  ;;  %v754_v33 = vrot.slane %v643_v30, 2 }
 0x128   : > { %v510_v60 = vsel %vm472_vm0, %v508_v52, %v509_v37  ;;  %v512_v61 = vsel %vm472_vm0, %v509_v37, %v511_v34  ;;  %v756_v7 = vrot.slane %v644_v39, 2  ;;  %v880_v9 = vmul.f32 %v2928_v49, %v2839_v15  ;;  %v277_v34 = vld [vmem:[%s2827_s29 + $0xcc] sm:$0xff]  }
 0x129   : > { %v2041_v8 = vmax.f32 %v2009_v54, 0.0  ;;  %v2042_v46 = vmax.f32 %v2010_v29, 0.0  ;;  %v599_v42 = vadd.f32 %v510_v60, %v354_v38  ;;  %v600_v53 = vadd.f32 %v512_v61, %v355_v32 }
 0x12a   : > { %v755_v62 = vsel %vm717_vm1, %v753_v59, %v754_v33  ;;  %v757_v17 = vsel %vm717_vm1, %v754_v33, %v756_v7  ;;  %v881_v28 = vmul.f32 %v2933_v55, %v2839_v15  ;;  %v955_v31 = vmul.f32 %v2928_v49, %v2845_v19 }
 0x12b   : > { %v2059_v57 = vpack.c.bf16 %v2042_v46, %v2041_v8  ;;  %v844_v11 = vadd.f32 %v755_v62, %v599_v42  ;;  %v845_v16 = vadd.f32 %v757_v17, %v600_v53  ;;  %v956_v25 = vmul.f32 %v2933_v55, %v2845_v19  ;;  %v3910_v56 = vpop.f32.mrb[0].mxu0  ;;  %v3949_v42 = vld [vmem:[%s2827_s29 + $0xd4] sm:$0x1] }
 0x12c   : > { %v957_v26 = vmul.f32 %v2845_v19, %v2943_v0  ;;  %v1065_v48 = vrot.slane %v955_v31, 1  ;;  %v1199_v36 = vmul.f32 %v2928_v49, %v2848_v20  ;;  %v1200_v50 = vmul.f32 %v2933_v55, %v2848_v20  ;;  %v3918_v4 = vpop.f32.mrb[1].mxu0 }
 0x12d   : > { %2732 = vmatprep.mubr.msk.bf16.mxu1 %vm2084_vm2, %v2059_v57  ;;  %v912_v38 = vadd.f32 %v880_v9, %v844_v11  ;;  %v913_v10 = vadd.f32 %v881_v28, %v845_v16  ;;  %v1066_v63 = vrot.slane %v956_v25, 1  ;;  %v1201_v3 = vmul.f32 %v2848_v20, %v2943_v0  ;;  %v3923_v32 = vpop.f32.mrb[2].mxu0 }
 0x12e   : > { %v1068_v43 = vrot.slane %v957_v26, 1  ;;  %v1309_v44 = vrot.slane %v1199_v36, 2  ;;  %v1310_v58 = vrot.slane %v1200_v50, 2  ;;  %v1436_v49 = vmul.f32 %v2851_v21, %v2945_v1  ;;  %v3927_v55 = vpop.f32.mrb[3].mxu0 }
 0x12f   : > { %v1067_v24 = vsel %vm472_vm0, %v1065_v48, %v1066_v63  ;;  %v1312_v22 = vrot.slane %v1201_v3, 2  ;;  %v1437_v45 = vmul.f32 %v2851_v21, %v2952_v5  ;;  %v1511_v51 = vmul.f32 %v2909_v23, %v2945_v1 }
 0x130   : > { %v1069_v0 = vsel %vm472_vm0, %v1066_v63, %v1068_v43  ;;  %v1156_v30 = vadd.f32 %v1067_v24, %v912_v38  ;;  %v1311_v52 = vsel %vm717_vm1, %v1309_v44, %v1310_v58  ;;  %v1512_v37 = vmul.f32 %v2909_v23, %v2952_v5  ;;  %v3979_v24 = vld [vmem:[%s4152_s2] ss:$0 sm:$0xff] }
 0x131   : > { %v1157_v39 = vadd.f32 %v1069_v0, %v913_v10  ;;  %v1313_v54 = vsel %vm717_vm1, %v1310_v58, %v1312_v22  ;;  %v1513_v29 = vmul.f32 %v2909_v23, %v2954_v6  ;;  %v1621_v59 = vrot.slane %v1511_v51, 1 }
 0x132   : > { %v1400_v33 = vadd.f32 %v1311_v52, %v1156_v30  ;;  %v1622_v60 = vrot.slane %v1512_v37, 1  ;;  %v1755_v61 = vmul.f32 %v3868_v47, %v2945_v1  ;;  %v1756_v7 = vmul.f32 %v3868_v47, %v2952_v5 }
 0x133   : > { %v1401_v9 = vadd.f32 %v1313_v54, %v1157_v39  ;;  %v1624_v8 = vrot.slane %v1513_v29, 1  ;;  %v1757_v46 = vmul.f32 %v3868_v47, %v2954_v6  ;;  %v3951_v53 = vunpack.c.l.bf16 %v277_v34 }
 0x134   : > { %v1468_v62 = vadd.f32 %v1436_v49, %v1400_v33  ;;  %v1623_v17 = vsel %vm472_vm0, %v1621_v59, %v1622_v60  ;;  %v1865_v28 = vrot.slane %v1755_v61, 2  ;;  %v1866_v31 = vrot.slane %v1756_v7, 2 }
 0x135   : > { %v1469_v57 = vadd.f32 %v1437_v45, %v1401_v9  ;;  %v1625_v1 = vsel %vm472_vm0, %v1622_v60, %v1624_v8  ;;  %v1868_v11 = vrot.slane %v1757_v46, 2  ;;  %v3955_v16 = vunpack.c.h.bf16 %v277_v34 }
 0x136   : > { %v1712_v5 = vadd.f32 %v1623_v17, %v1468_v62  ;;  %v1867_v25 = vsel %vm717_vm1, %v1865_v28, %v1866_v31  ;;  %v333_v6 = vunpack.c.l.bf16 %v3949_v42  ;;  %v370_v26 = vmul.f32 %v2830_v12, %v3668_v35 }
 0x137   : > { %v1713_v48 = vadd.f32 %v1625_v1, %v1469_v57  ;;  %v1869_v36 = vsel %vm717_vm1, %v1866_v31, %v1868_v11  ;;  %v371_v50 = vmul.f32 %v2830_v12, %v3672_v40  ;;  %v421_v38 = vmul.f32 %v2833_v13, %v3668_v35 }
 0x138   : > { %v1956_v10 = vadd.f32 %v1867_v25, %v1712_v5  ;;  %v422_v63 = vmul.f32 %v2833_v13, %v3672_v40  ;;  %v423_v3 = vmul.f32 %v2833_v13, %v3674_v41  ;;  %v666_v43 = vmul.f32 %v2836_v14, %v3668_v35 }
 0x139   : > { %v1957_v44 = vadd.f32 %v1869_v36, %v1713_v48  ;;  %v548_v58 = vrot.slane %v421_v38, 1  ;;  %v667_v49 = vmul.f32 %v2836_v14, %v3672_v40  ;;  %v668_v12 = vmul.f32 %v2836_v14, %v3674_v41 }
 0x13a   : > { %v1995_v22 = vadd.f32 %v3979_v24, %v1956_v10  ;;  %v549_v45 = vrot.slane %v422_v63, 1  ;;  %v551_v13 = vrot.slane %v423_v3, 1  ;;  %v793_v51 = vrot.slane %v666_v43, 2 }
 0x13b   : > { %v1996_v35 = vadd.f32 %v3979_v24, %v1957_v44  ;;  %v794_v0 = vrot.slane %v667_v49, 2  ;;  %v796_v30 = vrot.slane %v668_v12, 2  ;;  %v896_v40 = vmul.f32 %v3803_v27, %v2839_v15  ;;  %v4028_v12 = vld [vmem:[%s4154_s4] ss:$0 sm:$0xff] }
 0x13c   : > { %v2027_v52 = vmax.f32 %v1995_v22, 0.0  ;;  %v550_v14 = vsel %vm472_vm0, %v548_v58, %v549_v45  ;;  %v552_v41 = vsel %vm472_vm0, %v549_v45, %v551_v13  ;;  %v897_v37 = vmul.f32 %v3806_v18, %v2839_v15 }
 0x13d   : > { %v2028_v34 = vmax.f32 %v1996_v35, 0.0  ;;  %v615_v39 = vadd.f32 %v550_v14, %v370_v26  ;;  %v616_v54 = vadd.f32 %v552_v41, %v371_v50  ;;  %v795_v29 = vsel %vm717_vm1, %v793_v51, %v794_v0 }
 0x13e   : > { %v797_v59 = vsel %vm717_vm1, %v794_v0, %v796_v30  ;;  %v979_v33 = vmul.f32 %v3803_v27, %v2845_v19  ;;  %v980_v60 = vmul.f32 %v3806_v18, %v2845_v19  ;;  %v981_v61 = vmul.f32 %v2845_v19, %v3809_v2  ;;  %v2722_v7 = vpop.f32.mrb[0].mxu1 }
 0x13f   : > { %v2052_v9 = vpack.c.bf16 %v2028_v34, %v2027_v52  ;;  %v860_v8 = vadd.f32 %v795_v29, %v615_v39  ;;  %v861_v15 = vadd.f32 %v797_v59, %v616_v54  ;;  %v1223_v46 = vmul.f32 %v3803_v27, %v2848_v20  ;;  %v2231_v62 = vpop.f32.mrb[1].mxu1 }
 0x140   : > { %v1105_v17 = vrot.slane %v979_v33, 1  ;;  %v1106_v28 = vrot.slane %v980_v60, 1  ;;  %v1108_v31 = vrot.slane %v981_v61, 1  ;;  %v1224_v57 = vmul.f32 %v3806_v18, %v2848_v20  ;;  %v2723_v1 = vpop.f32.mrb[2].mxu1 }
 0x141   : > { %2717 = vmatmul.mubr.msk.bf16.gmra.mrb[12].mxu0 %vm2084_vm2, %v2052_v9  ;;  %v928_v11 = vadd.f32 %v896_v40, %v860_v8  ;;  %v929_v5 = vadd.f32 %v897_v37, %v861_v15  ;;  %v1225_v19 = vmul.f32 %v2848_v20, %v3809_v2  ;;  %v1349_v25 = vrot.slane %v1223_v46, 2  ;;  %v4004_v26 = vpop.f32.mrb[3].mxu1 }
 0x142   : > { %v1107_v27 = vsel %vm472_vm0, %v1105_v17, %v1106_v28  ;;  %v1109_v48 = vsel %vm472_vm0, %v1106_v28, %v1108_v31  ;;  %v1350_v36 = vrot.slane %v1224_v57, 2  ;;  %v1452_v50 = vmul.f32 %v2851_v21, %v3951_v53 }
 0x143   : > { %v1172_v18 = vadd.f32 %v1107_v27, %v928_v11  ;;  %v1173_v38 = vadd.f32 %v1109_v48, %v929_v5  ;;  %v1352_v10 = vrot.slane %v1225_v19, 2  ;;  %v1453_v63 = vmul.f32 %v2851_v21, %v3955_v16 }
 0x144   : > { %v1351_v3 = vsel %vm717_vm1, %v1349_v25, %v1350_v36  ;;  %v1535_v20 = vmul.f32 %v2909_v23, %v3951_v53  ;;  %v1536_v2 = vmul.f32 %v2909_v23, %v3955_v16  ;;  %v1537_v43 = vmul.f32 %v2909_v23, %v333_v6 }
 0x145   : > { %v1353_v44 = vsel %vm717_vm1, %v1350_v36, %v1352_v10  ;;  %v1416_v58 = vadd.f32 %v1351_v3, %v1172_v18  ;;  %v1779_v49 = vmul.f32 %v3868_v47, %v3951_v53  ;;  %v1780_v21 = vmul.f32 %v3868_v47, %v3955_v16 }
 0x146   : > { %v1417_v22 = vadd.f32 %v1353_v44, %v1173_v38  ;;  %v1661_v45 = vrot.slane %v1535_v20, 1  ;;  %v1662_v13 = vrot.slane %v1536_v2, 1  ;;  %v1664_v51 = vrot.slane %v1537_v43, 1 }
 0x147   : > { %v1484_v23 = vadd.f32 %v1452_v50, %v1416_v58  ;;  %v1781_v35 = vmul.f32 %v3868_v47, %v333_v6  ;;  %v1905_v0 = vrot.slane %v1779_v49, 2  ;;  %v1906_v30 = vrot.slane %v1780_v21, 2 }
 0x148   : > { %v1485_v53 = vadd.f32 %v1453_v63, %v1417_v22  ;;  %v1663_v40 = vsel %vm472_vm0, %v1661_v45, %v1662_v13  ;;  %v1665_v16 = vsel %vm472_vm0, %v1662_v13, %v1664_v51  ;;  %v2176_v52 = vadd.f32 %v3910_v56, %v4028_v12 }
 0x149   : > { %v1728_v14 = vadd.f32 %v1663_v40, %v1484_v23  ;;  %v1907_v41 = vsel %vm717_vm1, %v1905_v0, %v1906_v30  ;;  %v1908_v37 = vrot.slane %v1781_v35, 2  ;;  %v2240_v47 = vadd.f32 %v2722_v7, %v4028_v12 }
 0x14a   : > { %v1729_v34 = vadd.f32 %v1665_v16, %v1485_v53  ;;  %v2296_v42 = vmax.f32 %v2176_v52, 0.0  ;;  %v2168_v6 = vadd.f32 %v4028_v12, %v3918_v4  ;;  %v2232_v56 = vadd.f32 %v4028_v12, %v2231_v62 }
 0x14b   : > { %v1909_v39 = vsel %vm717_vm1, %v1906_v30, %v1908_v37  ;;  %v1972_v54 = vadd.f32 %v1907_v41, %v1728_v14  ;;  %v2179_v29 = vadd.f32 %v3923_v32, %v4028_v12  ;;  %v2312_v60 = vmax.f32 %v2240_v47, 0.0 }
 0x14c   : > { %v1973_v59 = vadd.f32 %v1909_v39, %v1729_v34  ;;  %v2608_v33 = vpack.c.bf16 %v2296_v42, %v2296_v42  ;;  %v2294_v61 = vmax.f32 %v2168_v6, 0.0  ;;  %v2310_v7 = vmax.f32 %v2232_v56, 0.0 }
 0x14d   : > { %v2011_v4 = vadd.f32 %v3979_v24, %v1972_v54  ;;  %v2297_v9 = vmax.f32 %v2179_v29, 0.0  ;;  %v2243_v8 = vadd.f32 %v2723_v1, %v4028_v12  ;;  %v2624_v46 = vpack.c.bf16 %v2312_v60, %v2312_v60 }
 0x14e   : > { %v2012_v15 = vadd.f32 %v3979_v24, %v1973_v59  ;;  %2457 = vst.msk [vmem:[%s4046_s23 + $0x8] sm:$0xf] %vm2454_vm3, %v2608_v33  ;;  %v2606_v32 = vpack.c.bf16 %v2294_v61, %v2294_v61  ;;  %v2171_v62 = vadd.f32 %v4028_v12, %v3927_v55  ;;  %v2622_v28 = vpack.c.bf16 %v2310_v7, %v2310_v7 }
 0x14f   : > { %v2043_v17 = vmax.f32 %v2011_v4, 0.0  ;;  %v2609_v31 = vpack.c.bf16 %v2297_v9, %v2297_v9  ;;  %v2313_v57 = vmax.f32 %v2243_v8, 0.0  ;;  %2473 = vst.msk [vmem:[%s4046_s23 + $0x48] sm:$0xf] %vm2454_vm3, %v2624_v46  ;;  %v2235_v1 = vadd.f32 %v4028_v12, %v4004_v26 }
 0x150   : > { %v2044_v11 = vmax.f32 %v2012_v15, 0.0  ;;  %2455 = vst.msk [vmem:[%s4046_s23] sm:$0xf] %vm2454_vm3, %v2606_v32  ;;  %v2295_v24 = vmax.f32 %v2171_v62, 0.0  ;;  %2471 = vst.msk [vmem:[%s4046_s23 + $0x40] sm:$0xf] %vm2454_vm3, %v2622_v28 }
 0x151   : > { %2458 = vst.msk [vmem:[%s4046_s23 + $0xc] sm:$0xf] %vm2454_vm3, %v2609_v31  ;;  %v2625_v55 = vpack.c.bf16 %v2313_v57, %v2313_v57  ;;  %v2311_v25 = vmax.f32 %v2235_v1, 0.0 }
 0x152   : > { %v2060_v5 = vpack.c.bf16 %v2044_v11, %v2043_v17  ;;  %v2607_v19 = vpack.c.bf16 %v2295_v24, %v2295_v24 }
 0x153   : > { %2474 = vst.msk [vmem:[%s4046_s23 + $0x4c] sm:$0xf] %vm2454_vm3, %v2625_v55  ;;  %v2623_v27 = vpack.c.bf16 %v2311_v25, %v2311_v25 }
 0x154   : > { %2733 = vmatmul.mubr.msk.bf16.gmra.mrb[12].mxu1 %vm2084_vm2, %v2060_v5  ;;  %2456 = vst.msk [vmem:[%s4046_s23 + $0x4] sm:$0xf] %vm2454_vm3, %v2607_v19 }
 0x155   : > { %2472 = vst.msk [vmem:[%s4046_s23 + $0x44] sm:$0xf] %vm2454_vm3, %v2623_v27 }
 0x179   : > { %v2710_v48 = vpop.f32.mrb[4].mxu0 }
 0x17a   : > { %v2192_v26 = vadd.f32 %v2710_v48, %v4028_v12  ;;  %v2183_v36 = vpop.f32.mrb[5].mxu0 }
 0x17b   : > { %v2184_v50 = vadd.f32 %v4028_v12, %v2183_v36  ;;  %v2711_v18 = vpop.f32.mrb[6].mxu0 }
 0x17c   : > { %v2300_v38 = vmax.f32 %v2192_v26, 0.0  ;;  %v2195_v10 = vadd.f32 %v2711_v18, %v4028_v12  ;;  %v2186_v63 = vpop.f32.mrb[7].mxu0 }
 0x17d   : > { %v2298_v3 = vmax.f32 %v2184_v50, 0.0  ;;  %v2187_v20 = vadd.f32 %v4028_v12, %v2186_v63 }
 0x17e   : > { %v2612_v2 = vpack.c.bf16 %v2300_v38, %v2300_v38  ;;  %v2301_v43 = vmax.f32 %v2195_v10, 0.0 }
 0x17f   : > { %v2610_v44 = vpack.c.bf16 %v2298_v3, %v2298_v3  ;;  %v2299_v58 = vmax.f32 %v2187_v20, 0.0 }
 0x180   : > { %2461 = vst.msk [vmem:[%s4046_s23 + $0x18] sm:$0xf] %vm2454_vm3, %v2612_v2  ;;  %v2613_v49 = vpack.c.bf16 %v2301_v43, %v2301_v43 }
 0x181   : > { %2459 = vst.msk [vmem:[%s4046_s23 + $0x10] sm:$0xf] %vm2454_vm3, %v2610_v44  ;;  %v2611_v21 = vpack.c.bf16 %v2299_v58, %v2299_v58 }
 0x182   : > { %2462 = vst.msk [vmem:[%s4046_s23 + $0x1c] sm:$0xf] %vm2454_vm3, %v2613_v49 }
 0x183   : > { %2460 = vst.msk [vmem:[%s4046_s23 + $0x14] sm:$0xf] %vm2454_vm3, %v2611_v21 }
 0x18c   : > { %v2726_v22 = vpop.f32.mrb[4].mxu1 }
 0x18d   : > { %v2256_v45 = vadd.f32 %v2726_v22, %v4028_v12  ;;  %v2247_v13 = vpop.f32.mrb[5].mxu1 }
 0x18e   : > { %v2248_v51 = vadd.f32 %v4028_v12, %v2247_v13  ;;  %v2727_v23 = vpop.f32.mrb[6].mxu1 }
 0x18f   : > { %v2316_v35 = vmax.f32 %v2256_v45, 0.0  ;;  %v2259_v0 = vadd.f32 %v2727_v23, %v4028_v12  ;;  %v2250_v30 = vpop.f32.mrb[7].mxu1 }
 0x190   : > { %v2314_v53 = vmax.f32 %v2248_v51, 0.0  ;;  %v2251_v40 = vadd.f32 %v4028_v12, %v2250_v30 }
 0x191   : > { %v2628_v16 = vpack.c.bf16 %v2316_v35, %v2316_v35  ;;  %v2317_v52 = vmax.f32 %v2259_v0, 0.0 }
 0x192   : > { %v2626_v14 = vpack.c.bf16 %v2314_v53, %v2314_v53  ;;  %v2315_v41 = vmax.f32 %v2251_v40, 0.0 }
 0x193   : > { %2477 = vst.msk [vmem:[%s4046_s23 + $0x58] sm:$0xf] %vm2454_vm3, %v2628_v16  ;;  %v2629_v37 = vpack.c.bf16 %v2317_v52, %v2317_v52 }
 0x194   : > { %2475 = vst.msk [vmem:[%s4046_s23 + $0x50] sm:$0xf] %vm2454_vm3, %v2626_v14  ;;  %v2627_v34 = vpack.c.bf16 %v2315_v41, %v2315_v41 }
 0x195   : > { %2478 = vst.msk [vmem:[%s4046_s23 + $0x5c] sm:$0xf] %vm2454_vm3, %v2629_v37 }
 0x196   : > { %2476 = vst.msk [vmem:[%s4046_s23 + $0x54] sm:$0xf] %vm2454_vm3, %v2627_v34 }
 0x1c7   : > { %v2714_v42 = vpop.f32.mrb[8].mxu0 }
 0x1c8   : > { %v2208_v47 = vadd.f32 %v2714_v42, %v4028_v12  ;;  %v2199_v6 = vpop.f32.mrb[9].mxu0 }
 0x1c9   : > { %v2200_v39 = vadd.f32 %v4028_v12, %v2199_v6  ;;  %v2715_v54 = vpop.f32.mrb[10].mxu0 }
 0x1ca   : > { %v2304_v56 = vmax.f32 %v2208_v47, 0.0  ;;  %v2211_v29 = vadd.f32 %v2715_v54, %v4028_v12  ;;  %v2202_v59 = vpop.f32.mrb[11].mxu0 }
 0x1cb   : > { %v2302_v33 = vmax.f32 %v2200_v39, 0.0  ;;  %v2203_v60 = vadd.f32 %v4028_v12, %v2202_v59 }
 0x1cc   : > { %v2616_v61 = vpack.c.bf16 %v2304_v56, %v2304_v56  ;;  %v2305_v4 = vmax.f32 %v2211_v29, 0.0 }
 0x1cd   : > { %v2614_v7 = vpack.c.bf16 %v2302_v33, %v2302_v33  ;;  %v2303_v9 = vmax.f32 %v2203_v60, 0.0 }
 0x1ce   : > { %2465 = vst.msk [vmem:[%s4046_s23 + $0x28] sm:$0xf] %vm2454_vm3, %v2616_v61  ;;  %v2617_v8 = vpack.c.bf16 %v2305_v4, %v2305_v4 }
 0x1cf   : > { %2463 = vst.msk [vmem:[%s4046_s23 + $0x20] sm:$0xf] %vm2454_vm3, %v2614_v7  ;;  %v2615_v15 = vpack.c.bf16 %v2303_v9, %v2303_v9 }
 0x1d0   : > { %2466 = vst.msk [vmem:[%s4046_s23 + $0x2c] sm:$0xf] %vm2454_vm3, %v2617_v8 }
 0x1d1   : > { %2464 = vst.msk [vmem:[%s4046_s23 + $0x24] sm:$0xf] %vm2454_vm3, %v2615_v15 }
 0x1da   : > { %v2730_v46 = vpop.f32.mrb[8].mxu1 }
 0x1db   : > { %v2272_v32 = vadd.f32 %v2730_v46, %v4028_v12  ;;  %v2263_v62 = vpop.f32.mrb[9].mxu1 }
 0x1dc   : > { %v2264_v17 = vadd.f32 %v4028_v12, %v2263_v62  ;;  %v2731_v28 = vpop.f32.mrb[10].mxu1 }
 0x1dd   : > { %v2320_v31 = vmax.f32 %v2272_v32, 0.0  ;;  %v2275_v57 = vadd.f32 %v2731_v28, %v4028_v12  ;;  %v2266_v11 = vpop.f32.mrb[11].mxu1 }
 0x1de   : > { %v2318_v24 = vmax.f32 %v2264_v17, 0.0  ;;  %v2267_v1 = vadd.f32 %v4028_v12, %v2266_v11 }
 0x1df   : > { %v2632_v55 = vpack.c.bf16 %v2320_v31, %v2320_v31  ;;  %v2321_v5 = vmax.f32 %v2275_v57, 0.0 }
 0x1e0   : > { %v2630_v19 = vpack.c.bf16 %v2318_v24, %v2318_v24  ;;  %v2319_v25 = vmax.f32 %v2267_v1, 0.0 }
 0x1e1   : > { %2481 = vst.msk [vmem:[%s4046_s23 + $0x68] sm:$0xf] %vm2454_vm3, %v2632_v55  ;;  %v2633_v27 = vpack.c.bf16 %v2321_v5, %v2321_v5 }
 0x1e2   : > { %2479 = vst.msk [vmem:[%s4046_s23 + $0x60] sm:$0xf] %vm2454_vm3, %v2630_v19  ;;  %v2631_v48 = vpack.c.bf16 %v2319_v25, %v2319_v25 }
 0x1e3   : > { %2482 = vst.msk [vmem:[%s4046_s23 + $0x6c] sm:$0xf] %vm2454_vm3, %v2633_v27 }
 0x1e4   : > { %2480 = vst.msk [vmem:[%s4046_s23 + $0x64] sm:$0xf] %vm2454_vm3, %v2631_v48 }
 0x214   : > { %v2718_v26 = vpop.f32.mrb[12].mxu0 }
 0x215   : > { %v2224_v36 = vadd.f32 %v2718_v26, %v4028_v12  ;;  %v2215_v50 = vpop.f32.mrb[13].mxu0 }
 0x216   : > { %v2216_v18 = vadd.f32 %v4028_v12, %v2215_v50  ;;  %v2719_v38 = vpop.f32.mrb[14].mxu0 }
 0x217   : > { %v2308_v10 = vmax.f32 %v2224_v36, 0.0  ;;  %v2227_v63 = vadd.f32 %v2719_v38, %v4028_v12  ;;  %v2218_v3 = vpop.f32.mrb[15].mxu0 }
 0x218   : > { %v2306_v20 = vmax.f32 %v2216_v18, 0.0  ;;  %v2219_v2 = vadd.f32 %v4028_v12, %v2218_v3 }
 0x219   : > { %v2620_v43 = vpack.c.bf16 %v2308_v10, %v2308_v10  ;;  %v2309_v44 = vmax.f32 %v2227_v63, 0.0 }
 0x21a   : > { %v2618_v58 = vpack.c.bf16 %v2306_v20, %v2306_v20  ;;  %v2307_v49 = vmax.f32 %v2219_v2, 0.0 }
 0x21b   : > { %2469 = vst.msk [vmem:[%s4046_s23 + $0x38] sm:$0xf] %vm2454_vm3, %v2620_v43  ;;  %v2621_v21 = vpack.c.bf16 %v2309_v44, %v2309_v44 }
 0x21c   : > { %2467 = vst.msk [vmem:[%s4046_s23 + $0x30] sm:$0xf] %vm2454_vm3, %v2618_v58  ;;  %v2619_v22 = vpack.c.bf16 %v2307_v49, %v2307_v49 }
 0x21d   : > { %2470 = vst.msk [vmem:[%s4046_s23 + $0x3c] sm:$0xf] %vm2454_vm3, %v2621_v21 }
 0x21e   : > { %2468 = vst.msk [vmem:[%s4046_s23 + $0x34] sm:$0xf] %vm2454_vm3, %v2619_v22 }
 0x227   : > { %v2734_v45 = vpop.f32.mrb[12].mxu1 }
 0x228   : > { %v2288_v13 = vadd.f32 %v2734_v45, %v4028_v12  ;;  %v2279_v51 = vpop.f32.mrb[13].mxu1 }
 0x229   : > { %v2280_v23 = vadd.f32 %v4028_v12, %v2279_v51  ;;  %v2735_v35 = vpop.f32.mrb[14].mxu1 }
 0x22a   : > { %v2324_v0 = vmax.f32 %v2288_v13, 0.0  ;;  %v2291_v30 = vadd.f32 %v2735_v35, %v4028_v12  ;;  %v2282_v53 = vpop.f32.mrb[15].mxu1 }
 0x22b   : > { %v2322_v40 = vmax.f32 %v2280_v23, 0.0  ;;  %v2283_v16 = vadd.f32 %v4028_v12, %v2282_v53 }
 0x22c   : > { %v2636_v52 = vpack.c.bf16 %v2324_v0, %v2324_v0  ;;  %v2325_v14 = vmax.f32 %v2291_v30, 0.0 }
 0x22d   : > { %v2634_v41 = vpack.c.bf16 %v2322_v40, %v2322_v40  ;;  %v2323_v37 = vmax.f32 %v2283_v16, 0.0 }
 0x22e   : > { %2485 = vst.msk [vmem:[%s4046_s23 + $0x78] sm:$0xf] %vm2454_vm3, %v2636_v52  ;;  %v2637_v34 = vpack.c.bf16 %v2325_v14, %v2325_v14 }
 0x22f   : > { %2483 = vst.msk [vmem:[%s4046_s23 + $0x70] sm:$0xf] %vm2454_vm3, %v2634_v41  ;;  %v2635_v42 = vpack.c.bf16 %v2323_v37, %v2323_v37 }
 0x230   : > { %2486 = vst.msk [vmem:[%s4046_s23 + $0x7c] sm:$0xf] %vm2454_vm3, %v2637_v34 }
 0x231   : > { %2484 = vst.msk [vmem:[%s4046_s23 + $0x74] sm:$0xf] %vm2454_vm3, %v2635_v42 }
 0x232 PF: > { %s15_s18 = sadd.s32 1, %s2761_s18  }
 0x233   : > { %p12_p4 = scmp.ge.s32.totalorder %s15_s18, 4  }
 0x235   :  { %14 = sbr.rel (!%p12_p4) target bundleno = 1 (0x1), region = 70 }

// kernel: mobilenet_forward.9
= control target key start
LH: loop header
LB: loop body
LE: loop exit
PB: predicated region body
PF: predicated region fallthrough
CT: control target
= control target key end

     0   :  { %s1062_s18 = smov 0   ;;  %s1479_s0 = inlined_call_operand.vmem [shape: bf16[2,36,9,64], index: 0, kind: input, shape index: {}]   ;;  %s1480_s1 = inlined_call_operand.vmem [shape: f32[9,64], index: 1, kind: input, shape index: {}]   ;;  %s1481_s2 = inlined_call_operand.vmem [shape: f32[1,64], index: 2, kind: input, shape index: {}]   ;;  %s1482_s3 = inlined_call_operand.vmem [shape: bf16[64,128], index: 3, kind: input, shape index: {}]   ;;  %s1483_s4 = inlined_call_operand.vmem [shape: f32[1,128], index: 4, kind: input, shape index: {}]   ;;  %s1484_s5 = inlined_call_operand.vmem [shape: bf16[2,64,128], index: 5, kind: output, shape index: {}]  }
   0x1 LB: > { %s918_s19 = sadd.s32 4294967295, %s1030_s18   ;;  %p922_p0 = scmp.ge.s32.totalorder %s1030_s18, 1  ;;  %s1030_s18 = sphi %s1062_s18, %s15_s18  }
   0x2   : > { %p187_p1 = scmp.lt.s32.totalorder %s1030_s18, 3 }
   0x4   : > { %p188_p2 = pnand %p922_p0, %p187_p1 }
   0x5   : > { %v1020_v0 = vld [vmem:[%s1482_s3] sm:$0xff] (!%p188_p2)   ;;  %p215_p3 = scmp.lt.s32.totalorder (!%p188_p2), %s918_s19, 1  ;;  %v330_v1 = vlaneseq (!%p188_p2)  ;;  %v1021_v2 = vld [vmem:[%s1482_s3 + $0x8] sm:$0xff] (!%p188_p2)   ;;  %v1022_v4 = vld [vmem:[%s1482_s3 + $0x10] sm:$0xff] (!%p188_p2)   ;;  %vm398_vm0 = vcmask (!%p188_p2), 1046528   ;;  %vm737_vm1 = vcmask (!%p188_p2), 523264  }
   0x6   : > { %191 = sbr.rel (%p188_p2) target bundleno = 327 (0x147), region = 40  ;;  %987 = vmatprep.subr.bf16.mxu0 (!%p188_p2), %v1020_v0  ;;  %1003 = vmatprep.subr.bf16.mxu1 (!%p188_p2), %v1020_v0  ;;  %v1087_v5 = vld [vmem:[%s1480_s1] sm:$0xff] (!%p188_p2)  ;;  %v1023_v9 = vld [vmem:[%s1482_s3 + $0x18] sm:$0xff] (!%p188_p2)  }
   0x7   : > { %988 = vmatpush3.bf16.msra.mxu0 (!%p188_p2), %v1020_v0  ;;  %1007 = vmatpush3.bf16.msra.mxu1 (!%p188_p2), %v1020_v0  ;;  %v1078_v3 = vshrl.u32 (!%p188_p2), %v330_v1, 7 }
   0x8   : > { %989 = vmatprep.subr.bf16.mxu0 (!%p188_p2), %v1021_v2  ;;  %1004 = vmatprep.subr.bf16.mxu1 (!%p188_p2), %v1021_v2 }
   0x9   : > { %v332_v6 = vsub.s32 (!%p188_p2), 0, %v1078_v3  ;;  %v344_v7 = vsub.s32 (!%p188_p2), 1, %v1078_v3  ;;  %v364_v8 = vsub.s32 (!%p188_p2), 2, %v1078_v3  ;;  %v441_v10 = vsub.s32 (!%p188_p2), 3, %v1078_v3 }
   0xa   : > { %v461_v11 = vsub.s32 (!%p188_p2), 4, %v1078_v3  ;;  %v481_v12 = vsub.s32 (!%p188_p2), 5, %v1078_v3  ;;  %v557_v13 = vsub.s32 (!%p188_p2), 6, %v1078_v3 }
   0xb   : > { %990 = vmatpush3.bf16.msra.mxu0 (!%p188_p2), %v1021_v2  ;;  %1008 = vmatpush3.bf16.msra.mxu1 (!%p188_p2), %v1021_v2  ;;  %v1110_v17 = vrot.slane (!%p188_p2), %v1087_v5, %v332_v6  ;;  %v1113_v18 = vrot.slane (!%p188_p2), %v1087_v5, %v344_v7  ;;  %v1125_v25 = vrot.slane (!%p188_p2), %v1087_v5, %v364_v8 }
   0xc   : > { %991 = vmatprep.subr.bf16.mxu0 (!%p188_p2), %v1022_v4  ;;  %1005 = vmatprep.subr.bf16.mxu1 (!%p188_p2), %v1022_v4  ;;  %v1182_v0 = vrot.slane (!%p188_p2), %v1087_v5, %v441_v10  ;;  %v1187_v1 = vrot.slane (!%p188_p2), %v1087_v5, %v461_v11  ;;  %v1192_v2 = vrot.slane (!%p188_p2), %v1087_v5, %v481_v12 }
   0xd   : > { %s1486_s19 = smov (!%p215_p3, %s918_s19), 1  ;;  %v1199_v8 = vrot.slane %v1087_v5, %v557_v13 }
   0xe   : > { %s1011_s26 = smul.u32 288, %s1486_s19  ;;  %s947_s15 = sshll.u32 %s1486_s19, 5 }
   0xf   : > { %992 = vmatpush3.bf16.msra.mxu0 %v1022_v4  ;;  %1009 = vmatpush3.bf16.msra.mxu1 %v1022_v4  ;;  %s224_s20 = scalar_lea.vmem %s1484_s5, %s947_s15 }
  0x10   : > { %s1098_s8 = scalar_lea.vmem %s1479_s0, %s1011_s26  ;;  %993 = vmatprep.subr.bf16.mxu0 %v1023_v9  ;;  %1006 = vmatprep.subr.bf16.mxu1 %v1023_v9 }
  0x11   : > { %v226_v14 = vld [vmem:[%s1098_s8] ss:$8 sps:$4 sm:$0xff]   ;;  %v227_v15 = vld [vmem:[%s1098_s8 + $0x4] sm:$0x1]  ;;  %v1107_v16 = vld [vmem:[%s1098_s8 + $0xc] sm:$0x1] }
  0x12   : > { %v230_v19 = vld [vmem:[%s1098_s8 + $0x10] ss:$56 sps:$4 sm:$0xff]   ;;  %v1117_v20 = vld [vmem:[%s1098_s8 + $0x14] sm:$0x1]  ;;  %v277_v22 = vunpack.c.l.bf16 %v226_v14  ;;  %v278_v23 = vunpack.c.l.bf16 %v227_v15  ;;  %v1122_v24 = vunpack.c.h.bf16 %v226_v14  ;;  %v1134_v28 = vld [vmem:[%s1098_s8 + $0x9c] sm:$0x1]  ;;  %v280_v29 = vunpack.c.l.bf16 %v1107_v16 }
  0x13   : > { %v1120_v21 = vld [vmem:[%s1098_s8 + $0x50] ss:$8 sps:$4 sm:$0xff]   ;;  %v1131_v27 = vld [vmem:[%s1098_s8 + $0x94] sm:$0x1]  ;;  %v1137_v30 = vunpack.c.l.bf16 %v230_v19  ;;  %v295_v31 = vunpack.c.h.bf16 %v230_v19  ;;  %v282_v34 = vunpack.c.l.bf16 %v1117_v20  ;;  %v1148_v38 = vld [vmem:[%s1098_s8 + $0x28] ss:$184 sps:$4 sm:$0xff]   ;;  %v307_v40 = vunpack.c.l.bf16 %v1134_v28  ;;  %994 = vmatpush3.bf16.msra.mxu0 %v1023_v9  ;;  %1010 = vmatpush3.bf16.msra.mxu1 %v1023_v9 }
  0x14   : > { %v1128_v26 = vld [vmem:[%s1098_s8 + $0x90] ss:$8 sps:$4 sm:$0xff]   ;;  %v296_v32 = vunpack.c.l.bf16 %v1120_v21  ;;  %v297_v35 = vunpack.c.h.bf16 %v1120_v21  ;;  %v305_v37 = vunpack.c.l.bf16 %v1131_v27  ;;  %v321_v43 = vunpack.c.h.bf16 %v1148_v38  ;;  %v1214_v28 = vld [vmem:[%s1480_s1 + $0x8] ss:$0 sm:$0xff]  ;;  %v1242_v16 = vld [vmem:[%s1098_s8 + $0x24] sm:$0x1] }
  0x15   : > { %v1141_v33 = vld [vmem:[%s1098_s8 + $0xa0] ss:$56 sps:$4 sm:$0xff]   ;;  %v304_v36 = vunpack.c.l.bf16 %v1128_v26  ;;  %v306_v39 = vunpack.c.h.bf16 %v1128_v26  ;;  %v334_v44 = vmul.f32 %v1110_v17, %v277_v22  ;;  %v335_v45 = vmul.f32 %v1110_v17, %v1122_v24 }
  0x16   : > { %v308_v41 = vunpack.c.l.bf16 %v1141_v33  ;;  %v320_v42 = vunpack.c.h.bf16 %v1141_v33  ;;  %v336_v46 = vmul.f32 %v1110_v17, %v1137_v30  ;;  %v346_v47 = vmul.f32 %v1113_v18, %v295_v31 }
  0x17   : > { %v347_v48 = vmul.f32 %v1113_v18, %v296_v32  ;;  %v348_v49 = vmul.f32 %v1113_v18, %v297_v35  ;;  %v366_v50 = vmul.f32 %v1125_v25, %v277_v22  ;;  %v367_v51 = vmul.f32 %v1125_v25, %v278_v23 }
  0x18   : > { %v368_v52 = vmul.f32 %v1125_v25, %v1122_v24  ;;  %v369_v53 = vmul.f32 %v1125_v25, %v280_v29  ;;  %v370_v54 = vmul.f32 %v1125_v25, %v1137_v30  ;;  %v354_v55 = vadd.f32 %v346_v47, %v334_v44 }
  0x19   : > { %v355_v56 = vadd.f32 %v347_v48, %v335_v45  ;;  %v356_v57 = vadd.f32 %v348_v49, %v336_v46  ;;  %v399_v58 = vrot.slane %v366_v50, 1  ;;  %v371_v59 = vmul.f32 %v1125_v25, %v282_v34 }
  0x1a   : > { %v400_v60 = vrot.slane %v367_v51, 1  ;;  %v402_v61 = vrot.slane %v368_v52, 1  ;;  %v403_v62 = vrot.slane %v369_v53, 1  ;;  %v405_v63 = vrot.slane %v370_v54, 1 }
  0x1b   : > { %v406_v7 = vrot.slane %v371_v59, 1  ;;  %v443_v11 = vmul.f32 %v1182_v0, %v304_v36  ;;  %v444_v14 = vmul.f32 %v1182_v0, %v306_v39  ;;  %v463_v12 = vmul.f32 %v1187_v1, %v320_v42 }
  0x1c   : > { %v401_v4 = vsel %vm398_vm0, %v399_v58, %v400_v60  ;;  %v404_v6 = vsel %vm398_vm0, %v402_v61, %v403_v62  ;;  %v464_v19 = vmul.f32 %v1187_v1, %v321_v43  ;;  %v577_v22 = vsub.s32 7, %v1078_v3  ;;  %v1254_v60 = vld [vmem:[%s1098_s8 + $0x34] sm:$0x1] }
  0x1d   : > { %v431_v9 = vadd.f32 %v401_v4, %v354_v55  ;;  %v432_v10 = vadd.f32 %v404_v6, %v355_v56  ;;  %v407_v15 = vsel %vm398_vm0, %v405_v63, %v406_v7  ;;  %v445_v23 = vmul.f32 %v1182_v0, %v308_v41  ;;  %v1257_v63 = vld [vmem:[%s1098_s8 + $0x68] ss:$8 sps:$4 sm:$0xff]   ;;  %v262_v7 = vld [vmem:[%s1098_s8 + $0xb4] sm:$0x1] }
  0x1e   : > { %v483_v27 = vmul.f32 %v1192_v2, %v304_v36  ;;  %v433_v31 = vadd.f32 %v407_v15, %v356_v57  ;;  %v484_v42 = vmul.f32 %v1192_v2, %v305_v37  ;;  %v485_v43 = vmul.f32 %v1192_v2, %v306_v39  ;;  %v1251_v57 = vld [vmem:[%s1098_s8 + $0x2c] sm:$0x1] }
  0x1f   : > { %v451_v13 = vadd.f32 %v443_v11, %v431_v9  ;;  %v452_v26 = vadd.f32 %v444_v14, %v432_v10  ;;  %v486_v3 = vmul.f32 %v1192_v2, %v307_v40  ;;  %v559_v36 = vmul.f32 %v1199_v8, %v1122_v24  ;;  %v1269_v9 = vld [vmem:[%s1098_s8 + $0xb8] ss:$8 sps:$4 sm:$0xff]  }
  0x20   : > { %v515_v46 = vrot.slane %v483_v27, 1  ;;  %v516_v47 = vrot.slane %v484_v42, 1  ;;  %v518_v48 = vrot.slane %v485_v43, 1  ;;  %v560_v50 = vmul.f32 %v1199_v8, %v1137_v30 }
  0x21   : > { %v471_v44 = vadd.f32 %v463_v12, %v451_v13  ;;  %v472_v45 = vadd.f32 %v464_v19, %v452_v26  ;;  %v519_v49 = vrot.slane %v486_v3, 1  ;;  %v1224_v37 = vrot.slane %v1087_v5, %v577_v22  ;;  %v264_v12 = vld [vmem:[%s1098_s8 + $0xbc] sm:$0x1]  ;;  %v273_v19 = vld [vmem:[%s1098_s8 + $0xf8] ss:$8 sps:$4 sm:$0xff]  }
  0x22   : > { %v599_v39 = vmul.f32 %v1214_v28, %v1122_v24  ;;  %v600_v40 = vmul.f32 %v1214_v28, %v280_v29  ;;  %v601_v51 = vmul.f32 %v1214_v28, %v1137_v30  ;;  %v1233_v52 = vadd.f32 %v445_v23, %v433_v31  ;;  %v234_v24 = vld [vmem:[%s1098_s8 + $0x20] ss:$16 sps:$4 sm:$0xff]  }
  0x23   : > { %v517_v53 = vsel %vm398_vm0, %v515_v46, %v516_v47  ;;  %v520_v54 = vsel %vm398_vm0, %v518_v48, %v519_v49  ;;  %v602_v5 = vmul.f32 %v1214_v28, %v282_v34  ;;  %v579_v30 = vmul.f32 %v1224_v37, %v296_v32  ;;  %v1260_v32 = vld [vmem:[%s1098_s8 + $0x78] ss:$56 sps:$4 sm:$0xff]   ;;  %v1283_v13 = vld [vmem:[%s1481_s2] ss:$0 sm:$0xff] }
  0x24   : > { %v547_v29 = vadd.f32 %v517_v53, %v471_v44  ;;  %v548_v55 = vadd.f32 %v520_v54, %v472_v45  ;;  %v580_v56 = vmul.f32 %v1224_v37, %v297_v35  ;;  %v631_v20 = vrot.slane %v599_v39, 1 }
  0x25   : > { %v632_v34 = vrot.slane %v600_v40, 1  ;;  %v634_v58 = vrot.slane %v601_v51, 1  ;;  %v635_v59 = vrot.slane %v602_v5, 1  ;;  %v1262_v21 = vunpack.c.l.bf16 %v234_v24 }
  0x26   : > { %v567_v61 = vadd.f32 %v559_v36, %v547_v29  ;;  %v568_v62 = vadd.f32 %v560_v50, %v548_v55  ;;  %v286_v35 = vunpack.c.l.bf16 %v1242_v16  ;;  %v1272_v10 = vunpack.c.l.bf16 %v1148_v38 }
  0x27   : > { %v633_v4 = vsel %vm398_vm0, %v631_v20, %v632_v34  ;;  %v636_v6 = vsel %vm398_vm0, %v634_v58, %v635_v59  ;;  %v288_v11 = vunpack.c.l.bf16 %v1251_v57  ;;  %v1277_v22 = vunpack.c.h.bf16 %v234_v24 }
  0x28   : > { %v587_v14 = vadd.f32 %v579_v30, %v567_v61  ;;  %v588_v15 = vadd.f32 %v580_v56, %v568_v62  ;;  %v290_v23 = vunpack.c.l.bf16 %v1254_v60  ;;  %v299_v26 = vunpack.c.l.bf16 %v1257_v63 }
  0x29   : > { %v300_v38 = vunpack.c.h.bf16 %v1257_v63  ;;  %v301_v27 = vunpack.c.l.bf16 %v1260_v32  ;;  %v312_v31 = vunpack.c.h.bf16 %v1260_v32  ;;  %v313_v3 = vunpack.c.l.bf16 %v262_v7  ;;  %v1421_v63 = vld [vmem:[%s1098_s8 + $0x40] ss:$72 sps:$4 sm:$0xff]  }
  0x2a   : > { %v663_v42 = vadd.f32 %v633_v4, %v587_v14  ;;  %v664_v43 = vadd.f32 %v636_v6, %v588_v15  ;;  %v314_v44 = vunpack.c.l.bf16 %v1269_v9  ;;  %v315_v45 = vunpack.c.l.bf16 %v264_v12 }
  0x2b   : > { %v316_v46 = vunpack.c.h.bf16 %v1269_v9  ;;  %v324_v36 = vunpack.c.l.bf16 %v273_v19  ;;  %v338_v47 = vmul.f32 %v1110_v17, %v1262_v21  ;;  %v339_v50 = vmul.f32 %v1110_v17, %v1272_v10 }
  0x2c   : > { %v678_v48 = vadd.f32 %v1283_v13, %v663_v42  ;;  %v679_v49 = vadd.f32 %v1283_v13, %v664_v43  ;;  %v340_v39 = vmul.f32 %v1110_v17, %v1277_v22  ;;  %v350_v40 = vmul.f32 %v1113_v18, %v299_v26 }
  0x2d   : > { %v351_v51 = vmul.f32 %v1113_v18, %v300_v38  ;;  %v352_v53 = vmul.f32 %v1113_v18, %v301_v27  ;;  %v374_v54 = vmul.f32 %v1125_v25, %v1262_v21  ;;  %v375_v29 = vmul.f32 %v1125_v25, %v286_v35 }
  0x2e   : > { %v686_v5 = vmax.f32 %v678_v48, 0.0  ;;  %v687_v24 = vmax.f32 %v679_v49, 0.0  ;;  %v376_v55 = vmul.f32 %v1125_v25, %v1272_v10  ;;  %v325_v30 = vunpack.c.h.bf16 %v273_v19 }
  0x2f   : > { %v358_v56 = vadd.f32 %v350_v40, %v338_v47  ;;  %v359_v20 = vadd.f32 %v351_v51, %v339_v50  ;;  %v377_v34 = vmul.f32 %v1125_v25, %v288_v11  ;;  %v378_v59 = vmul.f32 %v1125_v25, %v1277_v22 }
  0x30   : > { %v694_v58 = vpack.c.bf16 %v687_v24, %v686_v5  ;;  %v379_v61 = vmul.f32 %v1125_v25, %v290_v23  ;;  %v411_v62 = vrot.slane %v374_v54, 1  ;;  %v360_v4 = vadd.f32 %v352_v53, %v340_v39 }
  0x31   : > { %v412_v6 = vrot.slane %v375_v29, 1  ;;  %v414_v7 = vrot.slane %v376_v55, 1  ;;  %v415_v14 = vrot.slane %v377_v34, 1  ;;  %v417_v15 = vrot.slane %v378_v59, 1  ;;  %v1350_v59 = vld [vmem:[%s1098_s8 + $0x18] ss:$72 sps:$4 sm:$0xff]  }
  0x32   : > { %995 = vmatprep.mubr.msk.bf16.mxu0 %vm737_vm1, %v694_v58  ;;  %v418_v12 = vrot.slane %v379_v61, 1  ;;  %v447_v19 = vmul.f32 %v1182_v0, %v312_v31  ;;  %v448_v42 = vmul.f32 %v1182_v0, %v314_v44  ;;  %v467_v48 = vmul.f32 %v1187_v1, %v324_v36  ;;  %v1353_v61 = vld [vmem:[%s1098_s8 + $0x1c] sm:$0x1] }
  0x33   : > { %v413_v43 = vsel %vm398_vm0, %v411_v62, %v412_v6  ;;  %v416_v47 = vsel %vm398_vm0, %v414_v7, %v415_v14  ;;  %v468_v49 = vmul.f32 %v1187_v1, %v325_v30  ;;  %v491_v51 = vmul.f32 %v1192_v2, %v312_v31 }
  0x34   : > { %v419_v50 = vsel %vm398_vm0, %v417_v15, %v418_v12  ;;  %v435_v39 = vadd.f32 %v413_v43, %v358_v56  ;;  %v436_v40 = vadd.f32 %v416_v47, %v359_v20  ;;  %v1335_v53 = vmul.f32 %v1182_v0, %v316_v46  ;;  %v260_v43 = vld [vmem:[%s1098_s8 + $0xac] sm:$0x1] }
  0x35   : > { %v492_v54 = vmul.f32 %v1192_v2, %v313_v3  ;;  %v493_v5 = vmul.f32 %v1192_v2, %v314_v44  ;;  %v494_v36 = vmul.f32 %v1192_v2, %v315_v45  ;;  %v1340_v24 = vadd.f32 %v419_v50, %v360_v4 }
  0x36   : > { %v455_v29 = vadd.f32 %v447_v19, %v435_v39  ;;  %v456_v55 = vadd.f32 %v448_v42, %v436_v40  ;;  %v527_v30 = vrot.slane %v491_v51, 1  ;;  %v563_v34 = vmul.f32 %v1199_v8, %v1272_v10  ;;  %v258_v19 = vld [vmem:[%s1098_s8 + $0xa4] sm:$0x1]  ;;  %v259_v42 = vld [vmem:[%s1098_s8 + $0xa8] ss:$72 sps:$4 sm:$0xff]  }
  0x37   : > { %v528_v56 = vrot.slane %v492_v54, 1  ;;  %v530_v31 = vrot.slane %v493_v5, 1  ;;  %v531_v20 = vrot.slane %v494_v36, 1  ;;  %v564_v44 = vmul.f32 %v1199_v8, %v1277_v22  ;;  %v271_v54 = vld [vmem:[%s1098_s8 + $0x38] ss:$176 sps:$4 sm:$0xff]  }
  0x38   : > { %v475_v58 = vadd.f32 %v467_v48, %v455_v29  ;;  %v476_v3 = vadd.f32 %v468_v49, %v456_v55  ;;  %v583_v45 = vmul.f32 %v1224_v37, %v300_v38  ;;  %v584_v6 = vmul.f32 %v1224_v37, %v301_v27 }
  0x39   : > { %v529_v62 = vsel %vm398_vm0, %v527_v30, %v528_v56  ;;  %v532_v4 = vsel %vm398_vm0, %v530_v31, %v531_v20  ;;  %v607_v7 = vmul.f32 %v1214_v28, %v1272_v10  ;;  %v608_v38 = vmul.f32 %v1214_v28, %v288_v11 }
  0x3a   : > { %v551_v14 = vadd.f32 %v529_v62, %v475_v58  ;;  %v552_v15 = vadd.f32 %v532_v4, %v476_v3  ;;  %v609_v12 = vmul.f32 %v1214_v28, %v1277_v22  ;;  %v610_v32 = vmul.f32 %v1214_v28, %v290_v23 }
  0x3b   : > { %v643_v27 = vrot.slane %v607_v7, 1  ;;  %v283_v10 = vunpack.c.l.bf16 %v1350_v59  ;;  %v284_v47 = vunpack.c.l.bf16 %v1353_v61  ;;  %v644_v49 = vrot.slane %v608_v38, 1 }
  0x3c   : > { %v571_v48 = vadd.f32 %v563_v34, %v551_v14  ;;  %v572_v57 = vadd.f32 %v564_v44, %v552_v15  ;;  %v646_v11 = vrot.slane %v609_v12, 1  ;;  %v647_v50 = vrot.slane %v610_v32, 1 }
  0x3d   : > { %v298_v22 = vunpack.c.h.bf16 %v1350_v59  ;;  %v309_v39 = vunpack.c.l.bf16 %v258_v19  ;;  %v310_v40 = vunpack.c.l.bf16 %v259_v42  ;;  %v645_v23 = vsel %vm398_vm0, %v643_v27, %v644_v49 }
  0x3e   : > { %v591_v51 = vadd.f32 %v583_v45, %v571_v48  ;;  %v592_v60 = vadd.f32 %v584_v6, %v572_v57  ;;  %v311_v5 = vunpack.c.l.bf16 %v260_v43  ;;  %v648_v36 = vsel %vm398_vm0, %v646_v11, %v647_v50 }
  0x3f   : > { %v322_v29 = vunpack.c.h.bf16 %v271_v54  ;;  %v323_v55 = vunpack.c.h.bf16 %v259_v42  ;;  %v337_v30 = vmul.f32 %v1110_v17, %v283_v10  ;;  %v349_v20 = vmul.f32 %v1113_v18, %v298_v22 }
  0x40   : > { %v667_v56 = vadd.f32 %v645_v23, %v591_v51  ;;  %v668_v31 = vadd.f32 %v648_v36, %v592_v60  ;;  %v372_v34 = vmul.f32 %v1125_v25, %v283_v10  ;;  %v373_v58 = vmul.f32 %v1125_v25, %v284_v47 }
  0x41   : > { %v446_v3 = vmul.f32 %v1182_v0, %v310_v40  ;;  %v465_v44 = vmul.f32 %v1187_v1, %v322_v29  ;;  %v466_v45 = vmul.f32 %v1187_v1, %v323_v55  ;;  %v357_v62 = vadd.f32 %v349_v20, %v337_v30  ;;  %v1425_v30 = vld [vmem:[%s1098_s8 + $0x44] sm:$0x1] }
  0x42   : > { %v682_v59 = vadd.f32 %v1283_v13, %v667_v56  ;;  %v683_v61 = vadd.f32 %v1283_v13, %v668_v31  ;;  %v408_v4 = vrot.slane %v372_v34, 1  ;;  %v409_v6 = vrot.slane %v373_v58, 1  ;;  %v266_v56 = vld [vmem:[%s1098_s8 + $0xc4] sm:$0x1]  ;;  %v268_v58 = vld [vmem:[%s1098_s8 + $0xcc] sm:$0x1] }
  0x43   : > { %v473_v7 = vadd.f32 %v465_v44, %v1233_v52  ;;  %v487_v14 = vmul.f32 %v1192_v2, %v308_v41  ;;  %v488_v15 = vmul.f32 %v1192_v2, %v309_v39  ;;  %v489_v19 = vmul.f32 %v1192_v2, %v310_v40 }
  0x44   : > { %v690_v38 = vmax.f32 %v682_v59, 0.0  ;;  %v691_v12 = vmax.f32 %v683_v61, 0.0  ;;  %v490_v42 = vmul.f32 %v1192_v2, %v311_v5  ;;  %v410_v32 = vsel %vm398_vm0, %v408_v4, %v409_v6 }
  0x45   : > { %v521_v27 = vrot.slane %v487_v14, 1  ;;  %v522_v43 = vrot.slane %v488_v15, 1  ;;  %v561_v48 = vmul.f32 %v1199_v8, %v283_v10  ;;  %v434_v57 = vadd.f32 %v410_v32, %v357_v62 }
  0x46   : > { %v696_v52 = vpack.c.bf16 %v691_v12, %v690_v38  ;;  %v524_v33 = vrot.slane %v489_v19, 1  ;;  %v525_v41 = vrot.slane %v490_v42, 1  ;;  %v1399_v49 = vadd.f32 %v1335_v53, %v1340_v24  ;;  %v1411_v24 = vld [vmem:[%s1098_s8 + $0x3c] sm:$0x1] }
  0x47   : > { %v523_v11 = vsel %vm398_vm0, %v521_v27, %v522_v43  ;;  %v562_v50 = vmul.f32 %v1199_v8, %v1262_v21  ;;  %v581_v39 = vmul.f32 %v1224_v37, %v298_v22  ;;  %v454_v40 = vadd.f32 %v446_v3, %v434_v57 }
  0x48   : > { %999 = vmatprep.mubr.msk.bf16.mxu1 %vm737_vm1, %v696_v52  ;;  %v549_v51 = vadd.f32 %v523_v11, %v473_v7  ;;  %v582_v60 = vmul.f32 %v1224_v37, %v299_v26  ;;  %v603_v53 = vmul.f32 %v1214_v28, %v283_v10  ;;  %v526_v23 = vsel %vm398_vm0, %v524_v33, %v525_v41  ;;  %v251_v26 = vld [vmem:[%s1098_s8 + $0x80] ss:$72 sps:$4 sm:$0xff]  }
  0x49   : > { %v604_v5 = vmul.f32 %v1214_v28, %v284_v47  ;;  %v605_v22 = vmul.f32 %v1214_v28, %v1262_v21  ;;  %v606_v36 = vmul.f32 %v1214_v28, %v286_v35  ;;  %v474_v29 = vadd.f32 %v466_v45, %v454_v40  ;;  %v275_v35 = vld [vmem:[%s1098_s8 + $0x108] ss:$8 sps:$4 sm:$0xff]  }
  0x4a   : > { %v569_v10 = vadd.f32 %v561_v48, %v549_v51  ;;  %v637_v55 = vrot.slane %v603_v53, 1  ;;  %v291_v31 = vunpack.c.l.bf16 %v271_v54  ;;  %v292_v21 = vunpack.c.l.bf16 %v1411_v24 }
  0x4b   : > { %v638_v20 = vrot.slane %v604_v5, 1  ;;  %v640_v47 = vrot.slane %v605_v22, 1  ;;  %v641_v34 = vrot.slane %v606_v36, 1  ;;  %v550_v16 = vadd.f32 %v526_v23, %v474_v29 }
  0x4c   : > { %v589_v3 = vadd.f32 %v581_v39, %v569_v10  ;;  %v293_v44 = vunpack.c.l.bf16 %v1421_v63  ;;  %v302_v59 = vunpack.c.l.bf16 %v251_v26  ;;  %v294_v62 = vunpack.c.l.bf16 %v1425_v30 }
  0x4d   : > { %v639_v45 = vsel %vm398_vm0, %v637_v55, %v638_v20  ;;  %v642_v61 = vsel %vm398_vm0, %v640_v47, %v641_v34  ;;  %v317_v4 = vunpack.c.l.bf16 %v266_v56  ;;  %v570_v54 = vadd.f32 %v562_v50, %v550_v16 }
  0x4e   : > { %v665_v6 = vadd.f32 %v639_v45, %v589_v3  ;;  %v318_v7 = vunpack.c.h.bf16 %v251_v26  ;;  %v319_v14 = vunpack.c.l.bf16 %v268_v58  ;;  %v326_v15 = vunpack.c.l.bf16 %v275_v35 }
  0x4f   : > { %v327_v38 = vunpack.c.h.bf16 %v275_v35  ;;  %v341_v12 = vmul.f32 %v1110_v17, %v291_v31  ;;  %v353_v19 = vmul.f32 %v1113_v18, %v302_v59  ;;  %v590_v42 = vadd.f32 %v582_v60, %v570_v54 }
  0x50   : > { %v680_v32 = vadd.f32 %v1283_v13, %v665_v6  ;;  %v380_v27 = vmul.f32 %v1125_v25, %v291_v31  ;;  %v381_v43 = vmul.f32 %v1125_v25, %v292_v21  ;;  %v303_v48 = vunpack.c.h.bf16 %v1421_v63 }
  0x51   : > { %v361_v52 = vadd.f32 %v353_v19, %v341_v12  ;;  %v450_v57 = vmul.f32 %v1182_v0, %v318_v7  ;;  %v469_v33 = vmul.f32 %v1187_v1, %v326_v15  ;;  %v666_v41 = vadd.f32 %v642_v61, %v590_v42 }
  0x52   : > { %v420_v11 = vrot.slane %v380_v27, 1  ;;  %v421_v50 = vrot.slane %v381_v43, 1  ;;  %v470_v17 = vmul.f32 %v1187_v1, %v327_v38  ;;  %v688_v18 = vmax.f32 %v680_v32, 0.0 }
  0x53   : > { %v495_v39 = vmul.f32 %v1192_v2, %v316_v46  ;;  %v496_v40 = vmul.f32 %v1192_v2, %v317_v4  ;;  %v497_v25 = vmul.f32 %v1192_v2, %v318_v7  ;;  %v681_v51 = vadd.f32 %v1283_v13, %v666_v41 }
  0x54   : > { %v422_v0 = vsel %vm398_vm0, %v420_v11, %v421_v50  ;;  %v477_v60 = vadd.f32 %v469_v33, %v1399_v49  ;;  %v498_v53 = vmul.f32 %v1192_v2, %v319_v14  ;;  %v565_v46 = vmul.f32 %v1199_v8, %v291_v31 }
  0x55   : > { %v438_v24 = vadd.f32 %v422_v0, %v361_v52  ;;  %v533_v23 = vrot.slane %v495_v39, 1  ;;  %v534_v1 = vrot.slane %v496_v40, 1  ;;  %v536_v5 = vrot.slane %v497_v25, 1 }
  0x56   : > { %v689_v22 = vmax.f32 %v681_v51, 0.0  ;;  %v537_v9 = vrot.slane %v498_v53, 1  ;;  %v566_v36 = vmul.f32 %v1199_v8, %v293_v44  ;;  %v585_v29 = vmul.f32 %v1224_v37, %v302_v59 }
  0x57   : > { %v458_v63 = vadd.f32 %v450_v57, %v438_v24  ;;  %v535_v26 = vsel %vm398_vm0, %v533_v23, %v534_v1  ;;  %v611_v10 = vmul.f32 %v1214_v28, %v291_v31  ;;  %v612_v30 = vmul.f32 %v1214_v28, %v292_v21 }
  0x58   : > { %v695_v49 = vpack.c.bf16 %v689_v22, %v688_v18  ;;  %v538_v2 = vsel %vm398_vm0, %v536_v5, %v537_v9  ;;  %v553_v55 = vadd.f32 %v535_v26, %v477_v60  ;;  %v613_v20 = vmul.f32 %v1214_v28, %v293_v44 }
  0x59   : > { %v478_v56 = vadd.f32 %v470_v17, %v458_v63  ;;  %v614_v47 = vmul.f32 %v1214_v28, %v294_v62  ;;  %v649_v34 = vrot.slane %v611_v10, 1  ;;  %v650_v58 = vrot.slane %v612_v30, 1 }
  0x5a   : > { %996 = vmatmul.mubr.msk.bf16.vlgmr.msra.gmra.mrb[0].mxu0 %vm737_vm1, %v695_v49  ;;  %v573_v8 = vadd.f32 %v565_v46, %v553_v55  ;;  %v586_v3 = vmul.f32 %v1224_v37, %v303_v48  ;;  %v652_v31 = vrot.slane %v613_v20, 1  ;;  %v928_v37 = vld [vmem:[%s1483_s4] ss:$0 sm:$0xff] }
  0x5b   : > { %v554_v16 = vadd.f32 %v538_v2, %v478_v56  ;;  %v653_v35 = vrot.slane %v614_v47, 1  ;;  %v651_v45 = vsel %vm398_vm0, %v649_v34, %v650_v58 }
  0x5c   : > { %v593_v59 = vadd.f32 %v585_v29, %v573_v8 }
  0x5d   : > { %v574_v61 = vadd.f32 %v566_v36, %v554_v16  ;;  %v654_v21 = vsel %vm398_vm0, %v652_v31, %v653_v35 }
  0x5e   : > { %v669_v44 = vadd.f32 %v651_v45, %v593_v59 }
  0x5f   : > { %v594_v4 = vadd.f32 %v586_v3, %v574_v61 }
  0x60   : > { %v684_v28 = vadd.f32 %v1283_v13, %v669_v44 }
  0x61   : > { %v670_v62 = vadd.f32 %v654_v21, %v594_v4 }
  0x62   : > { %v692_v6 = vmax.f32 %v684_v28, 0.0 }
  0x63   : > { %v685_v54 = vadd.f32 %v1283_v13, %v670_v62 }
  0x65   : > { %v693_v7 = vmax.f32 %v685_v54, 0.0 }
  0x67   : > { %v697_v14 = vpack.c.bf16 %v693_v7, %v692_v6 }
  0x69   : > { %1000 = vmatmul.mubr.msk.bf16.vlgmr.msra.gmra.mrb[0].mxu1 %vm737_vm1, %v697_v14 }
 0x12d   : > { %v997_v15 = vpop.f32.mrb[0].mxu0 }
 0x12e   : > { %v793_v38 = vadd.f32 %v997_v15, %v928_v37  ;;  %v784_v12 = vpop.f32.mrb[1].mxu0 }
 0x12f   : > { %v785_v19 = vadd.f32 %v928_v37, %v784_v12  ;;  %v998_v42 = vpop.f32.mrb[2].mxu0 }
 0x130   : > { %v796_v32 = vadd.f32 %v998_v42, %v928_v37  ;;  %v787_v27 = vpop.f32.mrb[3].mxu0  ;;  %v817_v48 = vmax.f32 %v793_v38, 0.0 }
 0x131   : > { %v788_v43 = vadd.f32 %v928_v37, %v787_v27  ;;  %v815_v52 = vmax.f32 %v785_v19, 0.0 }
 0x132   : > { %v818_v13 = vmax.f32 %v796_v32, 0.0 }
 0x133   : > { %v816_v57 = vmax.f32 %v788_v43, 0.0 }
 0x134   : > { %v964_v33 = vpack.c.bf16 %v818_v13, %v817_v48 }
 0x135   : > { %v959_v41 = vpack.c.bf16 %v816_v57, %v815_v52 }
 0x136   : > { %976 = vst [vmem:[%s224_s20 + $0x8] sm:$0xff] %v964_v33  }
 0x137   : > { %960 = vst [vmem:[%s224_s20] sm:$0xff] %v959_v41  }
 0x13c   : > { %v1001_v11 = vpop.f32.mrb[0].mxu1 }
 0x13d   : > { %v809_v50 = vadd.f32 %v1001_v11, %v928_v37  ;;  %v800_v17 = vpop.f32.mrb[1].mxu1 }
 0x13e   : > { %v801_v18 = vadd.f32 %v928_v37, %v800_v17  ;;  %v1002_v39 = vpop.f32.mrb[2].mxu1 }
 0x13f   : > { %v812_v40 = vadd.f32 %v1002_v39, %v928_v37  ;;  %v803_v25 = vpop.f32.mrb[3].mxu1  ;;  %v821_v0 = vmax.f32 %v809_v50, 0.0 }
 0x140   : > { %v804_v51 = vadd.f32 %v928_v37, %v803_v25  ;;  %v819_v53 = vmax.f32 %v801_v18, 0.0 }
 0x141   : > { %v822_v60 = vmax.f32 %v812_v40, 0.0 }
 0x142   : > { %v820_v24 = vmax.f32 %v804_v51, 0.0 }
 0x143   : > { %v974_v23 = vpack.c.bf16 %v822_v60, %v821_v0 }
 0x144   : > { %v969_v1 = vpack.c.bf16 %v820_v24, %v819_v53 }
 0x145   : > { %978 = vst [vmem:[%s224_s20 + $0x18] sm:$0xff] %v974_v23  }
 0x146   : > { %977 = vst [vmem:[%s224_s20 + $0x10] sm:$0xff] %v969_v1  }
 0x147 PF: > { %s15_s18 = sadd.s32 1, %s1030_s18  }
 0x148   : > { %p12_p4 = scmp.ge.s32.totalorder %s15_s18, 4  }
 0x14a   :  { %14 = sbr.rel (!%p12_p4) target bundleno = 1 (0x1), region = 70 }

// kernel: mobilenet_forward.10
= control target key start
LH: loop header
LB: loop body
LE: loop exit
PB: predicated region body
PF: predicated region fallthrough
CT: control target
= control target key end

     0   :  { %s1212_s18 = smov 0   ;;  %s1656_s0 = inlined_call_operand.vmem [shape: bf16[2,10,10,128], index: 0, kind: input, shape index: {}]   ;;  %s1657_s1 = inlined_call_operand.vmem [shape: f32[9,128], index: 1, kind: input, shape index: {}]   ;;  %s1658_s2 = inlined_call_operand.vmem [shape: f32[1,128], index: 2, kind: input, shape index: {}]   ;;  %s1659_s3 = inlined_call_operand.vmem [shape: bf16[128,128], index: 3, kind: input, shape index: {}]   ;;  %s1660_s4 = inlined_call_operand.vmem [shape: f32[1,128], index: 4, kind: input, shape index: {}]   ;;  %s1661_s5 = inlined_call_operand.vmem [shape: bf16[2,64,128], index: 5, kind: output, shape index: {}]  }
   0x1 LB: > { %s1044_s19 = sadd.s32 4294967295, %s1180_s18   ;;  %p1048_p0 = scmp.ge.s32.totalorder %s1180_s18, 1  ;;  %s1180_s18 = sphi %s1212_s18, %s15_s18  }
   0x2   : > { %p187_p1 = scmp.lt.s32.totalorder %s1180_s18, 3 }
   0x4   : > { %p188_p2 = pnand %p1048_p0, %p187_p1 }
   0x5   : > { %v1166_v0 = vld [vmem:[%s1659_s3] sm:$0xff] (!%p188_p2)   ;;  %p215_p3 = scmp.lt.s32.totalorder (!%p188_p2), %s1044_s19, 1  ;;  %v268_v1 = vlaneseq (!%p188_p2)  ;;  %v1167_v2 = vld [vmem:[%s1659_s3 + $0x8] sm:$0xff] (!%p188_p2)   ;;  %v1168_v4 = vld [vmem:[%s1659_s3 + $0x10] sm:$0xff] (!%p188_p2)   ;;  %vm316_vm0 = vcmask (!%p188_p2), 1046528   ;;  %vm393_vm1 = vcmask (!%p188_p2), 1045504  }
   0x6   : > { %191 = sbr.rel (%p188_p2) target bundleno = 341 (0x155), region = 40  ;;  %1117 = vmatprep.subr.bf16.mxu0 (!%p188_p2), %v1166_v0  ;;  %1141 = vmatprep.subr.bf16.mxu1 (!%p188_p2), %v1166_v0  ;;  %v1169_v5 = vld [vmem:[%s1659_s3 + $0x18] sm:$0xff] (!%p188_p2)   ;;  %v1266_v23 = vld [vmem:[%s1657_s1] sm:$0xff] (!%p188_p2)  ;;  %v1171_v44 = vld [vmem:[%s1659_s3 + $0x28] sm:$0xff] (!%p188_p2)  }
   0x7   : > { %1118 = vmatpush3.bf16.msra.mxu0 (!%p188_p2), %v1166_v0  ;;  %1149 = vmatpush3.bf16.msra.mxu1 (!%p188_p2), %v1166_v0  ;;  %v1228_v3 = vshrl.u32 (!%p188_p2), %v268_v1, 7  ;;  %v1170_v27 = vld [vmem:[%s1659_s3 + $0x20] sm:$0xff] (!%p188_p2)   ;;  %v1172_v62 = vld [vmem:[%s1659_s3 + $0x30] sm:$0xff] (!%p188_p2)  }
   0x8   : > { %1119 = vmatprep.subr.bf16.mxu0 (!%p188_p2), %v1167_v2  ;;  %1142 = vmatprep.subr.bf16.mxu1 (!%p188_p2), %v1167_v2 }
   0x9   : > { %v270_v6 = vsub.s32 (!%p188_p2), 0, %v1228_v3  ;;  %v282_v7 = vsub.s32 (!%p188_p2), 1, %v1228_v3  ;;  %v359_v8 = vsub.s32 (!%p188_p2), 2, %v1228_v3  ;;  %v436_v28 = vsub.s32 (!%p188_p2), 3, %v1228_v3 }
   0xa   : > { %v456_v29 = vsub.s32 (!%p188_p2), 4, %v1228_v3  ;;  %v532_v30 = vsub.s32 (!%p188_p2), 5, %v1228_v3  ;;  %v608_v31 = vsub.s32 (!%p188_p2), 6, %v1228_v3  ;;  %v628_v61 = vsub.s32 (!%p188_p2), 7, %v1228_v3 }
   0xb   : > { %1120 = vmatpush3.bf16.msra.mxu0 (!%p188_p2), %v1167_v2  ;;  %1150 = vmatpush3.bf16.msra.mxu1 (!%p188_p2), %v1167_v2  ;;  %v1269_v24 = vrot.slane (!%p188_p2), %v1266_v23, %v270_v6  ;;  %v1272_v25 = vrot.slane (!%p188_p2), %v1266_v23, %v282_v7  ;;  %v1275_v26 = vrot.slane (!%p188_p2), %v1266_v23, %v359_v8 }
   0xc   : > { %1121 = vmatprep.subr.bf16.mxu0 (!%p188_p2), %v1168_v4  ;;  %1143 = vmatprep.subr.bf16.mxu1 (!%p188_p2), %v1168_v4  ;;  %v1304_v52 = vrot.slane (!%p188_p2), %v1266_v23, %v436_v28  ;;  %v1310_v57 = vrot.slane (!%p188_p2), %v1266_v23, %v456_v29 }
   0xd   : > { %s1663_s19 = smov (!%p215_p3, %s1044_s19), 1 }
   0xe   : > { %s1157_s26 = smul.u32 80, %s1663_s19  ;;  %s1073_s25 = sshll.u32 %s1663_s19, 5 }
   0xf   : > { %1122 = vmatpush3.bf16.msra.mxu0 %v1168_v4  ;;  %1151 = vmatpush3.bf16.msra.mxu1 %v1168_v4  ;;  %s224_s28 = scalar_lea.vmem %s1661_s5, %s1073_s25 }
  0x10   : > { %s1240_s6 = scalar_lea.vmem %s1656_s0, %s1157_s26  ;;  %1123 = vmatprep.subr.bf16.mxu0 %v1169_v5  ;;  %1144 = vmatprep.subr.bf16.mxu1 %v1169_v5 }
  0x11   : > { %v226_v9 = vld [vmem:[%s1240_s6] ss:$8 sps:$4 sm:$0xff]   ;;  %v227_v10 = vld [vmem:[%s1240_s6 + $0x4] sm:$0x1]  ;;  %v229_v11 = vld [vmem:[%s1240_s6 + $0xc] sm:$0x1] }
  0x12   : > { %v230_v12 = vld [vmem:[%s1240_s6 + $0x10] ss:$8 sps:$4 sm:$0xff]   ;;  %v231_v13 = vld [vmem:[%s1240_s6 + $0x14] sm:$0x1]  ;;  %v233_v14 = vld [vmem:[%s1240_s6 + $0x1c] sm:$0x1]  ;;  %v246_v15 = vunpack.c.l.bf16 %v226_v9  ;;  %v247_v16 = vunpack.c.l.bf16 %v227_v10  ;;  %v1251_v17 = vunpack.c.h.bf16 %v226_v9  ;;  %v1253_v18 = vunpack.c.l.bf16 %v229_v11 }
  0x13   : > { %v1255_v19 = vunpack.c.l.bf16 %v230_v12  ;;  %v1257_v20 = vunpack.c.l.bf16 %v231_v13  ;;  %v1259_v21 = vunpack.c.h.bf16 %v230_v12  ;;  %v1261_v22 = vunpack.c.l.bf16 %v233_v14  ;;  %1124 = vmatpush3.bf16.msra.mxu0 %v1169_v5  ;;  %1152 = vmatpush3.bf16.msra.mxu1 %v1169_v5  ;;  %v234_v53 = vld [vmem:[%s1240_s6 + $0x20] ss:$8 sps:$4 sm:$0xff]   ;;  %v235_v7 = vld [vmem:[%s1240_s6 + $0x24] sm:$0x1] }
  0x14   : > { %v272_v32 = vmul.f32 %v1269_v24, %v246_v15  ;;  %v273_v33 = vmul.f32 %v1269_v24, %v1251_v17  ;;  %v284_v34 = vmul.f32 %v1272_v25, %v246_v15  ;;  %v285_v35 = vmul.f32 %v1272_v25, %v247_v16  ;;  %1125 = vmatprep.subr.bf16.mxu0 %v1170_v27 }
  0x15   : > { %v286_v36 = vmul.f32 %v1272_v25, %v1251_v17  ;;  %v287_v37 = vmul.f32 %v1272_v25, %v1253_v18  ;;  %v361_v38 = vmul.f32 %v1275_v26, %v246_v15  ;;  %v362_v39 = vmul.f32 %v1275_v26, %v247_v16  ;;  %1145 = vmatprep.subr.bf16.mxu1 %v1170_v27  ;;  %v1173_v16 = vld [vmem:[%s1659_s3 + $0x38] sm:$0xff]  }
  0x16   : > { %v317_v40 = vrot.slane %v284_v34, 1  ;;  %v318_v41 = vrot.slane %v285_v35, 1  ;;  %v363_v42 = vmul.f32 %v1275_v26, %v1251_v17  ;;  %v364_v43 = vmul.f32 %v1275_v26, %v1253_v18 }
  0x17   : > { %v320_v45 = vrot.slane %v286_v36, 1  ;;  %v321_v46 = vrot.slane %v287_v37, 1  ;;  %v394_v47 = vrot.slane %v361_v38, 2  ;;  %v395_v48 = vrot.slane %v362_v39, 2  ;;  %1126 = vmatpush3.bf16.msra.mxu0 %v1170_v27  ;;  %1153 = vmatpush3.bf16.msra.mxu1 %v1170_v27 }
  0x18   : > { %v319_v49 = vsel %vm316_vm0, %v317_v40, %v318_v41  ;;  %v397_v50 = vrot.slane %v363_v42, 2  ;;  %v398_v51 = vrot.slane %v364_v43, 2  ;;  %v438_v60 = vmul.f32 %v1304_v52, %v1251_v17  ;;  %1127 = vmatprep.subr.bf16.mxu0 %v1171_v44  ;;  %1146 = vmatprep.subr.bf16.mxu1 %v1171_v44 }
  0x19   : > { %v322_v54 = vsel %vm316_vm0, %v320_v45, %v321_v46  ;;  %v349_v55 = vadd.f32 %v319_v49, %v272_v32  ;;  %v396_v56 = vsel %vm393_vm1, %v394_v47, %v395_v48  ;;  %v439_v0 = vmul.f32 %v1304_v52, %v1255_v19 }
  0x1a   : > { %v350_v58 = vadd.f32 %v322_v54, %v273_v33  ;;  %v399_v59 = vsel %vm393_vm1, %v397_v50, %v398_v51  ;;  %v458_v1 = vmul.f32 %v1310_v57, %v1251_v17  ;;  %v1323_v2 = vunpack.c.l.bf16 %v234_v53 }
  0x1b   : > { %v426_v63 = vadd.f32 %v396_v56, %v349_v55  ;;  %v459_v5 = vmul.f32 %v1310_v57, %v1253_v18  ;;  %v460_v3 = vmul.f32 %v1310_v57, %v1255_v19  ;;  %v461_v6 = vmul.f32 %v1310_v57, %v1257_v20  ;;  %1128 = vmatpush3.bf16.msra.mxu0 %v1171_v44 }
  0x1c   : > { %v427_v4 = vadd.f32 %v399_v59, %v350_v58  ;;  %v490_v9 = vrot.slane %v458_v1, 1  ;;  %v1333_v10 = vrot.slane %v1266_v23, %v532_v30  ;;  %v1336_v11 = vrot.slane %v1266_v23, %v608_v31  ;;  %1154 = vmatpush3.bf16.msra.mxu1 %v1171_v44  ;;  %1129 = vmatprep.subr.bf16.mxu0 %v1172_v62  ;;  %v1352_v31 = vld [vmem:[%s1657_s1 + $0x8] ss:$0 sm:$0xff]  ;;  %v237_v59 = vld [vmem:[%s1240_s6 + $0x2c] sm:$0x1] }
  0x1d   : > { %v446_v8 = vadd.f32 %v438_v60, %v426_v63  ;;  %v491_v13 = vrot.slane %v459_v5, 1  ;;  %v493_v14 = vrot.slane %v460_v3, 1  ;;  %v494_v15 = vrot.slane %v461_v6, 1  ;;  %1147 = vmatprep.subr.bf16.mxu1 %v1172_v62  ;;  %v238_v60 = vld [vmem:[%s1240_s6 + $0x30] ss:$8 sps:$4 sm:$0xff]  }
  0x1e   : > { %v447_v12 = vadd.f32 %v439_v0, %v427_v4  ;;  %v534_v27 = vmul.f32 %v1333_v10, %v1251_v17  ;;  %v535_v28 = vmul.f32 %v1333_v10, %v1253_v18  ;;  %v536_v29 = vmul.f32 %v1333_v10, %v1255_v19  ;;  %v239_v1 = vld [vmem:[%s1240_s6 + $0x34] sm:$0x1] }
  0x1f   : > { %v1347_v30 = vunpack.c.l.bf16 %v235_v7  ;;  %v492_v32 = vsel %vm316_vm0, %v490_v9, %v491_v13  ;;  %v495_v33 = vsel %vm316_vm0, %v493_v14, %v494_v15  ;;  %v537_v17 = vmul.f32 %v1333_v10, %v1257_v20  ;;  %1130 = vmatpush3.bf16.msra.mxu0 %v1172_v62  ;;  %v241_v7 = vld [vmem:[%s1240_s6 + $0x3c] sm:$0x1] }
  0x20   : > { %v610_v18 = vmul.f32 %v1336_v11, %v1255_v19  ;;  %v522_v34 = vadd.f32 %v492_v32, %v446_v8  ;;  %v523_v35 = vadd.f32 %v495_v33, %v447_v12  ;;  %v566_v36 = vrot.slane %v534_v27, 2  ;;  %1155 = vmatpush3.bf16.msra.mxu1 %v1172_v62  ;;  %1131 = vmatprep.subr.bf16.mxu0 %v1173_v16  ;;  %v1400_v27 = vld [vmem:[%s1658_s2] ss:$0 sm:$0xff] }
  0x21   : > { %v567_v37 = vrot.slane %v535_v28, 2  ;;  %v569_v38 = vrot.slane %v536_v29, 2  ;;  %v570_v39 = vrot.slane %v537_v17, 2  ;;  %v611_v40 = vmul.f32 %v1336_v11, %v1259_v21  ;;  %1148 = vmatprep.subr.bf16.mxu1 %v1173_v16 }
  0x22   : > { %v1363_v41 = vrot.slane %v1266_v23, %v628_v61  ;;  %v706_v43 = vmul.f32 %v1352_v31, %v1255_v19  ;;  %v707_v44 = vmul.f32 %v1352_v31, %v1257_v20  ;;  %v1370_v45 = vunpack.c.h.bf16 %v234_v53 }
  0x23   : > { %v568_v42 = vsel %vm393_vm1, %v566_v36, %v567_v37  ;;  %v571_v46 = vsel %vm393_vm1, %v569_v38, %v570_v39  ;;  %v708_v53 = vmul.f32 %v1352_v31, %v1259_v21  ;;  %1132 = vmatpush3.bf16.msra.mxu0 %v1173_v16  ;;  %v709_v58 = vmul.f32 %v1352_v31, %v1261_v22 }
  0x24   : > { %v598_v47 = vadd.f32 %v568_v42, %v522_v34  ;;  %v630_v23 = vmul.f32 %v1363_v41, %v1255_v19  ;;  %v631_v48 = vmul.f32 %v1363_v41, %v1257_v20  ;;  %v599_v49 = vadd.f32 %v571_v46, %v523_v35  ;;  %1156 = vmatpush3.bf16.msra.mxu1 %v1173_v16 }
  0x25   : > { %v632_v50 = vmul.f32 %v1363_v41, %v1259_v21  ;;  %v633_v51 = vmul.f32 %v1363_v41, %v1261_v22  ;;  %v738_v0 = vrot.slane %v706_v43, 2  ;;  %v739_v5 = vrot.slane %v707_v44, 2 }
  0x26   : > { %v618_v54 = vadd.f32 %v610_v18, %v598_v47  ;;  %v662_v55 = vrot.slane %v630_v23, 1  ;;  %v663_v56 = vrot.slane %v631_v48, 1  ;;  %v619_v61 = vadd.f32 %v611_v40, %v599_v49 }
  0x27   : > { %v665_v62 = vrot.slane %v632_v50, 1  ;;  %v666_v63 = vrot.slane %v633_v51, 1  ;;  %v741_v3 = vrot.slane %v708_v53, 2  ;;  %v742_v6 = vrot.slane %v709_v58, 2 }
  0x28   : > { %v664_v4 = vsel %vm316_vm0, %v662_v55, %v663_v56  ;;  %v1391_v12 = vunpack.c.l.bf16 %v237_v59  ;;  %v1393_v13 = vunpack.c.l.bf16 %v238_v60  ;;  %v740_v15 = vsel %vm393_vm1, %v738_v0, %v739_v5 }
  0x29   : > { %v667_v8 = vsel %vm316_vm0, %v665_v62, %v666_v63  ;;  %v694_v9 = vadd.f32 %v664_v4, %v618_v54  ;;  %v743_v16 = vsel %vm393_vm1, %v741_v3, %v742_v6  ;;  %v1402_v28 = vunpack.c.l.bf16 %v239_v1 }
  0x2a   : > { %v695_v14 = vadd.f32 %v667_v8, %v619_v61  ;;  %v1404_v32 = vunpack.c.h.bf16 %v238_v60  ;;  %v1406_v33 = vunpack.c.l.bf16 %v241_v7  ;;  %v276_v17 = vmul.f32 %v1269_v24, %v1323_v2 }
  0x2b   : > { %v770_v29 = vadd.f32 %v740_v15, %v694_v9  ;;  %v277_v34 = vmul.f32 %v1269_v24, %v1370_v45  ;;  %v292_v35 = vmul.f32 %v1272_v25, %v1323_v2  ;;  %v293_v36 = vmul.f32 %v1272_v25, %v1347_v30 }
  0x2c   : > { %v771_v18 = vadd.f32 %v743_v16, %v695_v14  ;;  %v294_v38 = vmul.f32 %v1272_v25, %v1370_v45  ;;  %v295_v39 = vmul.f32 %v1272_v25, %v1391_v12  ;;  %v369_v40 = vmul.f32 %v1275_v26, %v1323_v2 }
  0x2d   : > { %v785_v37 = vadd.f32 %v1400_v27, %v770_v29  ;;  %v329_v43 = vrot.slane %v292_v35, 1  ;;  %v330_v44 = vrot.slane %v293_v36, 1  ;;  %v370_v46 = vmul.f32 %v1275_v26, %v1347_v30 }
  0x2e   : > { %v786_v42 = vadd.f32 %v1400_v27, %v771_v18  ;;  %v332_v23 = vrot.slane %v294_v38, 1  ;;  %v333_v48 = vrot.slane %v295_v39, 1  ;;  %v371_v49 = vmul.f32 %v1275_v26, %v1370_v45 }
  0x2f   : > { %v793_v47 = vmax.f32 %v785_v37, 0.0  ;;  %v331_v51 = vsel %vm316_vm0, %v329_v43, %v330_v44  ;;  %v372_v53 = vmul.f32 %v1275_v26, %v1391_v12  ;;  %v406_v54 = vrot.slane %v369_v40, 2 }
  0x30   : > { %v794_v50 = vmax.f32 %v786_v42, 0.0  ;;  %v334_v55 = vsel %vm316_vm0, %v332_v23, %v333_v48  ;;  %v353_v56 = vadd.f32 %v331_v51, %v276_v17  ;;  %v407_v58 = vrot.slane %v370_v46, 2 }
  0x31   : > { %v409_v59 = vrot.slane %v371_v49, 2  ;;  %v354_v61 = vadd.f32 %v334_v55, %v277_v34  ;;  %v410_v62 = vrot.slane %v372_v53, 2  ;;  %v442_v63 = vmul.f32 %v1304_v52, %v1370_v45 }
  0x32   : > { %v801_v60 = vpack.c.bf16 %v794_v50, %v793_v47  ;;  %v408_v0 = vsel %vm393_vm1, %v406_v54, %v407_v58  ;;  %v443_v1 = vmul.f32 %v1304_v52, %v1393_v13  ;;  %v466_v4 = vmul.f32 %v1310_v57, %v1370_v45 }
  0x33   : > { %v467_v5 = vmul.f32 %v1310_v57, %v1391_v12  ;;  %v411_v3 = vsel %vm393_vm1, %v409_v59, %v410_v62  ;;  %v430_v6 = vadd.f32 %v408_v0, %v353_v56  ;;  %v468_v7 = vmul.f32 %v1310_v57, %v1393_v13 }
  0x34   : > { %1133 = vmatprep.mubr.bf16.mxu0 %v801_v60  ;;  %v469_v8 = vmul.f32 %v1310_v57, %v1402_v28  ;;  %v431_v9 = vadd.f32 %v411_v3, %v354_v61  ;;  %v502_v14 = vrot.slane %v466_v4, 1  ;;  %v542_v16 = vmul.f32 %v1333_v10, %v1370_v45 }
  0x35   : > { %v503_v15 = vrot.slane %v467_v5, 1  ;;  %v450_v29 = vadd.f32 %v442_v63, %v430_v6  ;;  %v505_v17 = vrot.slane %v468_v7, 1  ;;  %v543_v34 = vmul.f32 %v1333_v10, %v1391_v12 }
  0x36   : > { %v506_v18 = vrot.slane %v469_v8, 1  ;;  %v451_v35 = vadd.f32 %v443_v1, %v431_v9  ;;  %v544_v37 = vmul.f32 %v1333_v10, %v1393_v13  ;;  %v545_v38 = vmul.f32 %v1333_v10, %v1402_v28 }
  0x37   : > { %v504_v36 = vsel %vm316_vm0, %v502_v14, %v503_v15  ;;  %v578_v42 = vrot.slane %v542_v16, 2  ;;  %v579_v43 = vrot.slane %v543_v34, 2  ;;  %v614_v23 = vmul.f32 %v1336_v11, %v1393_v13 }
  0x38   : > { %v507_v39 = vsel %vm316_vm0, %v505_v17, %v506_v18  ;;  %v526_v40 = vadd.f32 %v504_v36, %v450_v29  ;;  %v581_v46 = vrot.slane %v544_v37, 2  ;;  %v582_v47 = vrot.slane %v545_v38, 2 }
  0x39   : > { %v527_v44 = vadd.f32 %v507_v39, %v451_v35  ;;  %v580_v48 = vsel %vm393_vm1, %v578_v42, %v579_v43  ;;  %v615_v49 = vmul.f32 %v1336_v11, %v1404_v32  ;;  %v638_v50 = vmul.f32 %v1363_v41, %v1393_v13 }
  0x3a   : > { %v639_v51 = vmul.f32 %v1363_v41, %v1402_v28  ;;  %v583_v53 = vsel %vm393_vm1, %v581_v46, %v582_v47  ;;  %v602_v54 = vadd.f32 %v580_v48, %v526_v40  ;;  %v640_v55 = vmul.f32 %v1363_v41, %v1404_v32 }
  0x3b   : > { %v641_v56 = vmul.f32 %v1363_v41, %v1406_v33  ;;  %v603_v58 = vadd.f32 %v583_v53, %v527_v44  ;;  %v674_v59 = vrot.slane %v638_v50, 1  ;;  %v714_v61 = vmul.f32 %v1352_v31, %v1393_v13 }
  0x3c   : > { %v675_v60 = vrot.slane %v639_v51, 1  ;;  %v622_v62 = vadd.f32 %v614_v23, %v602_v54  ;;  %v677_v63 = vrot.slane %v640_v55, 1  ;;  %v715_v1 = vmul.f32 %v1352_v31, %v1402_v28 }
  0x3d   : > { %v678_v0 = vrot.slane %v641_v56, 1  ;;  %v623_v4 = vadd.f32 %v615_v49, %v603_v58  ;;  %v716_v3 = vmul.f32 %v1352_v31, %v1404_v32  ;;  %v717_v6 = vmul.f32 %v1352_v31, %v1406_v33 }
  0x3e   : > { %v676_v5 = vsel %vm316_vm0, %v674_v59, %v675_v60  ;;  %v750_v9 = vrot.slane %v714_v61, 2  ;;  %v751_v14 = vrot.slane %v715_v1, 2  ;;  %v274_v17 = vmul.f32 %v1269_v24, %v1255_v19 }
  0x3f   : > { %v679_v7 = vsel %vm316_vm0, %v677_v63, %v678_v0  ;;  %v698_v8 = vadd.f32 %v676_v5, %v622_v62  ;;  %v753_v16 = vrot.slane %v716_v3, 2  ;;  %v754_v29 = vrot.slane %v717_v6, 2 }
  0x40   : > { %v699_v15 = vadd.f32 %v679_v7, %v623_v4  ;;  %v752_v18 = vsel %vm393_vm1, %v750_v9, %v751_v14  ;;  %v275_v34 = vmul.f32 %v1269_v24, %v1259_v21  ;;  %v288_v35 = vmul.f32 %v1272_v25, %v1255_v19 }
  0x41   : > { %v289_v36 = vmul.f32 %v1272_v25, %v1257_v20  ;;  %v755_v37 = vsel %vm393_vm1, %v753_v16, %v754_v29  ;;  %v774_v38 = vadd.f32 %v752_v18, %v698_v8  ;;  %v290_v39 = vmul.f32 %v1272_v25, %v1259_v21 }
  0x42   : > { %v291_v40 = vmul.f32 %v1272_v25, %v1261_v22  ;;  %v775_v42 = vadd.f32 %v755_v37, %v699_v15  ;;  %v323_v43 = vrot.slane %v288_v35, 1  ;;  %v365_v46 = vmul.f32 %v1275_v26, %v1255_v19 }
  0x43   : > { %v324_v44 = vrot.slane %v289_v36, 1  ;;  %v789_v47 = vadd.f32 %v1400_v27, %v774_v38  ;;  %v326_v23 = vrot.slane %v290_v39, 1  ;;  %v366_v49 = vmul.f32 %v1275_v26, %v1257_v20 }
  0x44   : > { %v327_v48 = vrot.slane %v291_v40, 1  ;;  %v790_v50 = vadd.f32 %v1400_v27, %v775_v42  ;;  %v367_v53 = vmul.f32 %v1275_v26, %v1259_v21  ;;  %v368_v54 = vmul.f32 %v1275_v26, %v1261_v22 }
  0x45   : > { %v325_v51 = vsel %vm316_vm0, %v323_v43, %v324_v44  ;;  %v797_v55 = vmax.f32 %v789_v47, 0.0  ;;  %v400_v58 = vrot.slane %v365_v46, 2  ;;  %v401_v61 = vrot.slane %v366_v49, 2 }
  0x46   : > { %v328_v19 = vsel %vm316_vm0, %v326_v23, %v327_v48  ;;  %v351_v56 = vadd.f32 %v325_v51, %v274_v17  ;;  %v798_v59 = vmax.f32 %v790_v50, 0.0  ;;  %v403_v62 = vrot.slane %v367_v53, 2 }
  0x47   : > { %v352_v60 = vadd.f32 %v328_v19, %v275_v34  ;;  %v404_v20 = vrot.slane %v368_v54, 2  ;;  %v440_v63 = vmul.f32 %v1304_v52, %v1259_v21  ;;  %v441_v0 = vmul.f32 %v1304_v52, %v1323_v2 }
  0x48   : > { %v462_v1 = vmul.f32 %v1310_v57, %v1259_v21  ;;  %v803_v4 = vpack.c.bf16 %v798_v59, %v797_v55  ;;  %v402_v5 = vsel %vm393_vm1, %v400_v58, %v401_v61  ;;  %v463_v3 = vmul.f32 %v1310_v57, %v1261_v22 }
  0x49   : > { %v464_v6 = vmul.f32 %v1310_v57, %v1323_v2  ;;  %v405_v7 = vsel %vm393_vm1, %v403_v62, %v404_v20  ;;  %v428_v8 = vadd.f32 %v402_v5, %v351_v56  ;;  %v465_v9 = vmul.f32 %v1310_v57, %v1347_v30 }
  0x4a   : > { %v496_v14 = vrot.slane %v462_v1, 1  ;;  %1137 = vmatprep.mubr.bf16.mxu1 %v803_v4  ;;  %v429_v15 = vadd.f32 %v405_v7, %v352_v60  ;;  %v497_v16 = vrot.slane %v463_v3, 1  ;;  %v538_v17 = vmul.f32 %v1333_v10, %v1259_v21  ;;  %v243_v1 = vld [vmem:[%s1240_s6 + $0x44] sm:$0x1] }
  0x4b   : > { %v499_v29 = vrot.slane %v464_v6, 1  ;;  %v448_v18 = vadd.f32 %v440_v63, %v428_v8  ;;  %v500_v34 = vrot.slane %v465_v9, 1  ;;  %v539_v35 = vmul.f32 %v1333_v10, %v1261_v22  ;;  %v1556_v6 = vld [vmem:[%s1240_s6 + $0x4c] sm:$0x1] }
  0x4c   : > { %v540_v36 = vmul.f32 %v1333_v10, %v1323_v2  ;;  %v449_v37 = vadd.f32 %v441_v0, %v429_v15  ;;  %v498_v38 = vsel %vm316_vm0, %v496_v14, %v497_v16  ;;  %v541_v39 = vmul.f32 %v1333_v10, %v1347_v30  ;;  %v242_v0 = vld [vmem:[%s1240_s6 + $0x40] ss:$8 sps:$4 sm:$0xff]  }
  0x4d   : > { %v572_v40 = vrot.slane %v538_v17, 2  ;;  %v501_v42 = vsel %vm316_vm0, %v499_v29, %v500_v34  ;;  %v524_v43 = vadd.f32 %v498_v38, %v448_v18  ;;  %v573_v44 = vrot.slane %v539_v35, 2 }
  0x4e   : > { %v575_v21 = vrot.slane %v540_v36, 2  ;;  %v525_v46 = vadd.f32 %v501_v42, %v449_v37  ;;  %v576_v47 = vrot.slane %v541_v39, 2  ;;  %v612_v22 = vmul.f32 %v1336_v11, %v1323_v2 }
  0x4f   : > { %v613_v23 = vmul.f32 %v1336_v11, %v1370_v45  ;;  %v574_v48 = vsel %vm393_vm1, %v572_v40, %v573_v44  ;;  %v634_v49 = vmul.f32 %v1363_v41, %v1323_v2  ;;  %v635_v50 = vmul.f32 %v1363_v41, %v1347_v30 }
  0x50   : > { %v636_v51 = vmul.f32 %v1363_v41, %v1370_v45  ;;  %v577_v53 = vsel %vm393_vm1, %v575_v21, %v576_v47  ;;  %v600_v54 = vadd.f32 %v574_v48, %v524_v43  ;;  %v637_v55 = vmul.f32 %v1363_v41, %v1391_v12 }
  0x51   : > { %v710_v19 = vmul.f32 %v1352_v31, %v1323_v2  ;;  %v601_v56 = vadd.f32 %v577_v53, %v525_v46  ;;  %v668_v58 = vrot.slane %v634_v49, 1  ;;  %v669_v59 = vrot.slane %v635_v50, 1 }
  0x52   : > { %v671_v60 = vrot.slane %v636_v51, 1  ;;  %v620_v61 = vadd.f32 %v612_v22, %v600_v54  ;;  %v672_v62 = vrot.slane %v637_v55, 1  ;;  %v711_v20 = vmul.f32 %v1352_v31, %v1347_v30 }
  0x53   : > { %v712_v63 = vmul.f32 %v1352_v31, %v1370_v45  ;;  %v621_v4 = vadd.f32 %v613_v23, %v601_v56  ;;  %v670_v5 = vsel %vm316_vm0, %v668_v58, %v669_v59  ;;  %v713_v2 = vmul.f32 %v1352_v31, %v1391_v12 }
  0x54   : > { %v744_v3 = vrot.slane %v710_v19, 2  ;;  %v673_v7 = vsel %vm316_vm0, %v671_v60, %v672_v62  ;;  %v696_v8 = vadd.f32 %v670_v5, %v620_v61  ;;  %v745_v9 = vrot.slane %v711_v20, 2 }
  0x55   : > { %v747_v14 = vrot.slane %v712_v63, 2  ;;  %v697_v30 = vadd.f32 %v673_v7, %v621_v4  ;;  %v748_v15 = vrot.slane %v713_v2, 2  ;;  %v1559_v16 = vunpack.c.l.bf16 %v242_v0 }
  0x56   : > { %v1561_v45 = vunpack.c.l.bf16 %v243_v1  ;;  %v746_v29 = vsel %vm393_vm1, %v744_v3, %v745_v9  ;;  %v1564_v17 = vunpack.c.h.bf16 %v242_v0  ;;  %v265_v12 = vunpack.c.l.bf16 %v1556_v6 }
  0x57   : > { %v278_v18 = vmul.f32 %v1269_v24, %v1393_v13  ;;  %v749_v34 = vsel %vm393_vm1, %v747_v14, %v748_v15  ;;  %v772_v35 = vadd.f32 %v746_v29, %v696_v8  ;;  %v279_v36 = vmul.f32 %v1269_v24, %v1404_v32 }
  0x58   : > { %v296_v37 = vmul.f32 %v1272_v25, %v1393_v13  ;;  %v773_v38 = vadd.f32 %v749_v34, %v697_v30  ;;  %v297_v39 = vmul.f32 %v1272_v25, %v1402_v28  ;;  %v298_v40 = vmul.f32 %v1272_v25, %v1404_v32 }
  0x59   : > { %v299_v42 = vmul.f32 %v1272_v25, %v1406_v33  ;;  %v787_v43 = vadd.f32 %v1400_v27, %v772_v35  ;;  %v373_v21 = vmul.f32 %v1275_v26, %v1393_v13  ;;  %v374_v24 = vmul.f32 %v1275_v26, %v1402_v28 }
  0x5a   : > { %v335_v44 = vrot.slane %v296_v37, 1  ;;  %v788_v46 = vadd.f32 %v1400_v27, %v773_v38  ;;  %v336_v47 = vrot.slane %v297_v39, 1  ;;  %v338_v22 = vrot.slane %v298_v40, 1 }
  0x5b   : > { %v339_v23 = vrot.slane %v299_v42, 1  ;;  %v795_v48 = vmax.f32 %v787_v43, 0.0  ;;  %v375_v49 = vmul.f32 %v1275_v26, %v1404_v32  ;;  %v376_v25 = vmul.f32 %v1275_v26, %v1406_v33 }
  0x5c   : > { %v412_v50 = vrot.slane %v373_v21, 2  ;;  %v796_v51 = vmax.f32 %v788_v46, 0.0  ;;  %v337_v53 = vsel %vm316_vm0, %v335_v44, %v336_v47  ;;  %v413_v54 = vrot.slane %v374_v24, 2 }
  0x5d   : > { %v340_v13 = vsel %vm316_vm0, %v338_v22, %v339_v23  ;;  %v355_v28 = vadd.f32 %v337_v53, %v278_v18  ;;  %v415_v19 = vrot.slane %v375_v49, 2  ;;  %v416_v56 = vrot.slane %v376_v25, 2 }
  0x5e   : > { %v356_v55 = vadd.f32 %v340_v13, %v279_v36  ;;  %v802_v58 = vpack.c.bf16 %v796_v51, %v795_v48  ;;  %v414_v59 = vsel %vm393_vm1, %v412_v50, %v413_v54  ;;  %v444_v60 = vmul.f32 %v1304_v52, %v1404_v32 }
  0x5f   : > { %v445_v26 = vmul.f32 %v1304_v52, %v1559_v16  ;;  %v417_v61 = vsel %vm393_vm1, %v415_v19, %v416_v56  ;;  %v432_v62 = vadd.f32 %v414_v59, %v355_v28  ;;  %v470_v20 = vmul.f32 %v1310_v57, %v1404_v32 }
  0x60   : > { %v471_v63 = vmul.f32 %v1310_v57, %v1406_v33  ;;  %1134 = vmatmul.mubr.bf16.vlgmr.msra.gmra.mrb[0].mxu0 %v802_v58  ;;  %v433_v0 = vadd.f32 %v417_v61, %v356_v55  ;;  %v472_v1 = vmul.f32 %v1310_v57, %v1559_v16  ;;  %v473_v4 = vmul.f32 %v1310_v57, %v1561_v45 }
  0x61   : > { %v546_v52 = vmul.f32 %v1333_v10, %v1404_v32  ;;  %v452_v5 = vadd.f32 %v444_v60, %v432_v62  ;;  %v508_v2 = vrot.slane %v470_v20, 1  ;;  %v547_v7 = vmul.f32 %v1333_v10, %v1406_v33 }
  0x62   : > { %v509_v3 = vrot.slane %v471_v63, 1  ;;  %v453_v8 = vadd.f32 %v445_v26, %v433_v0  ;;  %v511_v9 = vrot.slane %v472_v1, 1  ;;  %v512_v14 = vrot.slane %v473_v4, 1  ;;  %v1054_v26 = vld [vmem:[%s1660_s4] ss:$0 sm:$0xff] }
  0x63   : > { %v548_v30 = vmul.f32 %v1333_v10, %v1559_v16  ;;  %v549_v57 = vmul.f32 %v1333_v10, %v1561_v45  ;;  %v584_v29 = vrot.slane %v546_v52, 2  ;;  %v585_v18 = vrot.slane %v547_v7, 2 }
  0x64   : > { %v510_v15 = vsel %vm316_vm0, %v508_v2, %v509_v3  ;;  %v513_v32 = vsel %vm316_vm0, %v511_v9, %v512_v14  ;;  %v616_v33 = vmul.f32 %v1336_v11, %v1559_v16  ;;  %v617_v39 = vmul.f32 %v1336_v11, %v1564_v17 }
  0x65   : > { %v528_v34 = vadd.f32 %v510_v15, %v452_v5  ;;  %v587_v35 = vrot.slane %v548_v30, 2  ;;  %v529_v36 = vadd.f32 %v513_v32, %v453_v8  ;;  %v586_v37 = vsel %vm393_vm1, %v584_v29, %v585_v18 }
  0x66   : > { %v588_v38 = vrot.slane %v549_v57, 2  ;;  %v642_v10 = vmul.f32 %v1363_v41, %v1559_v16  ;;  %v643_v42 = vmul.f32 %v1363_v41, %v1561_v45  ;;  %v644_v43 = vmul.f32 %v1363_v41, %v1564_v17 }
  0x67   : > { %v604_v40 = vadd.f32 %v586_v37, %v528_v34  ;;  %v645_v21 = vmul.f32 %v1363_v41, %v265_v12  ;;  %v718_v24 = vmul.f32 %v1352_v31, %v1559_v16  ;;  %v719_v11 = vmul.f32 %v1352_v31, %v1561_v45 }
  0x68   : > { %v589_v44 = vsel %vm393_vm1, %v587_v35, %v588_v38  ;;  %v680_v22 = vrot.slane %v642_v10, 1  ;;  %v681_v23 = vrot.slane %v643_v42, 1  ;;  %v683_v48 = vrot.slane %v644_v43, 1 }
  0x69   : > { %v605_v46 = vadd.f32 %v589_v44, %v529_v36  ;;  %v624_v47 = vadd.f32 %v616_v33, %v604_v40  ;;  %v684_v49 = vrot.slane %v645_v21, 1  ;;  %v720_v25 = vmul.f32 %v1352_v31, %v1564_v17 }
  0x6a   : > { %v721_v50 = vmul.f32 %v1352_v31, %v265_v12  ;;  %v682_v51 = vsel %vm316_vm0, %v680_v22, %v681_v23  ;;  %v756_v16 = vrot.slane %v718_v24, 2  ;;  %v757_v53 = vrot.slane %v719_v11, 2 }
  0x6b   : > { %v625_v41 = vadd.f32 %v617_v39, %v605_v46  ;;  %v685_v45 = vsel %vm316_vm0, %v683_v48, %v684_v49  ;;  %v700_v13 = vadd.f32 %v682_v51, %v624_v47  ;;  %v759_v54 = vrot.slane %v720_v25, 2 }
  0x6c   : > { %v760_v28 = vrot.slane %v721_v50, 2  ;;  %v758_v19 = vsel %vm393_vm1, %v756_v16, %v757_v53 }
  0x6d   : > { %v701_v55 = vadd.f32 %v685_v45, %v625_v41  ;;  %v776_v56 = vadd.f32 %v758_v19, %v700_v13 }
  0x6e   : > { %v761_v17 = vsel %vm393_vm1, %v759_v54, %v760_v28 }
  0x6f   : > { %v777_v6 = vadd.f32 %v761_v17, %v701_v55  ;;  %v791_v31 = vadd.f32 %v1400_v27, %v776_v56 }
  0x71   : > { %v792_v12 = vadd.f32 %v1400_v27, %v777_v6  ;;  %v799_v58 = vmax.f32 %v791_v31, 0.0 }
  0x73   : > { %v800_v59 = vmax.f32 %v792_v12, 0.0 }
  0x75   : > { %v804_v60 = vpack.c.bf16 %v800_v59, %v799_v58 }
  0x77   : > { %1138 = vmatmul.mubr.bf16.vlgmr.msra.gmra.mrb[0].mxu1 %v804_v60 }
 0x133   : > { %v1135_v61 = vpop.f32.mrb[0].mxu0 }
 0x134   : > { %v919_v62 = vadd.f32 %v1135_v61, %v1054_v26  ;;  %v910_v20 = vpop.f32.mrb[1].mxu0 }
 0x135   : > { %v911_v63 = vadd.f32 %v1054_v26, %v910_v20  ;;  %v1136_v0 = vpop.f32.mrb[2].mxu0 }
 0x136   : > { %v922_v1 = vadd.f32 %v1136_v0, %v1054_v26  ;;  %v913_v4 = vpop.f32.mrb[3].mxu0  ;;  %v943_v5 = vmax.f32 %v919_v62, 0.0 }
 0x137   : > { %v914_v52 = vadd.f32 %v1054_v26, %v913_v4  ;;  %v941_v27 = vmax.f32 %v911_v63, 0.0 }
 0x138   : > { %v944_v2 = vmax.f32 %v922_v1, 0.0 }
 0x139   : > { %v942_v3 = vmax.f32 %v914_v52, 0.0 }
 0x13a   : > { %v1090_v7 = vpack.c.bf16 %v944_v2, %v943_v5 }
 0x13b   : > { %v1085_v8 = vpack.c.bf16 %v942_v3, %v941_v27 }
 0x13c   : > { %1102 = vst [vmem:[%s224_s28 + $0x8] sm:$0xff] %v1090_v7  }
 0x13d   : > { %1086 = vst [vmem:[%s224_s28] sm:$0xff] %v1085_v8  }
 0x14a   : > { %v1139_v9 = vpop.f32.mrb[0].mxu1 }
 0x14b   : > { %v935_v14 = vadd.f32 %v1139_v9, %v1054_v26  ;;  %v926_v30 = vpop.f32.mrb[1].mxu1 }
 0x14c   : > { %v927_v15 = vadd.f32 %v1054_v26, %v926_v30  ;;  %v1140_v57 = vpop.f32.mrb[2].mxu1 }
 0x14d   : > { %v938_v29 = vadd.f32 %v1140_v57, %v1054_v26  ;;  %v929_v18 = vpop.f32.mrb[3].mxu1  ;;  %v947_v34 = vmax.f32 %v935_v14, 0.0 }
 0x14e   : > { %v930_v32 = vadd.f32 %v1054_v26, %v929_v18  ;;  %v945_v33 = vmax.f32 %v927_v15, 0.0 }
 0x14f   : > { %v948_v35 = vmax.f32 %v938_v29, 0.0 }
 0x150   : > { %v946_v36 = vmax.f32 %v930_v32, 0.0 }
 0x151   : > { %v1100_v37 = vpack.c.bf16 %v948_v35, %v947_v34 }
 0x152   : > { %v1095_v38 = vpack.c.bf16 %v946_v36, %v945_v33 }
 0x153   : > { %1104 = vst [vmem:[%s224_s28 + $0x18] sm:$0xff] %v1100_v37  }
 0x154   : > { %1103 = vst [vmem:[%s224_s28 + $0x10] sm:$0xff] %v1095_v38  }
 0x155 PF: > { %s15_s18 = sadd.s32 1, %s1180_s18  }
 0x156   : > { %p12_p4 = scmp.ge.s32.totalorder %s15_s18, 4  }
 0x158   :  { %14 = sbr.rel (!%p12_p4) target bundleno = 1 (0x1), region = 70 }

// kernel: mobilenet_forward.11
= control target key start
LH: loop header
LB: loop body
LE: loop exit
PB: predicated region body
PF: predicated region fallthrough
CT: control target
= control target key end

     0   :  { %s866_s18 = smov 0   ;;  %s1179_s0 = inlined_call_operand.vmem [shape: bf16[2,20,9,128], index: 0, kind: input, shape index: {}]   ;;  %s1180_s1 = inlined_call_operand.vmem [shape: f32[9,128], index: 1, kind: input, shape index: {}]   ;;  %s1181_s2 = inlined_call_operand.vmem [shape: f32[1,128], index: 2, kind: input, shape index: {}]   ;;  %s1182_s3 = inlined_call_operand.vmem [shape: bf16[128,256], index: 3, kind: input, shape index: {}]   ;;  %s1183_s4 = inlined_call_operand.vmem [shape: f32[1,256], index: 4, kind: input, shape index: {}]   ;;  %s1184_s5 = inlined_call_operand.vmem [shape: bf16[2,32,256], index: 5, kind: output, shape index: {}]  }
   0x1 LB: > { %s740_s19 = sadd.s32 4294967295, %s833_s18   ;;  %p744_p0 = scmp.ge.s32.totalorder %s833_s18, 1  ;;  %s833_s18 = sphi %s866_s18, %s15_s18  }
   0x2   : > { %p187_p1 = scmp.lt.s32.totalorder %s833_s18, 3 }
   0x4   : > { %p188_p2 = pnand %p744_p0, %p187_p1 }
   0x5   : > { %v803_v0 = vld [vmem:[%s1182_s3 + $0x4] ss:$8 sps:$4 sm:$0xff] (!%p188_p2)   ;;  %p215_p3 = scmp.lt.s32.totalorder (!%p188_p2), %s740_s19, 1  ;;  %v805_v1 = vld [vmem:[%s1182_s3] ss:$8 sps:$4 sm:$0xff] (!%p188_p2)   ;;  %v835_v2 = vmov (!%p188_p2), 0   ;;  %v282_v3 = vlaneseq (!%p188_p2) }
   0x6   : > { %191 = sbr.rel (%p188_p2) target bundleno = 288 (0x120), region = 40  ;;  %628 = vmatprep.mubr.bf16.mxu0 (!%p188_p2), %v835_v2  ;;  %638 = vmatprep.mubr.bf16.mxu1 (!%p188_p2), %v835_v2  ;;  %v806_v4 = vld [vmem:[%s1182_s3 + $0x14] ss:$8 sps:$4 sm:$0xff] (!%p188_p2)   ;;  %v808_v5 = vld [vmem:[%s1182_s3 + $0x10] ss:$8 sps:$4 sm:$0xff] (!%p188_p2)   ;;  %vm322_vm0 = vcmask (!%p188_p2), 1046528  }
   0x7   : > { %596 = vmatprep.subr.bf16.mxu0 (!%p188_p2), %v803_v0  ;;  %777 = vmatprep.subr.bf16.mxu1 (!%p188_p2), %v803_v0  ;;  %v809_v6 = vld [vmem:[%s1182_s3 + $0x24] ss:$8 sps:$4 sm:$0xff] (!%p188_p2)   ;;  %v892_v7 = vshrl.u32 (!%p188_p2), %v282_v3, 7  ;;  %v811_v8 = vld [vmem:[%s1182_s3 + $0x20] ss:$8 sps:$4 sm:$0xff] (!%p188_p2)  }
   0x8   : > { %597 = vmatpush1.bf16.msra.mxu0 (!%p188_p2), %v805_v1  ;;  %785 = vmatpush1.bf16.msra.mxu1 (!%p188_p2), %v805_v1  ;;  %v812_v9 = vld [vmem:[%s1182_s3 + $0x34] ss:$8 sps:$4 sm:$0xff] (!%p188_p2)   ;;  %v814_v10 = vld [vmem:[%s1182_s3 + $0x30] ss:$8 sps:$4 sm:$0xff] (!%p188_p2)   ;;  %v815_v15 = vld [vmem:[%s1182_s3 + $0x44] ss:$8 sps:$4 sm:$0xff] (!%p188_p2)  }
   0x9   : > { %598 = vmatprep.subr.bf16.mxu0 (!%p188_p2), %v806_v4  ;;  %778 = vmatprep.subr.bf16.mxu1 (!%p188_p2), %v806_v4  ;;  %v284_v11 = vsub.s32 (!%p188_p2), 0, %v892_v7  ;;  %v292_v12 = vsub.s32 (!%p188_p2), 1, %v892_v7  ;;  %v304_v13 = vsub.s32 (!%p188_p2), 2, %v892_v7  ;;  %v345_v14 = vsub.s32 (!%p188_p2), 3, %v892_v7  ;;  %v956_v43 = vld [vmem:[%s1180_s1] sm:$0xff] (!%p188_p2) }
   0xa   : > { %v357_v17 = vsub.s32 (!%p188_p2), 4, %v892_v7  ;;  %v369_v18 = vsub.s32 (!%p188_p2), 5, %v892_v7  ;;  %v409_v19 = vsub.s32 (!%p188_p2), 6, %v892_v7  ;;  %v421_v20 = vsub.s32 (!%p188_p2), 7, %v892_v7  ;;  %v817_v44 = vld [vmem:[%s1182_s3 + $0x40] ss:$8 sps:$4 sm:$0xff] (!%p188_p2)  }
   0xb   : > { %v964_v46 = vrot.slane (!%p188_p2), %v956_v43, %v284_v11  ;;  %v969_v47 = vrot.slane (!%p188_p2), %v956_v43, %v292_v12  ;;  %v972_v48 = vrot.slane (!%p188_p2), %v956_v43, %v304_v13  ;;  %v818_v49 = vld [vmem:[%s1182_s3 + $0x54] ss:$8 sps:$4 sm:$0xff] (!%p188_p2)   ;;  %v978_v51 = vrot.slane (!%p188_p2), %v956_v43, %v345_v14  ;;  %v820_v0 = vld [vmem:[%s1182_s3 + $0x50] ss:$8 sps:$4 sm:$0xff] (!%p188_p2)  }
   0xc   : > { %599 = vmatpush1.bf16.msra.mxu0 (!%p188_p2), %v808_v5  ;;  %786 = vmatpush1.bf16.msra.mxu1 (!%p188_p2), %v808_v5  ;;  %v981_v52 = vrot.slane (!%p188_p2), %v956_v43, %v357_v17  ;;  %v984_v53 = vrot.slane (!%p188_p2), %v956_v43, %v369_v18  ;;  %v821_v5 = vld [vmem:[%s1182_s3 + $0x64] ss:$8 sps:$4 sm:$0xff] (!%p188_p2)  }
   0xd   : > { %s1186_s19 = smov (!%p215_p3, %s740_s19), 1  ;;  %600 = vmatprep.subr.bf16.mxu0 %v809_v6  ;;  %779 = vmatprep.subr.bf16.mxu1 %v809_v6 }
   0xe   : > { %s793_s30 = smul.u32 160, %s1186_s19  ;;  %s772_s16 = sshll.u32 %s1186_s19, 5 }
   0xf   : > { %s224_s21 = scalar_lea.vmem %s1184_s5, %s772_s16 }
  0x10   : > { %s900_s10 = scalar_lea.vmem %s1179_s0, %s793_s30  ;;  %601 = vmatpush1.bf16.msra.mxu0 %v811_v8  ;;  %787 = vmatpush1.bf16.msra.mxu1 %v811_v8 }
  0x11   : > { %v226_v16 = vld [vmem:[%s900_s10] ss:$8 sps:$4 sm:$0xff]   ;;  %v227_v21 = vld [vmem:[%s900_s10 + $0x4] sm:$0x1]  ;;  %v922_v22 = vld [vmem:[%s900_s10 + $0xc] sm:$0x1]  ;;  %602 = vmatprep.subr.bf16.mxu0 %v812_v9  ;;  %780 = vmatprep.subr.bf16.mxu1 %v812_v9 }
  0x12   : > { %v230_v23 = vld [vmem:[%s900_s10 + $0x10] ss:$24 sps:$4 sm:$0xff]   ;;  %v253_v24 = vunpack.c.l.bf16 %v226_v16  ;;  %v926_v25 = vld [vmem:[%s900_s10 + $0x14] sm:$0x1]  ;;  %v254_v28 = vunpack.c.l.bf16 %v227_v21  ;;  %v934_v29 = vunpack.c.h.bf16 %v226_v16  ;;  %v256_v30 = vunpack.c.l.bf16 %v922_v22  ;;  %v943_v33 = vld [vmem:[%s900_s10 + $0x5c] sm:$0x1] }
  0x13   : > { %v929_v26 = vld [vmem:[%s900_s10 + $0x30] ss:$8 sps:$4 sm:$0xff]   ;;  %v937_v31 = vunpack.c.l.bf16 %v230_v23  ;;  %v940_v32 = vld [vmem:[%s900_s10 + $0x54] sm:$0x1]  ;;  %v258_v35 = vunpack.c.l.bf16 %v926_v25  ;;  %v263_v36 = vunpack.c.h.bf16 %v230_v23  ;;  %v271_v42 = vunpack.c.l.bf16 %v943_v33  ;;  %v996_v59 = vld [vmem:[%s900_s10 + $0x1c] sm:$0x1] }
  0x14   : > { %v932_v27 = vld [vmem:[%s900_s10 + $0x50] ss:$8 sps:$4 sm:$0xff]   ;;  %v264_v37 = vunpack.c.l.bf16 %v929_v26  ;;  %v265_v38 = vunpack.c.h.bf16 %v929_v26  ;;  %v269_v40 = vunpack.c.l.bf16 %v940_v32  ;;  %603 = vmatpush1.bf16.msra.mxu0 %v814_v10  ;;  %788 = vmatpush1.bf16.msra.mxu1 %v814_v10  ;;  %v286_v55 = vmul.f32 %v964_v46, %v253_v24 }
  0x15   : > { %v249_v34 = vld [vmem:[%s900_s10 + $0x78] ss:$8 sps:$4 sm:$0xff]   ;;  %v268_v39 = vunpack.c.l.bf16 %v932_v27  ;;  %v270_v41 = vunpack.c.h.bf16 %v932_v27  ;;  %604 = vmatprep.subr.bf16.mxu0 %v815_v15  ;;  %781 = vmatprep.subr.bf16.mxu1 %v815_v15  ;;  %v287_v56 = vmul.f32 %v964_v46, %v934_v29  ;;  %v288_v57 = vmul.f32 %v964_v46, %v937_v31 }
  0x16   : > { %v276_v45 = vunpack.c.l.bf16 %v249_v34  ;;  %v277_v50 = vunpack.c.h.bf16 %v249_v34  ;;  %v987_v54 = vld [vmem:[%s900_s10 + $0x18] ss:$8 sps:$4 sm:$0xff]   ;;  %v294_v58 = vmul.f32 %v969_v47, %v263_v36  ;;  %v295_v60 = vmul.f32 %v969_v47, %v264_v37 }
  0x17   : > { %v296_v61 = vmul.f32 %v969_v47, %v265_v38  ;;  %v306_v62 = vmul.f32 %v972_v48, %v253_v24  ;;  %v307_v63 = vmul.f32 %v972_v48, %v254_v28  ;;  %v308_v2 = vmul.f32 %v972_v48, %v934_v29  ;;  %v823_v24 = vld [vmem:[%s1182_s3 + $0x60] ss:$8 sps:$4 sm:$0xff]  }
  0x18   : > { %605 = vmatpush1.bf16.msra.mxu0 %v817_v44  ;;  %789 = vmatpush1.bf16.msra.mxu1 %v817_v44  ;;  %v298_v1 = vadd.f32 %v294_v58, %v286_v55  ;;  %v309_v3 = vmul.f32 %v972_v48, %v256_v30  ;;  %v1015_v4 = vunpack.c.l.bf16 %v987_v54  ;;  %v299_v6 = vadd.f32 %v295_v60, %v287_v56  ;;  %v824_v44 = vld [vmem:[%s1182_s3 + $0x74] ss:$8 sps:$4 sm:$0xff]   ;;  %v1058_v60 = vld [vmem:[%s900_s10 + $0x24] sm:$0x1] }
  0x19   : > { %606 = vmatprep.subr.bf16.mxu0 %v818_v49  ;;  %782 = vmatprep.subr.bf16.mxu1 %v818_v49  ;;  %v1023_v8 = vmul.f32 %v972_v48, %v258_v35  ;;  %v323_v9 = vrot.slane %v306_v62, 1  ;;  %v260_v10 = vunpack.c.l.bf16 %v996_v59  ;;  %v1026_v13 = vadd.f32 %v296_v61, %v288_v57 }
  0x1a   : > { %v324_v14 = vrot.slane %v307_v63, 1  ;;  %v326_v15 = vrot.slane %v308_v2, 1  ;;  %v327_v16 = vrot.slane %v309_v3, 1  ;;  %v347_v17 = vmul.f32 %v978_v51, %v268_v39  ;;  %v1079_v2 = vld [vmem:[%s900_s10 + $0x40] ss:$8 sps:$4 sm:$0xff]  }
  0x1b   : > { %v348_v18 = vmul.f32 %v978_v51, %v270_v41  ;;  %v359_v21 = vmul.f32 %v981_v52, %v276_v45  ;;  %v360_v23 = vmul.f32 %v981_v52, %v277_v50  ;;  %v330_v34 = vrot.slane %v1023_v8, 1  ;;  %v245_v3 = vld [vmem:[%s900_s10 + $0x60] ss:$8 sps:$4 sm:$0xff]  }
  0x1c   : > { %607 = vmatpush1.bf16.msra.mxu0 %v820_v0  ;;  %790 = vmatpush1.bf16.msra.mxu1 %v820_v0  ;;  %v325_v28 = vsel %vm322_vm0, %v323_v9, %v324_v14  ;;  %v328_v32 = vsel %vm322_vm0, %v326_v15, %v327_v16  ;;  %v371_v36 = vmul.f32 %v984_v53, %v268_v39  ;;  %v261_v55 = vunpack.c.h.bf16 %v987_v54 }
  0x1d   : > { %608 = vmatprep.subr.bf16.mxu0 %v821_v5  ;;  %783 = vmatprep.subr.bf16.mxu1 %v821_v5  ;;  %v339_v45 = vadd.f32 %v325_v28, %v298_v1  ;;  %v340_v49 = vadd.f32 %v328_v32, %v299_v6  ;;  %v372_v50 = vmul.f32 %v984_v53, %v269_v40  ;;  %v1063_v40 = vld [vmem:[%s1180_s1 + $0x8] ss:$0 sm:$0xff]  ;;  %v262_v5 = vunpack.c.l.bf16 %v1058_v60 }
  0x1e   : > { %v373_v56 = vmul.f32 %v984_v53, %v270_v41  ;;  %v374_v39 = vmul.f32 %v984_v53, %v271_v42  ;;  %v387_v57 = vrot.slane %v371_v36, 1  ;;  %v1055_v58 = vrot.slane %v956_v43, %v409_v19  ;;  %v826_v19 = vld [vmem:[%s1182_s3 + $0x70] ss:$8 sps:$4 sm:$0xff]  }
  0x1f   : > { %v351_v27 = vadd.f32 %v347_v17, %v339_v45  ;;  %v352_v41 = vadd.f32 %v348_v18, %v340_v49  ;;  %v388_v33 = vrot.slane %v372_v50, 1  ;;  %v1068_v42 = vrot.slane %v956_v43, %v421_v20 }
  0x20   : > { %609 = vmatpush1.bf16.msra.mxu0 %v823_v24  ;;  %791 = vmatpush1.bf16.msra.mxu1 %v823_v24  ;;  %v390_v61 = vrot.slane %v373_v56, 1  ;;  %v391_v62 = vrot.slane %v374_v39, 1  ;;  %v411_v63 = vmul.f32 %v1055_v58, %v934_v29  ;;  %v412_v0 = vmul.f32 %v1055_v58, %v937_v31  ;;  %v248_v24 = vld [vmem:[%s900_s10 + $0x6c] sm:$0x1] }
  0x21   : > { %610 = vmatprep.subr.bf16.mxu0 %v824_v44  ;;  %784 = vmatprep.subr.bf16.mxu1 %v824_v44  ;;  %v363_v20 = vadd.f32 %v359_v21, %v351_v27  ;;  %v364_v43 = vadd.f32 %v360_v23, %v352_v41  ;;  %v389_v1 = vsel %vm322_vm0, %v387_v57, %v388_v33  ;;  %v246_v23 = vld [vmem:[%s900_s10 + $0x64] sm:$0x1]  ;;  %v272_v28 = vunpack.c.l.bf16 %v245_v3  ;;  %v1109_v27 = vld [vmem:[%s1181_s2] ss:$0 sm:$0xff] }
  0x22   : > { %v392_v6 = vsel %vm322_vm0, %v390_v61, %v391_v62  ;;  %v423_v9 = vmul.f32 %v1068_v42, %v264_v37  ;;  %v424_v14 = vmul.f32 %v1068_v42, %v265_v38  ;;  %v435_v15 = vmul.f32 %v1063_v40, %v934_v29  ;;  %v251_v38 = vld [vmem:[%s900_s10 + $0x88] ss:$8 sps:$4 sm:$0xff]  }
  0x23   : > { %v403_v16 = vadd.f32 %v389_v1, %v363_v20  ;;  %v404_v17 = vadd.f32 %v392_v6, %v364_v43  ;;  %v436_v18 = vmul.f32 %v1063_v40, %v256_v30  ;;  %v437_v21 = vmul.f32 %v1063_v40, %v937_v31 }
  0x24   : > { %611 = vmatpush1.bf16.msra.mxu0 %v826_v19  ;;  %792 = vmatpush1.bf16.msra.mxu1 %v826_v19  ;;  %v438_v26 = vmul.f32 %v1063_v40, %v258_v35  ;;  %v451_v37 = vrot.slane %v435_v15, 1  ;;  %v266_v29 = vunpack.c.l.bf16 %v1079_v2  ;;  %v273_v45 = vunpack.c.l.bf16 %v246_v23 }
  0x25   : > { %v415_v32 = vadd.f32 %v411_v63, %v403_v16  ;;  %v416_v22 = vadd.f32 %v412_v0, %v404_v17  ;;  %v452_v36 = vrot.slane %v436_v18, 1  ;;  %v454_v30 = vrot.slane %v437_v21, 1 }
  0x26   : > { %v455_v44 = vrot.slane %v438_v26, 1  ;;  %v274_v49 = vunpack.c.h.bf16 %v245_v3  ;;  %v275_v50 = vunpack.c.l.bf16 %v248_v24  ;;  %v278_v25 = vunpack.c.l.bf16 %v251_v38 }
  0x27   : > { %v427_v56 = vadd.f32 %v423_v9, %v415_v32  ;;  %v428_v39 = vadd.f32 %v424_v14, %v416_v22  ;;  %v453_v57 = vsel %vm322_vm0, %v451_v37, %v452_v36  ;;  %v279_v41 = vunpack.c.h.bf16 %v251_v38 }
  0x28   : > { %v456_v35 = vsel %vm322_vm0, %v454_v30, %v455_v44  ;;  %v289_v33 = vmul.f32 %v964_v46, %v1015_v4  ;;  %v297_v19 = vmul.f32 %v969_v47, %v266_v29  ;;  %v310_v63 = vmul.f32 %v972_v48, %v937_v31 }
  0x29   : > { %v467_v61 = vadd.f32 %v453_v57, %v427_v56  ;;  %v468_v62 = vadd.f32 %v456_v35, %v428_v39  ;;  %v312_v0 = vmul.f32 %v972_v48, %v1015_v4  ;;  %v313_v43 = vmul.f32 %v972_v48, %v260_v10 }
  0x2a   : > { %v301_v20 = vadd.f32 %v297_v19, %v289_v33  ;;  %v349_v1 = vmul.f32 %v978_v51, %v272_v28  ;;  %v350_v46 = vmul.f32 %v978_v51, %v274_v49  ;;  %v329_v6 = vrot.slane %v310_v63, 1 }
  0x2b   : > { %v478_v3 = vadd.f32 %v1109_v27, %v467_v61  ;;  %v479_v47 = vadd.f32 %v1109_v27, %v468_v62  ;;  %v332_v9 = vrot.slane %v312_v0, 1  ;;  %v333_v14 = vrot.slane %v313_v43, 1 }
  0x2c   : > { %v361_v31 = vmul.f32 %v981_v52, %v278_v25  ;;  %v362_v15 = vmul.f32 %v981_v52, %v279_v41  ;;  %v375_v16 = vmul.f32 %v984_v53, %v272_v28  ;;  %v331_v48 = vsel %vm322_vm0, %v329_v6, %v330_v34 }
  0x2d   : > { %v482_v17 = vmax.f32 %v478_v3, 0.0  ;;  %v483_v18 = vmax.f32 %v479_v47, 0.0  ;;  %v376_v51 = vmul.f32 %v984_v53, %v273_v45  ;;  %v334_v21 = vsel %vm322_vm0, %v332_v9, %v333_v14 }
  0x2e   : > { %v341_v23 = vadd.f32 %v331_v48, %v1026_v13  ;;  %v377_v24 = vmul.f32 %v984_v53, %v274_v49  ;;  %v378_v26 = vmul.f32 %v984_v53, %v275_v50  ;;  %v342_v52 = vadd.f32 %v334_v21, %v301_v20  ;;  %v504_v20 = vld [vmem:[%s1183_s4] sm:$0x3] }
  0x2f   : > { %v486_v37 = vpack.c.bf16 %v483_v18, %v482_v17  ;;  %v393_v38 = vrot.slane %v375_v16, 1  ;;  %v394_v28 = vrot.slane %v376_v51, 1  ;;  %v267_v32 = vunpack.c.h.bf16 %v1079_v2 }
  0x30   : > { %v353_v22 = vadd.f32 %v349_v1, %v341_v23  ;;  %v396_v8 = vrot.slane %v377_v24, 1  ;;  %v397_v36 = vrot.slane %v378_v26, 1  ;;  %v354_v34 = vadd.f32 %v350_v46, %v342_v52 }
  0x31   : > { %629 = vmatmul.mubr.bf16.vlgmr.msra.gmra.mrb[0].mxu0 %v486_v37  ;;  %v395_v30 = vsel %vm322_vm0, %v393_v38, %v394_v28  ;;  %v413_v13 = vmul.f32 %v1055_v58, %v1015_v4  ;;  %v414_v53 = vmul.f32 %v1055_v58, %v261_v55  ;;  %v439_v49 = vmul.f32 %v1063_v40, %v1015_v4 }
  0x32   : > { %v365_v44 = vadd.f32 %v361_v31, %v353_v22  ;;  %v398_v45 = vsel %vm322_vm0, %v396_v8, %v397_v36  ;;  %v366_v50 = vadd.f32 %v362_v15, %v354_v34  ;;  %v440_v56 = vmul.f32 %v1063_v40, %v260_v10 }
  0x33   : > { %v441_v39 = vmul.f32 %v1063_v40, %v261_v55  ;;  %v442_v57 = vmul.f32 %v1063_v40, %v262_v5  ;;  %v425_v58 = vmul.f32 %v1068_v42, %v266_v29  ;;  %v426_v4 = vmul.f32 %v1068_v42, %v267_v32 }
  0x34   : > { %v405_v25 = vadd.f32 %v395_v30, %v365_v44  ;;  %v457_v35 = vrot.slane %v439_v49, 1  ;;  %v406_v41 = vadd.f32 %v398_v45, %v366_v50  ;;  %v458_v59 = vrot.slane %v440_v56, 1 }
  0x35   : > { %v460_v33 = vrot.slane %v441_v39, 1  ;;  %v461_v10 = vrot.slane %v442_v57, 1  ;;  %v509_v43 = vrot.slane %v504_v20, %v284_v11  ;;  %v513_v1 = vrot.slane %v504_v20, %v292_v12 }
  0x36   : > { %v417_v19 = vadd.f32 %v413_v13, %v405_v25  ;;  %v418_v54 = vadd.f32 %v414_v53, %v406_v41  ;;  %v459_v55 = vsel %vm322_vm0, %v457_v35, %v458_v59 }
  0x37   : > { %v462_v60 = vsel %vm322_vm0, %v460_v33, %v461_v10 }
  0x38   : > { %v429_v61 = vadd.f32 %v425_v58, %v417_v19  ;;  %v430_v40 = vadd.f32 %v426_v4, %v418_v54 }
  0x3a   : > { %v469_v5 = vadd.f32 %v459_v55, %v429_v61  ;;  %v470_v2 = vadd.f32 %v462_v60, %v430_v40 }
  0x3c   : > { %v480_v29 = vadd.f32 %v1109_v27, %v469_v5  ;;  %v481_v42 = vadd.f32 %v1109_v27, %v470_v2 }
  0x3e   : > { %v484_v62 = vmax.f32 %v480_v29, 0.0  ;;  %v485_v63 = vmax.f32 %v481_v42, 0.0 }
  0x40   : > { %v487_v0 = vpack.c.bf16 %v485_v63, %v484_v62 }
  0x42   : > { %639 = vmatmul.mubr.bf16.vlgmr.msra.gmra.mrb[0].mxu1 %v487_v0 }
 0x104   : > { %v630_v46 = vpop.f32.mrb[0].mxu0 }
 0x105   : > { %v631_v3 = vadd.f32 %v630_v46, %v509_v43  ;;  %v632_v47 = vpop.f32.mrb[1].mxu0 }
 0x106   : > { %v633_v6 = vadd.f32 %v632_v47, %v513_v1  ;;  %v634_v27 = vpop.f32.mrb[2].mxu0 }
 0x107   : > { %v649_v9 = vmax.f32 %v631_v3, 0.0  ;;  %v635_v14 = vadd.f32 %v634_v27, %v509_v43  ;;  %v636_v31 = vpop.f32.mrb[3].mxu0 }
 0x108   : > { %v650_v15 = vmax.f32 %v633_v6, 0.0  ;;  %v637_v16 = vadd.f32 %v636_v31, %v513_v1 }
 0x109   : > { %v651_v17 = vmax.f32 %v635_v14, 0.0 }
 0x10a   : > { %v773_v11 = vpack.c.bf16 %v650_v15, %v649_v9  ;;  %v652_v18 = vmax.f32 %v637_v16, 0.0 }
 0x10c   : > { %681 = vst [vmem:[%s224_s21] sm:$0xff] %v773_v11  ;;  %v774_v7 = vpack.c.bf16 %v652_v18, %v651_v17 }
 0x10e   : > { %682 = vst [vmem:[%s224_s21 + $0x8] sm:$0xff] %v774_v7 }
 0x115   : > { %v640_v12 = vpop.f32.mrb[0].mxu1 }
 0x116   : > { %v641_v48 = vadd.f32 %v640_v12, %v509_v43  ;;  %v642_v51 = vpop.f32.mrb[1].mxu1 }
 0x117   : > { %v643_v21 = vadd.f32 %v642_v51, %v513_v1  ;;  %v644_v23 = vpop.f32.mrb[2].mxu1 }
 0x118   : > { %v653_v24 = vmax.f32 %v641_v48, 0.0  ;;  %v645_v26 = vadd.f32 %v644_v23, %v509_v43  ;;  %v646_v37 = vpop.f32.mrb[3].mxu1 }
 0x119   : > { %v654_v52 = vmax.f32 %v643_v21, 0.0  ;;  %v647_v38 = vadd.f32 %v646_v37, %v513_v1 }
 0x11a   : > { %v655_v28 = vmax.f32 %v645_v26, 0.0 }
 0x11b   : > { %v775_v32 = vpack.c.bf16 %v654_v52, %v653_v24  ;;  %v656_v22 = vmax.f32 %v647_v38, 0.0 }
 0x11d   : > { %683 = vst [vmem:[%s224_s21 + $0x10] sm:$0xff] %v775_v32  ;;  %v776_v8 = vpack.c.bf16 %v656_v22, %v655_v28 }
 0x11f   : > { %684 = vst [vmem:[%s224_s21 + $0x18] sm:$0xff] %v776_v8 }
 0x120 PF: > { %s15_s18 = sadd.s32 1, %s833_s18  }
 0x121   : > { %p12_p4 = scmp.ge.s32.totalorder %s15_s18, 4  }
 0x123   :  { %14 = sbr.rel (!%p12_p4) target bundleno = 1 (0x1), region = 70 }

// kernel: mobilenet_forward.12
= control target key start
LH: loop header
LB: loop body
LE: loop exit
PB: predicated region body
PF: predicated region fallthrough
CT: control target
= control target key end

     0   :  { %s1371_s18 = smov 0   ;;  %s1961_s0 = inlined_call_operand.vmem [shape: bf16[2,6,10,256], index: 0, kind: input, shape index: {}]   ;;  %s1962_s1 = inlined_call_operand.vmem [shape: f32[9,256], index: 1, kind: input, shape index: {}]   ;;  %s1963_s2 = inlined_call_operand.vmem [shape: f32[1,256], index: 2, kind: input, shape index: {}]   ;;  %s1964_s3 = inlined_call_operand.vmem [shape: bf16[256,256], index: 3, kind: input, shape index: {}]   ;;  %s1965_s4 = inlined_call_operand.vmem [shape: f32[1,256], index: 4, kind: input, shape index: {}]   ;;  %s1966_s5 = inlined_call_operand.vmem [shape: bf16[2,32,256], index: 5, kind: output, shape index: {}]  }
   0x1 LB: > { %s1191_s19 = sadd.s32 4294967295, %s1339_s18   ;;  %p1195_p0 = scmp.ge.s32.totalorder %s1339_s18, 1  ;;  %s1339_s18 = sphi %s1371_s18, %s15_s18  }
   0x2   : > { %p187_p1 = scmp.lt.s32.totalorder %s1339_s18, 3 }
   0x4   : > { %p188_p2 = pnand %p1195_p0, %p187_p1 }
   0x5   : > { %v1285_v0 = vld [vmem:[%s1964_s3 + $0x4] ss:$8 sps:$4 sm:$0xff] (!%p188_p2)   ;;  %v1287_v1 = vld [vmem:[%s1964_s3] ss:$8 sps:$4 sm:$0xff] (!%p188_p2)   ;;  %v1288_v2 = vld [vmem:[%s1964_s3 + $0x14] ss:$8 sps:$4 sm:$0xff] (!%p188_p2)   ;;  %v265_v9 = vlaneseq (!%p188_p2) }
   0x6   : > { %191 = sbr.rel (%p188_p2) target bundleno = 351 (0x15f), region = 40  ;;  %1047 = vmatprep.subr.bf16.mxu0 (!%p188_p2), %v1285_v0  ;;  %1244 = vmatprep.subr.bf16.mxu1 (!%p188_p2), %v1285_v0  ;;  %v1290_v3 = vld [vmem:[%s1964_s3 + $0x10] ss:$8 sps:$4 sm:$0xff] (!%p188_p2)   ;;  %v1291_v4 = vld [vmem:[%s1964_s3 + $0x24] ss:$8 sps:$4 sm:$0xff] (!%p188_p2)   ;;  %p215_p3 = scmp.lt.s32.totalorder (!%p188_p2), %s1191_s19, 1 }
   0x7   : > { %1048 = vmatpush1.bf16.msra.mxu0 (!%p188_p2), %v1287_v1  ;;  %1260 = vmatpush1.bf16.msra.mxu1 (!%p188_p2), %v1287_v1  ;;  %v1293_v5 = vld [vmem:[%s1964_s3 + $0x20] ss:$8 sps:$4 sm:$0xff] (!%p188_p2)   ;;  %v1294_v6 = vld [vmem:[%s1964_s3 + $0x34] ss:$8 sps:$4 sm:$0xff] (!%p188_p2)   ;;  %v1296_v7 = vld [vmem:[%s1964_s3 + $0x30] ss:$8 sps:$4 sm:$0xff] (!%p188_p2)  }
   0x8   : > { %1049 = vmatprep.subr.bf16.mxu0 (!%p188_p2), %v1288_v2  ;;  %1245 = vmatprep.subr.bf16.mxu1 (!%p188_p2), %v1288_v2  ;;  %v1297_v8 = vld [vmem:[%s1964_s3 + $0x44] ss:$8 sps:$4 sm:$0xff] (!%p188_p2)   ;;  %v1299_v10 = vld [vmem:[%s1964_s3 + $0x40] ss:$8 sps:$4 sm:$0xff] (!%p188_p2)   ;;  %v1300_v11 = vld [vmem:[%s1964_s3 + $0x54] ss:$8 sps:$4 sm:$0xff] (!%p188_p2)  }
   0x9   : > { %v1415_v12 = vshrl.u32 (!%p188_p2), %v265_v9, 7  ;;  %v1302_v13 = vld [vmem:[%s1964_s3 + $0x50] ss:$8 sps:$4 sm:$0xff] (!%p188_p2)   ;;  %v1303_v15 = vld [vmem:[%s1964_s3 + $0x64] ss:$8 sps:$4 sm:$0xff] (!%p188_p2)   ;;  %vm321_vm0 = vcmask (!%p188_p2), 1046528  }
   0xa   : > { %v1305_v29 = vld [vmem:[%s1964_s3 + $0x60] ss:$8 sps:$4 sm:$0xff] (!%p188_p2)   ;;  %vm402_vm1 = vcmask (!%p188_p2), 1045504   ;;  %v1306_v36 = vld [vmem:[%s1964_s3 + $0x74] ss:$8 sps:$4 sm:$0xff] (!%p188_p2)  }
   0xb   : > { %1050 = vmatpush1.bf16.msra.mxu0 (!%p188_p2), %v1290_v3  ;;  %1261 = vmatpush1.bf16.msra.mxu1 (!%p188_p2), %v1290_v3  ;;  %v1426_v14 = vsub.s32 (!%p188_p2), 0, %v1415_v12  ;;  %v1432_v16 = vsub.s32 (!%p188_p2), 1, %v1415_v12  ;;  %v364_v17 = vsub.s32 (!%p188_p2), 2, %v1415_v12  ;;  %v445_v20 = vsub.s32 (!%p188_p2), 3, %v1415_v12  ;;  %v1472_v41 = vld [vmem:[%s1962_s1] sm:$0xff] (!%p188_p2)  ;;  %v1477_v42 = vld [vmem:[%s1962_s1 + $0x8] sm:$0xff] (!%p188_p2) }
   0xc   : > { %1051 = vmatprep.subr.bf16.mxu0 (!%p188_p2), %v1291_v4  ;;  %1246 = vmatprep.subr.bf16.mxu1 (!%p188_p2), %v1291_v4  ;;  %v469_v21 = vsub.s32 (!%p188_p2), 4, %v1415_v12  ;;  %v549_v22 = vsub.s32 (!%p188_p2), 5, %v1415_v12  ;;  %v629_v27 = vsub.s32 (!%p188_p2), 6, %v1415_v12  ;;  %v1967_v28 = vsub.s32 (!%p188_p2), 7, %v1415_v12  ;;  %v1308_v52 = vld [vmem:[%s1964_s3 + $0x70] ss:$8 sps:$4 sm:$0xff] (!%p188_p2)  }
   0xd   : > { %s1970_s19 = smov (!%p215_p3, %s1191_s19), 1  ;;  %v1490_v48 = vrot.slane %v1472_v41, %v1426_v14  ;;  %v1494_v49 = vrot.slane %v1477_v42, %v1426_v14  ;;  %v1498_v50 = vrot.slane %v1472_v41, %v1432_v16  ;;  %v1502_v51 = vrot.slane %v1477_v42, %v1432_v16  ;;  %v1309_v57 = vld [vmem:[%s1964_s3 + $0x84] ss:$8 sps:$4 sm:$0xff]  }
   0xe   : > { %s1276_s13 = smul.u32 96, %s1970_s19  ;;  %v1510_v54 = vrot.slane %v1472_v41, %v364_v17  ;;  %v1513_v55 = vrot.slane %v1477_v42, %v364_v17  ;;  %v1518_v56 = vrot.slane %v1477_v42, %v445_v20  ;;  %s1239_s7 = sshll.u32 %s1970_s19, 5 }
   0xf   : > { %1052 = vmatpush1.bf16.msra.mxu0 %v1293_v5  ;;  %1262 = vmatpush1.bf16.msra.mxu1 %v1293_v5  ;;  %s224_s10 = scalar_lea.vmem %s1966_s5, %s1239_s7 }
  0x10   : > { %1053 = vmatprep.subr.bf16.mxu0 %v1294_v6  ;;  %1247 = vmatprep.subr.bf16.mxu1 %v1294_v6  ;;  %s1420_s22 = scalar_lea.vmem %s1961_s0, %s1276_s13  ;;  %v1311_v6 = vld [vmem:[%s1964_s3 + $0x80] ss:$8 sps:$4 sm:$0xff]  }
  0x11   : > { %v225_v18 = vld [vmem:[%s1420_s22] sm:$0xff]  ;;  %v1437_v19 = vld [vmem:[%s1420_s22 + $0x8] sm:$0x11]  ;;  %v227_v23 = vld [vmem:[%s1420_s22 + $0x10] sm:$0xff] }
  0x12   : > { %v228_v24 = vld [vmem:[%s1420_s22 + $0x18] sm:$0x11]  ;;  %v229_v25 = vld [vmem:[%s1420_s22 + $0x20] sm:$0xff]  ;;  %v1445_v26 = vunpack.c.l.bf16 %v225_v18  ;;  %v230_v30 = vld [vmem:[%s1420_s22 + $0x28] sm:$0x11]  ;;  %v238_v32 = vunpack.c.h.bf16 %v225_v18  ;;  %v239_v33 = vunpack.c.l.bf16 %v1437_v19  ;;  %v240_v34 = vunpack.c.h.bf16 %v1437_v19 }
  0x13   : > { %1054 = vmatpush1.bf16.msra.mxu0 %v1296_v7  ;;  %1263 = vmatpush1.bf16.msra.mxu1 %v1296_v7  ;;  %v231_v31 = vld [vmem:[%s1420_s22 + $0x30] sm:$0xff]  ;;  %v1456_v35 = vunpack.c.l.bf16 %v227_v23  ;;  %v1461_v37 = vunpack.c.h.bf16 %v227_v23  ;;  %v1463_v38 = vunpack.c.l.bf16 %v228_v24  ;;  %v1465_v39 = vunpack.c.h.bf16 %v228_v24  ;;  %v232_v43 = vld [vmem:[%s1420_s22 + $0x38] sm:$0x11] }
  0x14   : > { %1055 = vmatprep.subr.bf16.mxu0 %v1297_v8  ;;  %1248 = vmatprep.subr.bf16.mxu1 %v1297_v8  ;;  %v1467_v40 = vunpack.c.l.bf16 %v229_v25  ;;  %v1480_v44 = vunpack.c.h.bf16 %v229_v25  ;;  %v1482_v45 = vunpack.c.l.bf16 %v230_v30  ;;  %v1484_v46 = vunpack.c.h.bf16 %v230_v30  ;;  %v233_v30 = vld [vmem:[%s1420_s22 + $0x40] sm:$0xff] }
  0x15   : > { %v1486_v47 = vunpack.c.l.bf16 %v231_v31  ;;  %v1507_v53 = vunpack.c.h.bf16 %v231_v31  ;;  %v1523_v58 = vunpack.c.l.bf16 %v232_v43  ;;  %v274_v59 = vmul.f32 %v1494_v49, %v238_v32 }
  0x16   : > { %v276_v60 = vmul.f32 %v1494_v49, %v1461_v37  ;;  %v290_v61 = vmul.f32 %v1502_v51, %v238_v32  ;;  %v292_v62 = vmul.f32 %v1502_v51, %v240_v34  ;;  %v294_v63 = vmul.f32 %v1502_v51, %v1461_v37 }
  0x17   : > { %1056 = vmatpush1.bf16.msra.mxu0 %v1299_v10  ;;  %1264 = vmatpush1.bf16.msra.mxu1 %v1299_v10  ;;  %v296_v0 = vmul.f32 %v1502_v51, %v1465_v39  ;;  %v371_v1 = vmul.f32 %v1513_v55, %v238_v32  ;;  %v373_v3 = vmul.f32 %v1513_v55, %v240_v34 }
  0x18   : > { %1057 = vmatprep.subr.bf16.mxu0 %v1300_v11  ;;  %1249 = vmatprep.subr.bf16.mxu1 %v1300_v11  ;;  %v325_v2 = vrot.slane %v290_v61, 1  ;;  %v375_v4 = vmul.f32 %v1513_v55, %v1461_v37  ;;  %v377_v5 = vmul.f32 %v1513_v55, %v1465_v39  ;;  %v326_v7 = vrot.slane %v292_v62, 1  ;;  %v1312_v11 = vld [vmem:[%s1964_s3 + $0x94] ss:$8 sps:$4 sm:$0xff]   ;;  %v1315_v62 = vld [vmem:[%s1964_s3 + $0xa4] ss:$8 sps:$4 sm:$0xff]  }
  0x19   : > { %v331_v8 = vrot.slane %v294_v63, 1  ;;  %v332_v9 = vrot.slane %v296_v0, 1  ;;  %v406_v10 = vrot.slane %v371_v1, 2  ;;  %v452_v18 = vmul.f32 %v1518_v56, %v1461_v37 }
  0x1a   : > { %v413_v17 = vrot.slane %v377_v5, 2  ;;  %v327_v23 = vsel %vm321_vm0, %v325_v2, %v326_v7  ;;  %v454_v25 = vmul.f32 %v1518_v56, %v1480_v44  ;;  %v1576_v1 = vunpack.c.l.bf16 %v233_v30 }
  0x1b   : > { %1058 = vmatpush1.bf16.msra.mxu0 %v1302_v13  ;;  %1265 = vmatpush1.bf16.msra.mxu1 %v1302_v13  ;;  %v407_v13 = vrot.slane %v373_v3, 2  ;;  %v333_v24 = vsel %vm321_vm0, %v331_v8, %v332_v9  ;;  %v355_v31 = vadd.f32 %v327_v23, %v274_v59  ;;  %v1581_v5 = vrot.slane %v1477_v42, %v549_v22  ;;  %v1318_v23 = vld [vmem:[%s1964_s3 + $0xb4] ss:$8 sps:$4 sm:$0xff]  }
  0x1c   : > { %1059 = vmatprep.subr.bf16.mxu0 %v1303_v15  ;;  %1250 = vmatprep.subr.bf16.mxu1 %v1303_v15  ;;  %v412_v15 = vrot.slane %v375_v4, 2  ;;  %v357_v32 = vadd.f32 %v333_v24, %v276_v60  ;;  %v1605_v24 = vld [vmem:[%s1962_s1 + $0x18] ss:$0 sm:$0xff] }
  0x1d   : > { %v408_v34 = vsel %vm402_vm1, %v406_v10, %v407_v13  ;;  %v1587_v10 = vrot.slane %v1477_v42, %v629_v27 }
  0x1e   : > { %v436_v63 = vadd.f32 %v408_v34, %v355_v31 }
  0x1f   : > { %1060 = vmatpush1.bf16.msra.mxu0 %v1305_v29  ;;  %1266 = vmatpush1.bf16.msra.mxu1 %v1305_v29  ;;  %v1555_v29 = vrot.slane %v1477_v42, %v469_v21 }
  0x20   : > { %1061 = vmatprep.subr.bf16.mxu0 %v1306_v36  ;;  %1251 = vmatprep.subr.bf16.mxu1 %v1306_v36  ;;  %v414_v36 = vsel %vm402_vm1, %v412_v15, %v413_v17  ;;  %v460_v7 = vadd.f32 %v452_v18, %v436_v63  ;;  %v556_v15 = vmul.f32 %v1581_v5, %v1461_v37  ;;  %v1597_v18 = vunpack.c.h.bf16 %v233_v30 }
  0x21   : > { %v476_v61 = vmul.f32 %v1555_v29, %v1461_v37  ;;  %v478_v59 = vmul.f32 %v1555_v29, %v1465_v39  ;;  %v480_v60 = vmul.f32 %v1555_v29, %v1480_v44  ;;  %v438_v0 = vadd.f32 %v414_v36, %v357_v32 }
  0x22   : > { %v558_v17 = vmul.f32 %v1581_v5, %v1465_v39  ;;  %v560_v37 = vmul.f32 %v1581_v5, %v1480_v44  ;;  %v562_v32 = vmul.f32 %v1581_v5, %v1484_v46  ;;  %v590_v34 = vrot.slane %v556_v15, 2 }
  0x23   : > { %1062 = vmatpush1.bf16.msra.mxu0 %v1308_v52  ;;  %1267 = vmatpush1.bf16.msra.mxu1 %v1308_v52  ;;  %v1314_v52 = vld [vmem:[%s1964_s3 + $0x90] ss:$8 sps:$4 sm:$0xff]   ;;  %v510_v2 = vrot.slane %v476_v61, 1  ;;  %v511_v3 = vrot.slane %v478_v59, 1  ;;  %v516_v4 = vrot.slane %v480_v60, 1  ;;  %v462_v8 = vadd.f32 %v454_v25, %v438_v0 }
  0x24   : > { %1063 = vmatprep.subr.bf16.mxu0 %v1309_v57  ;;  %1252 = vmatprep.subr.bf16.mxu1 %v1309_v57  ;;  %v1563_v57 = vunpack.c.h.bf16 %v232_v43  ;;  %v482_v43 = vmul.f32 %v1555_v29, %v1484_v46  ;;  %v591_v36 = vrot.slane %v558_v17, 2  ;;  %v636_v61 = vmul.f32 %v1587_v10, %v1480_v44  ;;  %v1323_v17 = vld [vmem:[%s1964_s3 + $0xc0] ss:$8 sps:$4 sm:$0xff]  }
  0x25   : > { %v512_v13 = vsel %vm321_vm0, %v510_v2, %v511_v3  ;;  %v638_v59 = vmul.f32 %v1587_v10, %v1507_v53  ;;  %v1621_v60 = vrot.slane %v1477_v42, %v1967_v28  ;;  %v597_v0 = vrot.slane %v562_v32, 2  ;;  %v1321_v42 = vld [vmem:[%s1964_s3 + $0xc4] ss:$8 sps:$4 sm:$0xff]  }
  0x26   : > { %v517_v9 = vrot.slane %v482_v43, 1  ;;  %v540_v31 = vadd.f32 %v512_v13, %v460_v7  ;;  %v592_v63 = vsel %vm402_vm1, %v590_v34, %v591_v36  ;;  %v740_v43 = vmul.f32 %v1605_v24, %v1480_v44 }
  0x27   : > { %1064 = vmatpush1.bf16.msra.mxu0 %v1311_v6  ;;  %1268 = vmatpush1.bf16.msra.mxu1 %v1311_v6  ;;  %v234_v6 = vld [vmem:[%s1420_s22 + $0x48] sm:$0x11]  ;;  %v742_v2 = vmul.f32 %v1605_v24, %v1484_v46  ;;  %v662_v7 = vmul.f32 %v1621_v60, %v1484_v46  ;;  %v666_v13 = vmul.f32 %v1621_v60, %v1563_v57 }
  0x28   : > { %1065 = vmatprep.subr.bf16.mxu0 %v1312_v11  ;;  %1253 = vmatprep.subr.bf16.mxu1 %v1312_v11  ;;  %v1317_v11 = vld [vmem:[%s1964_s3 + $0xa0] ss:$8 sps:$4 sm:$0xff]   ;;  %v518_v25 = vsel %vm321_vm0, %v516_v4, %v517_v9  ;;  %v1610_v39 = vunpack.c.l.bf16 %v234_v6  ;;  %v620_v3 = vadd.f32 %v592_v63, %v540_v31  ;;  %v660_v4 = vmul.f32 %v1621_v60, %v1480_v44 }
  0x29   : > { %v542_v30 = vadd.f32 %v518_v25, %v462_v8  ;;  %v1638_v8 = vunpack.c.h.bf16 %v234_v6  ;;  %v744_v15 = vmul.f32 %v1605_v24, %v1507_v53  ;;  %v695_v6 = vrot.slane %v662_v7, 1  ;;  %v811_v63 = vld [vmem:[%s1963_s2] sm:$0x3] }
  0x2a   : > { %v644_v25 = vadd.f32 %v636_v61, %v620_v3  ;;  %v694_v31 = vrot.slane %v660_v4, 1  ;;  %v701_v34 = vrot.slane %v666_v13, 1  ;;  %v746_v36 = vmul.f32 %v1605_v24, %v1563_v57 }
  0x2b   : > { %1066 = vmatpush1.bf16.msra.mxu0 %v1314_v52  ;;  %1269 = vmatpush1.bf16.msra.mxu1 %v1314_v52  ;;  %v596_v52 = vrot.slane %v560_v37, 2  ;;  %v235_v37 = vld [vmem:[%s1420_s22 + $0x50] sm:$0xff]  ;;  %v780_v3 = vrot.slane %v744_v15, 2  ;;  %v1668_v28 = vrot.slane %v811_v63, %v1426_v14 }
  0x2c   : > { %1067 = vmatprep.subr.bf16.mxu0 %v1315_v62  ;;  %1254 = vmatprep.subr.bf16.mxu1 %v1315_v62  ;;  %v1320_v62 = vld [vmem:[%s1964_s3 + $0xb0] ss:$8 sps:$4 sm:$0xff]  }
  0x2d   : > { %v598_v9 = vsel %vm402_vm1, %v596_v52, %v597_v0  ;;  %v774_v52 = vrot.slane %v740_v43, 2  ;;  %v775_v0 = vrot.slane %v742_v2, 2  ;;  %v1662_v43 = vld [vmem:[%s1420_s22 + $0x58] sm:$0x11] }
  0x2e   : > { %v1326_v2 = vld [vmem:[%s1964_s3 + $0xd0] ss:$8 sps:$4 sm:$0xff]  }
  0x2f   : > { %1068 = vmatpush1.bf16.msra.mxu0 %v1317_v11  ;;  %1270 = vmatpush1.bf16.msra.mxu1 %v1317_v11  ;;  %v664_v11 = vmul.f32 %v1621_v60, %v1507_v53 }
  0x30   : > { %1069 = vmatprep.subr.bf16.mxu0 %v1318_v23  ;;  %1255 = vmatprep.subr.bf16.mxu1 %v1318_v23  ;;  %v622_v23 = vadd.f32 %v598_v9, %v542_v30  ;;  %v1324_v30 = vld [vmem:[%s1964_s3 + $0xd4] ss:$8 sps:$4 sm:$0xff]   ;;  %v781_v9 = vrot.slane %v746_v36, 2  ;;  %v298_v36 = vmul.f32 %v1502_v51, %v1480_v44 }
  0x31   : > { %v700_v32 = vrot.slane %v664_v11, 1  ;;  %v1664_v11 = vunpack.c.l.bf16 %v235_v37 }
  0x32   : > { %v646_v61 = vadd.f32 %v638_v59, %v622_v23  ;;  %v1671_v59 = vrot.slane %v811_v63, %v1432_v16  ;;  %v782_v15 = vsel %vm402_vm1, %v780_v3, %v781_v9  ;;  %v302_v63 = vmul.f32 %v1502_v51, %v1507_v53  ;;  %v1329_v3 = vld [vmem:[%s1964_s3 + $0xe0] ss:$8 sps:$4 sm:$0xff]  }
  0x33   : > { %1070 = vmatpush1.bf16.msra.mxu0 %v1320_v62  ;;  %1271 = vmatpush1.bf16.msra.mxu1 %v1320_v62  ;;  %v696_v62 = vsel %vm321_vm0, %v694_v31, %v695_v6  ;;  %v702_v4 = vsel %vm321_vm0, %v700_v32, %v701_v34  ;;  %v278_v31 = vmul.f32 %v1494_v49, %v1480_v44  ;;  %v1327_v6 = vld [vmem:[%s1964_s3 + $0xe4] ss:$8 sps:$4 sm:$0xff]  }
  0x34   : > { %1071 = vmatprep.subr.bf16.mxu0 %v1321_v42  ;;  %1256 = vmatprep.subr.bf16.mxu1 %v1321_v42  ;;  %v724_v7 = vadd.f32 %v696_v62, %v644_v25  ;;  %v726_v13 = vadd.f32 %v702_v4, %v646_v61  ;;  %v776_v42 = vsel %vm402_vm1, %v774_v52, %v775_v0  ;;  %v1677_v25 = vunpack.c.h.bf16 %v235_v37 }
  0x35   : > { %v280_v34 = vmul.f32 %v1494_v49, %v1507_v53  ;;  %v300_v52 = vmul.f32 %v1502_v51, %v1484_v46  ;;  %v337_v62 = vrot.slane %v298_v36, 1  ;;  %v379_v49 = vmul.f32 %v1513_v55, %v1480_v44 }
  0x36   : > { %v804_v23 = vadd.f32 %v776_v42, %v724_v7  ;;  %v806_v32 = vadd.f32 %v782_v15, %v726_v13  ;;  %v381_v0 = vmul.f32 %v1513_v55, %v1484_v46  ;;  %v343_v9 = vrot.slane %v302_v63, 1 }
  0x37   : > { %1072 = vmatpush1.bf16.msra.mxu0 %v1323_v17  ;;  %1272 = vmatpush1.bf16.msra.mxu1 %v1323_v17  ;;  %v259_v17 = vunpack.c.l.bf16 %v1662_v43  ;;  %v338_v7 = vrot.slane %v300_v52, 1  ;;  %v383_v46 = vmul.f32 %v1513_v55, %v1507_v53  ;;  %v385_v42 = vmul.f32 %v1513_v55, %v1563_v57 }
  0x38   : > { %1073 = vmatprep.subr.bf16.mxu0 %v1324_v30  ;;  %1257 = vmatprep.subr.bf16.mxu1 %v1324_v30  ;;  %v824_v37 = vadd.f32 %v1671_v59, %v804_v23  ;;  %v304_v30 = vmul.f32 %v1502_v51, %v1563_v57  ;;  %v826_v61 = vadd.f32 %v1671_v59, %v806_v32  ;;  %v1330_v51 = vld [vmem:[%s1964_s3 + $0xf4] ss:$8 sps:$4 sm:$0xff]   ;;  %v419_v32 = vrot.slane %v381_v0, 2 }
  0x39   : > { %v339_v15 = vsel %vm321_vm0, %v337_v62, %v338_v7  ;;  %v424_v63 = vrot.slane %v383_v46, 2  ;;  %v458_v62 = vmul.f32 %v1518_v56, %v1597_v18  ;;  %v486_v0 = vmul.f32 %v1555_v29, %v1563_v57 }
  0x3a   : > { %v832_v4 = vmax.f32 %v824_v37, 0.0  ;;  %v344_v13 = vrot.slane %v304_v30, 1  ;;  %v834_v44 = vmax.f32 %v826_v61, 0.0  ;;  %v359_v37 = vadd.f32 %v339_v15, %v278_v31  ;;  %v1332_v30 = vld [vmem:[%s1964_s3 + $0xf0] ss:$8 sps:$4 sm:$0xff]  }
  0x3b   : > { %1074 = vmatpush1.bf16.msra.mxu0 %v1326_v2  ;;  %1273 = vmatpush1.bf16.msra.mxu1 %v1326_v2  ;;  %v418_v2 = vrot.slane %v379_v49, 2  ;;  %v425_v61 = vrot.slane %v385_v42, 2  ;;  %v484_v49 = vmul.f32 %v1555_v29, %v1507_v53  ;;  %v260_v31 = vunpack.c.h.bf16 %v1662_v43 }
  0x3c   : > { %1075 = vmatprep.subr.bf16.mxu0 %v1327_v6  ;;  %1258 = vmatprep.subr.bf16.mxu1 %v1327_v6  ;;  %v345_v23 = vsel %vm321_vm0, %v343_v9, %v344_v13  ;;  %v456_v6 = vmul.f32 %v1518_v56, %v1507_v53  ;;  %v840_v36 = vpack.c.bf16 %v834_v44, %v832_v4  ;;  %v523_v44 = vrot.slane %v486_v0, 1 }
  0x3d   : > { %v361_v52 = vadd.f32 %v345_v23, %v280_v34  ;;  %v420_v55 = vsel %vm402_vm1, %v418_v2, %v419_v32  ;;  %v426_v4 = vsel %vm402_vm1, %v424_v63, %v425_v61  ;;  %v490_v56 = vmul.f32 %v1555_v29, %v1638_v8 }
  0x3e   : > { %v440_v34 = vadd.f32 %v420_v55, %v359_v37  ;;  %1079 = vmatprep.mubr.bf16.mxu0 %v840_v36  ;;  %v522_v7 = vrot.slane %v484_v49, 1  ;;  %v564_v9 = vmul.f32 %v1581_v5, %v1507_v53  ;;  %v566_v2 = vmul.f32 %v1581_v5, %v1563_v57 }
  0x3f   : > { %1076 = vmatpush1.bf16.msra.mxu0 %v1329_v3  ;;  %1274 = vmatpush1.bf16.msra.mxu1 %v1329_v3  ;;  %v488_v3 = vmul.f32 %v1555_v29, %v1597_v18  ;;  %v442_v13 = vadd.f32 %v426_v4, %v361_v52  ;;  %v529_v42 = vrot.slane %v490_v56, 1  ;;  %v568_v15 = vmul.f32 %v1581_v5, %v1597_v18 }
  0x40   : > { %1077 = vmatprep.subr.bf16.mxu0 %v1330_v51  ;;  %1259 = vmatprep.subr.bf16.mxu1 %v1330_v51  ;;  %v464_v51 = vadd.f32 %v456_v6, %v440_v34  ;;  %v570_v29 = vmul.f32 %v1581_v5, %v1638_v8  ;;  %v524_v32 = vsel %vm321_vm0, %v522_v7, %v523_v44  ;;  %v602_v53 = vrot.slane %v564_v9, 2 }
  0x41   : > { %v528_v46 = vrot.slane %v488_v3, 1  ;;  %v466_v23 = vadd.f32 %v458_v62, %v442_v13  ;;  %v640_v6 = vmul.f32 %v1587_v10, %v1597_v18  ;;  %v603_v52 = vrot.slane %v566_v2, 2 }
  0x42   : > { %v544_v37 = vadd.f32 %v524_v32, %v464_v51  ;;  %v608_v63 = vrot.slane %v568_v15, 2  ;;  %v609_v57 = vrot.slane %v570_v29, 2  ;;  %v642_v55 = vmul.f32 %v1587_v10, %v1677_v25 }
  0x43   : > { %1078 = vmatpush1.bf16.msra.mxu0 %v1332_v30  ;;  %1275 = vmatpush1.bf16.msra.mxu1 %v1332_v30  ;;  %v530_v36 = vsel %vm321_vm0, %v528_v46, %v529_v42  ;;  %v668_v5 = vmul.f32 %v1621_v60, %v1597_v18  ;;  %v604_v61 = vsel %vm402_vm1, %v602_v53, %v603_v52 }
  0x44   : > { %v546_v30 = vadd.f32 %v530_v36, %v466_v23  ;;  %v670_v62 = vmul.f32 %v1621_v60, %v1638_v8  ;;  %v672_v49 = vmul.f32 %v1621_v60, %v1677_v25  ;;  %v674_v34 = vmul.f32 %v1621_v60, %v260_v31 }
  0x45   : > { %v610_v0 = vsel %vm402_vm1, %v608_v63, %v609_v57  ;;  %v624_v3 = vadd.f32 %v604_v61, %v544_v37  ;;  %v706_v4 = vrot.slane %v668_v5, 1  ;;  %v748_v10 = vmul.f32 %v1605_v24, %v1597_v18 }
  0x46   : > { %v626_v56 = vadd.f32 %v610_v0, %v546_v30  ;;  %v707_v7 = vrot.slane %v670_v62, 1  ;;  %v712_v9 = vrot.slane %v672_v49, 1  ;;  %v713_v13 = vrot.slane %v674_v34, 1 }
  0x47   : > { %v648_v51 = vadd.f32 %v640_v6, %v624_v3  ;;  %v750_v44 = vmul.f32 %v1605_v24, %v1638_v8  ;;  %v752_v46 = vmul.f32 %v1605_v24, %v1677_v25  ;;  %v754_v60 = vmul.f32 %v1605_v24, %v260_v31 }
  0x48   : > { %v650_v42 = vadd.f32 %v642_v55, %v626_v56  ;;  %v708_v2 = vsel %vm321_vm0, %v706_v4, %v707_v7  ;;  %v714_v15 = vsel %vm321_vm0, %v712_v9, %v713_v13  ;;  %v786_v29 = vrot.slane %v748_v10, 2 }
  0x49   : > { %v728_v18 = vadd.f32 %v708_v2, %v648_v51  ;;  %v787_v23 = vrot.slane %v750_v44, 2  ;;  %v792_v32 = vrot.slane %v752_v46, 2  ;;  %v793_v53 = vrot.slane %v754_v60, 2 }
  0x4a   : > { %v730_v36 = vadd.f32 %v714_v15, %v650_v42  ;;  %v273_v6 = vmul.f32 %v1490_v48, %v1445_v26  ;;  %v275_v8 = vmul.f32 %v1490_v48, %v1456_v35  ;;  %v289_v24 = vmul.f32 %v1498_v50, %v1445_v26 }
  0x4b   : > { %v788_v25 = vsel %vm402_vm1, %v786_v29, %v787_v23  ;;  %v794_v31 = vsel %vm402_vm1, %v792_v32, %v793_v53  ;;  %v291_v37 = vmul.f32 %v1498_v50, %v239_v33  ;;  %v293_v52 = vmul.f32 %v1498_v50, %v1456_v35 }
  0x4c   : > { %v808_v63 = vadd.f32 %v788_v25, %v728_v18  ;;  %v810_v30 = vadd.f32 %v794_v31, %v730_v36  ;;  %v295_v57 = vmul.f32 %v1498_v50, %v1463_v38  ;;  %v322_v55 = vrot.slane %v289_v24, 1 }
  0x4d   : > { %v323_v5 = vrot.slane %v291_v37, 1  ;;  %v328_v61 = vrot.slane %v293_v52, 1  ;;  %v370_v62 = vmul.f32 %v1510_v54, %v1445_v26  ;;  %v372_v49 = vmul.f32 %v1510_v54, %v239_v33 }
  0x4e   : > { %v828_v34 = vadd.f32 %v1671_v59, %v808_v63  ;;  %v830_v0 = vadd.f32 %v1671_v59, %v810_v30  ;;  %v329_v3 = vrot.slane %v295_v57, 1  ;;  %v374_v4 = vmul.f32 %v1510_v54, %v1456_v35 }
  0x4f   : > { %v324_v10 = vsel %vm321_vm0, %v322_v55, %v323_v5  ;;  %v376_v56 = vmul.f32 %v1510_v54, %v1463_v38  ;;  %v403_v7 = vrot.slane %v370_v62, 2  ;;  %v404_v9 = vrot.slane %v372_v49, 2 }
  0x50   : > { %v836_v26 = vmax.f32 %v828_v34, 0.0  ;;  %v838_v13 = vmax.f32 %v830_v0, 0.0  ;;  %v330_v19 = vsel %vm321_vm0, %v328_v61, %v329_v3  ;;  %v354_v33 = vadd.f32 %v324_v10, %v273_v6  ;;  %v1843_v61 = vld [vmem:[%s1962_s1 + $0x10] ss:$0 sm:$0xff] }
  0x51   : > { %v356_v51 = vadd.f32 %v330_v19, %v275_v8  ;;  %v405_v44 = vsel %vm402_vm1, %v403_v7, %v404_v9  ;;  %v409_v59 = vrot.slane %v374_v4, 2  ;;  %v410_v46 = vrot.slane %v376_v56, 2 }
  0x52   : > { %v842_v60 = vpack.c.bf16 %v838_v13, %v836_v26  ;;  %v435_v42 = vadd.f32 %v405_v44, %v354_v33  ;;  %v1795_v2 = vrot.slane %v1472_v41, %v445_v20  ;;  %v1800_v15 = vrot.slane %v1472_v41, %v469_v21 }
  0x53   : > { %v411_v29 = vsel %vm402_vm1, %v409_v59, %v410_v46  ;;  %v1806_v18 = vrot.slane %v1472_v41, %v549_v22  ;;  %v1811_v23 = vrot.slane %v1472_v41, %v629_v27  ;;  %v1968_v20 = vsub.s32 7, %v1415_v12 }
  0x54   : > { %1089 = vmatprep.mubr.bf16.mxu1 %v842_v60  ;;  %v437_v21 = vadd.f32 %v411_v29, %v356_v51  ;;  %v451_v53 = vmul.f32 %v1795_v2, %v1456_v35  ;;  %v453_v36 = vmul.f32 %v1795_v2, %v1467_v40  ;;  %v475_v22 = vmul.f32 %v1800_v15, %v1456_v35 }
  0x55   : > { %v1816_v32 = vrot.slane %v1472_v41, %v1968_v20  ;;  %v477_v27 = vmul.f32 %v1800_v15, %v1463_v38  ;;  %v479_v12 = vmul.f32 %v1800_v15, %v1467_v40  ;;  %v481_v41 = vmul.f32 %v1800_v15, %v1482_v45 }
  0x56   : > { %v555_v6 = vmul.f32 %v1806_v18, %v1456_v35  ;;  %v459_v8 = vadd.f32 %v451_v53, %v435_v42  ;;  %v461_v24 = vadd.f32 %v453_v36, %v437_v21  ;;  %v507_v25 = vrot.slane %v475_v22, 1 }
  0x57   : > { %v557_v31 = vmul.f32 %v1806_v18, %v1463_v38  ;;  %v508_v37 = vrot.slane %v477_v27, 1  ;;  %v513_v52 = vrot.slane %v479_v12, 1  ;;  %v514_v63 = vrot.slane %v481_v41, 1 }
  0x58   : > { %v559_v30 = vmul.f32 %v1806_v18, %v1467_v40  ;;  %v561_v57 = vmul.f32 %v1806_v18, %v1482_v45  ;;  %v587_v55 = vrot.slane %v555_v6, 2  ;;  %v635_v35 = vmul.f32 %v1811_v23, %v1467_v40 }
  0x59   : > { %v588_v5 = vrot.slane %v557_v31, 2  ;;  %v509_v38 = vsel %vm321_vm0, %v507_v25, %v508_v37  ;;  %v515_v62 = vsel %vm321_vm0, %v513_v52, %v514_v63  ;;  %v637_v34 = vmul.f32 %v1811_v23, %v1486_v47 }
  0x5a   : > { %v593_v49 = vrot.slane %v559_v30, 2  ;;  %v539_v0 = vadd.f32 %v509_v38, %v459_v8  ;;  %v541_v3 = vadd.f32 %v515_v62, %v461_v24  ;;  %v594_v10 = vrot.slane %v561_v57, 2 }
  0x5b   : > { %v589_v4 = vsel %vm402_vm1, %v587_v55, %v588_v5  ;;  %v659_v56 = vmul.f32 %v1816_v32, %v1467_v40  ;;  %v661_v7 = vmul.f32 %v1816_v32, %v1482_v45  ;;  %v663_v9 = vmul.f32 %v1816_v32, %v1486_v47 }
  0x5c   : > { %v665_v26 = vmul.f32 %v1816_v32, %v1523_v58  ;;  %v595_v13 = vsel %vm402_vm1, %v593_v49, %v594_v10  ;;  %v619_v19 = vadd.f32 %v589_v4, %v539_v0  ;;  %v739_v33 = vmul.f32 %v1843_v61, %v1467_v40 }
  0x5d   : > { %v741_v51 = vmul.f32 %v1843_v61, %v1482_v45  ;;  %v621_v44 = vadd.f32 %v595_v13, %v541_v3  ;;  %v691_v59 = vrot.slane %v659_v56, 1  ;;  %v692_v46 = vrot.slane %v661_v7, 1 }
  0x5e   : > { %v697_v60 = vrot.slane %v663_v9, 1  ;;  %v643_v42 = vadd.f32 %v635_v35, %v619_v19  ;;  %v698_v29 = vrot.slane %v665_v26, 1  ;;  %v743_v20 = vmul.f32 %v1843_v61, %v1486_v47 }
  0x5f   : > { %v745_v21 = vmul.f32 %v1843_v61, %v1523_v58  ;;  %v645_v53 = vadd.f32 %v637_v34, %v621_v44  ;;  %v693_v36 = vsel %vm321_vm0, %v691_v59, %v692_v46  ;;  %v771_v22 = vrot.slane %v739_v33, 2 }
  0x60   : > { %v772_v27 = vrot.slane %v741_v51, 2  ;;  %v699_v12 = vsel %vm321_vm0, %v697_v60, %v698_v29  ;;  %v723_v41 = vadd.f32 %v693_v36, %v643_v42  ;;  %v777_v6 = vrot.slane %v743_v20, 2 }
  0x61   : > { %v778_v8 = vrot.slane %v745_v21, 2  ;;  %v725_v24 = vadd.f32 %v699_v12, %v645_v53  ;;  %v277_v31 = vmul.f32 %v1490_v48, %v1467_v40  ;;  %v279_v37 = vmul.f32 %v1490_v48, %v1486_v47 }
  0x62   : > { %v773_v25 = vsel %vm402_vm1, %v771_v22, %v772_v27  ;;  %v297_v30 = vmul.f32 %v1498_v50, %v1467_v40  ;;  %v299_v57 = vmul.f32 %v1498_v50, %v1482_v45  ;;  %v301_v5 = vmul.f32 %v1498_v50, %v1486_v47 }
  0x63   : > { %v779_v52 = vsel %vm402_vm1, %v777_v6, %v778_v8  ;;  %v803_v63 = vadd.f32 %v773_v25, %v723_v41  ;;  %v303_v35 = vmul.f32 %v1498_v50, %v1523_v58  ;;  %v378_v38 = vmul.f32 %v1510_v54, %v1467_v40 }
  0x64   : > { %v805_v55 = vadd.f32 %v779_v52, %v725_v24  ;;  %v334_v62 = vrot.slane %v297_v30, 1  ;;  %v335_v49 = vrot.slane %v299_v57, 1  ;;  %v380_v34 = vmul.f32 %v1510_v54, %v1482_v45 }
  0x65   : > { %v823_v48 = vadd.f32 %v1668_v28, %v803_v63  ;;  %v340_v3 = vrot.slane %v301_v5, 1  ;;  %v341_v4 = vrot.slane %v303_v35, 1  ;;  %v382_v10 = vmul.f32 %v1510_v54, %v1486_v47 }
  0x66   : > { %v825_v0 = vadd.f32 %v1668_v28, %v805_v55  ;;  %v336_v50 = vsel %vm321_vm0, %v334_v62, %v335_v49  ;;  %v384_v40 = vmul.f32 %v1510_v54, %v1523_v58  ;;  %v415_v7 = vrot.slane %v378_v38, 2 }
  0x67   : > { %v831_v56 = vmax.f32 %v823_v48, 0.0  ;;  %v342_v26 = vsel %vm321_vm0, %v340_v3, %v341_v4  ;;  %v358_v13 = vadd.f32 %v336_v50, %v277_v31  ;;  %v416_v19 = vrot.slane %v380_v34, 2 }
  0x68   : > { %v833_v9 = vmax.f32 %v825_v0, 0.0  ;;  %v360_v45 = vadd.f32 %v342_v26, %v279_v37  ;;  %v421_v33 = vrot.slane %v382_v10, 2  ;;  %v422_v51 = vrot.slane %v384_v40, 2 }
  0x69   : > { %v455_v44 = vmul.f32 %v1795_v2, %v1486_v47  ;;  %v417_v46 = vsel %vm402_vm1, %v415_v7, %v416_v19  ;;  %v457_v60 = vmul.f32 %v1795_v2, %v1576_v1  ;;  %v483_v54 = vmul.f32 %v1800_v15, %v1486_v47 }
  0x6a   : > { %v839_v59 = vpack.c.bf16 %v833_v9, %v831_v56  ;;  %v423_v42 = vsel %vm402_vm1, %v421_v33, %v422_v51  ;;  %v439_v29 = vadd.f32 %v417_v46, %v358_v13  ;;  %v485_v20 = vmul.f32 %v1800_v15, %v1523_v58 }
  0x6b   : > { %v487_v21 = vmul.f32 %v1800_v15, %v1576_v1  ;;  %v441_v53 = vadd.f32 %v423_v42, %v360_v45  ;;  %v489_v36 = vmul.f32 %v1800_v15, %v1610_v39  ;;  %v519_v22 = vrot.slane %v483_v54, 1  ;;  %v875_v42 = vld [vmem:[%s1965_s4] sm:$0x3] }
  0x6c   : > { %1080 = vmatmul.mubr.bf16.vlgmr.msra.gmra.mrb[0].mxu0 %v839_v59  ;;  %v563_v2 = vmul.f32 %v1806_v18, %v1486_v47  ;;  %v463_v27 = vadd.f32 %v455_v44, %v439_v29  ;;  %v520_v12 = vrot.slane %v485_v20, 1  ;;  %v565_v6 = vmul.f32 %v1806_v18, %v1523_v58 }
  0x6d   : > { %v525_v41 = vrot.slane %v487_v21, 1  ;;  %v465_v8 = vadd.f32 %v457_v60, %v441_v53  ;;  %v526_v24 = vrot.slane %v489_v36, 1  ;;  %v567_v25 = vmul.f32 %v1806_v18, %v1576_v1 }
  0x6e   : > { %v569_v31 = vmul.f32 %v1806_v18, %v1610_v39  ;;  %v521_v15 = vsel %vm321_vm0, %v519_v22, %v520_v12  ;;  %v599_v37 = vrot.slane %v563_v2, 2  ;;  %v600_v52 = vrot.slane %v565_v6, 2 }
  0x6f   : > { %v639_v47 = vmul.f32 %v1811_v23, %v1576_v1  ;;  %v527_v63 = vsel %vm321_vm0, %v525_v41, %v526_v24  ;;  %v543_v30 = vadd.f32 %v521_v15, %v463_v27  ;;  %v605_v57 = vrot.slane %v567_v25, 2 }
  0x70   : > { %v606_v58 = vrot.slane %v569_v31, 2  ;;  %v545_v55 = vadd.f32 %v527_v63, %v465_v8  ;;  %v601_v5 = vsel %vm402_vm1, %v599_v37, %v600_v52  ;;  %v641_v35 = vmul.f32 %v1811_v23, %v1664_v11 }
  0x71   : > { %v667_v18 = vmul.f32 %v1816_v32, %v1576_v1  ;;  %v623_v48 = vadd.f32 %v601_v5, %v543_v30  ;;  %v669_v62 = vmul.f32 %v1816_v32, %v1610_v39  ;;  %v671_v49 = vmul.f32 %v1816_v32, %v1664_v11 }
  0x72   : > { %v607_v38 = vsel %vm402_vm1, %v605_v57, %v606_v58  ;;  %v673_v0 = vmul.f32 %v1816_v32, %v259_v17  ;;  %v747_v23 = vmul.f32 %v1843_v61, %v1576_v1  ;;  %v749_v50 = vmul.f32 %v1843_v61, %v1610_v39 }
  0x73   : > { %v625_v34 = vadd.f32 %v607_v38, %v545_v55  ;;  %v703_v3 = vrot.slane %v667_v18, 1  ;;  %v647_v4 = vadd.f32 %v639_v47, %v623_v48  ;;  %v704_v10 = vrot.slane %v669_v62, 1 }
  0x74   : > { %v709_v56 = vrot.slane %v671_v49, 1  ;;  %v710_v7 = vrot.slane %v673_v0, 1  ;;  %v751_v9 = vmul.f32 %v1843_v61, %v1664_v11  ;;  %v753_v26 = vmul.f32 %v1843_v61, %v259_v17 }
  0x75   : > { %v649_v40 = vadd.f32 %v641_v35, %v625_v34  ;;  %v705_v32 = vsel %vm321_vm0, %v703_v3, %v704_v10  ;;  %v783_v13 = vrot.slane %v747_v23, 2  ;;  %v784_v19 = vrot.slane %v749_v50, 2 }
  0x76   : > { %v711_v1 = vsel %vm321_vm0, %v709_v56, %v710_v7  ;;  %v727_v45 = vadd.f32 %v705_v32, %v647_v4  ;;  %v789_v33 = vrot.slane %v751_v9, 2  ;;  %v790_v51 = vrot.slane %v753_v26, 2 }
  0x77   : > { %v729_v44 = vadd.f32 %v711_v1, %v649_v40  ;;  %v785_v39 = vsel %vm402_vm1, %v783_v13, %v784_v19  ;;  %v880_v29 = vrot.slane %v875_v42, %v1426_v14  ;;  %v884_v20 = vrot.slane %v875_v42, %v1432_v16 }
  0x78   : > { %v791_v59 = vsel %vm402_vm1, %v789_v33, %v790_v51  ;;  %v807_v11 = vadd.f32 %v785_v39, %v727_v45 }
  0x79   : > { %v809_v46 = vadd.f32 %v791_v59, %v729_v44 }
  0x7a   : > { %v827_v43 = vadd.f32 %v1668_v28, %v807_v11 }
  0x7b   : > { %v829_v17 = vadd.f32 %v1668_v28, %v809_v46 }
  0x7c   : > { %v835_v61 = vmax.f32 %v827_v43, 0.0 }
  0x7d   : > { %v837_v60 = vmax.f32 %v829_v17, 0.0 }
  0x7f   : > { %v841_v54 = vpack.c.bf16 %v837_v60, %v835_v61 }
  0x81   : > { %1090 = vmatmul.mubr.bf16.vlgmr.msra.gmra.mrb[0].mxu1 %v841_v54 }
 0x13f   : > { %v1081_v21 = vpop.f32.mrb[0].mxu0 }
 0x140   : > { %v1082_v53 = vadd.f32 %v1081_v21, %v880_v29  ;;  %v1083_v36 = vpop.f32.mrb[1].mxu0 }
 0x141   : > { %v1084_v22 = vadd.f32 %v1083_v36, %v884_v20  ;;  %v1085_v2 = vpop.f32.mrb[2].mxu0 }
 0x142   : > { %v1100_v27 = vmax.f32 %v1082_v53, 0.0  ;;  %v1086_v28 = vadd.f32 %v1085_v2, %v880_v29  ;;  %v1087_v12 = vpop.f32.mrb[3].mxu0 }
 0x143   : > { %v1101_v41 = vmax.f32 %v1084_v22, 0.0  ;;  %v1088_v6 = vadd.f32 %v1087_v12, %v884_v20 }
 0x144   : > { %v1102_v8 = vmax.f32 %v1086_v28, 0.0 }
 0x145   : > { %v1240_v24 = vpack.c.bf16 %v1101_v41, %v1100_v27  ;;  %v1103_v14 = vmax.f32 %v1088_v6, 0.0 }
 0x147   : > { %1132 = vst [vmem:[%s224_s10] sm:$0xff] %v1240_v24  ;;  %v1241_v16 = vpack.c.bf16 %v1103_v14, %v1102_v8 }
 0x149   : > { %1133 = vst [vmem:[%s224_s10 + $0x8] sm:$0xff] %v1241_v16 }
 0x154   : > { %v1091_v25 = vpop.f32.mrb[0].mxu1 }
 0x155   : > { %v1092_v31 = vadd.f32 %v1091_v25, %v880_v29  ;;  %v1093_v15 = vpop.f32.mrb[1].mxu1 }
 0x156   : > { %v1094_v37 = vadd.f32 %v1093_v15, %v884_v20  ;;  %v1095_v52 = vpop.f32.mrb[2].mxu1 }
 0x157   : > { %v1104_v47 = vmax.f32 %v1092_v31, 0.0  ;;  %v1096_v63 = vadd.f32 %v1095_v52, %v880_v29  ;;  %v1097_v30 = vpop.f32.mrb[3].mxu1 }
 0x158   : > { %v1105_v57 = vmax.f32 %v1094_v37, 0.0  ;;  %v1098_v58 = vadd.f32 %v1097_v30, %v884_v20 }
 0x159   : > { %v1106_v55 = vmax.f32 %v1096_v63, 0.0 }
 0x15a   : > { %v1242_v5 = vpack.c.bf16 %v1105_v57, %v1104_v47  ;;  %v1107_v35 = vmax.f32 %v1098_v58, 0.0 }
 0x15c   : > { %1134 = vst [vmem:[%s224_s10 + $0x10] sm:$0xff] %v1242_v5  ;;  %v1243_v18 = vpack.c.bf16 %v1107_v35, %v1106_v55 }
 0x15e   : > { %1135 = vst [vmem:[%s224_s10 + $0x18] sm:$0xff] %v1243_v18 }
 0x15f PF: > { %s15_s18 = sadd.s32 1, %s1339_s18  }
 0x160   : > { %p12_p4 = scmp.ge.s32.totalorder %s15_s18, 4  }
 0x162   :  { %14 = sbr.rel (!%p12_p4) target bundleno = 1 (0x1), region = 70 }

// kernel: mobilenet_forward.13
= control target key start
LH: loop header
LB: loop body
LE: loop exit
PB: predicated region body
PF: predicated region fallthrough
CT: control target
= control target key end

     0   :  { %s3678_s24 = smov 0   ;;  %s5018_s0 = inlined_call_operand.vmem [shape: bf16[2,12,9,256], index: 0, kind: input, shape index: {}]   ;;  %s5019_s1 = inlined_call_operand.vmem [shape: f32[9,256], index: 1, kind: input, shape index: {}]   ;;  %s5020_s2 = inlined_call_operand.vmem [shape: f32[1,256], index: 2, kind: input, shape index: {}]   ;;  %s5021_s3 = inlined_call_operand.vmem [shape: bf16[256,512], index: 3, kind: input, shape index: {}]   ;;  %s5022_s4 = inlined_call_operand.vmem [shape: f32[1,512], index: 4, kind: input, shape index: {}]   ;;  %s5023_s5 = inlined_call_operand.vmem [shape: bf16[512,1024], index: 5, kind: input, shape index: {}]   ;;  %s5024_s6 = inlined_call_operand.vmem [shape: f32[1,1024], index: 6, kind: input, shape index: {}]   ;;  %s5025_s7 = inlined_call_operand.vmem [shape: f32[2,1,1024], index: 7, kind: output, shape index: {}]  }
   0x1 LB: > { %s3168_s25 = sadd.s32 4294967295, %s3635_s24   ;;  %p3172_p0 = scmp.ge.s32.totalorder %s3635_s24, 1  ;;  %s3635_s24 = sphi %s3678_s24, %s17_s24  }
   0x2   : > { %p237_p1 = scmp.lt.s32.totalorder %s3635_s24, 3 }
   0x4   : > { %p238_p2 = pnand %p3172_p0, %p237_p1 }
   0x5   : > { %v3533_v0 = vld [vmem:[%s5021_s3 + $0x4] ss:$16 sps:$4 sm:$0xff] (!%p238_p2)   ;;  %v3535_v1 = vld [vmem:[%s5021_s3] ss:$16 sps:$4 sm:$0xff] (!%p238_p2)   ;;  %p268_p3 = scmp.lt.s32.totalorder (!%p238_p2), %s3168_s25, 1  ;;  %v326_v9 = vlaneseq (!%p238_p2)  ;;  %vm378_vm0 = vcmask (!%p238_p2), 1046528  }
   0x6   : > { %241 = sbr.rel (%p238_p2) target bundleno = 741 (0x2e5), region = 48  ;;  %979 = vmatprep.subr.bf16.mxu0 (!%p238_p2), %v3533_v0  ;;  %v3536_v2 = vld [vmem:[%s5021_s3 + $0x24] ss:$16 sps:$4 sm:$0xff] (!%p238_p2)   ;;  %v3538_v3 = vld [vmem:[%s5021_s3 + $0x20] ss:$16 sps:$4 sm:$0xff] (!%p238_p2)  }
   0x7   : > { %980 = vmatpush1.bf16.msra.mxu0 (!%p238_p2), %v3535_v1  ;;  %v3539_v4 = vld [vmem:[%s5021_s3 + $0x44] ss:$16 sps:$4 sm:$0xff] (!%p238_p2)   ;;  %v3541_v5 = vld [vmem:[%s5021_s3 + $0x40] ss:$16 sps:$4 sm:$0xff] (!%p238_p2)   ;;  %v3722_v12 = vshrl.u32 (!%p238_p2), %v326_v9, 7 }
   0x8   : > { %981 = vmatprep.subr.bf16.mxu0 (!%p238_p2), %v3536_v2  ;;  %v3542_v6 = vld [vmem:[%s5021_s3 + $0x64] ss:$16 sps:$4 sm:$0xff] (!%p238_p2)   ;;  %v3544_v7 = vld [vmem:[%s5021_s3 + $0x60] ss:$16 sps:$4 sm:$0xff] (!%p238_p2)   ;;  %v3575_v14 = vld [vmem:[%s5021_s3 + $0xc] ss:$16 sps:$4 sm:$0xff] (!%p238_p2)  }
   0x9   : > { %v3545_v8 = vld [vmem:[%s5021_s3 + $0x84] ss:$16 sps:$4 sm:$0xff] (!%p238_p2)   ;;  %v3547_v10 = vld [vmem:[%s5021_s3 + $0x80] ss:$16 sps:$4 sm:$0xff] (!%p238_p2)   ;;  %v3579_v16 = vld [vmem:[%s5021_s3 + $0x8] ss:$16 sps:$4 sm:$0xff] (!%p238_p2)   ;;  %1022 = vmatprep.subr.bf16.mxu1 (!%p238_p2), %v3575_v14 }
   0xa   : > { %v3548_v11 = vld [vmem:[%s5021_s3 + $0xa4] ss:$16 sps:$4 sm:$0xff] (!%p238_p2)   ;;  %v3550_v13 = vld [vmem:[%s5021_s3 + $0xa0] ss:$16 sps:$4 sm:$0xff] (!%p238_p2)   ;;  %v3742_v17 = vsub.s32 (!%p238_p2), 0, %v3722_v12  ;;  %v3745_v18 = vsub.s32 (!%p238_p2), 1, %v3722_v12  ;;  %1023 = vmatpush1.bf16.msra.mxu1 (!%p238_p2), %v3579_v16 }
   0xb   : > { %982 = vmatpush1.bf16.msra.mxu0 (!%p238_p2), %v3538_v3  ;;  %v3551_v15 = vld [vmem:[%s5021_s3 + $0xc4] ss:$16 sps:$4 sm:$0xff] (!%p238_p2)   ;;  %v3748_v19 = vsub.s32 (!%p238_p2), 2, %v3722_v12  ;;  %v3581_v20 = vld [vmem:[%s5021_s3 + $0x2c] ss:$16 sps:$4 sm:$0xff] (!%p238_p2)   ;;  %v3754_v21 = vsub.s32 (!%p238_p2), 3, %v3722_v12 }
   0xc   : > { %983 = vmatprep.subr.bf16.mxu0 (!%p238_p2), %v3539_v4  ;;  %v3757_v22 = vsub.s32 (!%p238_p2), 4, %v3722_v12  ;;  %v3553_v23 = vld [vmem:[%s5021_s3 + $0xc0] ss:$16 sps:$4 sm:$0xff] (!%p238_p2)   ;;  %v3554_v24 = vld [vmem:[%s5021_s3 + $0xe4] ss:$16 sps:$4 sm:$0xff] (!%p238_p2)   ;;  %1024 = vmatprep.subr.bf16.mxu1 (!%p238_p2), %v3581_v20  ;;  %v3776_v29 = vsub.s32 (!%p238_p2), 5, %v3722_v12 }
   0xd   : > { %s5050_s25 = smov (!%p268_p3, %s3168_s25), 1  ;;  %v3585_v25 = vld [vmem:[%s5021_s3 + $0x28] ss:$16 sps:$4 sm:$0xff]   ;;  %v3779_v30 = vsub.s32 6, %v3722_v12  ;;  %v3556_v31 = vld [vmem:[%s5021_s3 + $0xe0] ss:$16 sps:$4 sm:$0xff]  }
   0xe   : > { %s3523_s27 = smul.u32 192, %s5050_s25  ;;  %v3797_v38 = vsub.s32 7, %v3722_v12  ;;  %1025 = vmatpush1.bf16.msra.mxu1 %v3585_v25  ;;  %v3557_v53 = vld [vmem:[%s5021_s3 + $0x104] ss:$16 sps:$4 sm:$0xff]   ;;  %v3855_v2 = vld [vmem:[%s5019_s1 + $0x8] sm:$0xff]  ;;  %s3174_s10 = sshll.u32 %s5050_s25, 3 }
   0xf   : > { %984 = vmatpush1.bf16.msra.mxu0 %v3541_v5  ;;  %v3850_v1 = vld [vmem:[%s5019_s1] sm:$0xff]  ;;  %v3589_v14 = vld [vmem:[%s5021_s3 + $0x48] ss:$16 sps:$4 sm:$0xff]   ;;  %s276_s13 = scalar_lea.vmem %s5025_s7, %s3174_s10 }
  0x10   : > { %985 = vmatprep.subr.bf16.mxu0 %v3542_v6  ;;  %s3739_s15 = scalar_lea.vmem %s5018_s0, %s3523_s27  ;;  %v341_v25 = vrot.slane %v3850_v1, %v3745_v18  ;;  %v3592_v4 = vld [vmem:[%s5021_s3 + $0x68] ss:$16 sps:$4 sm:$0xff]  }
  0x11   : > { %v3769_v26 = vld [vmem:[%s3739_s15] sm:$0xff]  ;;  %v3772_v27 = vld [vmem:[%s3739_s15 + $0x8] sm:$0x11]  ;;  %v279_v28 = vld [vmem:[%s3739_s15 + $0x10] sm:$0xff] }
  0x12   : > { %v3785_v32 = vld [vmem:[%s3739_s15 + $0x18] sm:$0x11]  ;;  %v3788_v33 = vld [vmem:[%s3739_s15 + $0x20] sm:$0xff]  ;;  %v3791_v34 = vld [vmem:[%s3739_s15 + $0x28] sm:$0x11]  ;;  %v5026_v35 = vunpack.c.l.bf16 %v3769_v26  ;;  %v293_v36 = vunpack.c.h.bf16 %v3769_v26  ;;  %v295_v42 = vunpack.c.h.bf16 %v3772_v27  ;;  %v3809_v43 = vunpack.c.l.bf16 %v279_v28 }
  0x13   : > { %986 = vmatpush1.bf16.msra.mxu0 %v3544_v7  ;;  %v3800_v39 = vld [vmem:[%s3739_s15 + $0x30] sm:$0xff]  ;;  %v3803_v40 = vld [vmem:[%s3739_s15 + $0x40] sm:$0xff]  ;;  %v3811_v44 = vunpack.c.h.bf16 %v279_v28  ;;  %v298_v45 = vunpack.c.l.bf16 %v3785_v32  ;;  %v3818_v47 = vld [vmem:[%s3739_s15 + $0x68] sm:$0x11]  ;;  %v299_v49 = vunpack.c.h.bf16 %v3785_v32  ;;  %v301_v51 = vunpack.c.h.bf16 %v3788_v33 }
  0x14   : > { %987 = vmatprep.subr.bf16.mxu0 %v3545_v8  ;;  %v3806_v41 = vld [vmem:[%s3739_s15 + $0x50] sm:$0xff]  ;;  %v3815_v46 = vld [vmem:[%s3739_s15 + $0x60] sm:$0xff]  ;;  %v3831_v54 = vld [vmem:[%s3739_s15 + $0x78] sm:$0x11]  ;;  %v304_v57 = vunpack.c.l.bf16 %v3800_v39  ;;  %v305_v58 = vunpack.c.h.bf16 %v3800_v39  ;;  %v306_v59 = vunpack.c.l.bf16 %v3803_v40  ;;  %v5027_v61 = vunpack.c.h.bf16 %v3803_v40 }
  0x15   : > { %v3821_v48 = vld [vmem:[%s3739_s15 + $0x70] sm:$0xff]  ;;  %v3841_v60 = vld [vmem:[%s3739_s15 + $0xa0] sm:$0xff]  ;;  %v311_v3 = vunpack.c.h.bf16 %v3815_v46  ;;  %v313_v5 = vunpack.c.h.bf16 %v3818_v47  ;;  %v345_v28 = vrot.slane %v3855_v2, %v3745_v18  ;;  %v361_v39 = vrot.slane %v3855_v2, %v3748_v19  ;;  %v3614_v32 = vld [vmem:[%s5021_s3 + $0x16c] ss:$16 sps:$4 sm:$0xff]  }
  0x16   : > { %v3834_v55 = vld [vmem:[%s3739_s15 + $0x90] sm:$0xff]  ;;  %v315_v8 = vunpack.c.h.bf16 %v3821_v48  ;;  %v321_v52 = vunpack.c.h.bf16 %v3841_v60 }
  0x17   : > { %988 = vmatpush1.bf16.msra.mxu0 %v3547_v10  ;;  %v3559_v7 = vld [vmem:[%s5021_s3 + $0x100] ss:$16 sps:$4 sm:$0xff]   ;;  %v317_v10 = vunpack.c.h.bf16 %v3831_v54  ;;  %v319_v16 = vunpack.c.h.bf16 %v3834_v55  ;;  %v347_v6 = vmul.f32 %v345_v28, %v305_v58  ;;  %v349_v0 = vmul.f32 %v345_v28, %v5027_v61 }
  0x18   : > { %989 = vmatprep.subr.bf16.mxu0 %v3548_v11  ;;  %v346_v11 = vmul.f32 %v341_v25, %v304_v57  ;;  %v367_v58 = vmul.f32 %v361_v39, %v3811_v44  ;;  %v348_v28 = vmul.f32 %v341_v25, %v306_v59  ;;  %v369_v56 = vmul.f32 %v361_v39, %v299_v49 }
  0x1b   : > { %990 = vmatpush1.bf16.msra.mxu0 %v3550_v13  ;;  %v3587_v13 = vld [vmem:[%s5021_s3 + $0x4c] ss:$16 sps:$4 sm:$0xff]  }
  0x1c   : > { %991 = vmatprep.subr.bf16.mxu0 %v3551_v15  ;;  %v3560_v15 = vld [vmem:[%s5021_s3 + $0x124] ss:$16 sps:$4 sm:$0xff]   ;;  %1026 = vmatprep.subr.bf16.mxu1 %v3587_v13  ;;  %v3562_v13 = vld [vmem:[%s5021_s3 + $0x120] ss:$16 sps:$4 sm:$0xff]  }
  0x1d   : > { %1027 = vmatpush1.bf16.msra.mxu1 %v3589_v14  ;;  %v3593_v14 = vld [vmem:[%s5021_s3 + $0x8c] ss:$16 sps:$4 sm:$0xff]  }
  0x1f   : > { %992 = vmatpush1.bf16.msra.mxu0 %v3553_v23  ;;  %v329_v23 = vrot.slane %v3850_v1, %v3742_v17 }
  0x20   : > { %993 = vmatprep.subr.bf16.mxu0 %v3554_v24  ;;  %v333_v24 = vrot.slane %v3855_v2, %v3742_v17 }
  0x21   : > { %v334_v62 = vmul.f32 %v329_v23, %v5026_v35  ;;  %v336_v20 = vmul.f32 %v329_v23, %v3809_v43  ;;  %v365_v23 = vmul.f32 %v361_v39, %v295_v42 }
  0x22   : > { %v335_v50 = vmul.f32 %v333_v24, %v293_v36  ;;  %v337_v9 = vmul.f32 %v333_v24, %v3811_v44  ;;  %v363_v24 = vmul.f32 %v361_v39, %v293_v36  ;;  %v3565_v36 = vld [vmem:[%s5021_s3 + $0x140] ss:$16 sps:$4 sm:$0xff]   ;;  %v389_v39 = vrot.slane %v369_v56, 1 }
  0x23   : > { %994 = vmatpush1.bf16.msra.mxu0 %v3556_v31  ;;  %v3889_v31 = vrot.slane %v3850_v1, %v3748_v19  ;;  %v3926_v37 = vadd.f32 %v346_v11, %v334_v62  ;;  %v383_v61 = vrot.slane %v365_v23, 1  ;;  %v3566_v62 = vld [vmem:[%s5021_s3 + $0x164] ss:$16 sps:$4 sm:$0xff]   ;;  %v422_v11 = vrot.slane %v3855_v2, %v3757_v22 }
  0x24   : > { %995 = vmatprep.subr.bf16.mxu0 %v3557_v53  ;;  %v3590_v53 = vld [vmem:[%s5021_s3 + $0x6c] ss:$16 sps:$4 sm:$0xff]   ;;  %v353_v35 = vadd.f32 %v349_v0, %v337_v9  ;;  %v382_v63 = vrot.slane %v363_v24, 1  ;;  %v406_v9 = vrot.slane %v3855_v2, %v3754_v21 }
  0x25   : > { %v366_v57 = vmul.f32 %v3889_v31, %v3809_v43  ;;  %1028 = vmatprep.subr.bf16.mxu1 %v3590_v53  ;;  %v368_v42 = vmul.f32 %v3889_v31, %v298_v45  ;;  %v438_v53 = vrot.slane %v3855_v2, %v3776_v29 }
  0x26   : > { %1029 = vmatpush1.bf16.msra.mxu1 %v3592_v4  ;;  %v384_v4 = vsel %vm378_vm0, %v382_v63, %v383_v61  ;;  %v408_v23 = vmul.f32 %v406_v9, %v311_v3 }
  0x27   : > { %996 = vmatpush1.bf16.msra.mxu0 %v3559_v7  ;;  %v3563_v7 = vld [vmem:[%s5021_s3 + $0x144] ss:$16 sps:$4 sm:$0xff]   ;;  %v385_v0 = vrot.slane %v366_v57, 1  ;;  %1030 = vmatprep.subr.bf16.mxu1 %v3593_v14  ;;  %v386_v25 = vrot.slane %v368_v42, 1  ;;  %v410_v57 = vmul.f32 %v406_v9, %v315_v8  ;;  %v424_v14 = vmul.f32 %v422_v11, %v319_v16 }
  0x28   : > { %997 = vmatprep.subr.bf16.mxu0 %v3560_v15  ;;  %v351_v15 = vadd.f32 %v347_v6, %v335_v50  ;;  %v3595_v50 = vld [vmem:[%s5021_s3 + $0x88] ss:$16 sps:$4 sm:$0xff]   ;;  %v388_v6 = vrot.slane %v367_v58, 1  ;;  %v440_v63 = vmul.f32 %v438_v53, %v311_v3  ;;  %v3569_v3 = vld [vmem:[%s5021_s3 + $0x184] ss:$16 sps:$4 sm:$0xff]  }
  0x29   : > { %v387_v61 = vsel %vm378_vm0, %v385_v0, %v386_v25  ;;  %v3598_v58 = vld [vmem:[%s5021_s3 + $0xa8] ss:$16 sps:$4 sm:$0xff]  }
  0x2a   : > { %v396_v24 = vadd.f32 %v384_v4, %v351_v15  ;;  %v390_v56 = vsel %vm378_vm0, %v388_v6, %v389_v39  ;;  %1031 = vmatpush1.bf16.msra.mxu1 %v3595_v50  ;;  %v3568_v15 = vld [vmem:[%s5021_s3 + $0x160] ss:$16 sps:$4 sm:$0xff]   ;;  %v444_v50 = vmul.f32 %v438_v53, %v315_v8  ;;  %v458_v0 = vrot.slane %v440_v63, 1 }
  0x2b   : > { %998 = vmatpush1.bf16.msra.mxu0 %v3562_v13  ;;  %v3596_v13 = vld [vmem:[%s5021_s3 + $0xac] ss:$16 sps:$4 sm:$0xff]   ;;  %v398_v42 = vadd.f32 %v390_v56, %v353_v35  ;;  %v482_v35 = vrot.slane %v3855_v2, %v3779_v30  ;;  %v498_v8 = vrot.slane %v3855_v2, %v3797_v38 }
  0x2c   : > { %999 = vmatprep.subr.bf16.mxu0 %v3563_v7  ;;  %v352_v7 = vadd.f32 %v348_v28, %v336_v20  ;;  %v412_v16 = vadd.f32 %v408_v23, %v396_v24  ;;  %v426_v20 = vmul.f32 %v422_v11, %v321_v52  ;;  %v442_v28 = vmul.f32 %v438_v53, %v313_v5  ;;  %v3571_v52 = vld [vmem:[%s5021_s3 + $0x180] ss:$16 sps:$4 sm:$0xff]   ;;  %v3176_v5 = vld [vmem:[%s5019_s1 + $0x18] ss:$0 sm:$0xff] }
  0x2d   : > { %1032 = vmatprep.subr.bf16.mxu1 %v3596_v13  ;;  %v464_v4 = vrot.slane %v444_v50, 1  ;;  %v484_v39 = vmul.f32 %v482_v35, %v3811_v44  ;;  %v486_v2 = vmul.f32 %v482_v35, %v301_v51  ;;  %v5028_v23 = vunpack.c.h.bf16 %v3803_v40 }
  0x2e   : > { %v428_v6 = vadd.f32 %v424_v14, %v412_v16  ;;  %v459_v9 = vrot.slane %v442_v28, 1  ;;  %v3988_v11 = vadd.f32 %v387_v61, %v352_v7  ;;  %1033 = vmatpush1.bf16.msra.mxu1 %v3598_v58  ;;  %v4002_v14 = vld [vmem:[%s5020_s2] sm:$0x3]  ;;  %v3602_v7 = vld [vmem:[%s5021_s3 + $0xec] ss:$16 sps:$4 sm:$0xff]   ;;  %v516_v58 = vmul.f32 %v3176_v5, %v3811_v44 }
  0x2f   : > { %1000 = vmatpush1.bf16.msra.mxu0 %v3565_v36  ;;  %v446_v36 = vmul.f32 %v438_v53, %v317_v10  ;;  %v3599_v10 = vld [vmem:[%s5021_s3 + $0xcc] ss:$16 sps:$4 sm:$0xff]   ;;  %v3601_v53 = vld [vmem:[%s5021_s3 + $0xc8] ss:$16 sps:$4 sm:$0xff]   ;;  %v3572_v61 = vld [vmem:[%s5021_s3 + $0x1a4] ss:$16 sps:$4 sm:$0xff]   ;;  %v5029_v16 = vunpack.c.h.bf16 %v3806_v41  ;;  %v520_v28 = vmul.f32 %v3176_v5, %v301_v51  ;;  %v560_v44 = vrot.slane %v4002_v14, %v3745_v18 }
  0x30   : > { %1001 = vmatprep.subr.bf16.mxu0 %v3566_v62  ;;  %v414_v62 = vadd.f32 %v410_v57, %v398_v42  ;;  %v460_v24 = vsel %vm378_vm0, %v458_v0, %v459_v9  ;;  %v500_v57 = vmul.f32 %v498_v8, %v5028_v23  ;;  %1034 = vmatprep.subr.bf16.mxu1 %v3599_v10  ;;  %v534_v0 = vrot.slane %v516_v58, 1  ;;  %v3574_v51 = vld [vmem:[%s5021_s3 + $0x1a0] ss:$16 sps:$4 sm:$0xff]   ;;  %v3577_v10 = vld [vmem:[%s5021_s3 + $0x1c4] ss:$16 sps:$4 sm:$0xff]  }
  0x31   : > { %v465_v25 = vrot.slane %v446_v36, 1  ;;  %v472_v63 = vadd.f32 %v460_v24, %v428_v6  ;;  %v540_v6 = vrot.slane %v520_v28, 1  ;;  %v5031_v9 = vunpack.c.l.bf16 %v3769_v26  ;;  %v3605_v23 = vld [vmem:[%s5021_s3 + $0x10c] ss:$16 sps:$4 sm:$0xff]   ;;  %v3580_v58 = vld [vmem:[%s5021_s3 + $0x1c0] ss:$16 sps:$4 sm:$0xff]  }
  0x32   : > { %v430_v13 = vadd.f32 %v426_v20, %v414_v62  ;;  %v502_v20 = vmul.f32 %v498_v8, %v5029_v16  ;;  %1035 = vmatpush1.bf16.msra.mxu1 %v3601_v53  ;;  %v402_v53 = vrot.slane %v3850_v1, %v3754_v21 }
  0x33   : > { %1002 = vmatpush1.bf16.msra.mxu0 %v3568_v15  ;;  %v466_v56 = vsel %vm378_vm0, %v464_v4, %v465_v25  ;;  %v518_v15 = vmul.f32 %v3176_v5, %v299_v49  ;;  %v488_v36 = vadd.f32 %v484_v39, %v472_v63  ;;  %v3604_v49 = vld [vmem:[%s5021_s3 + $0xe8] ss:$16 sps:$4 sm:$0xff]   ;;  %v362_v8 = vmul.f32 %v3889_v31, %v5031_v9 }
  0x34   : > { %1003 = vmatprep.subr.bf16.mxu0 %v3569_v3  ;;  %v474_v42 = vadd.f32 %v466_v56, %v430_v13  ;;  %v5030_v3 = vunpack.c.h.bf16 %v3791_v34  ;;  %1036 = vmatprep.subr.bf16.mxu1 %v3602_v7  ;;  %v5032_v25 = vunpack.c.l.bf16 %v3772_v27  ;;  %v5033_v27 = vunpack.c.l.bf16 %v3815_v46  ;;  %v3607_v63 = vld [vmem:[%s5021_s3 + $0x108] ss:$16 sps:$4 sm:$0xff]  }
  0x35   : > { %v535_v35 = vrot.slane %v518_v15, 1  ;;  %v504_v4 = vadd.f32 %v500_v57, %v488_v36  ;;  %v379_v24 = vrot.slane %v362_v8, 1  ;;  %v3583_v36 = vld [vmem:[%s5021_s3 + $0x1e4] ss:$16 sps:$4 sm:$0xff]   ;;  %v3586_v8 = vld [vmem:[%s5021_s3 + $0x1e0] ss:$16 sps:$4 sm:$0xff]  }
  0x36   : > { %v522_v50 = vmul.f32 %v3176_v5, %v5030_v3  ;;  %v490_v62 = vadd.f32 %v486_v2, %v474_v42  ;;  %v364_v39 = vmul.f32 %v3889_v31, %v5032_v25  ;;  %v418_v2 = vrot.slane %v3850_v1, %v3757_v22  ;;  %1037 = vmatpush1.bf16.msra.mxu1 %v3604_v49 }
  0x37   : > { %1004 = vmatpush1.bf16.msra.mxu0 %v3571_v52  ;;  %v536_v52 = vsel %vm378_vm0, %v534_v0, %v535_v35  ;;  %v5034_v31 = vunpack.c.l.bf16 %v3821_v48  ;;  %v5035_v42 = vunpack.c.l.bf16 %v3834_v55  ;;  %v434_v3 = vrot.slane %v3850_v1, %v3776_v29  ;;  %1038 = vmatprep.subr.bf16.mxu1 %v3605_v23  ;;  %v3611_v23 = vld [vmem:[%s5021_s3 + $0x14c] ss:$16 sps:$4 sm:$0xff]  }
  0x38   : > { %v541_v5 = vrot.slane %v522_v50, 1  ;;  %1005 = vmatprep.subr.bf16.mxu0 %v3572_v61  ;;  %v506_v13 = vadd.f32 %v502_v20, %v490_v62  ;;  %v548_v57 = vadd.f32 %v536_v52, %v504_v4  ;;  %v380_v7 = vrot.slane %v364_v39, 1  ;;  %v3608_v50 = vld [vmem:[%s5021_s3 + $0x12c] ss:$16 sps:$4 sm:$0xff]  }
  0x39   : > { %v407_v61 = vmul.f32 %v402_v53, %v5033_v27  ;;  %v409_v56 = vmul.f32 %v402_v53, %v5034_v31  ;;  %v423_v16 = vmul.f32 %v418_v2, %v5035_v42  ;;  %v5036_v20 = vunpack.c.l.bf16 %v3841_v60  ;;  %v3613_v42 = vld [vmem:[%s5021_s3 + $0x148] ss:$16 sps:$4 sm:$0xff]  }
  0x3a   : > { %v542_v26 = vsel %vm378_vm0, %v540_v6, %v541_v5  ;;  %v564_v0 = vadd.f32 %v560_v44, %v548_v57  ;;  %v381_v35 = vsel %vm378_vm0, %v379_v24, %v380_v7  ;;  %v478_v60 = vrot.slane %v3850_v1, %v3779_v30  ;;  %1039 = vmatpush1.bf16.msra.mxu1 %v3607_v63 }
  0x3b   : > { %1006 = vmatpush1.bf16.msra.mxu0 %v3574_v51  ;;  %v550_v15 = vadd.f32 %v542_v26, %v506_v13  ;;  %v425_v28 = vmul.f32 %v418_v2, %v5036_v20  ;;  %v413_v55 = vadd.f32 %v409_v56, %v3988_v11  ;;  %v395_v51 = vadd.f32 %v381_v35, %v3926_v37  ;;  %v3610_v37 = vld [vmem:[%s5021_s3 + $0x128] ss:$16 sps:$4 sm:$0xff]  }
  0x3c   : > { %1007 = vmatprep.subr.bf16.mxu0 %v3577_v10  ;;  %v5037_v62 = vmov %v5033_v27  ;;  %v5038_v5 = vunpack.c.l.bf16 %v3818_v47  ;;  %v568_v10 = vmax.f32 %v564_v0, 0.0  ;;  %v5039_v11 = vmov %v5034_v31  ;;  %v3175_v47 = vld [vmem:[%s5019_s1 + $0x10] ss:$0 sm:$0xff]  ;;  %1040 = vmatprep.subr.bf16.mxu1 %v3608_v50 }
  0x3d   : > { %v566_v49 = vadd.f32 %v560_v44, %v550_v15  ;;  %v439_v6 = vmul.f32 %v434_v3, %v5037_v62  ;;  %v429_v4 = vadd.f32 %v425_v28, %v413_v55  ;;  %v443_v52 = vmul.f32 %v434_v3, %v5039_v11 }
  0x3e   : > { %v441_v9 = vmul.f32 %v434_v3, %v5038_v5  ;;  %v5040_v44 = vunpack.c.l.bf16 %v3831_v54  ;;  %v411_v39 = vadd.f32 %v407_v61, %v395_v51  ;;  %v483_v54 = vmul.f32 %v478_v60, %v3809_v43  ;;  %1041 = vmatpush1.bf16.msra.mxu1 %v3610_v37 }
  0x3f   : > { %1008 = vmatpush1.bf16.msra.mxu0 %v3580_v58  ;;  %v570_v46 = vmax.f32 %v566_v49, 0.0  ;;  %v455_v53 = vrot.slane %v439_v6, 1  ;;  %v461_v48 = vrot.slane %v443_v52, 1  ;;  %v5041_v24 = vunpack.c.l.bf16 %v3788_v33  ;;  %v1150_v33 = vld [vmem:[%s5023_s5] sm:$0xff]  ;;  %1042 = vmatprep.subr.bf16.mxu1 %v3611_v23  ;;  %v3616_v49 = vld [vmem:[%s5021_s3 + $0x168] ss:$16 sps:$4 sm:$0xff]  }
  0x40   : > { %v445_v25 = vmul.f32 %v434_v3, %v5040_v44  ;;  %v456_v13 = vrot.slane %v441_v9, 1  ;;  %1009 = vmatprep.subr.bf16.mxu0 %v3583_v36  ;;  %v427_v7 = vadd.f32 %v423_v16, %v411_v39  ;;  %v494_v61 = vrot.slane %v3850_v1, %v3797_v38  ;;  %v3617_v6 = vld [vmem:[%s5021_s3 + $0x18c] ss:$16 sps:$4 sm:$0xff]   ;;  %v1158_v52 = vld [vmem:[%s5023_s5 + $0x40] sm:$0xff] }
  0x41   : > { %v485_v2 = vmul.f32 %v478_v60, %v5041_v24  ;;  %v572_v57 = vpack.c.bf16 %v570_v46, %v568_v10  ;;  %v515_v56 = vmul.f32 %v3175_v47, %v3809_v43  ;;  %v517_v63 = vmul.f32 %v3175_v47, %v298_v45  ;;  %v1154_v43 = vld [vmem:[%s5023_s5 + $0x20] sm:$0xff]  ;;  %v3619_v10 = vld [vmem:[%s5021_s3 + $0x188] ss:$16 sps:$4 sm:$0xff]  }
  0x42   : > { %v462_v26 = vrot.slane %v445_v25, 1  ;;  %v457_v27 = vsel %vm378_vm0, %v455_v53, %v456_v13  ;;  %v5042_v58 = vmov %v5041_v24  ;;  %v499_v1 = vmul.f32 %v494_v61, %v306_v59  ;;  %1043 = vmatpush1.bf16.msra.mxu1 %v3613_v42  ;;  %v1162_v44 = vld [vmem:[%s5023_s5 + $0x60] sm:$0xff]  ;;  %v3622_v46 = vld [vmem:[%s5021_s3 + $0x1a8] ss:$16 sps:$4 sm:$0xff]   ;;  %v3623_v53 = vld [vmem:[%s5021_s3 + $0x1cc] ss:$16 sps:$4 sm:$0xff]  }
  0x43   : > { %v519_v15 = vmul.f32 %v3175_v47, %v5042_v58  ;;  %1010 = vmatpush1.bf16.msra.mxu0 %v3586_v8  ;;  %1011 = vmatprep.mubr.bf16.mxu0 %v572_v57  ;;  %v471_v16 = vadd.f32 %v457_v27, %v427_v7  ;;  %v5043_v45 = vunpack.c.l.bf16 %v3806_v41  ;;  %v5044_v3 = vunpack.c.l.bf16 %v3791_v34  ;;  %v1151_v23 = vld [vmem:[%s5023_s5 + $0x8] sm:$0xff]  ;;  %v1174_v27 = vld [vmem:[%s5023_s5 + $0xc0] sm:$0xff] }
  0x44   : > { %v463_v31 = vsel %vm378_vm0, %v461_v48, %v462_v26  ;;  %v531_v40 = vrot.slane %v515_v56, 1  ;;  %v532_v59 = vrot.slane %v517_v63, 1  ;;  %1054 = vmatprep.mubr.bf16.mxu1 %v572_v57  ;;  %v3242_v41 = vcombine.high %v1150_v33, %v1154_v43  ;;  %1044 = vmatprep.subr.bf16.mxu1 %v3614_v32  ;;  %v1166_v48 = vld [vmem:[%s5023_s5 + $0x80] sm:$0xff]  ;;  %v1155_v7 = vld [vmem:[%s5023_s5 + $0x28] sm:$0xff] }
  0x45   : > { %v473_v20 = vadd.f32 %v463_v31, %v429_v4  ;;  %v501_v28 = vmul.f32 %v494_v61, %v5043_v45  ;;  %v521_v50 = vmul.f32 %v3175_v47, %v5044_v3  ;;  %v487_v36 = vadd.f32 %v483_v54, %v471_v16  ;;  %v1170_v26 = vld [vmem:[%s5023_s5 + $0xa0] sm:$0xff]  ;;  %v3625_v54 = vld [vmem:[%s5021_s3 + $0x1c8] ss:$16 sps:$4 sm:$0xff]  }
  0x46   : > { %v537_v35 = vrot.slane %v519_v15, 1  ;;  %v533_v55 = vsel %vm378_vm0, %v531_v40, %v532_v59  ;;  %v556_v34 = vrot.slane %v4002_v14, %v3742_v17  ;;  %2728 = vmatprep.subr.bf16.mxu0 %v3242_v41  ;;  %1045 = vmatpush1.bf16.msra.mxu1 %v3616_v49  ;;  %v3620_v14 = vld [vmem:[%s5021_s3 + $0x1ac] ss:$16 sps:$4 sm:$0xff]   ;;  %v3241_v47 = vcombine.low %v1150_v33, %v1154_v43  ;;  %v1178_v61 = vld [vmem:[%s5023_s5 + $0xe0] sm:$0xff]  ;;  %v3628_v31 = vld [vmem:[%s5021_s3 + $0x1e8] ss:$16 sps:$4 sm:$0xff]  }
  0x47   : > { %v489_v0 = vadd.f32 %v485_v2, %v473_v20  ;;  %v538_v60 = vrot.slane %v521_v50, 1  ;;  %v503_v51 = vadd.f32 %v499_v1, %v487_v36  ;;  %1046 = vmatprep.subr.bf16.mxu1 %v3617_v6  ;;  %v3250_v13 = vcombine.high %v1158_v52, %v1162_v44  ;;  %v3626_v2 = vld [vmem:[%s5021_s3 + $0x1ec] ss:$16 sps:$4 sm:$0xff]   ;;  %v1182_v16 = vld [vmem:[%s5023_s5 + $0x100] sm:$0xff] }
  0x48   : > { %v3249_v24 = vcombine.low %v1158_v52, %v1162_v44  ;;  %v3258_v57 = vcombine.high %v1166_v48, %v1170_v26  ;;  %v3257_v56 = vcombine.low %v1166_v48, %v1170_v26  ;;  %v3244_v63 = vcombine.high %v1151_v23, %v1155_v7  ;;  %v1159_v58 = vld [vmem:[%s5023_s5 + $0x48] sm:$0xff]  ;;  %v1186_v20 = vld [vmem:[%s5023_s5 + $0x120] sm:$0xff] }
  0x49   : > { %v505_v62 = vadd.f32 %v501_v28, %v489_v0  ;;  %v539_v5 = vsel %vm378_vm0, %v537_v35, %v538_v60  ;;  %v547_v9 = vadd.f32 %v533_v55, %v503_v51  ;;  %v3266_v15 = vcombine.high %v1174_v27, %v1178_v61  ;;  %v1163_v42 = vld [vmem:[%s5023_s5 + $0x68] sm:$0xff]  ;;  %v1190_v3 = vld [vmem:[%s5023_s5 + $0x140] sm:$0xff] }
  0x4a   : > { %1047 = vmatpush1.bf16.msra.mxu1 %v3619_v10  ;;  %v3243_v1 = vcombine.low %v1151_v23, %v1155_v7  ;;  %v3265_v32 = vcombine.low %v1174_v27, %v1178_v61  ;;  %v3252_v33 = vcombine.high %v1159_v58, %v1163_v42  ;;  %v1167_v43 = vld [vmem:[%s5023_s5 + $0x88] sm:$0xff]  ;;  %v3274_v45 = vcombine.high %v1182_v16, %v1186_v20  ;;  %v1194_v50 = vld [vmem:[%s5023_s5 + $0x160] sm:$0xff] }
  0x4b   : > { %v549_v8 = vadd.f32 %v539_v5, %v505_v62  ;;  %v563_v4 = vadd.f32 %v556_v34, %v547_v9  ;;  %1048 = vmatprep.subr.bf16.mxu1 %v3620_v14  ;;  %v1171_v28 = vld [vmem:[%s5023_s5 + $0xa8] sm:$0xff]  ;;  %v3251_v40 = vcombine.low %v1159_v58, %v1163_v42  ;;  %v3273_v59 = vcombine.low %v1182_v16, %v1186_v20  ;;  %v1198_v60 = vld [vmem:[%s5023_s5 + $0x180] sm:$0xff] }
  0x4c   : > { %v3260_v36 = vcombine.high %v1167_v43, %v1171_v28  ;;  %v1175_v0 = vld [vmem:[%s5023_s5 + $0xc8] sm:$0xff]  ;;  %v3282_v35 = vcombine.high %v1190_v3, %v1194_v50  ;;  %v1202_v49 = vld [vmem:[%s5023_s5 + $0x1a0] sm:$0xff]  ;;  %v3259_v41 = vcombine.low %v1167_v43, %v1171_v28 }
  0x4d   : > { %v565_v11 = vadd.f32 %v556_v34, %v549_v8  ;;  %v567_v25 = vmax.f32 %v563_v4, 0.0  ;;  %v1179_v55 = vld [vmem:[%s5023_s5 + $0xe8] sm:$0xff]  ;;  %v3281_v34 = vcombine.low %v1190_v3, %v1194_v50  ;;  %v3290_v6 = vcombine.high %v1198_v60, %v1202_v49  ;;  %v1206_v9 = vld [vmem:[%s5023_s5 + $0x1c0] sm:$0xff] }
  0x4e   : > { %1049 = vmatpush1.bf16.msra.mxu1 %v3622_v46  ;;  %v3268_v51 = vcombine.high %v1175_v0, %v1179_v55  ;;  %v1183_v62 = vld [vmem:[%s5023_s5 + $0x108] sm:$0xff]  ;;  %v1210_v8 = vld [vmem:[%s5023_s5 + $0x1e0] sm:$0xff]  ;;  %v3267_v10 = vcombine.low %v1175_v0, %v1179_v55  ;;  %v3289_v4 = vcombine.low %v1198_v60, %v1202_v49 }
  0x4f   : > { %v569_v37 = vmax.f32 %v565_v11, 0.0  ;;  %1050 = vmatprep.subr.bf16.mxu1 %v3623_v53  ;;  %v1187_v5 = vld [vmem:[%s5023_s5 + $0x128] sm:$0xff]  ;;  %v3298_v52 = vcombine.high %v1206_v9, %v1210_v8  ;;  %v1222_v26 = vld [vmem:[%s5023_s5 + $0x240] sm:$0xff] }
  0x50   : > { %v3276_v11 = vcombine.high %v1183_v62, %v1187_v5  ;;  %v1191_v14 = vld [vmem:[%s5023_s5 + $0x148] sm:$0xff]  ;;  %v3275_v46 = vcombine.low %v1183_v62, %v1187_v5  ;;  %v1230_v43 = vld [vmem:[%s5023_s5 + $0x280] sm:$0xff] }
  0x51   : > { %v571_v39 = vpack.c.bf16 %v569_v37, %v567_v25  ;;  %v1195_v44 = vld [vmem:[%s5023_s5 + $0x168] sm:$0xff]  ;;  %v1214_v25 = vld [vmem:[%s5023_s5 + $0x200] sm:$0xff] }
  0x52   : > { %1051 = vmatpush1.bf16.msra.mxu1 %v3625_v54  ;;  %v1218_v37 = vld [vmem:[%s5023_s5 + $0x220] sm:$0xff]  ;;  %v1199_v53 = vld [vmem:[%s5023_s5 + $0x188] sm:$0xff] }
  0x53   : > { %1012 = vmatmul.mubr.bf16.vlgmr.msra.gmra.mrb[0].mxu0 %v571_v39  ;;  %1052 = vmatprep.subr.bf16.mxu1 %v3626_v2  ;;  %v1203_v48 = vld [vmem:[%s5023_s5 + $0x1a8] sm:$0xff]  ;;  %v1226_v54 = vld [vmem:[%s5023_s5 + $0x260] sm:$0xff]  ;;  %v3305_v2 = vcombine.low %v1214_v25, %v1218_v37 }
  0x54   : > { %2729 = vmatpush1.bf16.msra.mxu0 %v3241_v47  ;;  %v3297_v47 = vcombine.low %v1206_v9, %v1210_v8  ;;  %v3292_v23 = vcombine.high %v1199_v53, %v1203_v48  ;;  %v1207_v7 = vld [vmem:[%s5023_s5 + $0x1c8] sm:$0xff]  ;;  %v3291_v61 = vcombine.low %v1199_v53, %v1203_v48  ;;  %v1238_v0 = vld [vmem:[%s5023_s5 + $0x2c0] sm:$0xff] }
  0x55   : > { %2730 = vmatprep.subr.bf16.mxu0 %v3250_v13  ;;  %v3306_v13 = vcombine.high %v1214_v25, %v1218_v37  ;;  %v1211_v27 = vld [vmem:[%s5023_s5 + $0x1e8] sm:$0xff]  ;;  %v1246_v62 = vld [vmem:[%s5023_s5 + $0x300] sm:$0xff] }
  0x56   : > { %1053 = vmatpush1.bf16.msra.mxu1 %v3628_v31  ;;  %v3313_v31 = vcombine.low %v1222_v26, %v1226_v54  ;;  %v1219_v58 = vld [vmem:[%s5023_s5 + $0x228] sm:$0xff]  ;;  %v1262_v53 = vld [vmem:[%s5023_s5 + $0x380] sm:$0xff] }
  0x57   : > { %2810 = vmatprep.subr.bf16.mxu1 %v3244_v63  ;;  %v1215_v63 = vld [vmem:[%s5023_s5 + $0x208] sm:$0xff] }
  0x58   : > { %2731 = vmatpush1.bf16.msra.mxu0 %v3249_v24  ;;  %v3283_v24 = vcombine.low %v1191_v14, %v1195_v44  ;;  %v3308_v42 = vcombine.high %v1215_v63, %v1219_v58  ;;  %v1223_v16 = vld [vmem:[%s5023_s5 + $0x248] sm:$0xff] }
  0x59   : > { %2732 = vmatprep.subr.bf16.mxu0 %v3258_v57  ;;  %1055 = vmatmul.mubr.bf16.vlgmr.msra.gmra.mrb[0].mxu1 %v571_v39  ;;  %v3284_v39 = vcombine.high %v1191_v14, %v1195_v44  ;;  %v3314_v57 = vcombine.high %v1222_v26, %v1226_v54  ;;  %v1227_v20 = vld [vmem:[%s5023_s5 + $0x268] sm:$0xff]  ;;  %v1254_v14 = vld [vmem:[%s5023_s5 + $0x340] sm:$0xff] }
  0x5a   : > { %2811 = vmatpush1.bf16.msra.mxu1 %v3243_v1  ;;  %v3307_v1 = vcombine.low %v1215_v63, %v1219_v58  ;;  %v1231_v28 = vld [vmem:[%s5023_s5 + $0x288] sm:$0xff] }
  0x5b   : > { %2812 = vmatprep.subr.bf16.mxu1 %v3252_v33  ;;  %v3315_v33 = vcombine.low %v1223_v16, %v1227_v20  ;;  %v1235_v50 = vld [vmem:[%s5023_s5 + $0x2a8] sm:$0xff] }
  0x5c   : > { %2733 = vmatpush1.bf16.msra.mxu0 %v3257_v56  ;;  %v3300_v56 = vcombine.high %v1207_v7, %v1211_v27  ;;  %v1239_v55 = vld [vmem:[%s5023_s5 + $0x2c8] sm:$0xff] }
  0x5d   : > { %2734 = vmatprep.subr.bf16.mxu0 %v3266_v15  ;;  %v3299_v15 = vcombine.low %v1207_v7, %v1211_v27  ;;  %v1243_v49 = vld [vmem:[%s5023_s5 + $0x2e8] sm:$0xff]  ;;  %v1274_v7 = vld [vmem:[%s5023_s5 + $0x3e0] sm:$0xff] }
  0x5e   : > { %2813 = vmatpush1.bf16.msra.mxu1 %v3251_v40  ;;  %v1247_v5 = vld [vmem:[%s5023_s5 + $0x308] sm:$0xff] }
  0x5f   : > { %2814 = vmatprep.subr.bf16.mxu1 %v3260_v36  ;;  %v3324_v36 = vcombine.high %v1231_v28, %v1235_v50  ;;  %v1251_v8 = vld [vmem:[%s5023_s5 + $0x328] sm:$0xff] }
  0x60   : > { %2735 = vmatpush1.bf16.msra.mxu0 %v3265_v32  ;;  %v3316_v32 = vcombine.high %v1223_v16, %v1227_v20  ;;  %v1255_v44 = vld [vmem:[%s5023_s5 + $0x348] sm:$0xff] }
  0x61   : > { %2736 = vmatprep.subr.bf16.mxu0 %v3274_v45  ;;  %v1234_v45 = vld [vmem:[%s5023_s5 + $0x2a0] sm:$0xff]  ;;  %v1259_v37 = vld [vmem:[%s5023_s5 + $0x368] sm:$0xff] }
  0x62   : > { %2815 = vmatpush1.bf16.msra.mxu1 %v3259_v41  ;;  %v3322_v3 = vcombine.high %v1230_v43, %v1234_v45  ;;  %v3321_v40 = vcombine.low %v1230_v43, %v1234_v45  ;;  %v1263_v48 = vld [vmem:[%s5023_s5 + $0x388] sm:$0xff]  ;;  %v637_v45 = vld [vmem:[%s5022_s4] sm:$0xf] }
  0x63   : > { %2816 = vmatprep.subr.bf16.mxu1 %v3268_v51  ;;  %v3332_v51 = vcombine.high %v1239_v55, %v1243_v49  ;;  %v1267_v54 = vld [vmem:[%s5023_s5 + $0x3a8] sm:$0xff] }
  0x64   : > { %2737 = vmatpush1.bf16.msra.mxu0 %v3273_v59  ;;  %v3323_v59 = vcombine.low %v1231_v28, %v1235_v50  ;;  %v1271_v27 = vld [vmem:[%s5023_s5 + $0x3c8] sm:$0xff]  ;;  %v1075_v28 = vadd.s32 8, %v3722_v12  ;;  %v646_v50 = vrot.slane %v637_v45, %v3745_v18 }
  0x65   : > { %2738 = vmatprep.subr.bf16.mxu0 %v3282_v35  ;;  %v1242_v35 = vld [vmem:[%s5023_s5 + $0x2e0] sm:$0xff]  ;;  %v4353_v16 = vld [vmem:[%s5023_s5 + $0x408] sm:$0xff] }
  0x66   : > { %2817 = vmatpush1.bf16.msra.mxu1 %v3267_v10  ;;  %v3330_v60 = vcombine.high %v1238_v0, %v1242_v35  ;;  %v3329_v41 = vcombine.low %v1238_v0, %v1242_v35 }
  0x67   : > { %2818 = vmatprep.subr.bf16.mxu1 %v3276_v11  ;;  %v3340_v11 = vcombine.high %v1247_v5, %v1251_v8 }
  0x68   : > { %2739 = vmatpush1.bf16.msra.mxu0 %v3281_v34  ;;  %v3331_v34 = vcombine.low %v1239_v55, %v1243_v49 }
  0x69   : > { %2740 = vmatprep.subr.bf16.mxu0 %v3290_v6  ;;  %v1250_v6 = vld [vmem:[%s5023_s5 + $0x320] sm:$0xff] }
  0x6a   : > { %2819 = vmatpush1.bf16.msra.mxu1 %v3275_v46  ;;  %v3338_v9 = vcombine.high %v1246_v62, %v1250_v6  ;;  %v3337_v10 = vcombine.low %v1246_v62, %v1250_v6 }
  0x6b   : > { %2820 = vmatprep.subr.bf16.mxu1 %v3284_v39  ;;  %v3348_v39 = vcombine.high %v1255_v44, %v1259_v37 }
  0x6c   : > { %2741 = vmatpush1.bf16.msra.mxu0 %v3289_v4  ;;  %v3339_v4 = vcombine.low %v1247_v5, %v1251_v8 }
  0x6d   : > { %2742 = vmatprep.subr.bf16.mxu0 %v3298_v52  ;;  %v1258_v52 = vld [vmem:[%s5023_s5 + $0x360] sm:$0xff] }
  0x6e   : > { %2821 = vmatpush1.bf16.msra.mxu1 %v3283_v24  ;;  %v3346_v25 = vcombine.high %v1254_v14, %v1258_v52  ;;  %v3345_v46 = vcombine.low %v1254_v14, %v1258_v52 }
  0x6f   : > { %2822 = vmatprep.subr.bf16.mxu1 %v3292_v23  ;;  %v3356_v23 = vcombine.high %v1263_v48, %v1267_v54 }
  0x70   : > { %2743 = vmatpush1.bf16.msra.mxu0 %v3297_v47  ;;  %v3347_v47 = vcombine.low %v1255_v44, %v1259_v37 }
  0x71   : > { %2744 = vmatprep.subr.bf16.mxu0 %v3306_v13  ;;  %v1266_v13 = vld [vmem:[%s5023_s5 + $0x3a0] sm:$0xff] }
  0x72   : > { %2823 = vmatpush1.bf16.msra.mxu1 %v3291_v61  ;;  %v3354_v26 = vcombine.high %v1262_v53, %v1266_v13  ;;  %v3353_v24 = vcombine.low %v1262_v53, %v1266_v13 }
  0x73   : > { %2824 = vmatprep.subr.bf16.mxu1 %v3300_v56  ;;  %v1275_v56 = vld [vmem:[%s5023_s5 + $0x3e8] sm:$0xff] }
  0x74   : > { %2745 = vmatpush1.bf16.msra.mxu0 %v3305_v2  ;;  %v3355_v2 = vcombine.low %v1263_v48, %v1267_v54  ;;  %v3364_v63 = vcombine.high %v1271_v27, %v1275_v56  ;;  %v3363_v58 = vcombine.low %v1271_v27, %v1275_v56 }
  0x75   : > { %2746 = vmatprep.subr.bf16.mxu0 %v3314_v57  ;;  %v1270_v57 = vld [vmem:[%s5023_s5 + $0x3c0] sm:$0xff] }
  0x76   : > { %2825 = vmatpush1.bf16.msra.mxu1 %v3299_v15  ;;  %v3361_v61 = vcombine.low %v1270_v57, %v1274_v7  ;;  %v4343_v15 = vld [vmem:[%s5023_s5 + $0x400] sm:$0xff] }
  0x77   : > { %2826 = vmatprep.subr.bf16.mxu1 %v3308_v42  ;;  %v4348_v42 = vld [vmem:[%s5023_s5 + $0x420] sm:$0xff] }
  0x78   : > { %2747 = vmatpush1.bf16.msra.mxu0 %v3313_v31  ;;  %v3362_v31 = vcombine.high %v1270_v57, %v1274_v7  ;;  %v3370_v20 = vcombine.high %v4343_v15, %v4348_v42 }
  0x79   : > { %2748 = vmatprep.subr.bf16.mxu0 %v3322_v3  ;;  %v642_v3 = vrot.slane %v637_v45, %v3742_v17 }
  0x7a   : > { %2827 = vmatpush1.bf16.msra.mxu1 %v3307_v1  ;;  %v4360_v1 = vld [vmem:[%s5023_s5 + $0x428] sm:$0xff] }
  0x7b   : > { %2828 = vmatprep.subr.bf16.mxu1 %v3316_v32  ;;  %v3369_v32 = vcombine.low %v4343_v15, %v4348_v42  ;;  %v3372_v43 = vcombine.high %v4353_v16, %v4360_v1  ;;  %v1306_v15 = vld [vmem:[%s5023_s5 + $0x4e0] sm:$0xff]  ;;  %v1303_v42 = vld [vmem:[%s5023_s5 + $0x4c8] sm:$0xff] }
  0x7c   : > { %2749 = vmatpush1.bf16.msra.mxu0 %v3321_v40 }
  0x7d   : > { %2750 = vmatprep.subr.bf16.mxu0 %v3330_v60 }
  0x7e   : > { %2829 = vmatpush1.bf16.msra.mxu1 %v3315_v33  ;;  %v3371_v33 = vcombine.low %v4353_v16, %v4360_v1  ;;  %v1307_v16 = vld [vmem:[%s5023_s5 + $0x4e8] sm:$0xff] }
  0x7f   : > { %2830 = vmatprep.subr.bf16.mxu1 %v3324_v36  ;;  %v1087_v36 = vand.u32 7, %v1075_v28 }
  0x80   : > { %2751 = vmatpush1.bf16.msra.mxu0 %v3329_v41 }
  0x81   : > { %2752 = vmatprep.subr.bf16.mxu0 %v3338_v9  ;;  %vm4379_vm2 = vcmp.lt.s32.totalorder %v1087_v36, 2 }
  0x82   : > { %2831 = vmatpush1.bf16.msra.mxu1 %v3323_v59  ;;  %v1080_v59 = vand.u32 7, %v3722_v12 }
  0x83   : > { %2832 = vmatprep.subr.bf16.mxu1 %v3332_v51  ;;  %v1291_v51 = vld [vmem:[%s5023_s5 + $0x468] sm:$0xff] }
  0x84   : > { %2753 = vmatpush1.bf16.msra.mxu0 %v3337_v10  ;;  %vm4375_vm1 = vcmp.lt.s32.totalorder %v1080_v59, 2 }
  0x85   : > { %2754 = vmatprep.subr.bf16.mxu0 %v3346_v25  ;;  %v650_v25 = vrot.slane %v637_v45, %v3748_v19 }
  0x86   : > { %2833 = vmatpush1.bf16.msra.mxu1 %v3331_v34 }
  0x87   : > { %2834 = vmatprep.subr.bf16.mxu1 %v3340_v11 }
  0x88   : > { %2755 = vmatpush1.bf16.msra.mxu0 %v3345_v46  ;;  %v654_v46 = vrot.slane %v637_v45, %v3754_v21 }
  0x89   : > { %2756 = vmatprep.subr.bf16.mxu0 %v3354_v26 }
  0x8a   : > { %2835 = vmatpush1.bf16.msra.mxu1 %v3339_v4 }
  0x8b   : > { %2836 = vmatprep.subr.bf16.mxu1 %v3348_v39 }
  0x8c   : > { %2757 = vmatpush1.bf16.msra.mxu0 %v3353_v24 }
  0x8d   : > { %2758 = vmatprep.subr.bf16.mxu0 %v3362_v31 }
  0x8e   : > { %2837 = vmatpush1.bf16.msra.mxu1 %v3347_v47 }
  0x8f   : > { %2838 = vmatprep.subr.bf16.mxu1 %v3356_v23 }
  0x90   : > { %2759 = vmatpush1.bf16.msra.mxu0 %v3361_v61 }
  0x91   : > { %2769 = vmatprep.subr.bf16.mxu0 %v3370_v20 }
  0x92   : > { %2839 = vmatpush1.bf16.msra.mxu1 %v3355_v2 }
  0x93   : > { %2840 = vmatprep.subr.bf16.mxu1 %v3364_v63 }
  0x96   : > { %2841 = vmatpush1.bf16.msra.mxu1 %v3363_v58 }
  0x97   : > { %2851 = vmatprep.subr.bf16.mxu1 %v3372_v43 }
 0x126   : > { %v1013_v40 = vpop.f32.mrb[0].mxu0 }
 0x127   : > { %v1014_v0 = vadd.f32 %v1013_v40, %v642_v3  ;;  %v1015_v35 = vpop.f32.mrb[1].mxu0 }
 0x128   : > { %v1016_v55 = vadd.f32 %v1015_v35, %v646_v50  ;;  %v1017_v60 = vpop.f32.mrb[2].mxu0 }
 0x129   : > { %v1065_v49 = vmax.f32 %v1014_v0, 0.0  ;;  %v1018_v41 = vadd.f32 %v1017_v60, %v642_v3  ;;  %v1019_v34 = vpop.f32.mrb[3].mxu0  ;;  %v1286_v60 = vld [vmem:[%s5023_s5 + $0x440] sm:$0xff] }
 0x12a   : > { %v1066_v62 = vmax.f32 %v1016_v55, 0.0  ;;  %v1020_v5 = vadd.f32 %v1019_v34, %v646_v50  ;;  %v1287_v34 = vld [vmem:[%s5023_s5 + $0x448] sm:$0xff] }
 0x12b   : > { %v1069_v9 = vmax.f32 %v1018_v41, 0.0  ;;  %v1106_v10 = vsel %vm4375_vm1, %v1065_v49, 0.0  ;;  %v1290_v41 = vld [vmem:[%s5023_s5 + $0x460] sm:$0xff] }
 0x12c   : > { %v1070_v8 = vmax.f32 %v1020_v5, 0.0  ;;  %v1107_v11 = vsel %vm4375_vm1, %v1066_v62, 0.0  ;;  %v1056_v53 = vpop.f32.mrb[0].mxu1 }
 0x12d   : > { %v1110_v4 = vsel %vm4379_vm2, %v1069_v9, 0.0  ;;  %v1057_v48 = vadd.f32 %v1056_v53, %v650_v25  ;;  %v1058_v26 = vpop.f32.mrb[1].mxu1  ;;  %v1302_v53 = vld [vmem:[%s5023_s5 + $0x4c0] sm:$0xff] }
 0x12e   : > { %v1114_v14 = vadd.f32 %v1110_v4, %v1106_v10  ;;  %v1111_v52 = vsel %vm4379_vm2, %v1070_v8, 0.0  ;;  %v1059_v24 = vadd.f32 %v1058_v26, %v654_v46  ;;  %v1060_v2 = vpop.f32.mrb[2].mxu1  ;;  %v3378_v8 = vcombine.high %v1286_v60, %v1290_v41  ;;  %v1294_v4 = vld [vmem:[%s5023_s5 + $0x480] sm:$0xff] }
 0x12f   : > { %v1121_v44 = vadd.f32 %v1111_v52, %v1107_v11  ;;  %v1067_v57 = vmax.f32 %v1057_v48, 0.0  ;;  %v1061_v7 = vadd.f32 %v1060_v2, %v650_v25  ;;  %v1062_v27 = vpop.f32.mrb[3].mxu1  ;;  %v3380_v10 = vcombine.high %v1287_v34, %v1291_v51  ;;  %v1298_v11 = vld [vmem:[%s5023_s5 + $0x4a0] sm:$0xff]  ;;  %v1299_v52 = vld [vmem:[%s5023_s5 + $0x4a8] sm:$0xff] }
 0x130   : > { %v1115_v37 = vrot.slane %v1114_v14, 4  ;;  %v1068_v31 = vmax.f32 %v1059_v24, 0.0  ;;  %v1063_v56 = vadd.f32 %v1062_v27, %v654_v46  ;;  %v3377_v25 = vcombine.low %v1286_v60, %v1290_v41  ;;  %v1314_v24 = vld [vmem:[%s5023_s5 + $0x520] sm:$0xff]  ;;  %v1311_v2 = vld [vmem:[%s5023_s5 + $0x508] sm:$0xff] }
 0x131   : > { %v1122_v47 = vrot.slane %v1121_v44, 4  ;;  %v1108_v58 = vsel %vm4375_vm1, %v1067_v57, 0.0  ;;  %v1071_v20 = vmax.f32 %v1061_v7, 0.0  ;;  %v3394_v48 = vcombine.high %v1302_v53, %v1306_v15 }
 0x132   : > { %v1116_v39 = vadd.f32 %v1115_v37, %v1114_v14  ;;  %v1109_v45 = vsel %vm4375_vm1, %v1068_v31, 0.0  ;;  %v1072_v28 = vmax.f32 %v1063_v56, 0.0  ;;  %v1295_v14 = vld [vmem:[%s5023_s5 + $0x488] sm:$0xff]  ;;  %v3379_v37 = vcombine.low %v1287_v34, %v1291_v51  ;;  %v1334_v34 = vld [vmem:[%s5023_s5 + $0x5c0] sm:$0xff] }
 0x133   : > { %v1123_v13 = vadd.f32 %v1122_v47, %v1121_v44  ;;  %v1112_v50 = vsel %vm4379_vm2, %v1071_v20, 0.0  ;;  %v3386_v47 = vcombine.high %v1294_v4, %v1298_v11  ;;  %v3396_v26 = vcombine.high %v1303_v42, %v1307_v16  ;;  %v1319_v20 = vld [vmem:[%s5023_s5 + $0x548] sm:$0xff]  ;;  %v1338_v51 = vld [vmem:[%s5023_s5 + $0x5e0] sm:$0xff] }
 0x134   : > { %v1117_v54 = vrot.slane %v1116_v39, 2  ;;  %v4399_v59 = vadd.f32 %v1112_v50, %v1108_v58  ;;  %v1113_v36 = vsel %vm4379_vm2, %v1072_v28, 0.0  ;;  %v3393_v7 = vcombine.low %v1302_v53, %v1306_v15  ;;  %v1322_v58 = vld [vmem:[%s5023_s5 + $0x560] sm:$0xff] }
 0x135   : > { %v1124_v23 = vrot.slane %v1123_v13, 2  ;;  %v1135_v35 = vadd.f32 %v1113_v36, %v1109_v45  ;;  %v3395_v27 = vcombine.low %v1303_v42, %v1307_v16  ;;  %v1330_v36 = vld [vmem:[%s5023_s5 + $0x5a0] sm:$0xff]  ;;  %v1351_v42 = vld [vmem:[%s5023_s5 + $0x648] sm:$0xff] }
 0x136   : > { %v1118_v61 = vadd.f32 %v1117_v54, %v1116_v39  ;;  %v3388_v39 = vcombine.high %v1295_v14, %v1299_v52  ;;  %v1310_v54 = vld [vmem:[%s5023_s5 + $0x500] sm:$0xff]  ;;  %v1355_v16 = vld [vmem:[%s5023_s5 + $0x668] sm:$0xff] }
 0x137   : > { %v1125_v63 = vadd.f32 %v1124_v23, %v1123_v13  ;;  %v1136_v62 = vrot.slane %v1135_v35, 4  ;;  %v1315_v23 = vld [vmem:[%s5023_s5 + $0x528] sm:$0xff]  ;;  %v3402_v31 = vcombine.high %v1310_v54, %v1314_v24  ;;  %v3401_v45 = vcombine.low %v1310_v54, %v1314_v24  ;;  %v1350_v53 = vld [vmem:[%s5023_s5 + $0x640] sm:$0xff] }
 0x138   : > { %v1119_v43 = vrot.slane %v1118_v61, 1  ;;  %v3404_v56 = vcombine.high %v1311_v2, %v1315_v23  ;;  %v3403_v28 = vcombine.low %v1311_v2, %v1315_v23  ;;  %v1354_v15 = vld [vmem:[%s5023_s5 + $0x660] sm:$0xff]  ;;  %v1359_v54 = vld [vmem:[%s5023_s5 + $0x688] sm:$0xff]  ;;  %v3443_v23 = vcombine.low %v1351_v42, %v1355_v16 }
 0x139   : > { %v1126_v3 = vrot.slane %v1125_v63, 1  ;;  %v1137_v5 = vadd.f32 %v1136_v62, %v1135_v35  ;;  %v1331_v35 = vld [vmem:[%s5023_s5 + $0x5a8] sm:$0xff]  ;;  %v3441_v2 = vcombine.low %v1350_v53, %v1354_v15 }
 0x13a   : > { %v1120_v40 = vadd.f32 %v1119_v43, %v1118_v61  ;;  %v1323_v43 = vld [vmem:[%s5023_s5 + $0x568] sm:$0xff] }
 0x13b   : > { %v1127_v0 = vadd.f32 %v1126_v3, %v1125_v63  ;;  %v1138_v44 = vrot.slane %v1137_v5, 2  ;;  %v1318_v63 = vld [vmem:[%s5023_s5 + $0x540] sm:$0xff]  ;;  %v3412_v50 = vcombine.high %v1319_v20, %v1323_v43  ;;  %v3411_v60 = vcombine.low %v1319_v20, %v1323_v43  ;;  %v1335_v62 = vld [vmem:[%s5023_s5 + $0x5c8] sm:$0xff] }
 0x13c   : > { %v1142_v55 = vmul.f32 0.25, %v1120_v40  ;;  %v3410_v3 = vcombine.high %v1318_v63, %v1322_v58  ;;  %v1326_v40 = vld [vmem:[%s5023_s5 + $0x580] sm:$0xff]  ;;  %v1363_v24 = vld [vmem:[%s5023_s5 + $0x6a8] sm:$0xff] }
 0x13d   : > { %v1143_v49 = vmul.f32 0.25, %v1127_v0  ;;  %v1139_v46 = vadd.f32 %v1138_v44, %v1137_v5  ;;  %v1327_v0 = vld [vmem:[%s5023_s5 + $0x588] sm:$0xff]  ;;  %v3451_v43 = vcombine.low %v1359_v54, %v1363_v24 }
 0x13e   : > { %v4417_v9 = vpack.c.bf16 %v1142_v55, %v1142_v55  ;;  %v3409_v55 = vcombine.low %v1318_v63, %v1322_v58  ;;  %v3420_v41 = vcombine.high %v1327_v0, %v1331_v35  ;;  %v1339_v5 = vld [vmem:[%s5023_s5 + $0x5e8] sm:$0xff] }
 0x13f   : > { %v4415_v6 = vpack.c.bf16 %v1143_v49, %v1143_v49  ;;  %v1140_v1 = vrot.slane %v1139_v46, 1  ;;  %v3418_v49 = vcombine.high %v1326_v40, %v1330_v36  ;;  %v1343_v44 = vld [vmem:[%s5023_s5 + $0x608] sm:$0xff] }
 0x140   : > { %v1367_v63 = vld [vmem:[%s5023_s5 + $0x6c8] sm:$0xff] }
 0x141   : > { %2760 = vmatprep.mubr.bf16.mxu0 %v4415_v6  ;;  %2842 = vmatprep.mubr.bf16.mxu1 %v4415_v6  ;;  %v1141_v13 = vadd.f32 %v1140_v1, %v1139_v46  ;;  %v3427_v46 = vcombine.low %v1335_v62, %v1339_v5  ;;  %v1371_v58 = vld [vmem:[%s5023_s5 + $0x6e8] sm:$0xff] }
 0x142   : > { %2761 = vmatmul.mubr.bf16.vlgmr.msra.gmra.mrb[4].mxu0 %v4417_v9  ;;  %2843 = vmatmul.mubr.bf16.vlgmr.msra.gmra.mrb[4].mxu1 %v4417_v9 }
 0x143   : > { %2770 = vmatpush1.bf16.msra.mxu0 %v3369_v32  ;;  %2852 = vmatpush1.bf16.msra.mxu1 %v3371_v33  ;;  %v3385_v32 = vcombine.low %v1294_v4, %v1298_v11  ;;  %v3387_v33 = vcombine.low %v1295_v14, %v1299_v52  ;;  %v1145_v57 = vmul.f32 0.25, %v1141_v13  ;;  %v3426_v4 = vcombine.high %v1334_v34, %v1338_v51  ;;  %v1342_v14 = vld [vmem:[%s5023_s5 + $0x600] sm:$0xff] }
 0x144   : > { %2771 = vmatprep.subr.bf16.mxu0 %v3378_v8  ;;  %2853 = vmatprep.subr.bf16.mxu1 %v3380_v10  ;;  %v3417_v8 = vcombine.low %v1326_v40, %v1330_v36  ;;  %v3419_v10 = vcombine.low %v1327_v0, %v1331_v35  ;;  %v3428_v11 = vcombine.high %v1335_v62, %v1339_v5  ;;  %v1346_v52 = vld [vmem:[%s5023_s5 + $0x620] sm:$0xff]  ;;  %v1375_v36 = vld [vmem:[%s5023_s5 + $0x708] sm:$0xff] }
 0x145   : > { %v4465_v61 = vpack.c.bf16 %v1145_v57, %v1145_v57  ;;  %v3433_v1 = vcombine.low %v1342_v14, %v1346_v52  ;;  %v3444_v13 = vcombine.high %v1351_v42, %v1355_v16  ;;  %v1129_v57 = vrot.slane %v4399_v59, 4  ;;  %v1378_v40 = vld [vmem:[%s5023_s5 + $0x720] sm:$0xff]  ;;  %v1387_v62 = vld [vmem:[%s5023_s5 + $0x768] sm:$0xff] }
 0x146   : > { %v3459_v35 = vcombine.low %v1367_v63, %v1371_v58  ;;  %v1402_v42 = vld [vmem:[%s5023_s5 + $0x7e0] sm:$0xff]  ;;  %v1399_v16 = vld [vmem:[%s5023_s5 + $0x7c8] sm:$0xff] }
 0x147   : > { %2772 = vmatpush1.bf16.msra.mxu0 %v3377_v25  ;;  %2854 = vmatpush1.bf16.msra.mxu1 %v3379_v37  ;;  %v1347_v25 = vld [vmem:[%s5023_s5 + $0x628] sm:$0xff]  ;;  %v3425_v37 = vcombine.low %v1334_v34, %v1338_v51  ;;  %v1386_v34 = vld [vmem:[%s5023_s5 + $0x760] sm:$0xff] }
 0x148   : > { %2773 = vmatprep.subr.bf16.mxu0 %v3386_v47  ;;  %2855 = vmatprep.subr.bf16.mxu1 %v3388_v39  ;;  %v3434_v47 = vcombine.high %v1342_v14, %v1346_v52  ;;  %v3436_v39 = vcombine.high %v1343_v44, %v1347_v25  ;;  %v1383_v51 = vld [vmem:[%s5023_s5 + $0x748] sm:$0xff]  ;;  %v1390_v14 = vld [vmem:[%s5023_s5 + $0x780] sm:$0xff] }
 0x149   : > { %2801 = vmatprep.mubr.bf16.mxu0 %v4465_v61  ;;  %2883 = vmatprep.mubr.bf16.mxu1 %v4465_v61  ;;  %v1394_v52 = vld [vmem:[%s5023_s5 + $0x7a0] sm:$0xff] }
 0x14b   : > { %2774 = vmatpush1.bf16.msra.mxu0 %v3385_v32  ;;  %2856 = vmatpush1.bf16.msra.mxu1 %v3387_v33  ;;  %v3435_v32 = vcombine.low %v1343_v44, %v1347_v25  ;;  %v3442_v33 = vcombine.high %v1350_v53, %v1354_v15  ;;  %v1391_v44 = vld [vmem:[%s5023_s5 + $0x788] sm:$0xff]  ;;  %v1398_v15 = vld [vmem:[%s5023_s5 + $0x7c0] sm:$0xff] }
 0x14c   : > { %2775 = vmatprep.subr.bf16.mxu0 %v3394_v48  ;;  %2857 = vmatprep.subr.bf16.mxu1 %v3396_v26  ;;  %v1358_v48 = vld [vmem:[%s5023_s5 + $0x680] sm:$0xff]  ;;  %v1395_v25 = vld [vmem:[%s5023_s5 + $0x7a8] sm:$0xff] }
 0x14d   : > { %v1362_v26 = vld [vmem:[%s5023_s5 + $0x6a0] sm:$0xff]  ;;  %v3484_v53 = vcombine.high %v1391_v44, %v1395_v25 }
 0x14e   : > { %v3449_v20 = vcombine.low %v1358_v48, %v1362_v26 }
 0x14f   : > { %2776 = vmatpush1.bf16.msra.mxu0 %v3393_v7  ;;  %2858 = vmatpush1.bf16.msra.mxu1 %v3395_v27  ;;  %v3450_v7 = vcombine.high %v1358_v48, %v1362_v26  ;;  %v3452_v27 = vcombine.high %v1359_v54, %v1363_v24  ;;  %v1152_v54 = vld [vmem:[%s5023_s5 + $0x10] sm:$0xff] }
 0x150   : > { %2777 = vmatprep.subr.bf16.mxu0 %v3402_v31  ;;  %2859 = vmatprep.subr.bf16.mxu1 %v3404_v56  ;;  %v1366_v31 = vld [vmem:[%s5023_s5 + $0x6c0] sm:$0xff]  ;;  %v1156_v24 = vld [vmem:[%s5023_s5 + $0x30] sm:$0xff] }
 0x151   : > { %v1370_v56 = vld [vmem:[%s5023_s5 + $0x6e0] sm:$0xff] }
 0x152   : > { %v3457_v0 = vcombine.low %v1366_v31, %v1370_v56 }
 0x153   : > { %2778 = vmatpush1.bf16.msra.mxu0 %v3401_v45  ;;  %2860 = vmatpush1.bf16.msra.mxu1 %v3403_v28  ;;  %v1130_v45 = vadd.f32 %v1129_v57, %v4399_v59  ;;  %v3458_v28 = vcombine.high %v1366_v31, %v1370_v56  ;;  %v1379_v59 = vld [vmem:[%s5023_s5 + $0x728] sm:$0xff]  ;;  %v3489_v57 = vcombine.low %v1398_v15, %v1402_v42 }
 0x154   : > { %2779 = vmatprep.subr.bf16.mxu0 %v3410_v3  ;;  %2861 = vmatprep.subr.bf16.mxu1 %v3412_v50  ;;  %v3460_v3 = vcombine.high %v1367_v63, %v1371_v58  ;;  %v1374_v50 = vld [vmem:[%s5023_s5 + $0x700] sm:$0xff]  ;;  %v3246_v31 = vcombine.high %v1152_v54, %v1156_v24  ;;  %v1160_v63 = vld [vmem:[%s5023_s5 + $0x50] sm:$0xff] }
 0x155   : > { %v3465_v5 = vcombine.low %v1374_v50, %v1378_v40  ;;  %v1164_v58 = vld [vmem:[%s5023_s5 + $0x70] sm:$0xff] }
 0x157   : > { %2780 = vmatpush1.bf16.msra.mxu0 %v3409_v55  ;;  %2862 = vmatpush1.bf16.msra.mxu1 %v3411_v60  ;;  %v1131_v55 = vrot.slane %v1130_v45, 2  ;;  %v3466_v60 = vcombine.high %v1374_v50, %v1378_v40  ;;  %v3254_v50 = vcombine.high %v1160_v63, %v1164_v58 }
 0x158   : > { %2781 = vmatprep.subr.bf16.mxu0 %v3418_v49  ;;  %2863 = vmatprep.subr.bf16.mxu1 %v3420_v41  ;;  %v3468_v49 = vcombine.high %v1375_v36, %v1379_v59  ;;  %v1382_v41 = vld [vmem:[%s5023_s5 + $0x740] sm:$0xff] }
 0x15b   : > { %2782 = vmatpush1.bf16.msra.mxu0 %v3417_v8  ;;  %2864 = vmatpush1.bf16.msra.mxu1 %v3419_v10  ;;  %v3467_v8 = vcombine.low %v1375_v36, %v1379_v59  ;;  %v1132_v10 = vadd.f32 %v1131_v55, %v1130_v45  ;;  %v3245_v45 = vcombine.low %v1152_v54, %v1156_v24  ;;  %v1168_v36 = vld [vmem:[%s5023_s5 + $0x90] sm:$0xff]  ;;  %v1205_v54 = vld [vmem:[%s5023_s5 + $0x1b8] sm:$0xff] }
 0x15c   : > { %2783 = vmatprep.subr.bf16.mxu0 %v3426_v4  ;;  %2865 = vmatprep.subr.bf16.mxu1 %v3428_v11  ;;  %v3474_v4 = vcombine.high %v1382_v41, %v1386_v34  ;;  %v3476_v11 = vcombine.high %v1383_v51, %v1387_v62  ;;  %v1172_v59 = vld [vmem:[%s5023_s5 + $0xb0] sm:$0xff]  ;;  %v3253_v55 = vcombine.low %v1160_v63, %v1164_v58 }
 0x15f   : > { %2784 = vmatpush1.bf16.msra.mxu0 %v3425_v37  ;;  %2866 = vmatpush1.bf16.msra.mxu1 %v3427_v46  ;;  %v3473_v37 = vcombine.low %v1382_v41, %v1386_v34  ;;  %v3475_v46 = vcombine.low %v1383_v51, %v1387_v62  ;;  %v1176_v34 = vld [vmem:[%s5023_s5 + $0xd0] sm:$0xff]  ;;  %v1177_v62 = vld [vmem:[%s5023_s5 + $0xd8] sm:$0xff] }
 0x160   : > { %2785 = vmatprep.subr.bf16.mxu0 %v3434_v47  ;;  %2867 = vmatprep.subr.bf16.mxu1 %v3436_v39  ;;  %v1133_v47 = vrot.slane %v1132_v10, 1  ;;  %v3482_v39 = vcombine.high %v1390_v14, %v1394_v52  ;;  %v1180_v51 = vld [vmem:[%s5023_s5 + $0xf0] sm:$0xff] }
 0x162   : > { %v1134_v26 = vadd.f32 %v1133_v47, %v1132_v10  ;;  %v3270_v10 = vcombine.high %v1176_v34, %v1180_v51 }
 0x163   : > { %2786 = vmatpush1.bf16.msra.mxu0 %v3433_v1  ;;  %2868 = vmatpush1.bf16.msra.mxu1 %v3435_v32  ;;  %v1403_v1 = vld [vmem:[%s5023_s5 + $0x7e8] sm:$0xff]  ;;  %v3481_v32 = vcombine.low %v1390_v14, %v1394_v52  ;;  %v1188_v14 = vld [vmem:[%s5023_s5 + $0x130] sm:$0xff]  ;;  %v1185_v52 = vld [vmem:[%s5023_s5 + $0x118] sm:$0xff] }
 0x164   : > { %2787 = vmatprep.subr.bf16.mxu0 %v3442_v33  ;;  %2869 = vmatprep.subr.bf16.mxu1 %v3444_v13  ;;  %v3483_v33 = vcombine.low %v1391_v44, %v1395_v25  ;;  %v3490_v13 = vcombine.high %v1398_v15, %v1402_v42  ;;  %v3492_v48 = vcombine.high %v1399_v16, %v1403_v1  ;;  %v1189_v44 = vld [vmem:[%s5023_s5 + $0x138] sm:$0xff] }
 0x165   : > { %v3269_v25 = vcombine.low %v1176_v34, %v1180_v51  ;;  %v3280_v47 = vcombine.high %v1185_v52, %v1189_v44  ;;  %v1193_v15 = vld [vmem:[%s5023_s5 + $0x158] sm:$0xff] }
 0x166   : > { %v1197_v42 = vld [vmem:[%s5023_s5 + $0x178] sm:$0xff] }
 0x167   : > { %2788 = vmatpush1.bf16.msra.mxu0 %v3441_v2  ;;  %2870 = vmatpush1.bf16.msra.mxu1 %v3443_v23  ;;  %v1153_v2 = vld [vmem:[%s5023_s5 + $0x18] sm:$0xff] }
 0x168   : > { %2789 = vmatprep.subr.bf16.mxu0 %v3450_v7  ;;  %2871 = vmatprep.subr.bf16.mxu1 %v3452_v27  ;;  %v1157_v23 = vld [vmem:[%s5023_s5 + $0x38] sm:$0xff]  ;;  %v3491_v7 = vcombine.low %v1399_v16, %v1403_v1  ;;  %v1144_v27 = vmul.f32 0.25, %v1134_v26  ;;  %v3279_v1 = vcombine.low %v1185_v52, %v1189_v44 }
 0x169   : > { %v3248_v56 = vcombine.high %v1153_v2, %v1157_v23  ;;  %v1201_v26 = vld [vmem:[%s5023_s5 + $0x198] sm:$0xff] }
 0x16a   : > { %v3295_v58 = vcombine.low %v1201_v26, %v1205_v54 }
 0x16b   : > { %2790 = vmatpush1.bf16.msra.mxu0 %v3449_v20  ;;  %2872 = vmatpush1.bf16.msra.mxu1 %v3451_v43  ;;  %v1161_v20 = vld [vmem:[%s5023_s5 + $0x58] sm:$0xff] }
 0x16c   : > { %2791 = vmatprep.subr.bf16.mxu0 %v3458_v28  ;;  %2873 = vmatprep.subr.bf16.mxu1 %v3460_v3  ;;  %v1165_v43 = vld [vmem:[%s5023_s5 + $0x78] sm:$0xff]  ;;  %v4627_v28 = vpack.c.bf16 %v1144_v27, %v1144_v27  ;;  %v3247_v3 = vcombine.low %v1153_v2, %v1157_v23  ;;  %v3287_v2 = vcombine.low %v1193_v15, %v1197_v42  ;;  %v1212_v27 = vld [vmem:[%s5023_s5 + $0x1f0] sm:$0xff] }
 0x16d   : > { %v3256_v40 = vcombine.high %v1161_v20, %v1165_v43 }
 0x16f   : > { %2792 = vmatpush1.bf16.msra.mxu0 %v3457_v0  ;;  %2874 = vmatpush1.bf16.msra.mxu1 %v3459_v35  ;;  %v1169_v0 = vld [vmem:[%s5023_s5 + $0x98] sm:$0xff] }
 0x170   : > { %2793 = vmatprep.subr.bf16.mxu0 %v3466_v60  ;;  %2875 = vmatprep.subr.bf16.mxu1 %v3468_v49  ;;  %v1173_v35 = vld [vmem:[%s5023_s5 + $0xb8] sm:$0xff]  ;;  %v3255_v60 = vcombine.low %v1161_v20, %v1165_v43  ;;  %v3262_v49 = vcombine.high %v1168_v36, %v1172_v59 }
 0x171   : > { %v3264_v41 = vcombine.high %v1169_v0, %v1173_v35 }
 0x173   : > { %2794 = vmatpush1.bf16.msra.mxu0 %v3465_v5  ;;  %2876 = vmatpush1.bf16.msra.mxu1 %v3467_v8  ;;  %v3261_v5 = vcombine.low %v1168_v36, %v1172_v59  ;;  %v3263_v8 = vcombine.low %v1169_v0, %v1173_v35 }
 0x174   : > { %2795 = vmatprep.subr.bf16.mxu0 %v3474_v4  ;;  %2877 = vmatprep.subr.bf16.mxu1 %v3476_v11  ;;  %v1184_v11 = vld [vmem:[%s5023_s5 + $0x110] sm:$0xff] }
 0x175   : > { %v3277_v16 = vcombine.low %v1184_v11, %v1188_v14 }
 0x177   : > { %2796 = vmatpush1.bf16.msra.mxu0 %v3473_v37  ;;  %2878 = vmatpush1.bf16.msra.mxu1 %v3475_v46  ;;  %v3278_v46 = vcombine.high %v1184_v11, %v1188_v14 }
 0x178   : > { %2797 = vmatprep.subr.bf16.mxu0 %v3482_v39  ;;  %2879 = vmatprep.subr.bf16.mxu1 %v3484_v53  ;;  %v1192_v39 = vld [vmem:[%s5023_s5 + $0x150] sm:$0xff] }
 0x179   : > { %v1196_v53 = vld [vmem:[%s5023_s5 + $0x170] sm:$0xff] }
 0x17a   : > { %v3285_v24 = vcombine.low %v1192_v39, %v1196_v53 }
 0x17b   : > { %2798 = vmatpush1.bf16.msra.mxu0 %v3481_v32  ;;  %2880 = vmatpush1.bf16.msra.mxu1 %v3483_v33  ;;  %v3286_v32 = vcombine.high %v1192_v39, %v1196_v53  ;;  %v3288_v33 = vcombine.high %v1193_v15, %v1197_v42 }
 0x17c   : > { %2799 = vmatprep.subr.bf16.mxu0 %v3490_v13  ;;  %2881 = vmatprep.subr.bf16.mxu1 %v3492_v48  ;;  %v1200_v13 = vld [vmem:[%s5023_s5 + $0x190] sm:$0xff] }
 0x17d   : > { %v1204_v48 = vld [vmem:[%s5023_s5 + $0x1b0] sm:$0xff] }
 0x17e   : > { %v3294_v23 = vcombine.high %v1200_v13, %v1204_v48  ;;  %v3293_v63 = vcombine.low %v1200_v13, %v1204_v48 }
 0x17f   : > { %2800 = vmatpush1.bf16.msra.mxu0 %v3489_v57  ;;  %2882 = vmatpush1.bf16.msra.mxu1 %v3491_v7  ;;  %v3296_v57 = vcombine.high %v1201_v26, %v1205_v54  ;;  %v1208_v7 = vld [vmem:[%s5023_s5 + $0x1d0] sm:$0xff] }
 0x180   : > { %2892 = vmatprep.subr.bf16.mxu0 %v3246_v31  ;;  %2974 = vmatprep.subr.bf16.mxu1 %v3248_v56  ;;  %v1209_v31 = vld [vmem:[%s5023_s5 + $0x1d8] sm:$0xff]  ;;  %v3302_v20 = vcombine.high %v1208_v7, %v1212_v27  ;;  %v3301_v36 = vcombine.low %v1208_v7, %v1212_v27 }
 0x181   : > { %v1213_v56 = vld [vmem:[%s5023_s5 + $0x1f8] sm:$0xff] }
 0x182   : > { %2802 = vmatmul.mubr.bf16.vlgmr.msra.gmra.mrb[4].mxu0 %v4627_v28  ;;  %2884 = vmatmul.mubr.bf16.vlgmr.msra.gmra.mrb[4].mxu1 %v4627_v28  ;;  %v3304_v43 = vcombine.high %v1209_v31, %v1213_v56  ;;  %v3303_v59 = vcombine.low %v1209_v31, %v1213_v56 }
 0x183   : > { %2893 = vmatpush1.bf16.msra.mxu0 %v3245_v45  ;;  %2924 = vmatprep.mubr.bf16.mxu0 %v4415_v6  ;;  %v1216_v45 = vld [vmem:[%s5023_s5 + $0x210] sm:$0xff] }
 0x184   : > { %2975 = vmatpush1.bf16.msra.mxu1 %v3247_v3  ;;  %3006 = vmatprep.mubr.bf16.mxu1 %v4415_v6  ;;  %v1181_v6 = vld [vmem:[%s5023_s5 + $0xf8] sm:$0xff]  ;;  %v1220_v3 = vld [vmem:[%s5023_s5 + $0x230] sm:$0xff] }
 0x185   : > { %2894 = vmatprep.subr.bf16.mxu0 %v3254_v50  ;;  %2976 = vmatprep.subr.bf16.mxu1 %v3256_v40  ;;  %v3272_v4 = vcombine.high %v1177_v62, %v1181_v6  ;;  %v3271_v37 = vcombine.low %v1177_v62, %v1181_v6  ;;  %v1217_v50 = vld [vmem:[%s5023_s5 + $0x218] sm:$0xff]  ;;  %v3310_v0 = vcombine.high %v1216_v45, %v1220_v3 }
 0x186   : > { %v1221_v40 = vld [vmem:[%s5023_s5 + $0x238] sm:$0xff]  ;;  %v3309_v34 = vcombine.low %v1216_v45, %v1220_v3 }
 0x187   : > { %2895 = vmatpush1.bf16.msra.mxu0 %v3253_v55  ;;  %v3312_v35 = vcombine.high %v1217_v50, %v1221_v40  ;;  %v1224_v55 = vld [vmem:[%s5023_s5 + $0x250] sm:$0xff]  ;;  %v3311_v51 = vcombine.low %v1217_v50, %v1221_v40 }
 0x188   : > { %2977 = vmatpush1.bf16.msra.mxu1 %v3255_v60  ;;  %2896 = vmatprep.subr.bf16.mxu0 %v3262_v49  ;;  %v1228_v60 = vld [vmem:[%s5023_s5 + $0x270] sm:$0xff]  ;;  %v1225_v49 = vld [vmem:[%s5023_s5 + $0x258] sm:$0xff] }
 0x189   : > { %2978 = vmatprep.subr.bf16.mxu1 %v3264_v41  ;;  %v1229_v41 = vld [vmem:[%s5023_s5 + $0x278] sm:$0xff]  ;;  %v3318_v62 = vcombine.high %v1224_v55, %v1228_v60  ;;  %v3317_v11 = vcombine.low %v1224_v55, %v1228_v60 }
 0x18a   : > { %v3320_v6 = vcombine.high %v1225_v49, %v1229_v41  ;;  %v3319_v14 = vcombine.low %v1225_v49, %v1229_v41 }
 0x18b   : > { %2897 = vmatpush1.bf16.msra.mxu0 %v3261_v5  ;;  %v1232_v5 = vld [vmem:[%s5023_s5 + $0x290] sm:$0xff] }
 0x18c   : > { %2979 = vmatpush1.bf16.msra.mxu1 %v3263_v8  ;;  %2898 = vmatprep.subr.bf16.mxu0 %v3270_v10  ;;  %v1236_v8 = vld [vmem:[%s5023_s5 + $0x2b0] sm:$0xff]  ;;  %v1233_v10 = vld [vmem:[%s5023_s5 + $0x298] sm:$0xff] }
 0x18d   : > { %2980 = vmatprep.subr.bf16.mxu1 %v3272_v4  ;;  %v1237_v4 = vld [vmem:[%s5023_s5 + $0x2b8] sm:$0xff]  ;;  %v3326_v52 = vcombine.high %v1232_v5, %v1236_v8  ;;  %v3325_v39 = vcombine.low %v1232_v5, %v1236_v8 }
 0x18e   : > { %v3328_v44 = vcombine.high %v1233_v10, %v1237_v4  ;;  %v3327_v53 = vcombine.low %v1233_v10, %v1237_v4 }
 0x18f   : > { %2899 = vmatpush1.bf16.msra.mxu0 %v3269_v25  ;;  %v1240_v25 = vld [vmem:[%s5023_s5 + $0x2d0] sm:$0xff] }
 0x190   : > { %2981 = vmatpush1.bf16.msra.mxu1 %v3271_v37  ;;  %2900 = vmatprep.subr.bf16.mxu0 %v3278_v46  ;;  %v1244_v37 = vld [vmem:[%s5023_s5 + $0x2f0] sm:$0xff]  ;;  %v1241_v46 = vld [vmem:[%s5023_s5 + $0x2d8] sm:$0xff] }
 0x191   : > { %2982 = vmatprep.subr.bf16.mxu1 %v3280_v47  ;;  %v1245_v47 = vld [vmem:[%s5023_s5 + $0x2f8] sm:$0xff]  ;;  %v3334_v15 = vcombine.high %v1240_v25, %v1244_v37  ;;  %v3333_v13 = vcombine.low %v1240_v25, %v1244_v37 }
 0x192   : > { %v3336_v42 = vcombine.high %v1241_v46, %v1245_v47  ;;  %v3335_v48 = vcombine.low %v1241_v46, %v1245_v47  ;;  %v1293_v25 = vld [vmem:[%s5023_s5 + $0x478] sm:$0xff]  ;;  %v1296_v47 = vld [vmem:[%s5023_s5 + $0x490] sm:$0xff] }
 0x193   : > { %2901 = vmatpush1.bf16.msra.mxu0 %v3277_v16  ;;  %v1248_v16 = vld [vmem:[%s5023_s5 + $0x310] sm:$0xff] }
 0x194   : > { %2983 = vmatpush1.bf16.msra.mxu1 %v3279_v1  ;;  %2902 = vmatprep.subr.bf16.mxu0 %v3286_v32  ;;  %v1252_v1 = vld [vmem:[%s5023_s5 + $0x330] sm:$0xff]  ;;  %v1249_v32 = vld [vmem:[%s5023_s5 + $0x318] sm:$0xff] }
 0x195   : > { %2984 = vmatprep.subr.bf16.mxu1 %v3288_v33  ;;  %v1253_v33 = vld [vmem:[%s5023_s5 + $0x338] sm:$0xff]  ;;  %v3342_v26 = vcombine.high %v1248_v16, %v1252_v1  ;;  %v3341_v7 = vcombine.low %v1248_v16, %v1252_v1 }
 0x196   : > { %v3344_v54 = vcombine.high %v1249_v32, %v1253_v33  ;;  %v3343_v27 = vcombine.low %v1249_v32, %v1253_v33 }
 0x197   : > { %2903 = vmatpush1.bf16.msra.mxu0 %v3285_v24  ;;  %v1256_v24 = vld [vmem:[%s5023_s5 + $0x350] sm:$0xff] }
 0x198   : > { %2985 = vmatpush1.bf16.msra.mxu1 %v3287_v2  ;;  %2904 = vmatprep.subr.bf16.mxu0 %v3294_v23  ;;  %v1260_v2 = vld [vmem:[%s5023_s5 + $0x370] sm:$0xff]  ;;  %v1257_v23 = vld [vmem:[%s5023_s5 + $0x358] sm:$0xff] }
 0x199   : > { %2986 = vmatprep.subr.bf16.mxu1 %v3296_v57  ;;  %v1261_v57 = vld [vmem:[%s5023_s5 + $0x378] sm:$0xff]  ;;  %v3350_v31 = vcombine.high %v1256_v24, %v1260_v2  ;;  %v3349_v45 = vcombine.low %v1256_v24, %v1260_v2 }
 0x19a   : > { %v3352_v56 = vcombine.high %v1257_v23, %v1261_v57  ;;  %v3351_v3 = vcombine.low %v1257_v23, %v1261_v57  ;;  %v1312_v23 = vld [vmem:[%s5023_s5 + $0x510] sm:$0xff] }
 0x19b   : > { %2905 = vmatpush1.bf16.msra.mxu0 %v3293_v63  ;;  %v1264_v63 = vld [vmem:[%s5023_s5 + $0x390] sm:$0xff] }
 0x19c   : > { %2987 = vmatpush1.bf16.msra.mxu1 %v3295_v58  ;;  %2906 = vmatprep.subr.bf16.mxu0 %v3302_v20  ;;  %v1268_v58 = vld [vmem:[%s5023_s5 + $0x3b0] sm:$0xff]  ;;  %v1265_v20 = vld [vmem:[%s5023_s5 + $0x398] sm:$0xff] }
 0x19d   : > { %2988 = vmatprep.subr.bf16.mxu1 %v3304_v43  ;;  %v1269_v43 = vld [vmem:[%s5023_s5 + $0x3b8] sm:$0xff]  ;;  %v3358_v50 = vcombine.high %v1264_v63, %v1268_v58  ;;  %v3357_v55 = vcombine.low %v1264_v63, %v1268_v58  ;;  %v1316_v57 = vld [vmem:[%s5023_s5 + $0x530] sm:$0xff] }
 0x19e   : > { %v3360_v40 = vcombine.high %v1265_v20, %v1269_v43  ;;  %v3359_v60 = vcombine.low %v1265_v20, %v1269_v43  ;;  %v3406_v63 = vcombine.high %v1312_v23, %v1316_v57  ;;  %v1320_v20 = vld [vmem:[%s5023_s5 + $0x550] sm:$0xff] }
 0x19f   : > { %2907 = vmatpush1.bf16.msra.mxu0 %v3301_v36  ;;  %v1272_v36 = vld [vmem:[%s5023_s5 + $0x3d0] sm:$0xff] }
 0x1a0   : > { %2989 = vmatpush1.bf16.msra.mxu1 %v3303_v59  ;;  %2908 = vmatprep.subr.bf16.mxu0 %v3310_v0  ;;  %v1276_v59 = vld [vmem:[%s5023_s5 + $0x3f0] sm:$0xff]  ;;  %v1273_v0 = vld [vmem:[%s5023_s5 + $0x3d8] sm:$0xff] }
 0x1a1   : > { %2990 = vmatprep.subr.bf16.mxu1 %v3312_v35  ;;  %v1277_v35 = vld [vmem:[%s5023_s5 + $0x3f8] sm:$0xff]  ;;  %v3366_v49 = vcombine.high %v1272_v36, %v1276_v59  ;;  %v3365_v5 = vcombine.low %v1272_v36, %v1276_v59  ;;  %v1324_v43 = vld [vmem:[%s5023_s5 + $0x570] sm:$0xff] }
 0x1a2   : > { %v3368_v41 = vcombine.high %v1273_v0, %v1277_v35  ;;  %v3367_v8 = vcombine.low %v1273_v0, %v1277_v35  ;;  %v3414_v36 = vcombine.high %v1320_v20, %v1324_v43  ;;  %v1328_v0 = vld [vmem:[%s5023_s5 + $0x590] sm:$0xff] }
 0x1a3   : > { %2909 = vmatpush1.bf16.msra.mxu0 %v3309_v34  ;;  %v1280_v34 = vld [vmem:[%s5023_s5 + $0x410] sm:$0xff] }
 0x1a4   : > { %2991 = vmatpush1.bf16.msra.mxu1 %v3311_v51  ;;  %2910 = vmatprep.subr.bf16.mxu0 %v3318_v62  ;;  %v1284_v51 = vld [vmem:[%s5023_s5 + $0x430] sm:$0xff]  ;;  %v1281_v62 = vld [vmem:[%s5023_s5 + $0x418] sm:$0xff] }
 0x1a5   : > { %2992 = vmatprep.subr.bf16.mxu1 %v3320_v6  ;;  %v1285_v6 = vld [vmem:[%s5023_s5 + $0x438] sm:$0xff]  ;;  %v3374_v10 = vcombine.high %v1280_v34, %v1284_v51  ;;  %v1332_v35 = vld [vmem:[%s5023_s5 + $0x5b0] sm:$0xff] }
 0x1a6   : > { %v3376_v4 = vcombine.high %v1281_v62, %v1285_v6  ;;  %v3375_v37 = vcombine.low %v1281_v62, %v1285_v6  ;;  %v1336_v62 = vld [vmem:[%s5023_s5 + $0x5d0] sm:$0xff] }
 0x1a7   : > { %2911 = vmatpush1.bf16.msra.mxu0 %v3317_v11  ;;  %v1288_v11 = vld [vmem:[%s5023_s5 + $0x450] sm:$0xff] }
 0x1a8   : > { %2993 = vmatpush1.bf16.msra.mxu1 %v3319_v14  ;;  %2912 = vmatprep.subr.bf16.mxu0 %v3326_v52  ;;  %v1292_v14 = vld [vmem:[%s5023_s5 + $0x470] sm:$0xff]  ;;  %v3373_v52 = vcombine.low %v1280_v34, %v1284_v51  ;;  %v3422_v34 = vcombine.high %v1328_v0, %v1332_v35 }
 0x1a9   : > { %2994 = vmatprep.subr.bf16.mxu1 %v3328_v44  ;;  %v1289_v44 = vld [vmem:[%s5023_s5 + $0x458] sm:$0xff]  ;;  %v3382_v46 = vcombine.high %v1288_v11, %v1292_v14  ;;  %v3381_v16 = vcombine.low %v1288_v11, %v1292_v14  ;;  %v1340_v6 = vld [vmem:[%s5023_s5 + $0x5f0] sm:$0xff] }
 0x1aa   : > { %v3383_v1 = vcombine.low %v1289_v44, %v1293_v25  ;;  %v3430_v11 = vcombine.high %v1336_v62, %v1340_v6 }
 0x1ab   : > { %2913 = vmatpush1.bf16.msra.mxu0 %v3325_v39  ;;  %v1300_v39 = vld [vmem:[%s5023_s5 + $0x4b0] sm:$0xff] }
 0x1ac   : > { %2995 = vmatpush1.bf16.msra.mxu1 %v3327_v53  ;;  %2914 = vmatprep.subr.bf16.mxu0 %v3334_v15  ;;  %v3384_v53 = vcombine.high %v1289_v44, %v1293_v25  ;;  %v1297_v15 = vld [vmem:[%s5023_s5 + $0x498] sm:$0xff]  ;;  %v3390_v32 = vcombine.high %v1296_v47, %v1300_v39  ;;  %v1348_v44 = vld [vmem:[%s5023_s5 + $0x630] sm:$0xff] }
 0x1ad   : > { %2996 = vmatprep.subr.bf16.mxu1 %v3336_v42  ;;  %v1301_v42 = vld [vmem:[%s5023_s5 + $0x4b8] sm:$0xff] }
 0x1ae   : > { %v3392_v33 = vcombine.high %v1297_v15, %v1301_v42  ;;  %v1345_v25 = vld [vmem:[%s5023_s5 + $0x618] sm:$0xff] }
 0x1af   : > { %2915 = vmatpush1.bf16.msra.mxu0 %v3333_v13  ;;  %v1304_v13 = vld [vmem:[%s5023_s5 + $0x4d0] sm:$0xff] }
 0x1b0   : > { %2997 = vmatpush1.bf16.msra.mxu1 %v3335_v48  ;;  %2916 = vmatprep.subr.bf16.mxu0 %v3342_v26  ;;  %v1308_v48 = vld [vmem:[%s5023_s5 + $0x4f0] sm:$0xff]  ;;  %v1309_v26 = vld [vmem:[%s5023_s5 + $0x4f8] sm:$0xff] }
 0x1b1   : > { %2998 = vmatprep.subr.bf16.mxu1 %v3344_v54  ;;  %v3391_v54 = vcombine.low %v1297_v15, %v1301_v42  ;;  %v3398_v24 = vcombine.high %v1304_v13, %v1308_v48  ;;  %v1352_v15 = vld [vmem:[%s5023_s5 + $0x650] sm:$0xff] }
 0x1b2   : > { %v1356_v42 = vld [vmem:[%s5023_s5 + $0x670] sm:$0xff] }
 0x1b3   : > { %2917 = vmatpush1.bf16.msra.mxu0 %v3341_v7  ;;  %v1313_v7 = vld [vmem:[%s5023_s5 + $0x518] sm:$0xff] }
 0x1b4   : > { %2999 = vmatpush1.bf16.msra.mxu1 %v3343_v27  ;;  %2918 = vmatprep.subr.bf16.mxu0 %v3350_v31  ;;  %v1317_v27 = vld [vmem:[%s5023_s5 + $0x538] sm:$0xff]  ;;  %v3397_v31 = vcombine.low %v1304_v13, %v1308_v48  ;;  %v3446_v13 = vcombine.high %v1352_v15, %v1356_v42 }
 0x1b5   : > { %3000 = vmatprep.subr.bf16.mxu1 %v3352_v56  ;;  %v3408_v58 = vcombine.high %v1313_v7, %v1317_v27 }
 0x1b7   : > { %2919 = vmatpush1.bf16.msra.mxu0 %v3349_v45  ;;  %v1321_v45 = vld [vmem:[%s5023_s5 + $0x558] sm:$0xff] }
 0x1b8   : > { %3001 = vmatpush1.bf16.msra.mxu1 %v3351_v3  ;;  %2920 = vmatprep.subr.bf16.mxu0 %v3358_v50  ;;  %v1325_v3 = vld [vmem:[%s5023_s5 + $0x578] sm:$0xff]  ;;  %v3405_v50 = vcombine.low %v1312_v23, %v1316_v57 }
 0x1b9   : > { %3002 = vmatprep.subr.bf16.mxu1 %v3360_v40  ;;  %v3407_v40 = vcombine.low %v1313_v7, %v1317_v27  ;;  %v3416_v59 = vcombine.high %v1321_v45, %v1325_v3  ;;  %v1368_v7 = vld [vmem:[%s5023_s5 + $0x6d0] sm:$0xff] }
 0x1ba   : > { %v1372_v27 = vld [vmem:[%s5023_s5 + $0x6f0] sm:$0xff] }
 0x1bb   : > { %2921 = vmatpush1.bf16.msra.mxu0 %v3357_v55  ;;  %v1329_v55 = vld [vmem:[%s5023_s5 + $0x598] sm:$0xff] }
 0x1bc   : > { %3003 = vmatpush1.bf16.msra.mxu1 %v3359_v60  ;;  %2922 = vmatprep.subr.bf16.mxu0 %v3366_v49  ;;  %v1333_v60 = vld [vmem:[%s5023_s5 + $0x5b8] sm:$0xff]  ;;  %v3413_v49 = vcombine.low %v1320_v20, %v1324_v43  ;;  %v3462_v20 = vcombine.high %v1368_v7, %v1372_v27 }
 0x1bd   : > { %3004 = vmatprep.subr.bf16.mxu1 %v3368_v41  ;;  %v3415_v41 = vcombine.low %v1321_v45, %v1325_v3  ;;  %v3424_v51 = vcombine.high %v1329_v55, %v1333_v60  ;;  %v1376_v45 = vld [vmem:[%s5023_s5 + $0x710] sm:$0xff] }
 0x1be   : > { %v1380_v3 = vld [vmem:[%s5023_s5 + $0x730] sm:$0xff] }
 0x1bf   : > { %2923 = vmatpush1.bf16.msra.mxu0 %v3365_v5  ;;  %v1337_v5 = vld [vmem:[%s5023_s5 + $0x5d8] sm:$0xff] }
 0x1c0   : > { %3005 = vmatpush1.bf16.msra.mxu1 %v3367_v8  ;;  %2933 = vmatprep.subr.bf16.mxu0 %v3374_v10  ;;  %v1341_v8 = vld [vmem:[%s5023_s5 + $0x5f8] sm:$0xff]  ;;  %v3421_v10 = vcombine.low %v1328_v0, %v1332_v35  ;;  %v3470_v0 = vcombine.high %v1376_v45, %v1380_v3 }
 0x1c1   : > { %3015 = vmatprep.subr.bf16.mxu1 %v3376_v4  ;;  %v3423_v4 = vcombine.low %v1329_v55, %v1333_v60  ;;  %v3432_v14 = vcombine.high %v1337_v5, %v1341_v8  ;;  %v1384_v55 = vld [vmem:[%s5023_s5 + $0x750] sm:$0xff] }
 0x1c2   : > { %2925 = vmatmul.mubr.bf16.vlgmr.msra.gmra.mrb[8].mxu0 %v4417_v9  ;;  %v1388_v60 = vld [vmem:[%s5023_s5 + $0x770] sm:$0xff] }
 0x1c3   : > { %3007 = vmatmul.mubr.bf16.vlgmr.msra.gmra.mrb[8].mxu1 %v4417_v9  ;;  %2934 = vmatpush1.bf16.msra.mxu0 %v3373_v52  ;;  %v1305_v9 = vld [vmem:[%s5023_s5 + $0x4d8] sm:$0xff]  ;;  %v1344_v52 = vld [vmem:[%s5023_s5 + $0x610] sm:$0xff] }
 0x1c4   : > { %2965 = vmatprep.mubr.bf16.mxu0 %v4465_v61  ;;  %3016 = vmatpush1.bf16.msra.mxu1 %v3375_v37  ;;  %v3400_v2 = vcombine.high %v1305_v9, %v1309_v26  ;;  %v3399_v56 = vcombine.low %v1305_v9, %v1309_v26  ;;  %v1349_v37 = vld [vmem:[%s5023_s5 + $0x638] sm:$0xff]  ;;  %v1360_v9 = vld [vmem:[%s5023_s5 + $0x690] sm:$0xff] }
 0x1c5   : > { %3047 = vmatprep.mubr.bf16.mxu1 %v4465_v61  ;;  %2935 = vmatprep.subr.bf16.mxu0 %v3382_v46  ;;  %v3389_v61 = vcombine.low %v1296_v47, %v1300_v39  ;;  %v3429_v46 = vcombine.low %v1336_v62, %v1340_v6  ;;  %v3431_v47 = vcombine.low %v1337_v5, %v1341_v8  ;;  %v1364_v26 = vld [vmem:[%s5023_s5 + $0x6b0] sm:$0xff] }
 0x1c6   : > { %3017 = vmatprep.subr.bf16.mxu1 %v3384_v53  ;;  %v3438_v39 = vcombine.high %v1344_v52, %v1348_v44  ;;  %v3440_v53 = vcombine.high %v1345_v25, %v1349_v37  ;;  %v3454_v23 = vcombine.high %v1360_v9, %v1364_v26  ;;  %v3478_v62 = vcombine.high %v1384_v55, %v1388_v60  ;;  %v1392_v5 = vld [vmem:[%s5023_s5 + $0x790] sm:$0xff] }
 0x1c7   : > { %2936 = vmatpush1.bf16.msra.mxu0 %v3381_v16  ;;  %v1353_v16 = vld [vmem:[%s5023_s5 + $0x658] sm:$0xff]  ;;  %v1396_v8 = vld [vmem:[%s5023_s5 + $0x7b0] sm:$0xff] }
 0x1c8   : > { %3018 = vmatpush1.bf16.msra.mxu1 %v3383_v1  ;;  %2937 = vmatprep.subr.bf16.mxu0 %v3390_v32  ;;  %v1357_v1 = vld [vmem:[%s5023_s5 + $0x678] sm:$0xff]  ;;  %v3437_v32 = vcombine.low %v1344_v52, %v1348_v44  ;;  %v3486_v52 = vcombine.high %v1392_v5, %v1396_v8 }
 0x1c9   : > { %3019 = vmatprep.subr.bf16.mxu1 %v3392_v33  ;;  %v3439_v33 = vcombine.low %v1345_v25, %v1349_v37  ;;  %v3448_v48 = vcombine.high %v1353_v16, %v1357_v1  ;;  %v1400_v25 = vld [vmem:[%s5023_s5 + $0x7d0] sm:$0xff] }
 0x1ca   : > { %v1404_v37 = vld [vmem:[%s5023_s5 + $0x7f0] sm:$0xff] }
 0x1cb   : > { %2938 = vmatpush1.bf16.msra.mxu0 %v3389_v61  ;;  %v1361_v61 = vld [vmem:[%s5023_s5 + $0x698] sm:$0xff] }
 0x1cc   : > { %3020 = vmatpush1.bf16.msra.mxu1 %v3391_v54  ;;  %2939 = vmatprep.subr.bf16.mxu0 %v3398_v24  ;;  %v1365_v54 = vld [vmem:[%s5023_s5 + $0x6b8] sm:$0xff]  ;;  %v3445_v24 = vcombine.low %v1352_v15, %v1356_v42  ;;  %v3494_v15 = vcombine.high %v1400_v25, %v1404_v37 }
 0x1cd   : > { %3021 = vmatprep.subr.bf16.mxu1 %v3400_v2  ;;  %v3447_v2 = vcombine.low %v1353_v16, %v1357_v1  ;;  %v3456_v57 = vcombine.high %v1361_v61, %v1365_v54  ;;  %v3493_v16 = vcombine.low %v1400_v25, %v1404_v37 }
 0x1cf   : > { %2940 = vmatpush1.bf16.msra.mxu0 %v3397_v31  ;;  %v1369_v31 = vld [vmem:[%s5023_s5 + $0x6d8] sm:$0xff] }
 0x1d0   : > { %3022 = vmatpush1.bf16.msra.mxu1 %v3399_v56  ;;  %2941 = vmatprep.subr.bf16.mxu0 %v3406_v63  ;;  %v1373_v56 = vld [vmem:[%s5023_s5 + $0x6f8] sm:$0xff]  ;;  %v3453_v63 = vcombine.low %v1360_v9, %v1364_v26 }
 0x1d1   : > { %3023 = vmatprep.subr.bf16.mxu1 %v3408_v58  ;;  %v3455_v58 = vcombine.low %v1361_v61, %v1365_v54  ;;  %v3464_v43 = vcombine.high %v1369_v31, %v1373_v56 }
 0x1d3   : > { %2942 = vmatpush1.bf16.msra.mxu0 %v3405_v50  ;;  %v1377_v50 = vld [vmem:[%s5023_s5 + $0x718] sm:$0xff] }
 0x1d4   : > { %3024 = vmatpush1.bf16.msra.mxu1 %v3407_v40  ;;  %2943 = vmatprep.subr.bf16.mxu0 %v3414_v36  ;;  %v1381_v40 = vld [vmem:[%s5023_s5 + $0x738] sm:$0xff]  ;;  %v3461_v36 = vcombine.low %v1368_v7, %v1372_v27 }
 0x1d5   : > { %3025 = vmatprep.subr.bf16.mxu1 %v3416_v59  ;;  %v3463_v59 = vcombine.low %v1369_v31, %v1373_v56  ;;  %v3472_v35 = vcombine.high %v1377_v50, %v1381_v40 }
 0x1d7   : > { %2944 = vmatpush1.bf16.msra.mxu0 %v3413_v49  ;;  %v1385_v49 = vld [vmem:[%s5023_s5 + $0x758] sm:$0xff] }
 0x1d8   : > { %3026 = vmatpush1.bf16.msra.mxu1 %v3415_v41  ;;  %2945 = vmatprep.subr.bf16.mxu0 %v3422_v34  ;;  %v1389_v41 = vld [vmem:[%s5023_s5 + $0x778] sm:$0xff]  ;;  %v3469_v34 = vcombine.low %v1376_v45, %v1380_v3 }
 0x1d9   : > { %3027 = vmatprep.subr.bf16.mxu1 %v3424_v51  ;;  %v3471_v51 = vcombine.low %v1377_v50, %v1381_v40  ;;  %v3480_v6 = vcombine.high %v1385_v49, %v1389_v41 }
 0x1db   : > { %2946 = vmatpush1.bf16.msra.mxu0 %v3421_v10  ;;  %v1393_v10 = vld [vmem:[%s5023_s5 + $0x798] sm:$0xff] }
 0x1dc   : > { %3028 = vmatpush1.bf16.msra.mxu1 %v3423_v4  ;;  %2947 = vmatprep.subr.bf16.mxu0 %v3430_v11  ;;  %v1397_v4 = vld [vmem:[%s5023_s5 + $0x7b8] sm:$0xff]  ;;  %v3477_v11 = vcombine.low %v1384_v55, %v1388_v60 }
 0x1dd   : > { %3029 = vmatprep.subr.bf16.mxu1 %v3432_v14  ;;  %v3479_v14 = vcombine.low %v1385_v49, %v1389_v41  ;;  %v3488_v44 = vcombine.high %v1393_v10, %v1397_v4 }
 0x1df   : > { %2948 = vmatpush1.bf16.msra.mxu0 %v3429_v46  ;;  %v1401_v46 = vld [vmem:[%s5023_s5 + $0x7d8] sm:$0xff] }
 0x1e0   : > { %3030 = vmatpush1.bf16.msra.mxu1 %v3431_v47  ;;  %2949 = vmatprep.subr.bf16.mxu0 %v3438_v39  ;;  %v1405_v47 = vld [vmem:[%s5023_s5 + $0x7f8] sm:$0xff]  ;;  %v3485_v39 = vcombine.low %v1392_v5, %v1396_v8 }
 0x1e1   : > { %3031 = vmatprep.subr.bf16.mxu1 %v3440_v53  ;;  %v3487_v53 = vcombine.low %v1393_v10, %v1397_v4  ;;  %v3496_v42 = vcombine.high %v1401_v46, %v1405_v47  ;;  %v3495_v1 = vcombine.low %v1401_v46, %v1405_v47 }
 0x1e3   : > { %2950 = vmatpush1.bf16.msra.mxu0 %v3437_v32  ;;  %v1406_v32 = vld [vmem:[%s5024_s6] sm:$0xff] }
 0x1e4   : > { %3032 = vmatpush1.bf16.msra.mxu1 %v3439_v33  ;;  %2951 = vmatprep.subr.bf16.mxu0 %v3446_v13  ;;  %v3637_v33 = vmov 1966171168   ;;  %v2699_v9 = vrot.slane %v1406_v32, %v3748_v19  ;;  %v2695_v26 = vrot.slane %v1406_v32, %v3745_v18  ;;  %v2703_v54 = vrot.slane %v1406_v32, %v3754_v21 }
 0x1e5   : > { %3033 = vmatprep.subr.bf16.mxu1 %v3448_v48  ;;  %v3069_v13 = vunpack.c.l.s4 %v3637_v33  ;;  %v2691_v48 = vrot.slane %v1406_v32, %v3742_v17  ;;  %v2707_v21 = vrot.slane %v1406_v32, %v3757_v22  ;;  %v2715_v50 = vrot.slane %v1406_v32, %v3779_v30 }
 0x1e6   : > { %v2711_v40 = vrot.slane %v1406_v32, %v3776_v29 }
 0x1e7   : > { %2952 = vmatpush1.bf16.msra.mxu0 %v3445_v24  ;;  %v3070_v61 = vunpack.c.0.s8 %v3069_v13 }
 0x1e8   : > { %3034 = vmatpush1.bf16.msra.mxu1 %v3447_v2  ;;  %2953 = vmatprep.subr.bf16.mxu0 %v3454_v23 }
 0x1e9   : > { %3035 = vmatprep.subr.bf16.mxu1 %v3456_v57  ;;  %v3073_v31 = vsub.s32 %v3070_v61, %v3722_v12 }
 0x1eb   : > { %2954 = vmatpush1.bf16.msra.mxu0 %v3453_v63 }
 0x1ec   : > { %3036 = vmatpush1.bf16.msra.mxu1 %v3455_v58  ;;  %2955 = vmatprep.subr.bf16.mxu0 %v3462_v20 }
 0x1ed   : > { %3037 = vmatprep.subr.bf16.mxu1 %v3464_v43 }
 0x1ef   : > { %2956 = vmatpush1.bf16.msra.mxu0 %v3461_v36  ;;  %v2719_v36 = vrot.slane %v1406_v32, %v3797_v38 }
 0x1f0   : > { %3038 = vmatpush1.bf16.msra.mxu1 %v3463_v59  ;;  %2957 = vmatprep.subr.bf16.mxu0 %v3470_v0 }
 0x1f1   : > { %3039 = vmatprep.subr.bf16.mxu1 %v3472_v35 }
 0x1f3   : > { %2958 = vmatpush1.bf16.msra.mxu0 %v3469_v34 }
 0x1f4   : > { %3040 = vmatpush1.bf16.msra.mxu1 %v3471_v51  ;;  %2959 = vmatprep.subr.bf16.mxu0 %v3478_v62 }
 0x1f5   : > { %3041 = vmatprep.subr.bf16.mxu1 %v3480_v6 }
 0x1f7   : > { %2960 = vmatpush1.bf16.msra.mxu0 %v3477_v11 }
 0x1f8   : > { %3042 = vmatpush1.bf16.msra.mxu1 %v3479_v14  ;;  %2961 = vmatprep.subr.bf16.mxu0 %v3486_v52 }
 0x1f9   : > { %3043 = vmatprep.subr.bf16.mxu1 %v3488_v44 }
 0x1fb   : > { %2962 = vmatpush1.bf16.msra.mxu0 %v3485_v39 }
 0x1fc   : > { %3044 = vmatpush1.bf16.msra.mxu1 %v3487_v53  ;;  %2963 = vmatprep.subr.bf16.mxu0 %v3494_v15 }
 0x1fd   : > { %3045 = vmatprep.subr.bf16.mxu1 %v3496_v42 }
 0x1ff   : > { %2964 = vmatpush1.bf16.msra.mxu0 %v3493_v16 }
 0x200   : > { %3046 = vmatpush1.bf16.msra.mxu1 %v3495_v1 }
 0x202   : > { %2966 = vmatmul.mubr.bf16.vlgmr.msra.gmra.mrb[8].mxu0 %v4627_v28 }
 0x203   : > { %3048 = vmatmul.mubr.bf16.vlgmr.msra.gmra.mrb[8].mxu1 %v4627_v28 }
 0x255   : > { %v2803_v24 = vpop.f32.mrb[4].mxu0  ;;  %v2885_v2 = vpop.f32.mrb[4].mxu1 }
 0x256   : > { %v3499_v23 = vadd.f32 %v2803_v24, %v2691_v48  ;;  %v3501_v57 = vadd.f32 %v2885_v2, %v2699_v9  ;;  %v2805_v28 = vpop.f32.mrb[5].mxu0  ;;  %v2887_v7 = vpop.f32.mrb[5].mxu1 }
 0x257   : > { %v3500_v27 = vadd.f32 %v2805_v28, %v2695_v26  ;;  %v3502_v56 = vadd.f32 %v2887_v7, %v2703_v54  ;;  %v2807_v63 = vpop.f32.mrb[6].mxu0  ;;  %v2889_v58 = vpop.f32.mrb[6].mxu1 }
 0x258   : > { %v2808_v17 = vpop.f32.mrb[7].mxu0  ;;  %v2890_v20 = vpop.f32.mrb[7].mxu1 }
 0x259   : > { %v3064_v19 = vcombine.low %v3499_v23, %v3500_v27  ;;  %v3065_v43 = vcombine.low %v3501_v57, %v3502_v56 }
 0x25b   : > { %v3074_v18 = vrot.slane %v3064_v19, %v3073_v31  ;;  %v3081_v45 = vrot.slane %v3065_v43, %v3073_v31 }
 0x25d   : > { %v3096_v3 = vcombine.low %v3074_v18, %v3081_v45 }
 0x25f   : > { %v3104_v38 = vrot.slane %v3096_v3, %v3073_v31 }
 0x2d5   : > { %v2967_v59 = vpop.f32.mrb[8].mxu0 }
 0x2d6   : > { %v3503_v12 = vadd.f32 %v2967_v59, %v2707_v21  ;;  %v3049_v0 = vpop.f32.mrb[8].mxu1  ;;  %v2969_v35 = vpop.f32.mrb[9].mxu0 }
 0x2d7   : > { %v3505_v55 = vadd.f32 %v3049_v0, %v2715_v50  ;;  %v3504_v60 = vadd.f32 %v2969_v35, %v2711_v40  ;;  %v3051_v49 = vpop.f32.mrb[9].mxu1  ;;  %v2971_v41 = vpop.f32.mrb[10].mxu0 }
 0x2d8   : > { %v3506_v34 = vadd.f32 %v3051_v49, %v2719_v36  ;;  %v3053_v51 = vpop.f32.mrb[10].mxu1  ;;  %v2972_v62 = vpop.f32.mrb[11].mxu0 }
 0x2d9   : > { %v3066_v6 = vcombine.low %v3503_v12, %v3504_v60  ;;  %v3054_v22 = vpop.f32.mrb[11].mxu1 }
 0x2da   : > { %v3067_v5 = vcombine.low %v3505_v55, %v3506_v34 }
 0x2db   : > { %v3088_v30 = vrot.slane %v3066_v6, %v3073_v31 }
 0x2dc   : > { %v3095_v8 = vrot.slane %v3067_v5, %v3073_v31 }
 0x2de   : > { %v3097_v29 = vcombine.low %v3088_v30, %v3095_v8 }
 0x2e0   : > { %v3111_v10 = vrot.slane %v3097_v29, %v3073_v31 }
 0x2e2   : > { %v3112_v4 = vcombine.low %v3104_v38, %v3111_v10 }
 0x2e4   : > { %3114 = vst [vmem:[%s276_s13] sm:$0xff] %v3112_v4 }
 0x2e5 PF: > { %s17_s24 = sadd.s32 1, %s3635_s24  }
 0x2e6   : > { %p14_p4 = scmp.ge.s32.totalorder %s17_s24, 4  }
 0x2e8   :  { %16 = sbr.rel (!%p14_p4) target bundleno = 1 (0x1), region = 78 }

</bundles_post_ra>
